<compile_context>
chip_gen: v6e
topology: v6e:2x2x1
jax: 0.10.0
libtpu: 0.0.40
codegen_flags: <defaults>
</compile_context>

<pallas_src>
import functools

import jax
import jax.numpy as jnp
import numpy as np
from jax import lax
from jax.experimental import pallas as pl
from jax.experimental.pallas import tpu as pltpu


# ----------------------------------------------------------------------------
# Generation-aware tiling limits (v5e/v6e: 128 MiB VMEM, v7x: 64 MiB).
# ----------------------------------------------------------------------------
def _detect_vmem_bytes():
    try:
        info = pltpu.get_tpu_info()
        for name in ("vmem_capacity_bytes", "vmem_bytes", "vmem_size_bytes"):
            v = getattr(info, name, None)
            if v:
                return int(v)
    except Exception:
        pass
    return 64 * 1024 * 1024            # conservative default (v7x-sized)


_VMEM_TOTAL = _detect_vmem_bytes()
if _VMEM_TOTAL >= 100 * 1024 * 1024:   # v5e / v6e class parts
    TN_MAX = 2048
    VMEM_BUDGET = 80 * 1024 * 1024
else:                                   # v7x class parts
    TN_MAX = 1024
    VMEM_BUDGET = 40 * 1024 * 1024
TARGET_STEPS = 4                        # aim for >=4 (even) grid steps along M


def _round_up(x, m):
    return ((x + m - 1) // m) * m


def _pick_tile(M, col_bytes_fn):
    """Lane tile (multiple of 128) and grid-step count along the flat axis M."""
    tn = max(128, _round_up(pl.cdiv(M, TARGET_STEPS), 128))
    tn = min(tn, TN_MAX)
    while tn > 128 and 2 * tn * col_bytes_fn(tn) > VMEM_BUDGET:
        tn -= 128
    nsteps = pl.cdiv(M, tn)
    if nsteps > 1 and nsteps % 2 == 1:
        nsteps += 1                     # keep the parallel grid even (v7x megacore)
    return tn, nsteps


# ----------------------------------------------------------------------------
# Fused conv kernel: per grid step it assembles a haloed window of each source
# in VMEM and accumulates, per output row-group, one small MXU matmul per tap:
#     out[rows, tn] = act( sum_t W_t @ (mask_t * shift_t(window)) + bias )
# ----------------------------------------------------------------------------
def _fused_conv_kernel(*refs, groups, src_nblocks, cur_offs, tn, relu):
    w_ref, b_ref, m_ref = refs[0], refs[1], refs[2]
    n_src_refs = sum(src_nblocks)
    src_refs = refs[3:3 + n_src_refs]
    o_ref = refs[3 + n_src_refs]

    # Haloed ("wide") view of every source: concat of its shifted blocks.
    wides = []
    k = 0
    for nb in src_nblocks:
        blocks = [src_refs[k + j][...] for j in range(nb)]
        k += nb
        wides.append(blocks[0] if nb == 1 else jnp.concatenate(blocks, axis=1))

    masks = m_ref[...]                  # (NM, tn), values 0.0 / 1.0
    w_all = w_ref[...]
    b_all = b_ref[...]

    outs = []
    for (row0, rows, taps) in groups:
        acc = jnp.zeros((rows, tn), jnp.float32)
        for (s, sr0, srows, wc0, delta, mids) in taps:
            off = cur_offs[s] + delta
            patch = wides[s][sr0:sr0 + srows, off:off + tn]
            for mi in mids:             # border masks (zero out-of-image taps)
                patch = patch * masks[mi:mi + 1, :]
            wblk = w_all[row0:row0 + rows, wc0:wc0 + srows]
            acc = acc + jnp.dot(wblk, patch, preferred_element_type=jnp.float32)
        acc = acc + b_all[row0:row0 + rows, :]
        if relu:
            acc = jnp.maximum(acc, 0.0)
        outs.append(acc)
    out = outs[0] if len(outs) == 1 else jnp.concatenate(outs, axis=0)
    o_ref[...] = out.astype(o_ref.dtype)


def _run_fused_layer(sources, weight, bias, mask_rows, groups, M, relu,
                     compute_dtype):
    """sources : list of (Cs, M) arrays (compute dtype), flat output coords on lanes.
       weight  : (WR, WC) compute dtype (BN scale folded).
       bias    : (WR, 1) float32 (folded BN shift).
       mask_rows: (NM, M) compute dtype, border masks.
       groups  : list of (row0, rows, taps); tap = (src, srow0, srows, wcol0,
                 delta, mask_ids).  Returns (WR, M) in compute dtype."""
    WR, WC = weight.shape
    NM = mask_rows.shape[0]
    cdt = jnp.dtype(compute_dtype)

    n_src = len(sources)
    dmin = [0] * n_src
    dmax = [0] * n_src
    for (_, _, taps) in groups:
        for (s, _, _, _, d, _) in taps:
            dmin[s] = min(dmin[s], d)
            dmax[s] = max(dmax[s], d)

    def col_bytes(tn):
        b = NM * cdt.itemsize + WR * cdt.itemsize
        for s, src in enumerate(sources):
            nb = 1 + pl.cdiv(max(0, -dmin[s]), tn) + pl.cdiv(max(0, dmax[s]), tn)
            b += nb * src.shape[0] * cdt.itemsize
        return b

    tn, nsteps = _pick_tile(M, col_bytes)
    Mp = nsteps * tn

    nprev = [int(pl.cdiv(max(0, -dmin[s]), tn)) for s in range(n_src)]
    nnext = [int(pl.cdiv(max(0, dmax[s]), tn)) for s in range(n_src)]
    src_nblocks = tuple(nprev[s] + 1 + nnext[s] for s in range(n_src))
    cur_offs = tuple(nprev[s] * tn for s in range(n_src))

    # Zero-pad sources so every haloed block index is in range and all
    # out-of-image reads land on zeros (they are masked anyway).
    padded = [jnp.pad(src, ((0, 0), (nprev[s] * tn, Mp + nnext[s] * tn - M)))
              for s, src in enumerate(sources)]
    masks_p = jnp.pad(mask_rows, ((0, 0), (0, Mp - M)))

    in_specs = [
        pl.BlockSpec((WR, WC), lambda i: (0, 0)),    # folded weights (resident)
        pl.BlockSpec((WR, 1), lambda i: (0, 0)),     # folded BN bias
        pl.BlockSpec((NM, tn), lambda i: (0, i)),    # border masks
    ]
    operands = [weight, bias, masks_p]
    for s in range(n_src):
        Cs = padded[s].shape[0]
        for j in range(src_nblocks[s]):
            in_specs.append(pl.BlockSpec((Cs, tn), lambda i, j=j: (0, i + j)))
            operands.append(padded[s])

    kernel = functools.partial(
        _fused_conv_kernel, groups=groups, src_nblocks=src_nblocks,
        cur_offs=cur_offs, tn=tn, relu=relu)

    need = 2 * tn * col_bytes(tn) + WR * WC * cdt.itemsize + (2 << 20)
    vmem_limit = int(min(VMEM_BUDGET, max(32 * 2 ** 20, 2 * need)))

    out = pl.pallas_call(
        kernel,
        out_shape=jax.ShapeDtypeStruct((WR, Mp), compute_dtype),
        grid=(nsteps,),
        in_specs=in_specs,
        out_specs=pl.BlockSpec((WR, tn), lambda i: (0, i)),
        compiler_params=pltpu.CompilerParams(
            dimension_semantics=("parallel",),
            vmem_limit_bytes=vmem_limit),
    )(*operands)
    return out[:, :M]


# ----------------------------------------------------------------------------
# Border masks over the (flattened) output coordinate space.
# ----------------------------------------------------------------------------
def _coord_masks(N, D, H, W, specs, dtype):
    M = N * D * H * W
    idx = jnp.arange(M, dtype=jnp.int32)
    w_ = idx % W
    h_ = (idx // W) % H
    d_ = (idx // (W * H)) % D
    coord = {'d': (d_, D), 'h': (h_, H), 'w': (w_, W)}
    rows = []
    for (dim, a) in specs:
        c, E = coord[dim]
        rows.append(((c + a >= 0) & (c + a < E)).astype(dtype))
    if not rows:
        rows = [jnp.ones((M,), dtype)]
    return jnp.stack(rows, axis=0)


# ----------------------------------------------------------------------------
# Conv3d(3x3x3, pad=1, stride 1 or 2) + folded BN (+ ReLU).
# Activations are channel-first: (C, N, D, H, W).
# ----------------------------------------------------------------------------
def conv3d_bn(x, layer, *, stride, relu, compute_dtype):
    w_t = layer['w']                               # (Cout, Cin, 3, 3, 3)
    Cout, Cin = int(w_t.shape[0]), int(w_t.shape[1])
    _, N, D, H, W = x.shape
    cd = compute_dtype

    if stride == 1:
        Do, Ho, Wo = D, H, W
        src = x.reshape(Cin, N * D * H * W).astype(cd)

        def tap_src(kd, kh, kw):
            return 0, kd - 1, kh - 1, kw - 1
    else:
        assert stride == 2 and D % 2 == 0 and H % 2 == 0 and W % 2 == 0, \
            "stride-2 path assumes even spatial dims"
        # TODO(synk): odd spatial dims would need per-phase extents.
        Do, Ho, Wo = D // 2, H // 2, W // 2
        xs = x.astype(cd).reshape(Cin, N, Do, 2, Ho, 2, Wo, 2)
        xs = jnp.transpose(xs, (3, 5, 7, 0, 1, 2, 4, 6))   # phase-split (1x pass)
        src = xs.reshape(8 * Cin, N * Do * Ho * Wo)

        def tap_src(kd, kh, kw):
            pd = (kd - 1) % 2
            ad = (kd - 1 - pd) // 2
            ph = (kh - 1) % 2
            ah = (kh - 1 - ph) // 2
            pw = (kw - 1) % 2
            aw = (kw - 1 - pw) // 2
            return ((pd * 2 + ph) * 2 + pw) * Cin, ad, ah, aw

    M = N * Do * Ho * Wo
    scale = layer['scale'].astype(jnp.float32)
    mask_specs, mask_idx = [], {}
    taps, wcols = [], []
    wcol0 = 0
    for kd in range(3):
        for kh in range(3):
            for kw in range(3):
                row0, ad, ah, aw = tap_src(kd, kh, kw)
                mids = []
                for dim, a in (('d', ad), ('h', ah), ('w', aw)):
                    if a != 0:
                        if (dim, a) not in mask_idx:
                            mask_idx[(dim, a)] = len(mask_specs)
                            mask_specs.append((dim, a))
                        mids.append(mask_idx[(dim, a)])
                delta = ad * (Ho * Wo) + ah * Wo + aw
                taps.append((0, row0, Cin, wcol0, delta, tuple(mids)))
                wcols.append(w_t[:, :, kd, kh, kw].astype(jnp.float32)
                             * scale[:, None])
                wcol0 += Cin

    weight = jnp.concatenate(wcols, axis=1).astype(cd)       # (Cout, 27*Cin)
    bias = layer['shift'].reshape(Cout, 1).astype(jnp.float32)
    masks = _coord_masks(N, Do, Ho, Wo, mask_specs, cd)
    groups = [(0, Cout, taps)]
    y = _run_fused_layer([src], weight, bias, masks, groups, M, relu, cd)
    return y.reshape(Cout, N, Do, Ho, Wo)


# ----------------------------------------------------------------------------
# ConvTranspose3d(3, s=2, p=1, op=1)+BN fused with redir(1x1x1 conv+BN) + ReLU.
# 8 output parities stacked on the output sublane axis in ONE pallas_call.
#   even output index : y[2m]   = x[m]   * w[..1..]
#   odd  output index : y[2m+1] = x[m+1] * w[..0..] + x[m] * w[..2..]
# ----------------------------------------------------------------------------
_PTAPS = {0: ((0, 1),), 1: ((1, 0), (0, 2))}   # parity -> ((input shift, kernel idx), ...)


def deconv3d_bn_redir(x, deconv_layer, redir_x, redir_layer, *, compute_dtype):
    w_t = deconv_layer['w']                        # (Cin, Cout, 3, 3, 3)
    Cin, Cout = int(w_t.shape[0]), int(w_t.shape[1])
    _, N, D, H, W = x.shape
    wr = redir_layer['w']                          # (Cout, Cr, 1, 1, 1)
    Cr = int(wr.shape[1])
    assert int(wr.shape[0]) == Cout
    assert redir_x.shape[2:] == (2 * D, 2 * H, 2 * W)
    cd = compute_dtype
    M = N * D * H * W

    src_main = x.reshape(Cin, M).astype(cd)
    rs = redir_x.astype(cd).reshape(Cr, N, D, 2, H, 2, W, 2)
    rs = jnp.transpose(rs, (3, 5, 7, 0, 1, 2, 4, 6))        # phase-split redir
    src_redir = rs.reshape(8 * Cr, M)

    sc_d = deconv_layer['scale'].astype(jnp.float32)
    sc_r = redir_layer['scale'].astype(jnp.float32)
    bias1 = (deconv_layer['shift'] + redir_layer['shift']).astype(jnp.float32)
    wr2 = wr[:, :, 0, 0, 0].astype(jnp.float32) * sc_r[:, None]   # (Cout, Cr)

    WR = 8 * Cout
    mask_specs, mask_idx = [], {}

    def mid(dim, a):
        if a == 0:
            return None
        if (dim, a) not in mask_idx:
            mask_idx[(dim, a)] = len(mask_specs)
            mask_specs.append((dim, a))
        return mask_idx[(dim, a)]

    groups, col_blocks = [], []
    wcol0 = 0
    for pd in range(2):
        for ph in range(2):
            for pw in range(2):
                p = (pd * 2 + ph) * 2 + pw
                row0 = p * Cout
                taps = []
                for sd, kd in _PTAPS[pd]:
                    for sh, kh in _PTAPS[ph]:
                        for sw, kw in _PTAPS[pw]:
                            mids = tuple(m for m in (mid('d', sd), mid('h', sh),
                                                     mid('w', sw)) if m is not None)
                            delta = sd * (H * W) + sh * W + sw
                            taps.append((0, 0, Cin, wcol0, delta, mids))
                            blk = (w_t[:, :, kd, kh, kw].T.astype(jnp.float32)
                                   * sc_d[:, None])                  # (Cout, Cin)
                            col_blocks.append(
                                jnp.pad(blk, ((row0, WR - row0 - Cout), (0, 0))))
                            wcol0 += Cin
                # redir 1x1x1 conv rides along as one extra tap per phase.
                taps.append((1, p * Cr, Cr, wcol0, 0, ()))
                col_blocks.append(jnp.pad(wr2, ((row0, WR - row0 - Cout), (0, 0))))
                wcol0 += Cr
                groups.append((row0, Cout, taps))

    weight = jnp.concatenate(col_blocks, axis=1).astype(cd)          # (8*Cout, WC)
    bias = jnp.tile(bias1, 8).reshape(WR, 1)
    masks = _coord_masks(N, D, H, W, mask_specs, cd)
    y = _run_fused_layer([src_main, src_redir], weight, bias, masks, groups,
                         M, True, cd)                                # (8*Cout, M)

    # Interleave the 8 output parities -> (Cout, N, 2D, 2H, 2W).
    yp = y.reshape(2, 2, 2, Cout, N, D, H, W)
    out = jnp.transpose(yp, (3, 4, 5, 0, 6, 1, 7, 2)).reshape(
        Cout, N, 2 * D, 2 * H, 2 * W)
    return out


# ----------------------------------------------------------------------------
# hourglass forward (channel-first activations between layers).
# ----------------------------------------------------------------------------
def hourglass_forward(x_ncdhw, params, *, compute_dtype=jnp.bfloat16):
    x = jnp.transpose(x_ncdhw, (1, 0, 2, 3, 4)).astype(jnp.float32)  # (C,N,D,H,W)
    cd = compute_dtype
    c1 = conv3d_bn(x, params['conv1'], stride=2, relu=True, compute_dtype=cd)
    c2 = conv3d_bn(c1, params['conv2'], stride=1, relu=True, compute_dtype=cd)
    c3 = conv3d_bn(c2, params['conv3'], stride=2, relu=True, compute_dtype=cd)
    c4 = conv3d_bn(c3, params['conv4'], stride=1, relu=True, compute_dtype=cd)
    c5 = deconv3d_bn_redir(c4, params['conv5'], c2, params['redir2'],
                           compute_dtype=cd)
    c6 = deconv3d_bn_redir(c5, params['conv6'], x, params['redir1'],
                           compute_dtype=cd)
    return jnp.transpose(c6, (1, 0, 2, 3, 4)).astype(jnp.float32)    # NCDHW


# ----------------------------------------------------------------------------
# Deterministic synthetic parameters (eval-mode BN folded from running stats).
# ----------------------------------------------------------------------------
def _bn_fold(key, c):
    k1, k2, k3, k4 = jax.random.split(key, 4)
    gamma = 1.0 + 0.1 * jax.random.normal(k1, (c,), jnp.float32)
    beta = 0.1 * jax.random.normal(k2, (c,), jnp.float32)
    mean = 0.1 * jax.random.normal(k3, (c,), jnp.float32)
    var = 1.0 + 0.1 * jnp.abs(jax.random.normal(k4, (c,), jnp.float32))
    scale = gamma / jnp.sqrt(var + 1e-5)
    shift = beta - mean * scale
    return scale, shift


def make_params(C, key):
    specs = {
        'conv1': ((2 * C, C, 3, 3, 3), 2 * C),
        'conv2': ((2 * C, 2 * C, 3, 3, 3), 2 * C),
        'conv3': ((4 * C, 2 * C, 3, 3, 3), 4 * C),
        'conv4': ((4 * C, 4 * C, 3, 3, 3), 4 * C),
        'conv5': ((4 * C, 2 * C, 3, 3, 3), 2 * C),   # ConvTranspose3d (Cin,Cout,k,k,k)
        'conv6': ((2 * C, C, 3, 3, 3), C),           # ConvTranspose3d
        'redir1': ((C, C, 1, 1, 1), C),
        'redir2': ((2 * C, 2 * C, 1, 1, 1), 2 * C),
    }
    keys = jax.random.split(key, len(specs))
    params = {}
    for i, (name, (shape, cout)) in enumerate(specs.items()):
        kw_, kb_ = jax.random.split(keys[i], 2)
        fan = float(np.prod(shape[1:]))
        w = (jax.random.normal(kw_, shape, jnp.float32) / np.sqrt(fan))
        scale, shift = _bn_fold(kb_, cout)
        params[name] = {'w': w, 'scale': scale, 'shift': shift}
    return params


# ----------------------------------------------------------------------------
# Pure-JAX reference (XLA convs, HIGHEST precision); independent formulation
# (ConvTranspose via lhs-dilated conv, Pallas path via parity decomposition).
# ----------------------------------------------------------------------------
def hourglass_reference(x_ncdhw, params):
    x = jnp.transpose(x_ncdhw, (0, 2, 3, 4, 1)).astype(jnp.float32)

    def conv(x, layer, stride, pad, relu):
        w = jnp.transpose(layer['w'], (2, 3, 4, 1, 0))    # DHWIO
        dn = lax.conv_dimension_numbers(x.shape, w.shape, ('NDHWC', 'DHWIO', 'NDHWC'))
        y = lax.conv_general_dilated(x, w, (stride,) * 3, [(pad, pad)] * 3,
                                     dimension_numbers=dn,
                                     precision=lax.Precision.HIGHEST)
        y = y * layer['scale'] + layer['shift']
        return jnp.maximum(y, 0.0) if relu else y

    def deconv(x, layer):
        w = jnp.transpose(layer['w'][:, :, ::-1, ::-1, ::-1], (2, 3, 4, 0, 1))
        dn = lax.conv_dimension_numbers(x.shape, w.shape, ('NDHWC', 'DHWIO', 'NDHWC'))
        y = lax.conv_general_dilated(x, w, (1, 1, 1), [(1, 2)] * 3,
                                     lhs_dilation=(2, 2, 2),
                                     dimension_numbers=dn,
                                     precision=lax.Precision.HIGHEST)
        return y * layer['scale'] + layer['shift']

    c1 = conv(x, params['conv1'], 2, 1, True)
    c2 = conv(c1, params['conv2'], 1, 1, True)
    c3 = conv(c2, params['conv3'], 2, 1, True)
    c4 = conv(c3, params['conv4'], 1, 1, True)
    c5 = jnp.maximum(deconv(c4, params['conv5'])
                     + conv(c2, params['redir2'], 1, 0, False), 0.0)
    c6 = jnp.maximum(deconv(c5, params['conv6'])
                     + conv(x, params['redir1'], 1, 0, False), 0.0)
    return jnp.transpose(c6, (0, 4, 1, 2, 3))


if __name__ == "__main__":
    C = 4
    N, D, H, W = 2, 8, 16, 16             # D,H,W divisible by 4 (two stride-2 stages)
    x = jax.random.normal(jax.random.PRNGKey(0), (N, C, D, H, W), jnp.float32)
    params = make_params(C, jax.random.PRNGKey(42))

    ref = jax.block_until_ready(hourglass_reference(x, params))

    # 1) f32 compute path — catches any layout / indexing / decomposition bug.
    #    (Tolerance allows for the MXU's multi-pass f32 matmul rounding.)
    fwd_f32 = jax.jit(lambda xx: hourglass_forward(xx, params,
                                                   compute_dtype=jnp.float32))
    out_f32 = jax.block_until_ready(fwd_f32(x))
    assert out_f32.shape == (N, C, D, H, W)
    np.testing.assert_allclose(np.asarray(out_f32), np.asarray(ref),
                               rtol=2e-2, atol=2e-2)

    # 2) Performance configuration: bf16 operands, f32 MXU accumulation.
    fwd_bf16 = jax.jit(lambda xx: hourglass_forward(xx, params,
                                                    compute_dtype=jnp.bfloat16))
    out_bf16 = jax.block_until_ready(fwd_bf16(x))
    np.testing.assert_allclose(np.asarray(out_bf16), np.asarray(ref),
                               rtol=1.5e-1, atol=1.5e-1)

    print("KERNEL_OK")
</pallas_src>

<mosaic_0001>
module attributes {stable_mosaic.version = 11 : i64} {
  func.func @_fused_conv_kernel(%arg0: i32, %arg1: memref<8x108xf32, #tpu.memory_space<vmem>>, %arg2: memref<8x1xf32, #tpu.memory_space<vmem>>, %arg3: memref<3x128xf32, #tpu.memory_space<vmem>>, %arg4: memref<32x128xf32, #tpu.memory_space<vmem>>, %arg5: memref<32x128xf32, #tpu.memory_space<vmem>>, %arg6: memref<8x128xf32, #tpu.memory_space<vmem>>) attributes {dimension_semantics = [#tpu.dimension_semantics<parallel>], iteration_bounds = array<i64: 4>, scalar_prefetch = 0 : i64, scratch_operands = 0 : i64, tpu.core_type = #tpu.core_type<tc>, window_params = [{pipeline_mode = #tpu.pipeline_mode<synchronous>, transform_indices = @transform_0, window_bounds = array<i64: 8, 108>}, {pipeline_mode = #tpu.pipeline_mode<synchronous>, transform_indices = @transform_1, window_bounds = array<i64: 8, 1>}, {transform_indices = @transform_2, window_bounds = array<i64: 3, 128>}, {transform_indices = @transform_3, window_bounds = array<i64: 32, 128>}, {transform_indices = @transform_4, window_bounds = array<i64: 32, 128>}, {transform_indices = @transform_5, window_bounds = array<i64: 8, 128>}]} {
    %c0 = arith.constant 0 : index
    %c0_0 = arith.constant 0 : index
    %0 = vector.load %arg4[%c0, %c0_0] : memref<32x128xf32, #tpu.memory_space<vmem>>, vector<32x128xf32>
    %c0_1 = arith.constant 0 : index
    %c0_2 = arith.constant 0 : index
    %1 = vector.load %arg5[%c0_1, %c0_2] : memref<32x128xf32, #tpu.memory_space<vmem>>, vector<32x128xf32>
    %2 = tpu.concatenate %0, %1 in 1 : vector<32x128xf32>, vector<32x128xf32> -> vector<32x256xf32>
    %c0_3 = arith.constant 0 : index
    %c0_4 = arith.constant 0 : index
    %3 = vector.load %arg3[%c0_3, %c0_4] : memref<3x128xf32, #tpu.memory_space<vmem>>, vector<3x128xf32>
    %c0_5 = arith.constant 0 : index
    %c0_6 = arith.constant 0 : index
    %4 = vector.load %arg1[%c0_5, %c0_6] : memref<8x108xf32, #tpu.memory_space<vmem>>, vector<8x108xf32>
    %c0_7 = arith.constant 0 : index
    %c0_8 = arith.constant 0 : index
    %5 = vector.load %arg2[%c0_7, %c0_8] : memref<8x1xf32, #tpu.memory_space<vmem>>, vector<8x1xf32>
    %cst = arith.constant 0.000000e+00 : f32
    %6 = vector.broadcast %cst : f32 to vector<8x128xf32>
    %7 = vector.extract_strided_slice %2 {offsets = [28, 55], sizes = [4, 128], strides = [1, 1]} : vector<32x256xf32> to vector<4x128xf32>
    %8 = vector.extract_strided_slice %3 {offsets = [0, 0], sizes = [1, 128], strides = [1, 1]} : vector<3x128xf32> to vector<1x128xf32>
    %9 = vector.broadcast %8 : vector<1x128xf32> to vector<4x128xf32>
    %10 = arith.mulf %7, %9 : vector<4x128xf32>
    %11 = vector.extract_strided_slice %3 {offsets = [1, 0], sizes = [1, 128], strides = [1, 1]} : vector<3x128xf32> to vector<1x128xf32>
    %12 = vector.broadcast %11 : vector<1x128xf32> to vector<4x128xf32>
    %13 = arith.mulf %10, %12 : vector<4x128xf32>
    %14 = vector.extract_strided_slice %3 {offsets = [2, 0], sizes = [1, 128], strides = [1, 1]} : vector<3x128xf32> to vector<1x128xf32>
    %15 = vector.broadcast %14 : vector<1x128xf32> to vector<4x128xf32>
    %16 = arith.mulf %13, %15 : vector<4x128xf32>
    %17 = vector.extract_strided_slice %4 {offsets = [0, 0], sizes = [8, 4], strides = [1, 1]} : vector<8x108xf32> to vector<8x4xf32>
    %cst_9 = arith.constant dense<0.000000e+00> : vector<8x128xf32>
    %18 = tpu.matmul %17, %16, %cst_9 {dimension_numbers = #tpu.dot_dimension_numbers<[1], [0], [0], [1], [0, 0, 1, 1], [], []>} : vector<8x4xf32>, vector<4x128xf32>, vector<8x128xf32> -> vector<8x128xf32>
    %19 = arith.addf %6, %18 : vector<8x128xf32>
    %20 = vector.extract_strided_slice %2 {offsets = [24, 56], sizes = [4, 128], strides = [1, 1]} : vector<32x256xf32> to vector<4x128xf32>
    %21 = vector.extract_strided_slice %3 {offsets = [0, 0], sizes = [1, 128], strides = [1, 1]} : vector<3x128xf32> to vector<1x128xf32>
    %22 = vector.broadcast %21 : vector<1x128xf32> to vector<4x128xf32>
    %23 = arith.mulf %20, %22 : vector<4x128xf32>
    %24 = vector.extract_strided_slice %3 {offsets = [1, 0], sizes = [1, 128], strides = [1, 1]} : vector<3x128xf32> to vector<1x128xf32>
    %25 = vector.broadcast %24 : vector<1x128xf32> to vector<4x128xf32>
    %26 = arith.mulf %23, %25 : vector<4x128xf32>
    %27 = vector.extract_strided_slice %4 {offsets = [0, 4], sizes = [8, 4], strides = [1, 1]} : vector<8x108xf32> to vector<8x4xf32>
    %cst_10 = arith.constant dense<0.000000e+00> : vector<8x128xf32>
    %28 = tpu.matmul %27, %26, %cst_10 {dimension_numbers = #tpu.dot_dimension_numbers<[1], [0], [0], [1], [0, 0, 1, 1], [], []>} : vector<8x4xf32>, vector<4x128xf32>, vector<8x128xf32> -> vector<8x128xf32>
    %29 = arith.addf %19, %28 : vector<8x128xf32>
    %30 = vector.extract_strided_slice %2 {offsets = [28, 56], sizes = [4, 128], strides = [1, 1]} : vector<32x256xf32> to vector<4x128xf32>
    %31 = vector.extract_strided_slice %3 {offsets = [0, 0], sizes = [1, 128], strides = [1, 1]} : vector<3x128xf32> to vector<1x128xf32>
    %32 = vector.broadcast %31 : vector<1x128xf32> to vector<4x128xf32>
    %33 = arith.mulf %30, %32 : vector<4x128xf32>
    %34 = vector.extract_strided_slice %3 {offsets = [1, 0], sizes = [1, 128], strides = [1, 1]} : vector<3x128xf32> to vector<1x128xf32>
    %35 = vector.broadcast %34 : vector<1x128xf32> to vector<4x128xf32>
    %36 = arith.mulf %33, %35 : vector<4x128xf32>
    %37 = vector.extract_strided_slice %4 {offsets = [0, 8], sizes = [8, 4], strides = [1, 1]} : vector<8x108xf32> to vector<8x4xf32>
    %cst_11 = arith.constant dense<0.000000e+00> : vector<8x128xf32>
    %38 = tpu.matmul %37, %36, %cst_11 {dimension_numbers = #tpu.dot_dimension_numbers<[1], [0], [0], [1], [0, 0, 1, 1], [], []>} : vector<8x4xf32>, vector<4x128xf32>, vector<8x128xf32> -> vector<8x128xf32>
    %39 = arith.addf %29, %38 : vector<8x128xf32>
    %40 = vector.extract_strided_slice %2 {offsets = [20, 63], sizes = [4, 128], strides = [1, 1]} : vector<32x256xf32> to vector<4x128xf32>
    %41 = vector.extract_strided_slice %3 {offsets = [0, 0], sizes = [1, 128], strides = [1, 1]} : vector<3x128xf32> to vector<1x128xf32>
    %42 = vector.broadcast %41 : vector<1x128xf32> to vector<4x128xf32>
    %43 = arith.mulf %40, %42 : vector<4x128xf32>
    %44 = vector.extract_strided_slice %3 {offsets = [2, 0], sizes = [1, 128], strides = [1, 1]} : vector<3x128xf32> to vector<1x128xf32>
    %45 = vector.broadcast %44 : vector<1x128xf32> to vector<4x128xf32>
    %46 = arith.mulf %43, %45 : vector<4x128xf32>
    %47 = vector.extract_strided_slice %4 {offsets = [0, 12], sizes = [8, 4], strides = [1, 1]} : vector<8x108xf32> to vector<8x4xf32>
    %cst_12 = arith.constant dense<0.000000e+00> : vector<8x128xf32>
    %48 = tpu.matmul %47, %46, %cst_12 {dimension_numbers = #tpu.dot_dimension_numbers<[1], [0], [0], [1], [0, 0, 1, 1], [], []>} : vector<8x4xf32>, vector<4x128xf32>, vector<8x128xf32> -> vector<8x128xf32>
    %49 = arith.addf %39, %48 : vector<8x128xf32>
    %50 = vector.extract_strided_slice %2 {offsets = [16, 64], sizes = [4, 128], strides = [1, 1]} : vector<32x256xf32> to vector<4x128xf32>
    %51 = vector.extract_strided_slice %3 {offsets = [0, 0], sizes = [1, 128], strides = [1, 1]} : vector<3x128xf32> to vector<1x128xf32>
    %52 = vector.broadcast %51 : vector<1x128xf32> to vector<4x128xf32>
    %53 = arith.mulf %50, %52 : vector<4x128xf32>
    %54 = vector.extract_strided_slice %4 {offsets = [0, 16], sizes = [8, 4], strides = [1, 1]} : vector<8x108xf32> to vector<8x4xf32>
    %cst_13 = arith.constant dense<0.000000e+00> : vector<8x128xf32>
    %55 = tpu.matmul %54, %53, %cst_13 {dimension_numbers = #tpu.dot_dimension_numbers<[1], [0], [0], [1], [0, 0, 1, 1], [], []>} : vector<8x4xf32>, vector<4x128xf32>, vector<8x128xf32> -> vector<8x128xf32>
    %56 = arith.addf %49, %55 : vector<8x128xf32>
    %57 = vector.extract_strided_slice %2 {offsets = [20, 64], sizes = [4, 128], strides = [1, 1]} : vector<32x256xf32> to vector<4x128xf32>
    %58 = vector.extract_strided_slice %3 {offsets = [0, 0], sizes = [1, 128], strides = [1, 1]} : vector<3x128xf32> to vector<1x128xf32>
    %59 = vector.broadcast %58 : vector<1x128xf32> to vector<4x128xf32>
    %60 = arith.mulf %57, %59 : vector<4x128xf32>
    %61 = vector.extract_strided_slice %4 {offsets = [0, 20], sizes = [8, 4], strides = [1, 1]} : vector<8x108xf32> to vector<8x4xf32>
    %cst_14 = arith.constant dense<0.000000e+00> : vector<8x128xf32>
    %62 = tpu.matmul %61, %60, %cst_14 {dimension_numbers = #tpu.dot_dimension_numbers<[1], [0], [0], [1], [0, 0, 1, 1], [], []>} : vector<8x4xf32>, vector<4x128xf32>, vector<8x128xf32> -> vector<8x128xf32>
    %63 = arith.addf %56, %62 : vector<8x128xf32>
    %64 = vector.extract_strided_slice %2 {offsets = [28, 63], sizes = [4, 128], strides = [1, 1]} : vector<32x256xf32> to vector<4x128xf32>
    %65 = vector.extract_strided_slice %3 {offsets = [0, 0], sizes = [1, 128], strides = [1, 1]} : vector<3x128xf32> to vector<1x128xf32>
    %66 = vector.broadcast %65 : vector<1x128xf32> to vector<4x128xf32>
    %67 = arith.mulf %64, %66 : vector<4x128xf32>
    %68 = vector.extract_strided_slice %3 {offsets = [2, 0], sizes = [1, 128], strides = [1, 1]} : vector<3x128xf32> to vector<1x128xf32>
    %69 = vector.broadcast %68 : vector<1x128xf32> to vector<4x128xf32>
    %70 = arith.mulf %67, %69 : vector<4x128xf32>
    %71 = vector.extract_strided_slice %4 {offsets = [0, 24], sizes = [8, 4], strides = [1, 1]} : vector<8x108xf32> to vector<8x4xf32>
    %cst_15 = arith.constant dense<0.000000e+00> : vector<8x128xf32>
    %72 = tpu.matmul %71, %70, %cst_15 {dimension_numbers = #tpu.dot_dimension_numbers<[1], [0], [0], [1], [0, 0, 1, 1], [], []>} : vector<8x4xf32>, vector<4x128xf32>, vector<8x128xf32> -> vector<8x128xf32>
    %73 = arith.addf %63, %72 : vector<8x128xf32>
    %74 = vector.extract_strided_slice %2 {offsets = [24, 64], sizes = [4, 128], strides = [1, 1]} : vector<32x256xf32> to vector<4x128xf32>
    %75 = vector.extract_strided_slice %3 {offsets = [0, 0], sizes = [1, 128], strides = [1, 1]} : vector<3x128xf32> to vector<1x128xf32>
    %76 = vector.broadcast %75 : vector<1x128xf32> to vector<4x128xf32>
    %77 = arith.mulf %74, %76 : vector<4x128xf32>
    %78 = vector.extract_strided_slice %4 {offsets = [0, 28], sizes = [8, 4], strides = [1, 1]} : vector<8x108xf32> to vector<8x4xf32>
    %cst_16 = arith.constant dense<0.000000e+00> : vector<8x128xf32>
    %79 = tpu.matmul %78, %77, %cst_16 {dimension_numbers = #tpu.dot_dimension_numbers<[1], [0], [0], [1], [0, 0, 1, 1], [], []>} : vector<8x4xf32>, vector<4x128xf32>, vector<8x128xf32> -> vector<8x128xf32>
    %80 = arith.addf %73, %79 : vector<8x128xf32>
    %81 = vector.extract_strided_slice %2 {offsets = [28, 64], sizes = [4, 128], strides = [1, 1]} : vector<32x256xf32> to vector<4x128xf32>
    %82 = vector.extract_strided_slice %3 {offsets = [0, 0], sizes = [1, 128], strides = [1, 1]} : vector<3x128xf32> to vector<1x128xf32>
    %83 = vector.broadcast %82 : vector<1x128xf32> to vector<4x128xf32>
    %84 = arith.mulf %81, %83 : vector<4x128xf32>
    %85 = vector.extract_strided_slice %4 {offsets = [0, 32], sizes = [8, 4], strides = [1, 1]} : vector<8x108xf32> to vector<8x4xf32>
    %cst_17 = arith.constant dense<0.000000e+00> : vector<8x128xf32>
    %86 = tpu.matmul %85, %84, %cst_17 {dimension_numbers = #tpu.dot_dimension_numbers<[1], [0], [0], [1], [0, 0, 1, 1], [], []>} : vector<8x4xf32>, vector<4x128xf32>, vector<8x128xf32> -> vector<8x128xf32>
    %87 = arith.addf %80, %86 : vector<8x128xf32>
    %88 = vector.extract_strided_slice %2 {offsets = [12, 119], sizes = [4, 128], strides = [1, 1]} : vector<32x256xf32> to vector<4x128xf32>
    %89 = vector.extract_strided_slice %3 {offsets = [1, 0], sizes = [1, 128], strides = [1, 1]} : vector<3x128xf32> to vector<1x128xf32>
    %90 = vector.broadcast %89 : vector<1x128xf32> to vector<4x128xf32>
    %91 = arith.mulf %88, %90 : vector<4x128xf32>
    %92 = vector.extract_strided_slice %3 {offsets = [2, 0], sizes = [1, 128], strides = [1, 1]} : vector<3x128xf32> to vector<1x128xf32>
    %93 = vector.broadcast %92 : vector<1x128xf32> to vector<4x128xf32>
    %94 = arith.mulf %91, %93 : vector<4x128xf32>
    %95 = vector.extract_strided_slice %4 {offsets = [0, 36], sizes = [8, 4], strides = [1, 1]} : vector<8x108xf32> to vector<8x4xf32>
    %cst_18 = arith.constant dense<0.000000e+00> : vector<8x128xf32>
    %96 = tpu.matmul %95, %94, %cst_18 {dimension_numbers = #tpu.dot_dimension_numbers<[1], [0], [0], [1], [0, 0, 1, 1], [], []>} : vector<8x4xf32>, vector<4x128xf32>, vector<8x128xf32> -> vector<8x128xf32>
    %97 = arith.addf %87, %96 : vector<8x128xf32>
    %98 = vector.extract_strided_slice %2 {offsets = [8, 120], sizes = [4, 128], strides = [1, 1]} : vector<32x256xf32> to vector<4x128xf32>
    %99 = vector.extract_strided_slice %3 {offsets = [1, 0], sizes = [1, 128], strides = [1, 1]} : vector<3x128xf32> to vector<1x128xf32>
    %100 = vector.broadcast %99 : vector<1x128xf32> to vector<4x128xf32>
    %101 = arith.mulf %98, %100 : vector<4x128xf32>
    %102 = vector.extract_strided_slice %4 {offsets = [0, 40], sizes = [8, 4], strides = [1, 1]} : vector<8x108xf32> to vector<8x4xf32>
    %cst_19 = arith.constant dense<0.000000e+00> : vector<8x128xf32>
    %103 = tpu.matmul %102, %101, %cst_19 {dimension_numbers = #tpu.dot_dimension_numbers<[1], [0], [0], [1], [0, 0, 1, 1], [], []>} : vector<8x4xf32>, vector<4x128xf32>, vector<8x128xf32> -> vector<8x128xf32>
    %104 = arith.addf %97, %103 : vector<8x128xf32>
    %105 = vector.extract_strided_slice %2 {offsets = [12, 120], sizes = [4, 128], strides = [1, 1]} : vector<32x256xf32> to vector<4x128xf32>
    %106 = vector.extract_strided_slice %3 {offsets = [1, 0], sizes = [1, 128], strides = [1, 1]} : vector<3x128xf32> to vector<1x128xf32>
    %107 = vector.broadcast %106 : vector<1x128xf32> to vector<4x128xf32>
    %108 = arith.mulf %105, %107 : vector<4x128xf32>
    %109 = vector.extract_strided_slice %4 {offsets = [0, 44], sizes = [8, 4], strides = [1, 1]} : vector<8x108xf32> to vector<8x4xf32>
    %cst_20 = arith.constant dense<0.000000e+00> : vector<8x128xf32>
    %110 = tpu.matmul %109, %108, %cst_20 {dimension_numbers = #tpu.dot_dimension_numbers<[1], [0], [0], [1], [0, 0, 1, 1], [], []>} : vector<8x4xf32>, vector<4x128xf32>, vector<8x128xf32> -> vector<8x128xf32>
    %111 = arith.addf %104, %110 : vector<8x128xf32>
    %112 = vector.extract_strided_slice %2 {offsets = [4, 127], sizes = [4, 128], strides = [1, 1]} : vector<32x256xf32> to vector<4x128xf32>
    %113 = vector.extract_strided_slice %3 {offsets = [2, 0], sizes = [1, 128], strides = [1, 1]} : vector<3x128xf32> to vector<1x128xf32>
    %114 = vector.broadcast %113 : vector<1x128xf32> to vector<4x128xf32>
    %115 = arith.mulf %112, %114 : vector<4x128xf32>
    %116 = vector.extract_strided_slice %4 {offsets = [0, 48], sizes = [8, 4], strides = [1, 1]} : vector<8x108xf32> to vector<8x4xf32>
    %cst_21 = arith.constant dense<0.000000e+00> : vector<8x128xf32>
    %117 = tpu.matmul %116, %115, %cst_21 {dimension_numbers = #tpu.dot_dimension_numbers<[1], [0], [0], [1], [0, 0, 1, 1], [], []>} : vector<8x4xf32>, vector<4x128xf32>, vector<8x128xf32> -> vector<8x128xf32>
    %118 = arith.addf %111, %117 : vector<8x128xf32>
    %119 = vector.extract_strided_slice %2 {offsets = [0, 128], sizes = [4, 128], strides = [1, 1]} : vector<32x256xf32> to vector<4x128xf32>
    %120 = vector.extract_strided_slice %4 {offsets = [0, 52], sizes = [8, 4], strides = [1, 1]} : vector<8x108xf32> to vector<8x4xf32>
    %cst_22 = arith.constant dense<0.000000e+00> : vector<8x128xf32>
    %121 = tpu.matmul %120, %119, %cst_22 {dimension_numbers = #tpu.dot_dimension_numbers<[1], [0], [0], [1], [0, 0, 1, 1], [], []>} : vector<8x4xf32>, vector<4x128xf32>, vector<8x128xf32> -> vector<8x128xf32>
    %122 = arith.addf %118, %121 : vector<8x128xf32>
    %123 = vector.extract_strided_slice %2 {offsets = [4, 128], sizes = [4, 128], strides = [1, 1]} : vector<32x256xf32> to vector<4x128xf32>
    %124 = vector.extract_strided_slice %4 {offsets = [0, 56], sizes = [8, 4], strides = [1, 1]} : vector<8x108xf32> to vector<8x4xf32>
    %cst_23 = arith.constant dense<0.000000e+00> : vector<8x128xf32>
    %125 = tpu.matmul %124, %123, %cst_23 {dimension_numbers = #tpu.dot_dimension_numbers<[1], [0], [0], [1], [0, 0, 1, 1], [], []>} : vector<8x4xf32>, vector<4x128xf32>, vector<8x128xf32> -> vector<8x128xf32>
    %126 = arith.addf %122, %125 : vector<8x128xf32>
    %127 = vector.extract_strided_slice %2 {offsets = [12, 127], sizes = [4, 128], strides = [1, 1]} : vector<32x256xf32> to vector<4x128xf32>
    %128 = vector.extract_strided_slice %3 {offsets = [2, 0], sizes = [1, 128], strides = [1, 1]} : vector<3x128xf32> to vector<1x128xf32>
    %129 = vector.broadcast %128 : vector<1x128xf32> to vector<4x128xf32>
    %130 = arith.mulf %127, %129 : vector<4x128xf32>
    %131 = vector.extract_strided_slice %4 {offsets = [0, 60], sizes = [8, 4], strides = [1, 1]} : vector<8x108xf32> to vector<8x4xf32>
    %cst_24 = arith.constant dense<0.000000e+00> : vector<8x128xf32>
    %132 = tpu.matmul %131, %130, %cst_24 {dimension_numbers = #tpu.dot_dimension_numbers<[1], [0], [0], [1], [0, 0, 1, 1], [], []>} : vector<8x4xf32>, vector<4x128xf32>, vector<8x128xf32> -> vector<8x128xf32>
    %133 = arith.addf %126, %132 : vector<8x128xf32>
    %134 = vector.extract_strided_slice %2 {offsets = [8, 128], sizes = [4, 128], strides = [1, 1]} : vector<32x256xf32> to vector<4x128xf32>
    %135 = vector.extract_strided_slice %4 {offsets = [0, 64], sizes = [8, 4], strides = [1, 1]} : vector<8x108xf32> to vector<8x4xf32>
    %cst_25 = arith.constant dense<0.000000e+00> : vector<8x128xf32>
    %136 = tpu.matmul %135, %134, %cst_25 {dimension_numbers = #tpu.dot_dimension_numbers<[1], [0], [0], [1], [0, 0, 1, 1], [], []>} : vector<8x4xf32>, vector<4x128xf32>, vector<8x128xf32> -> vector<8x128xf32>
    %137 = arith.addf %133, %136 : vector<8x128xf32>
    %138 = vector.extract_strided_slice %2 {offsets = [12, 128], sizes = [4, 128], strides = [1, 1]} : vector<32x256xf32> to vector<4x128xf32>
    %139 = vector.extract_strided_slice %4 {offsets = [0, 68], sizes = [8, 4], strides = [1, 1]} : vector<8x108xf32> to vector<8x4xf32>
    %cst_26 = arith.constant dense<0.000000e+00> : vector<8x128xf32>
    %140 = tpu.matmul %139, %138, %cst_26 {dimension_numbers = #tpu.dot_dimension_numbers<[1], [0], [0], [1], [0, 0, 1, 1], [], []>} : vector<8x4xf32>, vector<4x128xf32>, vector<8x128xf32> -> vector<8x128xf32>
    %141 = arith.addf %137, %140 : vector<8x128xf32>
    %142 = vector.extract_strided_slice %2 {offsets = [28, 119], sizes = [4, 128], strides = [1, 1]} : vector<32x256xf32> to vector<4x128xf32>
    %143 = vector.extract_strided_slice %3 {offsets = [1, 0], sizes = [1, 128], strides = [1, 1]} : vector<3x128xf32> to vector<1x128xf32>
    %144 = vector.broadcast %143 : vector<1x128xf32> to vector<4x128xf32>
    %145 = arith.mulf %142, %144 : vector<4x128xf32>
    %146 = vector.extract_strided_slice %3 {offsets = [2, 0], sizes = [1, 128], strides = [1, 1]} : vector<3x128xf32> to vector<1x128xf32>
    %147 = vector.broadcast %146 : vector<1x128xf32> to vector<4x128xf32>
    %148 = arith.mulf %145, %147 : vector<4x128xf32>
    %149 = vector.extract_strided_slice %4 {offsets = [0, 72], sizes = [8, 4], strides = [1, 1]} : vector<8x108xf32> to vector<8x4xf32>
    %cst_27 = arith.constant dense<0.000000e+00> : vector<8x128xf32>
    %150 = tpu.matmul %149, %148, %cst_27 {dimension_numbers = #tpu.dot_dimension_numbers<[1], [0], [0], [1], [0, 0, 1, 1], [], []>} : vector<8x4xf32>, vector<4x128xf32>, vector<8x128xf32> -> vector<8x128xf32>
    %151 = arith.addf %141, %150 : vector<8x128xf32>
    %152 = vector.extract_strided_slice %2 {offsets = [24, 120], sizes = [4, 128], strides = [1, 1]} : vector<32x256xf32> to vector<4x128xf32>
    %153 = vector.extract_strided_slice %3 {offsets = [1, 0], sizes = [1, 128], strides = [1, 1]} : vector<3x128xf32> to vector<1x128xf32>
    %154 = vector.broadcast %153 : vector<1x128xf32> to vector<4x128xf32>
    %155 = arith.mulf %152, %154 : vector<4x128xf32>
    %156 = vector.extract_strided_slice %4 {offsets = [0, 76], sizes = [8, 4], strides = [1, 1]} : vector<8x108xf32> to vector<8x4xf32>
    %cst_28 = arith.constant dense<0.000000e+00> : vector<8x128xf32>
    %157 = tpu.matmul %156, %155, %cst_28 {dimension_numbers = #tpu.dot_dimension_numbers<[1], [0], [0], [1], [0, 0, 1, 1], [], []>} : vector<8x4xf32>, vector<4x128xf32>, vector<8x128xf32> -> vector<8x128xf32>
    %158 = arith.addf %151, %157 : vector<8x128xf32>
    %159 = vector.extract_strided_slice %2 {offsets = [28, 120], sizes = [4, 128], strides = [1, 1]} : vector<32x256xf32> to vector<4x128xf32>
    %160 = vector.extract_strided_slice %3 {offsets = [1, 0], sizes = [1, 128], strides = [1, 1]} : vector<3x128xf32> to vector<1x128xf32>
    %161 = vector.broadcast %160 : vector<1x128xf32> to vector<4x128xf32>
    %162 = arith.mulf %159, %161 : vector<4x128xf32>
    %163 = vector.extract_strided_slice %4 {offsets = [0, 80], sizes = [8, 4], strides = [1, 1]} : vector<8x108xf32> to vector<8x4xf32>
    %cst_29 = arith.constant dense<0.000000e+00> : vector<8x128xf32>
    %164 = tpu.matmul %163, %162, %cst_29 {dimension_numbers = #tpu.dot_dimension_numbers<[1], [0], [0], [1], [0, 0, 1, 1], [], []>} : vector<8x4xf32>, vector<4x128xf32>, vector<8x128xf32> -> vector<8x128xf32>
    %165 = arith.addf %158, %164 : vector<8x128xf32>
    %166 = vector.extract_strided_slice %2 {offsets = [20, 127], sizes = [4, 128], strides = [1, 1]} : vector<32x256xf32> to vector<4x128xf32>
    %167 = vector.extract_strided_slice %3 {offsets = [2, 0], sizes = [1, 128], strides = [1, 1]} : vector<3x128xf32> to vector<1x128xf32>
    %168 = vector.broadcast %167 : vector<1x128xf32> to vector<4x128xf32>
    %169 = arith.mulf %166, %168 : vector<4x128xf32>
    %170 = vector.extract_strided_slice %4 {offsets = [0, 84], sizes = [8, 4], strides = [1, 1]} : vector<8x108xf32> to vector<8x4xf32>
    %cst_30 = arith.constant dense<0.000000e+00> : vector<8x128xf32>
    %171 = tpu.matmul %170, %169, %cst_30 {dimension_numbers = #tpu.dot_dimension_numbers<[1], [0], [0], [1], [0, 0, 1, 1], [], []>} : vector<8x4xf32>, vector<4x128xf32>, vector<8x128xf32> -> vector<8x128xf32>
    %172 = arith.addf %165, %171 : vector<8x128xf32>
    %173 = vector.extract_strided_slice %2 {offsets = [16, 128], sizes = [4, 128], strides = [1, 1]} : vector<32x256xf32> to vector<4x128xf32>
    %174 = vector.extract_strided_slice %4 {offsets = [0, 88], sizes = [8, 4], strides = [1, 1]} : vector<8x108xf32> to vector<8x4xf32>
    %cst_31 = arith.constant dense<0.000000e+00> : vector<8x128xf32>
    %175 = tpu.matmul %174, %173, %cst_31 {dimension_numbers = #tpu.dot_dimension_numbers<[1], [0], [0], [1], [0, 0, 1, 1], [], []>} : vector<8x4xf32>, vector<4x128xf32>, vector<8x128xf32> -> vector<8x128xf32>
    %176 = arith.addf %172, %175 : vector<8x128xf32>
    %177 = vector.extract_strided_slice %2 {offsets = [20, 128], sizes = [4, 128], strides = [1, 1]} : vector<32x256xf32> to vector<4x128xf32>
    %178 = vector.extract_strided_slice %4 {offsets = [0, 92], sizes = [8, 4], strides = [1, 1]} : vector<8x108xf32> to vector<8x4xf32>
    %cst_32 = arith.constant dense<0.000000e+00> : vector<8x128xf32>
    %179 = tpu.matmul %178, %177, %cst_32 {dimension_numbers = #tpu.dot_dimension_numbers<[1], [0], [0], [1], [0, 0, 1, 1], [], []>} : vector<8x4xf32>, vector<4x128xf32>, vector<8x128xf32> -> vector<8x128xf32>
    %180 = arith.addf %176, %179 : vector<8x128xf32>
    %181 = vector.extract_strided_slice %2 {offsets = [28, 127], sizes = [4, 128], strides = [1, 1]} : vector<32x256xf32> to vector<4x128xf32>
    %182 = vector.extract_strided_slice %3 {offsets = [2, 0], sizes = [1, 128], strides = [1, 1]} : vector<3x128xf32> to vector<1x128xf32>
    %183 = vector.broadcast %182 : vector<1x128xf32> to vector<4x128xf32>
    %184 = arith.mulf %181, %183 : vector<4x128xf32>
    %185 = vector.extract_strided_slice %4 {offsets = [0, 96], sizes = [8, 4], strides = [1, 1]} : vector<8x108xf32> to vector<8x4xf32>
    %cst_33 = arith.constant dense<0.000000e+00> : vector<8x128xf32>
    %186 = tpu.matmul %185, %184, %cst_33 {dimension_numbers = #tpu.dot_dimension_numbers<[1], [0], [0], [1], [0, 0, 1, 1], [], []>} : vector<8x4xf32>, vector<4x128xf32>, vector<8x128xf32> -> vector<8x128xf32>
    %187 = arith.addf %180, %186 : vector<8x128xf32>
    %188 = vector.extract_strided_slice %2 {offsets = [24, 128], sizes = [4, 128], strides = [1, 1]} : vector<32x256xf32> to vector<4x128xf32>
    %189 = vector.extract_strided_slice %4 {offsets = [0, 100], sizes = [8, 4], strides = [1, 1]} : vector<8x108xf32> to vector<8x4xf32>
    %cst_34 = arith.constant dense<0.000000e+00> : vector<8x128xf32>
    %190 = tpu.matmul %189, %188, %cst_34 {dimension_numbers = #tpu.dot_dimension_numbers<[1], [0], [0], [1], [0, 0, 1, 1], [], []>} : vector<8x4xf32>, vector<4x128xf32>, vector<8x128xf32> -> vector<8x128xf32>
    %191 = arith.addf %187, %190 : vector<8x128xf32>
    %192 = vector.extract_strided_slice %2 {offsets = [28, 128], sizes = [4, 128], strides = [1, 1]} : vector<32x256xf32> to vector<4x128xf32>
    %193 = vector.extract_strided_slice %4 {offsets = [0, 104], sizes = [8, 4], strides = [1, 1]} : vector<8x108xf32> to vector<8x4xf32>
    %cst_35 = arith.constant dense<0.000000e+00> : vector<8x128xf32>
    %194 = tpu.matmul %193, %192, %cst_35 {dimension_numbers = #tpu.dot_dimension_numbers<[1], [0], [0], [1], [0, 0, 1, 1], [], []>} : vector<8x4xf32>, vector<4x128xf32>, vector<8x128xf32> -> vector<8x128xf32>
    %195 = arith.addf %191, %194 : vector<8x128xf32>
    %196 = vector.broadcast %5 : vector<8x1xf32> to vector<8x128xf32>
    %197 = arith.addf %195, %196 : vector<8x128xf32>
    %cst_36 = arith.constant 0.000000e+00 : f32
    %198 = vector.broadcast %cst_36 : f32 to vector<8x128xf32>
    %199 = arith.maximumf %197, %198 : vector<8x128xf32>
    %c0_37 = arith.constant 0 : index
    %c0_38 = arith.constant 0 : index
    %200 = vector.load %arg6[%c0_37, %c0_38] : memref<8x128xf32, #tpu.memory_space<vmem>>, vector<8x128xf32>
    tpu.vector_store %arg6[%c0_37, %c0_38], %199 {strides = array<i32>} : memref<8x128xf32, #tpu.memory_space<vmem>>, vector<8x128xf32>,
    return
  }
  func.func @transform_0(%arg0: i32) -> (i32, i32) {
    %c0_i32 = arith.constant 0 : i32
    %c0_i32_0 = arith.constant 0 : i32
    %c0_i32_1 = arith.constant 0 : i32
    return %c0_i32, %c0_i32_0 : i32, i32
  }
  func.func @transform_1(%arg0: i32) -> (i32, i32) {
    %c0_i32 = arith.constant 0 : i32
    %c0_i32_0 = arith.constant 0 : i32
    %c0_i32_1 = arith.constant 0 : i32
    return %c0_i32, %c0_i32_0 : i32, i32
  }
  func.func @transform_2(%arg0: i32) -> (i32, i32) {
    %c0_i32 = arith.constant 0 : i32
    %c0_i32_0 = arith.constant 0 : i32
    return %c0_i32, %arg0 : i32, i32
  }
  func.func @transform_3(%arg0: i32) -> (i32, i32) {
    %c0_i32 = arith.constant 0 : i32
    %0 = arith.addi %arg0, %c0_i32 : i32
    %c0_i32_0 = arith.constant 0 : i32
    %c0_i32_1 = arith.constant 0 : i32
    return %c0_i32_0, %0 : i32, i32
  }
  func.func @transform_4(%arg0: i32) -> (i32, i32) {
    %c1_i32 = arith.constant 1 : i32
    %0 = arith.addi %arg0, %c1_i32 : i32
    %c0_i32 = arith.constant 0 : i32
    %c0_i32_0 = arith.constant 0 : i32
    return %c0_i32, %0 : i32, i32
  }
  func.func @transform_5(%arg0: i32) -> (i32, i32) {
    %c0_i32 = arith.constant 0 : i32
    %c0_i32_0 = arith.constant 0 : i32
    return %c0_i32, %arg0 : i32, i32
  }
}

module attributes {stable_mosaic.version = 11 : i64} {
  func.func @_fused_conv_kernel(%arg0: i32, %arg1: memref<8x216xf32, #tpu.memory_space<vmem>>, %arg2: memref<8x1xf32, #tpu.memory_space<vmem>>, %arg3: memref<6x128xf32, #tpu.memory_space<vmem>>, %arg4: memref<8x128xf32, #tpu.memory_space<vmem>>, %arg5: memref<8x128xf32, #tpu.memory_space<vmem>>, %arg6: memref<8x128xf32, #tpu.memory_space<vmem>>, %arg7: memref<8x128xf32, #tpu.memory_space<vmem>>) attributes {dimension_semantics = [#tpu.dimension_semantics<parallel>], iteration_bounds = array<i64: 4>, scalar_prefetch = 0 : i64, scratch_operands = 0 : i64, tpu.core_type = #tpu.core_type<tc>, window_params = [{pipeline_mode = #tpu.pipeline_mode<synchronous>, transform_indices = @transform_0, window_bounds = array<i64: 8, 216>}, {pipeline_mode = #tpu.pipeline_mode<synchronous>, transform_indices = @transform_1, window_bounds = array<i64: 8, 1>}, {transform_indices = @transform_2, window_bounds = array<i64: 6, 128>}, {transform_indices = @transform_3, window_bounds = array<i64: 8, 128>}, {transform_indices = @transform_4, window_bounds = array<i64: 8, 128>}, {transform_indices = @transform_5, window_bounds = array<i64: 8, 128>}, {transform_indices = @transform_6, window_bounds = array<i64: 8, 128>}]} {
    %c0 = arith.constant 0 : index
    %c0_0 = arith.constant 0 : index
    %0 = vector.load %arg4[%c0, %c0_0] : memref<8x128xf32, #tpu.memory_space<vmem>>, vector<8x128xf32>
    %c0_1 = arith.constant 0 : index
    %c0_2 = arith.constant 0 : index
    %1 = vector.load %arg5[%c0_1, %c0_2] : memref<8x128xf32, #tpu.memory_space<vmem>>, vector<8x128xf32>
    %c0_3 = arith.constant 0 : index
    %c0_4 = arith.constant 0 : index
    %2 = vector.load %arg6[%c0_3, %c0_4] : memref<8x128xf32, #tpu.memory_space<vmem>>, vector<8x128xf32>
    %3 = tpu.concatenate %0, %1, %2 in 1 : vector<8x128xf32>, vector<8x128xf32>, vector<8x128xf32> -> vector<8x384xf32>
    %c0_5 = arith.constant 0 : index
    %c0_6 = arith.constant 0 : index
    %4 = vector.load %arg3[%c0_5, %c0_6] : memref<6x128xf32, #tpu.memory_space<vmem>>, vector<6x128xf32>
    %c0_7 = arith.constant 0 : index
    %c0_8 = arith.constant 0 : index
    %5 = vector.load %arg1[%c0_7, %c0_8] : memref<8x216xf32, #tpu.memory_space<vmem>>, vector<8x216xf32>
    %c0_9 = arith.constant 0 : index
    %c0_10 = arith.constant 0 : index
    %6 = vector.load %arg2[%c0_9, %c0_10] : memref<8x1xf32, #tpu.memory_space<vmem>>, vector<8x1xf32>
    %cst = arith.constant 0.000000e+00 : f32
    %7 = vector.broadcast %cst : f32 to vector<8x128xf32>
    %8 = vector.extract_strided_slice %3 {offsets = [0, 55], sizes = [8, 128], strides = [1, 1]} : vector<8x384xf32> to vector<8x128xf32>
    %9 = vector.extract_strided_slice %4 {offsets = [0, 0], sizes = [1, 128], strides = [1, 1]} : vector<6x128xf32> to vector<1x128xf32>
    %10 = vector.broadcast %9 : vector<1x128xf32> to vector<8x128xf32>
    %11 = arith.mulf %8, %10 : vector<8x128xf32>
    %12 = vector.extract_strided_slice %4 {offsets = [1, 0], sizes = [1, 128], strides = [1, 1]} : vector<6x128xf32> to vector<1x128xf32>
    %13 = vector.broadcast %12 : vector<1x128xf32> to vector<8x128xf32>
    %14 = arith.mulf %11, %13 : vector<8x128xf32>
    %15 = vector.extract_strided_slice %4 {offsets = [2, 0], sizes = [1, 128], strides = [1, 1]} : vector<6x128xf32> to vector<1x128xf32>
    %16 = vector.broadcast %15 : vector<1x128xf32> to vector<8x128xf32>
    %17 = arith.mulf %14, %16 : vector<8x128xf32>
    %18 = vector.extract_strided_slice %5 {offsets = [0, 0], sizes = [8, 8], strides = [1, 1]} : vector<8x216xf32> to vector<8x8xf32>
    %cst_11 = arith.constant dense<0.000000e+00> : vector<8x128xf32>
    %19 = tpu.matmul %18, %17, %cst_11 {dimension_numbers = #tpu.dot_dimension_numbers<[1], [0], [0], [1], [0, 0, 1, 1], [], []>} : vector<8x8xf32>, vector<8x128xf32>, vector<8x128xf32> -> vector<8x128xf32>
    %20 = arith.addf %7, %19 : vector<8x128xf32>
    %21 = vector.extract_strided_slice %3 {offsets = [0, 56], sizes = [8, 128], strides = [1, 1]} : vector<8x384xf32> to vector<8x128xf32>
    %22 = vector.extract_strided_slice %4 {offsets = [0, 0], sizes = [1, 128], strides = [1, 1]} : vector<6x128xf32> to vector<1x128xf32>
    %23 = vector.broadcast %22 : vector<1x128xf32> to vector<8x128xf32>
    %24 = arith.mulf %21, %23 : vector<8x128xf32>
    %25 = vector.extract_strided_slice %4 {offsets = [1, 0], sizes = [1, 128], strides = [1, 1]} : vector<6x128xf32> to vector<1x128xf32>
    %26 = vector.broadcast %25 : vector<1x128xf32> to vector<8x128xf32>
    %27 = arith.mulf %24, %26 : vector<8x128xf32>
    %28 = vector.extract_strided_slice %5 {offsets = [0, 8], sizes = [8, 8], strides = [1, 1]} : vector<8x216xf32> to vector<8x8xf32>
    %cst_12 = arith.constant dense<0.000000e+00> : vector<8x128xf32>
    %29 = tpu.matmul %28, %27, %cst_12 {dimension_numbers = #tpu.dot_dimension_numbers<[1], [0], [0], [1], [0, 0, 1, 1], [], []>} : vector<8x8xf32>, vector<8x128xf32>, vector<8x128xf32> -> vector<8x128xf32>
    %30 = arith.addf %20, %29 : vector<8x128xf32>
    %31 = vector.extract_strided_slice %3 {offsets = [0, 57], sizes = [8, 128], strides = [1, 1]} : vector<8x384xf32> to vector<8x128xf32>
    %32 = vector.extract_strided_slice %4 {offsets = [0, 0], sizes = [1, 128], strides = [1, 1]} : vector<6x128xf32> to vector<1x128xf32>
    %33 = vector.broadcast %32 : vector<1x128xf32> to vector<8x128xf32>
    %34 = arith.mulf %31, %33 : vector<8x128xf32>
    %35 = vector.extract_strided_slice %4 {offsets = [1, 0], sizes = [1, 128], strides = [1, 1]} : vector<6x128xf32> to vector<1x128xf32>
    %36 = vector.broadcast %35 : vector<1x128xf32> to vector<8x128xf32>
    %37 = arith.mulf %34, %36 : vector<8x128xf32>
    %38 = vector.extract_strided_slice %4 {offsets = [3, 0], sizes = [1, 128], strides = [1, 1]} : vector<6x128xf32> to vector<1x128xf32>
    %39 = vector.broadcast %38 : vector<1x128xf32> to vector<8x128xf32>
    %40 = arith.mulf %37, %39 : vector<8x128xf32>
    %41 = vector.extract_strided_slice %5 {offsets = [0, 16], sizes = [8, 8], strides = [1, 1]} : vector<8x216xf32> to vector<8x8xf32>
    %cst_13 = arith.constant dense<0.000000e+00> : vector<8x128xf32>
    %42 = tpu.matmul %41, %40, %cst_13 {dimension_numbers = #tpu.dot_dimension_numbers<[1], [0], [0], [1], [0, 0, 1, 1], [], []>} : vector<8x8xf32>, vector<8x128xf32>, vector<8x128xf32> -> vector<8x128xf32>
    %43 = arith.addf %30, %42 : vector<8x128xf32>
    %44 = vector.extract_strided_slice %3 {offsets = [0, 63], sizes = [8, 128], strides = [1, 1]} : vector<8x384xf32> to vector<8x128xf32>
    %45 = vector.extract_strided_slice %4 {offsets = [0, 0], sizes = [1, 128], strides = [1, 1]} : vector<6x128xf32> to vector<1x128xf32>
    %46 = vector.broadcast %45 : vector<1x128xf32> to vector<8x128xf32>
    %47 = arith.mulf %44, %46 : vector<8x128xf32>
    %48 = vector.extract_strided_slice %4 {offsets = [2, 0], sizes = [1, 128], strides = [1, 1]} : vector<6x128xf32> to vector<1x128xf32>
    %49 = vector.broadcast %48 : vector<1x128xf32> to vector<8x128xf32>
    %50 = arith.mulf %47, %49 : vector<8x128xf32>
    %51 = vector.extract_strided_slice %5 {offsets = [0, 24], sizes = [8, 8], strides = [1, 1]} : vector<8x216xf32> to vector<8x8xf32>
    %cst_14 = arith.constant dense<0.000000e+00> : vector<8x128xf32>
    %52 = tpu.matmul %51, %50, %cst_14 {dimension_numbers = #tpu.dot_dimension_numbers<[1], [0], [0], [1], [0, 0, 1, 1], [], []>} : vector<8x8xf32>, vector<8x128xf32>, vector<8x128xf32> -> vector<8x128xf32>
    %53 = arith.addf %43, %52 : vector<8x128xf32>
    %54 = vector.extract_strided_slice %3 {offsets = [0, 64], sizes = [8, 128], strides = [1, 1]} : vector<8x384xf32> to vector<8x128xf32>
    %55 = vector.extract_strided_slice %4 {offsets = [0, 0], sizes = [1, 128], strides = [1, 1]} : vector<6x128xf32> to vector<1x128xf32>
    %56 = vector.broadcast %55 : vector<1x128xf32> to vector<8x128xf32>
    %57 = arith.mulf %54, %56 : vector<8x128xf32>
    %58 = vector.extract_strided_slice %5 {offsets = [0, 32], sizes = [8, 8], strides = [1, 1]} : vector<8x216xf32> to vector<8x8xf32>
    %cst_15 = arith.constant dense<0.000000e+00> : vector<8x128xf32>
    %59 = tpu.matmul %58, %57, %cst_15 {dimension_numbers = #tpu.dot_dimension_numbers<[1], [0], [0], [1], [0, 0, 1, 1], [], []>} : vector<8x8xf32>, vector<8x128xf32>, vector<8x128xf32> -> vector<8x128xf32>
    %60 = arith.addf %53, %59 : vector<8x128xf32>
    %61 = vector.extract_strided_slice %3 {offsets = [0, 65], sizes = [8, 128], strides = [1, 1]} : vector<8x384xf32> to vector<8x128xf32>
    %62 = vector.extract_strided_slice %4 {offsets = [0, 0], sizes = [1, 128], strides = [1, 1]} : vector<6x128xf32> to vector<1x128xf32>
    %63 = vector.broadcast %62 : vector<1x128xf32> to vector<8x128xf32>
    %64 = arith.mulf %61, %63 : vector<8x128xf32>
    %65 = vector.extract_strided_slice %4 {offsets = [3, 0], sizes = [1, 128], strides = [1, 1]} : vector<6x128xf32> to vector<1x128xf32>
    %66 = vector.broadcast %65 : vector<1x128xf32> to vector<8x128xf32>
    %67 = arith.mulf %64, %66 : vector<8x128xf32>
    %68 = vector.extract_strided_slice %5 {offsets = [0, 40], sizes = [8, 8], strides = [1, 1]} : vector<8x216xf32> to vector<8x8xf32>
    %cst_16 = arith.constant dense<0.000000e+00> : vector<8x128xf32>
    %69 = tpu.matmul %68, %67, %cst_16 {dimension_numbers = #tpu.dot_dimension_numbers<[1], [0], [0], [1], [0, 0, 1, 1], [], []>} : vector<8x8xf32>, vector<8x128xf32>, vector<8x128xf32> -> vector<8x128xf32>
    %70 = arith.addf %60, %69 : vector<8x128xf32>
    %71 = vector.extract_strided_slice %3 {offsets = [0, 71], sizes = [8, 128], strides = [1, 1]} : vector<8x384xf32> to vector<8x128xf32>
    %72 = vector.extract_strided_slice %4 {offsets = [0, 0], sizes = [1, 128], strides = [1, 1]} : vector<6x128xf32> to vector<1x128xf32>
    %73 = vector.broadcast %72 : vector<1x128xf32> to vector<8x128xf32>
    %74 = arith.mulf %71, %73 : vector<8x128xf32>
    %75 = vector.extract_strided_slice %4 {offsets = [4, 0], sizes = [1, 128], strides = [1, 1]} : vector<6x128xf32> to vector<1x128xf32>
    %76 = vector.broadcast %75 : vector<1x128xf32> to vector<8x128xf32>
    %77 = arith.mulf %74, %76 : vector<8x128xf32>
    %78 = vector.extract_strided_slice %4 {offsets = [2, 0], sizes = [1, 128], strides = [1, 1]} : vector<6x128xf32> to vector<1x128xf32>
    %79 = vector.broadcast %78 : vector<1x128xf32> to vector<8x128xf32>
    %80 = arith.mulf %77, %79 : vector<8x128xf32>
    %81 = vector.extract_strided_slice %5 {offsets = [0, 48], sizes = [8, 8], strides = [1, 1]} : vector<8x216xf32> to vector<8x8xf32>
    %cst_17 = arith.constant dense<0.000000e+00> : vector<8x128xf32>
    %82 = tpu.matmul %81, %80, %cst_17 {dimension_numbers = #tpu.dot_dimension_numbers<[1], [0], [0], [1], [0, 0, 1, 1], [], []>} : vector<8x8xf32>, vector<8x128xf32>, vector<8x128xf32> -> vector<8x128xf32>
    %83 = arith.addf %70, %82 : vector<8x128xf32>
    %84 = vector.extract_strided_slice %3 {offsets = [0, 72], sizes = [8, 128], strides = [1, 1]} : vector<8x384xf32> to vector<8x128xf32>
    %85 = vector.extract_strided_slice %4 {offsets = [0, 0], sizes = [1, 128], strides = [1, 1]} : vector<6x128xf32> to vector<1x128xf32>
    %86 = vector.broadcast %85 : vector<1x128xf32> to vector<8x128xf32>
    %87 = arith.mulf %84, %86 : vector<8x128xf32>
    %88 = vector.extract_strided_slice %4 {offsets = [4, 0], sizes = [1, 128], strides = [1, 1]} : vector<6x128xf32> to vector<1x128xf32>
    %89 = vector.broadcast %88 : vector<1x128xf32> to vector<8x128xf32>
    %90 = arith.mulf %87, %89 : vector<8x128xf32>
    %91 = vector.extract_strided_slice %5 {offsets = [0, 56], sizes = [8, 8], strides = [1, 1]} : vector<8x216xf32> to vector<8x8xf32>
    %cst_18 = arith.constant dense<0.000000e+00> : vector<8x128xf32>
    %92 = tpu.matmul %91, %90, %cst_18 {dimension_numbers = #tpu.dot_dimension_numbers<[1], [0], [0], [1], [0, 0, 1, 1], [], []>} : vector<8x8xf32>, vector<8x128xf32>, vector<8x128xf32> -> vector<8x128xf32>
    %93 = arith.addf %83, %92 : vector<8x128xf32>
    %94 = vector.extract_strided_slice %3 {offsets = [0, 73], sizes = [8, 128], strides = [1, 1]} : vector<8x384xf32> to vector<8x128xf32>
    %95 = vector.extract_strided_slice %4 {offsets = [0, 0], sizes = [1, 128], strides = [1, 1]} : vector<6x128xf32> to vector<1x128xf32>
    %96 = vector.broadcast %95 : vector<1x128xf32> to vector<8x128xf32>
    %97 = arith.mulf %94, %96 : vector<8x128xf32>
    %98 = vector.extract_strided_slice %4 {offsets = [4, 0], sizes = [1, 128], strides = [1, 1]} : vector<6x128xf32> to vector<1x128xf32>
    %99 = vector.broadcast %98 : vector<1x128xf32> to vector<8x128xf32>
    %100 = arith.mulf %97, %99 : vector<8x128xf32>
    %101 = vector.extract_strided_slice %4 {offsets = [3, 0], sizes = [1, 128], strides = [1, 1]} : vector<6x128xf32> to vector<1x128xf32>
    %102 = vector.broadcast %101 : vector<1x128xf32> to vector<8x128xf32>
    %103 = arith.mulf %100, %102 : vector<8x128xf32>
    %104 = vector.extract_strided_slice %5 {offsets = [0, 64], sizes = [8, 8], strides = [1, 1]} : vector<8x216xf32> to vector<8x8xf32>
    %cst_19 = arith.constant dense<0.000000e+00> : vector<8x128xf32>
    %105 = tpu.matmul %104, %103, %cst_19 {dimension_numbers = #tpu.dot_dimension_numbers<[1], [0], [0], [1], [0, 0, 1, 1], [], []>} : vector<8x8xf32>, vector<8x128xf32>, vector<8x128xf32> -> vector<8x128xf32>
    %106 = arith.addf %93, %105 : vector<8x128xf32>
    %107 = vector.extract_strided_slice %3 {offsets = [0, 119], sizes = [8, 128], strides = [1, 1]} : vector<8x384xf32> to vector<8x128xf32>
    %108 = vector.extract_strided_slice %4 {offsets = [1, 0], sizes = [1, 128], strides = [1, 1]} : vector<6x128xf32> to vector<1x128xf32>
    %109 = vector.broadcast %108 : vector<1x128xf32> to vector<8x128xf32>
    %110 = arith.mulf %107, %109 : vector<8x128xf32>
    %111 = vector.extract_strided_slice %4 {offsets = [2, 0], sizes = [1, 128], strides = [1, 1]} : vector<6x128xf32> to vector<1x128xf32>
    %112 = vector.broadcast %111 : vector<1x128xf32> to vector<8x128xf32>
    %113 = arith.mulf %110, %112 : vector<8x128xf32>
    %114 = vector.extract_strided_slice %5 {offsets = [0, 72], sizes = [8, 8], strides = [1, 1]} : vector<8x216xf32> to vector<8x8xf32>
    %cst_20 = arith.constant dense<0.000000e+00> : vector<8x128xf32>
    %115 = tpu.matmul %114, %113, %cst_20 {dimension_numbers = #tpu.dot_dimension_numbers<[1], [0], [0], [1], [0, 0, 1, 1], [], []>} : vector<8x8xf32>, vector<8x128xf32>, vector<8x128xf32> -> vector<8x128xf32>
    %116 = arith.addf %106, %115 : vector<8x128xf32>
    %117 = vector.extract_strided_slice %3 {offsets = [0, 120], sizes = [8, 128], strides = [1, 1]} : vector<8x384xf32> to vector<8x128xf32>
    %118 = vector.extract_strided_slice %4 {offsets = [1, 0], sizes = [1, 128], strides = [1, 1]} : vector<6x128xf32> to vector<1x128xf32>
    %119 = vector.broadcast %118 : vector<1x128xf32> to vector<8x128xf32>
    %120 = arith.mulf %117, %119 : vector<8x128xf32>
    %121 = vector.extract_strided_slice %5 {offsets = [0, 80], sizes = [8, 8], strides = [1, 1]} : vector<8x216xf32> to vector<8x8xf32>
    %cst_21 = arith.constant dense<0.000000e+00> : vector<8x128xf32>
    %122 = tpu.matmul %121, %120, %cst_21 {dimension_numbers = #tpu.dot_dimension_numbers<[1], [0], [0], [1], [0, 0, 1, 1], [], []>} : vector<8x8xf32>, vector<8x128xf32>, vector<8x128xf32> -> vector<8x128xf32>
    %123 = arith.addf %116, %122 : vector<8x128xf32>
    %124 = vector.extract_strided_slice %3 {offsets = [0, 121], sizes = [8, 128], strides = [1, 1]} : vector<8x384xf32> to vector<8x128xf32>
    %125 = vector.extract_strided_slice %4 {offsets = [1, 0], sizes = [1, 128], strides = [1, 1]} : vector<6x128xf32> to vector<1x128xf32>
    %126 = vector.broadcast %125 : vector<1x128xf32> to vector<8x128xf32>
    %127 = arith.mulf %124, %126 : vector<8x128xf32>
    %128 = vector.extract_strided_slice %4 {offsets = [3, 0], sizes = [1, 128], strides = [1, 1]} : vector<6x128xf32> to vector<1x128xf32>
    %129 = vector.broadcast %128 : vector<1x128xf32> to vector<8x128xf32>
    %130 = arith.mulf %127, %129 : vector<8x128xf32>
    %131 = vector.extract_strided_slice %5 {offsets = [0, 88], sizes = [8, 8], strides = [1, 1]} : vector<8x216xf32> to vector<8x8xf32>
    %cst_22 = arith.constant dense<0.000000e+00> : vector<8x128xf32>
    %132 = tpu.matmul %131, %130, %cst_22 {dimension_numbers = #tpu.dot_dimension_numbers<[1], [0], [0], [1], [0, 0, 1, 1], [], []>} : vector<8x8xf32>, vector<8x128xf32>, vector<8x128xf32> -> vector<8x128xf32>
    %133 = arith.addf %123, %132 : vector<8x128xf32>
    %134 = vector.extract_strided_slice %3 {offsets = [0, 127], sizes = [8, 128], strides = [1, 1]} : vector<8x384xf32> to vector<8x128xf32>
    %135 = vector.extract_strided_slice %4 {offsets = [2, 0], sizes = [1, 128], strides = [1, 1]} : vector<6x128xf32> to vector<1x128xf32>
    %136 = vector.broadcast %135 : vector<1x128xf32> to vector<8x128xf32>
    %137 = arith.mulf %134, %136 : vector<8x128xf32>
    %138 = vector.extract_strided_slice %5 {offsets = [0, 96], sizes = [8, 8], strides = [1, 1]} : vector<8x216xf32> to vector<8x8xf32>
    %cst_23 = arith.constant dense<0.000000e+00> : vector<8x128xf32>
    %139 = tpu.matmul %138, %137, %cst_23 {dimension_numbers = #tpu.dot_dimension_numbers<[1], [0], [0], [1], [0, 0, 1, 1], [], []>} : vector<8x8xf32>, vector<8x128xf32>, vector<8x128xf32> -> vector<8x128xf32>
    %140 = arith.addf %133, %139 : vector<8x128xf32>
    %141 = vector.extract_strided_slice %3 {offsets = [0, 128], sizes = [8, 128], strides = [1, 1]} : vector<8x384xf32> to vector<8x128xf32>
    %142 = vector.extract_strided_slice %5 {offsets = [0, 104], sizes = [8, 8], strides = [1, 1]} : vector<8x216xf32> to vector<8x8xf32>
    %cst_24 = arith.constant dense<0.000000e+00> : vector<8x128xf32>
    %143 = tpu.matmul %142, %141, %cst_24 {dimension_numbers = #tpu.dot_dimension_numbers<[1], [0], [0], [1], [0, 0, 1, 1], [], []>} : vector<8x8xf32>, vector<8x128xf32>, vector<8x128xf32> -> vector<8x128xf32>
    %144 = arith.addf %140, %143 : vector<8x128xf32>
    %145 = vector.extract_strided_slice %3 {offsets = [0, 129], sizes = [8, 128], strides = [1, 1]} : vector<8x384xf32> to vector<8x128xf32>
    %146 = vector.extract_strided_slice %4 {offsets = [3, 0], sizes = [1, 128], strides = [1, 1]} : vector<6x128xf32> to vector<1x128xf32>
    %147 = vector.broadcast %146 : vector<1x128xf32> to vector<8x128xf32>
    %148 = arith.mulf %145, %147 : vector<8x128xf32>
    %149 = vector.extract_strided_slice %5 {offsets = [0, 112], sizes = [8, 8], strides = [1, 1]} : vector<8x216xf32> to vector<8x8xf32>
    %cst_25 = arith.constant dense<0.000000e+00> : vector<8x128xf32>
    %150 = tpu.matmul %149, %148, %cst_25 {dimension_numbers = #tpu.dot_dimension_numbers<[1], [0], [0], [1], [0, 0, 1, 1], [], []>} : vector<8x8xf32>, vector<8x128xf32>, vector<8x128xf32> -> vector<8x128xf32>
    %151 = arith.addf %144, %150 : vector<8x128xf32>
    %152 = vector.extract_strided_slice %3 {offsets = [0, 135], sizes = [8, 128], strides = [1, 1]} : vector<8x384xf32> to vector<8x128xf32>
    %153 = vector.extract_strided_slice %4 {offsets = [4, 0], sizes = [1, 128], strides = [1, 1]} : vector<6x128xf32> to vector<1x128xf32>
    %154 = vector.broadcast %153 : vector<1x128xf32> to vector<8x128xf32>
    %155 = arith.mulf %152, %154 : vector<8x128xf32>
    %156 = vector.extract_strided_slice %4 {offsets = [2, 0], sizes = [1, 128], strides = [1, 1]} : vector<6x128xf32> to vector<1x128xf32>
    %157 = vector.broadcast %156 : vector<1x128xf32> to vector<8x128xf32>
    %158 = arith.mulf %155, %157 : vector<8x128xf32>
    %159 = vector.extract_strided_slice %5 {offsets = [0, 120], sizes = [8, 8], strides = [1, 1]} : vector<8x216xf32> to vector<8x8xf32>
    %cst_26 = arith.constant dense<0.000000e+00> : vector<8x128xf32>
    %160 = tpu.matmul %159, %158, %cst_26 {dimension_numbers = #tpu.dot_dimension_numbers<[1], [0], [0], [1], [0, 0, 1, 1], [], []>} : vector<8x8xf32>, vector<8x128xf32>, vector<8x128xf32> -> vector<8x128xf32>
    %161 = arith.addf %151, %160 : vector<8x128xf32>
    %162 = vector.extract_strided_slice %3 {offsets = [0, 136], sizes = [8, 128], strides = [1, 1]} : vector<8x384xf32> to vector<8x128xf32>
    %163 = vector.extract_strided_slice %4 {offsets = [4, 0], sizes = [1, 128], strides = [1, 1]} : vector<6x128xf32> to vector<1x128xf32>
    %164 = vector.broadcast %163 : vector<1x128xf32> to vector<8x128xf32>
    %165 = arith.mulf %162, %164 : vector<8x128xf32>
    %166 = vector.extract_strided_slice %5 {offsets = [0, 128], sizes = [8, 8], strides = [1, 1]} : vector<8x216xf32> to vector<8x8xf32>
    %cst_27 = arith.constant dense<0.000000e+00> : vector<8x128xf32>
    %167 = tpu.matmul %166, %165, %cst_27 {dimension_numbers = #tpu.dot_dimension_numbers<[1], [0], [0], [1], [0, 0, 1, 1], [], []>} : vector<8x8xf32>, vector<8x128xf32>, vector<8x128xf32> -> vector<8x128xf32>
    %168 = arith.addf %161, %167 : vector<8x128xf32>
    %169 = vector.extract_strided_slice %3 {offsets = [0, 137], sizes = [8, 128], strides = [1, 1]} : vector<8x384xf32> to vector<8x128xf32>
    %170 = vector.extract_strided_slice %4 {offsets = [4, 0], sizes = [1, 128], strides = [1, 1]} : vector<6x128xf32> to vector<1x128xf32>
    %171 = vector.broadcast %170 : vector<1x128xf32> to vector<8x128xf32>
    %172 = arith.mulf %169, %171 : vector<8x128xf32>
    %173 = vector.extract_strided_slice %4 {offsets = [3, 0], sizes = [1, 128], strides = [1, 1]} : vector<6x128xf32> to vector<1x128xf32>
    %174 = vector.broadcast %173 : vector<1x128xf32> to vector<8x128xf32>
    %175 = arith.mulf %172, %174 : vector<8x128xf32>
    %176 = vector.extract_strided_slice %5 {offsets = [0, 136], sizes = [8, 8], strides = [1, 1]} : vector<8x216xf32> to vector<8x8xf32>
    %cst_28 = arith.constant dense<0.000000e+00> : vector<8x128xf32>
    %177 = tpu.matmul %176, %175, %cst_28 {dimension_numbers = #tpu.dot_dimension_numbers<[1], [0], [0], [1], [0, 0, 1, 1], [], []>} : vector<8x8xf32>, vector<8x128xf32>, vector<8x128xf32> -> vector<8x128xf32>
    %178 = arith.addf %168, %177 : vector<8x128xf32>
    %179 = vector.extract_strided_slice %3 {offsets = [0, 183], sizes = [8, 128], strides = [1, 1]} : vector<8x384xf32> to vector<8x128xf32>
    %180 = vector.extract_strided_slice %4 {offsets = [5, 0], sizes = [1, 128], strides = [1, 1]} : vector<6x128xf32> to vector<1x128xf32>
    %181 = vector.broadcast %180 : vector<1x128xf32> to vector<8x128xf32>
    %182 = arith.mulf %179, %181 : vector<8x128xf32>
    %183 = vector.extract_strided_slice %4 {offsets = [1, 0], sizes = [1, 128], strides = [1, 1]} : vector<6x128xf32> to vector<1x128xf32>
    %184 = vector.broadcast %183 : vector<1x128xf32> to vector<8x128xf32>
    %185 = arith.mulf %182, %184 : vector<8x128xf32>
    %186 = vector.extract_strided_slice %4 {offsets = [2, 0], sizes = [1, 128], strides = [1, 1]} : vector<6x128xf32> to vector<1x128xf32>
    %187 = vector.broadcast %186 : vector<1x128xf32> to vector<8x128xf32>
    %188 = arith.mulf %185, %187 : vector<8x128xf32>
    %189 = vector.extract_strided_slice %5 {offsets = [0, 144], sizes = [8, 8], strides = [1, 1]} : vector<8x216xf32> to vector<8x8xf32>
    %cst_29 = arith.constant dense<0.000000e+00> : vector<8x128xf32>
    %190 = tpu.matmul %189, %188, %cst_29 {dimension_numbers = #tpu.dot_dimension_numbers<[1], [0], [0], [1], [0, 0, 1, 1], [], []>} : vector<8x8xf32>, vector<8x128xf32>, vector<8x128xf32> -> vector<8x128xf32>
    %191 = arith.addf %178, %190 : vector<8x128xf32>
    %192 = vector.extract_strided_slice %3 {offsets = [0, 184], sizes = [8, 128], strides = [1, 1]} : vector<8x384xf32> to vector<8x128xf32>
    %193 = vector.extract_strided_slice %4 {offsets = [5, 0], sizes = [1, 128], strides = [1, 1]} : vector<6x128xf32> to vector<1x128xf32>
    %194 = vector.broadcast %193 : vector<1x128xf32> to vector<8x128xf32>
    %195 = arith.mulf %192, %194 : vector<8x128xf32>
    %196 = vector.extract_strided_slice %4 {offsets = [1, 0], sizes = [1, 128], strides = [1, 1]} : vector<6x128xf32> to vector<1x128xf32>
    %197 = vector.broadcast %196 : vector<1x128xf32> to vector<8x128xf32>
    %198 = arith.mulf %195, %197 : vector<8x128xf32>
    %199 = vector.extract_strided_slice %5 {offsets = [0, 152], sizes = [8, 8], strides = [1, 1]} : vector<8x216xf32> to vector<8x8xf32>
    %cst_30 = arith.constant dense<0.000000e+00> : vector<8x128xf32>
    %200 = tpu.matmul %199, %198, %cst_30 {dimension_numbers = #tpu.dot_dimension_numbers<[1], [0], [0], [1], [0, 0, 1, 1], [], []>} : vector<8x8xf32>, vector<8x128xf32>, vector<8x128xf32> -> vector<8x128xf32>
    %201 = arith.addf %191, %200 : vector<8x128xf32>
    %202 = vector.extract_strided_slice %3 {offsets = [0, 185], sizes = [8, 128], strides = [1, 1]} : vector<8x384xf32> to vector<8x128xf32>
    %203 = vector.extract_strided_slice %4 {offsets = [5, 0], sizes = [1, 128], strides = [1, 1]} : vector<6x128xf32> to vector<1x128xf32>
    %204 = vector.broadcast %203 : vector<1x128xf32> to vector<8x128xf32>
    %205 = arith.mulf %202, %204 : vector<8x128xf32>
    %206 = vector.extract_strided_slice %4 {offsets = [1, 0], sizes = [1, 128], strides = [1, 1]} : vector<6x128xf32> to vector<1x128xf32>
    %207 = vector.broadcast %206 : vector<1x128xf32> to vector<8x128xf32>
    %208 = arith.mulf %205, %207 : vector<8x128xf32>
    %209 = vector.extract_strided_slice %4 {offsets = [3, 0], sizes = [1, 128], strides = [1, 1]} : vector<6x128xf32> to vector<1x128xf32>
    %210 = vector.broadcast %209 : vector<1x128xf32> to vector<8x128xf32>
    %211 = arith.mulf %208, %210 : vector<8x128xf32>
    %212 = vector.extract_strided_slice %5 {offsets = [0, 160], sizes = [8, 8], strides = [1, 1]} : vector<8x216xf32> to vector<8x8xf32>
    %cst_31 = arith.constant dense<0.000000e+00> : vector<8x128xf32>
    %213 = tpu.matmul %212, %211, %cst_31 {dimension_numbers = #tpu.dot_dimension_numbers<[1], [0], [0], [1], [0, 0, 1, 1], [], []>} : vector<8x8xf32>, vector<8x128xf32>, vector<8x128xf32> -> vector<8x128xf32>
    %214 = arith.addf %201, %213 : vector<8x128xf32>
    %215 = vector.extract_strided_slice %3 {offsets = [0, 191], sizes = [8, 128], strides = [1, 1]} : vector<8x384xf32> to vector<8x128xf32>
    %216 = vector.extract_strided_slice %4 {offsets = [5, 0], sizes = [1, 128], strides = [1, 1]} : vector<6x128xf32> to vector<1x128xf32>
    %217 = vector.broadcast %216 : vector<1x128xf32> to vector<8x128xf32>
    %218 = arith.mulf %215, %217 : vector<8x128xf32>
    %219 = vector.extract_strided_slice %4 {offsets = [2, 0], sizes = [1, 128], strides = [1, 1]} : vector<6x128xf32> to vector<1x128xf32>
    %220 = vector.broadcast %219 : vector<1x128xf32> to vector<8x128xf32>
    %221 = arith.mulf %218, %220 : vector<8x128xf32>
    %222 = vector.extract_strided_slice %5 {offsets = [0, 168], sizes = [8, 8], strides = [1, 1]} : vector<8x216xf32> to vector<8x8xf32>
    %cst_32 = arith.constant dense<0.000000e+00> : vector<8x128xf32>
    %223 = tpu.matmul %222, %221, %cst_32 {dimension_numbers = #tpu.dot_dimension_numbers<[1], [0], [0], [1], [0, 0, 1, 1], [], []>} : vector<8x8xf32>, vector<8x128xf32>, vector<8x128xf32> -> vector<8x128xf32>
    %224 = arith.addf %214, %223 : vector<8x128xf32>
    %225 = vector.extract_strided_slice %3 {offsets = [0, 192], sizes = [8, 128], strides = [1, 1]} : vector<8x384xf32> to vector<8x128xf32>
    %226 = vector.extract_strided_slice %4 {offsets = [5, 0], sizes = [1, 128], strides = [1, 1]} : vector<6x128xf32> to vector<1x128xf32>
    %227 = vector.broadcast %226 : vector<1x128xf32> to vector<8x128xf32>
    %228 = arith.mulf %225, %227 : vector<8x128xf32>
    %229 = vector.extract_strided_slice %5 {offsets = [0, 176], sizes = [8, 8], strides = [1, 1]} : vector<8x216xf32> to vector<8x8xf32>
    %cst_33 = arith.constant dense<0.000000e+00> : vector<8x128xf32>
    %230 = tpu.matmul %229, %228, %cst_33 {dimension_numbers = #tpu.dot_dimension_numbers<[1], [0], [0], [1], [0, 0, 1, 1], [], []>} : vector<8x8xf32>, vector<8x128xf32>, vector<8x128xf32> -> vector<8x128xf32>
    %231 = arith.addf %224, %230 : vector<8x128xf32>
    %232 = vector.extract_strided_slice %3 {offsets = [0, 193], sizes = [8, 128], strides = [1, 1]} : vector<8x384xf32> to vector<8x128xf32>
    %233 = vector.extract_strided_slice %4 {offsets = [5, 0], sizes = [1, 128], strides = [1, 1]} : vector<6x128xf32> to vector<1x128xf32>
    %234 = vector.broadcast %233 : vector<1x128xf32> to vector<8x128xf32>
    %235 = arith.mulf %232, %234 : vector<8x128xf32>
    %236 = vector.extract_strided_slice %4 {offsets = [3, 0], sizes = [1, 128], strides = [1, 1]} : vector<6x128xf32> to vector<1x128xf32>
    %237 = vector.broadcast %236 : vector<1x128xf32> to vector<8x128xf32>
    %238 = arith.mulf %235, %237 : vector<8x128xf32>
    %239 = vector.extract_strided_slice %5 {offsets = [0, 184], sizes = [8, 8], strides = [1, 1]} : vector<8x216xf32> to vector<8x8xf32>
    %cst_34 = arith.constant dense<0.000000e+00> : vector<8x128xf32>
    %240 = tpu.matmul %239, %238, %cst_34 {dimension_numbers = #tpu.dot_dimension_numbers<[1], [0], [0], [1], [0, 0, 1, 1], [], []>} : vector<8x8xf32>, vector<8x128xf32>, vector<8x128xf32> -> vector<8x128xf32>
    %241 = arith.addf %231, %240 : vector<8x128xf32>
    %242 = vector.extract_strided_slice %3 {offsets = [0, 199], sizes = [8, 128], strides = [1, 1]} : vector<8x384xf32> to vector<8x128xf32>
    %243 = vector.extract_strided_slice %4 {offsets = [5, 0], sizes = [1, 128], strides = [1, 1]} : vector<6x128xf32> to vector<1x128xf32>
    %244 = vector.broadcast %243 : vector<1x128xf32> to vector<8x128xf32>
    %245 = arith.mulf %242, %244 : vector<8x128xf32>
    %246 = vector.extract_strided_slice %4 {offsets = [4, 0], sizes = [1, 128], strides = [1, 1]} : vector<6x128xf32> to vector<1x128xf32>
    %247 = vector.broadcast %246 : vector<1x128xf32> to vector<8x128xf32>
    %248 = arith.mulf %245, %247 : vector<8x128xf32>
    %249 = vector.extract_strided_slice %4 {offsets = [2, 0], sizes = [1, 128], strides = [1, 1]} : vector<6x128xf32> to vector<1x128xf32>
    %250 = vector.broadcast %249 : vector<1x128xf32> to vector<8x128xf32>
    %251 = arith.mulf %248, %250 : vector<8x128xf32>
    %252 = vector.extract_strided_slice %5 {offsets = [0, 192], sizes = [8, 8], strides = [1, 1]} : vector<8x216xf32> to vector<8x8xf32>
    %cst_35 = arith.constant dense<0.000000e+00> : vector<8x128xf32>
    %253 = tpu.matmul %252, %251, %cst_35 {dimension_numbers = #tpu.dot_dimension_numbers<[1], [0], [0], [1], [0, 0, 1, 1], [], []>} : vector<8x8xf32>, vector<8x128xf32>, vector<8x128xf32> -> vector<8x128xf32>
    %254 = arith.addf %241, %253 : vector<8x128xf32>
    %255 = vector.extract_strided_slice %3 {offsets = [0, 200], sizes = [8, 128], strides = [1, 1]} : vector<8x384xf32> to vector<8x128xf32>
    %256 = vector.extract_strided_slice %4 {offsets = [5, 0], sizes = [1, 128], strides = [1, 1]} : vector<6x128xf32> to vector<1x128xf32>
    %257 = vector.broadcast %256 : vector<1x128xf32> to vector<8x128xf32>
    %258 = arith.mulf %255, %257 : vector<8x128xf32>
    %259 = vector.extract_strided_slice %4 {offsets = [4, 0], sizes = [1, 128], strides = [1, 1]} : vector<6x128xf32> to vector<1x128xf32>
    %260 = vector.broadcast %259 : vector<1x128xf32> to vector<8x128xf32>
    %261 = arith.mulf %258, %260 : vector<8x128xf32>
    %262 = vector.extract_strided_slice %5 {offsets = [0, 200], sizes = [8, 8], strides = [1, 1]} : vector<8x216xf32> to vector<8x8xf32>
    %cst_36 = arith.constant dense<0.000000e+00> : vector<8x128xf32>
    %263 = tpu.matmul %262, %261, %cst_36 {dimension_numbers = #tpu.dot_dimension_numbers<[1], [0], [0], [1], [0, 0, 1, 1], [], []>} : vector<8x8xf32>, vector<8x128xf32>, vector<8x128xf32> -> vector<8x128xf32>
    %264 = arith.addf %254, %263 : vector<8x128xf32>
    %265 = vector.extract_strided_slice %3 {offsets = [0, 201], sizes = [8, 128], strides = [1, 1]} : vector<8x384xf32> to vector<8x128xf32>
    %266 = vector.extract_strided_slice %4 {offsets = [5, 0], sizes = [1, 128], strides = [1, 1]} : vector<6x128xf32> to vector<1x128xf32>
    %267 = vector.broadcast %266 : vector<1x128xf32> to vector<8x128xf32>
    %268 = arith.mulf %265, %267 : vector<8x128xf32>
    %269 = vector.extract_strided_slice %4 {offsets = [4, 0], sizes = [1, 128], strides = [1, 1]} : vector<6x128xf32> to vector<1x128xf32>
    %270 = vector.broadcast %269 : vector<1x128xf32> to vector<8x128xf32>
    %271 = arith.mulf %268, %270 : vector<8x128xf32>
    %272 = vector.extract_strided_slice %4 {offsets = [3, 0], sizes = [1, 128], strides = [1, 1]} : vector<6x128xf32> to vector<1x128xf32>
    %273 = vector.broadcast %272 : vector<1x128xf32> to vector<8x128xf32>
    %274 = arith.mulf %271, %273 : vector<8x128xf32>
    %275 = vector.extract_strided_slice %5 {offsets = [0, 208], sizes = [8, 8], strides = [1, 1]} : vector<8x216xf32> to vector<8x8xf32>
    %cst_37 = arith.constant dense<0.000000e+00> : vector<8x128xf32>
    %276 = tpu.matmul %275, %274, %cst_37 {dimension_numbers = #tpu.dot_dimension_numbers<[1], [0], [0], [1], [0, 0, 1, 1], [], []>} : vector<8x8xf32>, vector<8x128xf32>, vector<8x128xf32> -> vector<8x128xf32>
    %277 = arith.addf %264, %276 : vector<8x128xf32>
    %278 = vector.broadcast %6 : vector<8x1xf32> to vector<8x128xf32>
    %279 = arith.addf %277, %278 : vector<8x128xf32>
    %cst_38 = arith.constant 0.000000e+00 : f32
    %280 = vector.broadcast %cst_38 : f32 to vector<8x128xf32>
    %281 = arith.maximumf %279, %280 : vector<8x128xf32>
    %c0_39 = arith.constant 0 : index
    %c0_40 = arith.constant 0 : index
    %282 = vector.load %arg7[%c0_39, %c0_40] : memref<8x128xf32, #tpu.memory_space<vmem>>, vector<8x128xf32>
    tpu.vector_store %arg7[%c0_39, %c0_40], %281 {strides = array<i32>} : memref<8x128xf32, #tpu.memory_space<vmem>>, vector<8x128xf32>,
    return
  }
  func.func @transform_0(%arg0: i32) -> (i32, i32) {
    %c0_i32 = arith.constant 0 : i32
    %c0_i32_0 = arith.constant 0 : i32
    %c0_i32_1 = arith.constant 0 : i32
    return %c0_i32, %c0_i32_0 : i32, i32
  }
  func.func @transform_1(%arg0: i32) -> (i32, i32) {
    %c0_i32 = arith.constant 0 : i32
    %c0_i32_0 = arith.constant 0 : i32
    %c0_i32_1 = arith.constant 0 : i32
    return %c0_i32, %c0_i32_0 : i32, i32
  }
  func.func @transform_2(%arg0: i32) -> (i32, i32) {
    %c0_i32 = arith.constant 0 : i32
    %c0_i32_0 = arith.constant 0 : i32
    return %c0_i32, %arg0 : i32, i32
  }
  func.func @transform_3(%arg0: i32) -> (i32, i32) {
    %c0_i32 = arith.constant 0 : i32
    %0 = arith.addi %arg0, %c0_i32 : i32
    %c0_i32_0 = arith.constant 0 : i32
    %c0_i32_1 = arith.constant 0 : i32
    return %c0_i32_0, %0 : i32, i32
  }
  func.func @transform_4(%arg0: i32) -> (i32, i32) {
    %c1_i32 = arith.constant 1 : i32
    %0 = arith.addi %arg0, %c1_i32 : i32
    %c0_i32 = arith.constant 0 : i32
    %c0_i32_0 = arith.constant 0 : i32
    return %c0_i32, %0 : i32, i32
  }
  func.func @transform_5(%arg0: i32) -> (i32, i32) {
    %c2_i32 = arith.constant 2 : i32
    %0 = arith.addi %arg0, %c2_i32 : i32
    %c0_i32 = arith.constant 0 : i32
    %c0_i32_0 = arith.constant 0 : i32
    return %c0_i32, %0 : i32, i32
  }
  func.func @transform_6(%arg0: i32) -> (i32, i32) {
    %c0_i32 = arith.constant 0 : i32
    %c0_i32_0 = arith.constant 0 : i32
    return %c0_i32, %arg0 : i32, i32
  }
}

module attributes {stable_mosaic.version = 11 : i64} {
  func.func @_fused_conv_kernel(%arg0: i32, %arg1: memref<16x216xf32, #tpu.memory_space<vmem>>, %arg2: memref<16x1xf32, #tpu.memory_space<vmem>>, %arg3: memref<3x128xf32, #tpu.memory_space<vmem>>, %arg4: memref<64x128xf32, #tpu.memory_space<vmem>>, %arg5: memref<64x128xf32, #tpu.memory_space<vmem>>, %arg6: memref<16x128xf32, #tpu.memory_space<vmem>>) attributes {dimension_semantics = [#tpu.dimension_semantics<parallel>], iteration_bounds = array<i64: 1>, scalar_prefetch = 0 : i64, scratch_operands = 0 : i64, tpu.core_type = #tpu.core_type<tc>, window_params = [{pipeline_mode = #tpu.pipeline_mode<synchronous>, transform_indices = @transform_0, window_bounds = array<i64: 16, 216>}, {pipeline_mode = #tpu.pipeline_mode<synchronous>, transform_indices = @transform_1, window_bounds = array<i64: 16, 1>}, {transform_indices = @transform_2, window_bounds = array<i64: 3, 128>}, {transform_indices = @transform_3, window_bounds = array<i64: 64, 128>}, {transform_indices = @transform_4, window_bounds = array<i64: 64, 128>}, {transform_indices = @transform_5, window_bounds = array<i64: 16, 128>}]} {
    %c0 = arith.constant 0 : index
    %c0_0 = arith.constant 0 : index
    %0 = vector.load %arg4[%c0, %c0_0] : memref<64x128xf32, #tpu.memory_space<vmem>>, vector<64x128xf32>
    %c0_1 = arith.constant 0 : index
    %c0_2 = arith.constant 0 : index
    %1 = vector.load %arg5[%c0_1, %c0_2] : memref<64x128xf32, #tpu.memory_space<vmem>>, vector<64x128xf32>
    %2 = tpu.concatenate %0, %1 in 1 : vector<64x128xf32>, vector<64x128xf32> -> vector<64x256xf32>
    %c0_3 = arith.constant 0 : index
    %c0_4 = arith.constant 0 : index
    %3 = vector.load %arg3[%c0_3, %c0_4] : memref<3x128xf32, #tpu.memory_space<vmem>>, vector<3x128xf32>
    %c0_5 = arith.constant 0 : index
    %c0_6 = arith.constant 0 : index
    %4 = vector.load %arg1[%c0_5, %c0_6] : memref<16x216xf32, #tpu.memory_space<vmem>>, vector<16x216xf32>
    %c0_7 = arith.constant 0 : index
    %c0_8 = arith.constant 0 : index
    %5 = vector.load %arg2[%c0_7, %c0_8] : memref<16x1xf32, #tpu.memory_space<vmem>>, vector<16x1xf32>
    %cst = arith.constant 0.000000e+00 : f32
    %6 = vector.broadcast %cst : f32 to vector<16x128xf32>
    %7 = vector.extract_strided_slice %2 {offsets = [56, 107], sizes = [8, 128], strides = [1, 1]} : vector<64x256xf32> to vector<8x128xf32>
    %8 = vector.extract_strided_slice %3 {offsets = [0, 0], sizes = [1, 128], strides = [1, 1]} : vector<3x128xf32> to vector<1x128xf32>
    %9 = vector.broadcast %8 : vector<1x128xf32> to vector<8x128xf32>
    %10 = arith.mulf %7, %9 : vector<8x128xf32>
    %11 = vector.extract_strided_slice %3 {offsets = [1, 0], sizes = [1, 128], strides = [1, 1]} : vector<3x128xf32> to vector<1x128xf32>
    %12 = vector.broadcast %11 : vector<1x128xf32> to vector<8x128xf32>
    %13 = arith.mulf %10, %12 : vector<8x128xf32>
    %14 = vector.extract_strided_slice %3 {offsets = [2, 0], sizes = [1, 128], strides = [1, 1]} : vector<3x128xf32> to vector<1x128xf32>
    %15 = vector.broadcast %14 : vector<1x128xf32> to vector<8x128xf32>
    %16 = arith.mulf %13, %15 : vector<8x128xf32>
    %17 = vector.extract_strided_slice %4 {offsets = [0, 0], sizes = [16, 8], strides = [1, 1]} : vector<16x216xf32> to vector<16x8xf32>
    %cst_9 = arith.constant dense<0.000000e+00> : vector<16x128xf32>
    %18 = tpu.matmul %17, %16, %cst_9 {dimension_numbers = #tpu.dot_dimension_numbers<[1], [0], [0], [1], [0, 0, 1, 1], [], []>} : vector<16x8xf32>, vector<8x128xf32>, vector<16x128xf32> -> vector<16x128xf32>
    %19 = arith.addf %6, %18 : vector<16x128xf32>
    %20 = vector.extract_strided_slice %2 {offsets = [48, 108], sizes = [8, 128], strides = [1, 1]} : vector<64x256xf32> to vector<8x128xf32>
    %21 = vector.extract_strided_slice %3 {offsets = [0, 0], sizes = [1, 128], strides = [1, 1]} : vector<3x128xf32> to vector<1x128xf32>
    %22 = vector.broadcast %21 : vector<1x128xf32> to vector<8x128xf32>
    %23 = arith.mulf %20, %22 : vector<8x128xf32>
    %24 = vector.extract_strided_slice %3 {offsets = [1, 0], sizes = [1, 128], strides = [1, 1]} : vector<3x128xf32> to vector<1x128xf32>
    %25 = vector.broadcast %24 : vector<1x128xf32> to vector<8x128xf32>
    %26 = arith.mulf %23, %25 : vector<8x128xf32>
    %27 = vector.extract_strided_slice %4 {offsets = [0, 8], sizes = [16, 8], strides = [1, 1]} : vector<16x216xf32> to vector<16x8xf32>
    %cst_10 = arith.constant dense<0.000000e+00> : vector<16x128xf32>
    %28 = tpu.matmul %27, %26, %cst_10 {dimension_numbers = #tpu.dot_dimension_numbers<[1], [0], [0], [1], [0, 0, 1, 1], [], []>} : vector<16x8xf32>, vector<8x128xf32>, vector<16x128xf32> -> vector<16x128xf32>
    %29 = arith.addf %19, %28 : vector<16x128xf32>
    %30 = vector.extract_strided_slice %2 {offsets = [56, 108], sizes = [8, 128], strides = [1, 1]} : vector<64x256xf32> to vector<8x128xf32>
    %31 = vector.extract_strided_slice %3 {offsets = [0, 0], sizes = [1, 128], strides = [1, 1]} : vector<3x128xf32> to vector<1x128xf32>
    %32 = vector.broadcast %31 : vector<1x128xf32> to vector<8x128xf32>
    %33 = arith.mulf %30, %32 : vector<8x128xf32>
    %34 = vector.extract_strided_slice %3 {offsets = [1, 0], sizes = [1, 128], strides = [1, 1]} : vector<3x128xf32> to vector<1x128xf32>
    %35 = vector.broadcast %34 : vector<1x128xf32> to vector<8x128xf32>
    %36 = arith.mulf %33, %35 : vector<8x128xf32>
    %37 = vector.extract_strided_slice %4 {offsets = [0, 16], sizes = [16, 8], strides = [1, 1]} : vector<16x216xf32> to vector<16x8xf32>
    %cst_11 = arith.constant dense<0.000000e+00> : vector<16x128xf32>
    %38 = tpu.matmul %37, %36, %cst_11 {dimension_numbers = #tpu.dot_dimension_numbers<[1], [0], [0], [1], [0, 0, 1, 1], [], []>} : vector<16x8xf32>, vector<8x128xf32>, vector<16x128xf32> -> vector<16x128xf32>
    %39 = arith.addf %29, %38 : vector<16x128xf32>
    %40 = vector.extract_strided_slice %2 {offsets = [40, 111], sizes = [8, 128], strides = [1, 1]} : vector<64x256xf32> to vector<8x128xf32>
    %41 = vector.extract_strided_slice %3 {offsets = [0, 0], sizes = [1, 128], strides = [1, 1]} : vector<3x128xf32> to vector<1x128xf32>
    %42 = vector.broadcast %41 : vector<1x128xf32> to vector<8x128xf32>
    %43 = arith.mulf %40, %42 : vector<8x128xf32>
    %44 = vector.extract_strided_slice %3 {offsets = [2, 0], sizes = [1, 128], strides = [1, 1]} : vector<3x128xf32> to vector<1x128xf32>
    %45 = vector.broadcast %44 : vector<1x128xf32> to vector<8x128xf32>
    %46 = arith.mulf %43, %45 : vector<8x128xf32>
    %47 = vector.extract_strided_slice %4 {offsets = [0, 24], sizes = [16, 8], strides = [1, 1]} : vector<16x216xf32> to vector<16x8xf32>
    %cst_12 = arith.constant dense<0.000000e+00> : vector<16x128xf32>
    %48 = tpu.matmul %47, %46, %cst_12 {dimension_numbers = #tpu.dot_dimension_numbers<[1], [0], [0], [1], [0, 0, 1, 1], [], []>} : vector<16x8xf32>, vector<8x128xf32>, vector<16x128xf32> -> vector<16x128xf32>
    %49 = arith.addf %39, %48 : vector<16x128xf32>
    %50 = vector.extract_strided_slice %2 {offsets = [32, 112], sizes = [8, 128], strides = [1, 1]} : vector<64x256xf32> to vector<8x128xf32>
    %51 = vector.extract_strided_slice %3 {offsets = [0, 0], sizes = [1, 128], strides = [1, 1]} : vector<3x128xf32> to vector<1x128xf32>
    %52 = vector.broadcast %51 : vector<1x128xf32> to vector<8x128xf32>
    %53 = arith.mulf %50, %52 : vector<8x128xf32>
    %54 = vector.extract_strided_slice %4 {offsets = [0, 32], sizes = [16, 8], strides = [1, 1]} : vector<16x216xf32> to vector<16x8xf32>
    %cst_13 = arith.constant dense<0.000000e+00> : vector<16x128xf32>
    %55 = tpu.matmul %54, %53, %cst_13 {dimension_numbers = #tpu.dot_dimension_numbers<[1], [0], [0], [1], [0, 0, 1, 1], [], []>} : vector<16x8xf32>, vector<8x128xf32>, vector<16x128xf32> -> vector<16x128xf32>
    %56 = arith.addf %49, %55 : vector<16x128xf32>
    %57 = vector.extract_strided_slice %2 {offsets = [40, 112], sizes = [8, 128], strides = [1, 1]} : vector<64x256xf32> to vector<8x128xf32>
    %58 = vector.extract_strided_slice %3 {offsets = [0, 0], sizes = [1, 128], strides = [1, 1]} : vector<3x128xf32> to vector<1x128xf32>
    %59 = vector.broadcast %58 : vector<1x128xf32> to vector<8x128xf32>
    %60 = arith.mulf %57, %59 : vector<8x128xf32>
    %61 = vector.extract_strided_slice %4 {offsets = [0, 40], sizes = [16, 8], strides = [1, 1]} : vector<16x216xf32> to vector<16x8xf32>
    %cst_14 = arith.constant dense<0.000000e+00> : vector<16x128xf32>
    %62 = tpu.matmul %61, %60, %cst_14 {dimension_numbers = #tpu.dot_dimension_numbers<[1], [0], [0], [1], [0, 0, 1, 1], [], []>} : vector<16x8xf32>, vector<8x128xf32>, vector<16x128xf32> -> vector<16x128xf32>
    %63 = arith.addf %56, %62 : vector<16x128xf32>
    %64 = vector.extract_strided_slice %2 {offsets = [56, 111], sizes = [8, 128], strides = [1, 1]} : vector<64x256xf32> to vector<8x128xf32>
    %65 = vector.extract_strided_slice %3 {offsets = [0, 0], sizes = [1, 128], strides = [1, 1]} : vector<3x128xf32> to vector<1x128xf32>
    %66 = vector.broadcast %65 : vector<1x128xf32> to vector<8x128xf32>
    %67 = arith.mulf %64, %66 : vector<8x128xf32>
    %68 = vector.extract_strided_slice %3 {offsets = [2, 0], sizes = [1, 128], strides = [1, 1]} : vector<3x128xf32> to vector<1x128xf32>
    %69 = vector.broadcast %68 : vector<1x128xf32> to vector<8x128xf32>
    %70 = arith.mulf %67, %69 : vector<8x128xf32>
    %71 = vector.extract_strided_slice %4 {offsets = [0, 48], sizes = [16, 8], strides = [1, 1]} : vector<16x216xf32> to vector<16x8xf32>
    %cst_15 = arith.constant dense<0.000000e+00> : vector<16x128xf32>
    %72 = tpu.matmul %71, %70, %cst_15 {dimension_numbers = #tpu.dot_dimension_numbers<[1], [0], [0], [1], [0, 0, 1, 1], [], []>} : vector<16x8xf32>, vector<8x128xf32>, vector<16x128xf32> -> vector<16x128xf32>
    %73 = arith.addf %63, %72 : vector<16x128xf32>
    %74 = vector.extract_strided_slice %2 {offsets = [48, 112], sizes = [8, 128], strides = [1, 1]} : vector<64x256xf32> to vector<8x128xf32>
    %75 = vector.extract_strided_slice %3 {offsets = [0, 0], sizes = [1, 128], strides = [1, 1]} : vector<3x128xf32> to vector<1x128xf32>
    %76 = vector.broadcast %75 : vector<1x128xf32> to vector<8x128xf32>
    %77 = arith.mulf %74, %76 : vector<8x128xf32>
    %78 = vector.extract_strided_slice %4 {offsets = [0, 56], sizes = [16, 8], strides = [1, 1]} : vector<16x216xf32> to vector<16x8xf32>
    %cst_16 = arith.constant dense<0.000000e+00> : vector<16x128xf32>
    %79 = tpu.matmul %78, %77, %cst_16 {dimension_numbers = #tpu.dot_dimension_numbers<[1], [0], [0], [1], [0, 0, 1, 1], [], []>} : vector<16x8xf32>, vector<8x128xf32>, vector<16x128xf32> -> vector<16x128xf32>
    %80 = arith.addf %73, %79 : vector<16x128xf32>
    %81 = vector.extract_strided_slice %2 {offsets = [56, 112], sizes = [8, 128], strides = [1, 1]} : vector<64x256xf32> to vector<8x128xf32>
    %82 = vector.extract_strided_slice %3 {offsets = [0, 0], sizes = [1, 128], strides = [1, 1]} : vector<3x128xf32> to vector<1x128xf32>
    %83 = vector.broadcast %82 : vector<1x128xf32> to vector<8x128xf32>
    %84 = arith.mulf %81, %83 : vector<8x128xf32>
    %85 = vector.extract_strided_slice %4 {offsets = [0, 64], sizes = [16, 8], strides = [1, 1]} : vector<16x216xf32> to vector<16x8xf32>
    %cst_17 = arith.constant dense<0.000000e+00> : vector<16x128xf32>
    %86 = tpu.matmul %85, %84, %cst_17 {dimension_numbers = #tpu.dot_dimension_numbers<[1], [0], [0], [1], [0, 0, 1, 1], [], []>} : vector<16x8xf32>, vector<8x128xf32>, vector<16x128xf32> -> vector<16x128xf32>
    %87 = arith.addf %80, %86 : vector<16x128xf32>
    %88 = vector.extract_strided_slice %2 {offsets = [24, 123], sizes = [8, 128], strides = [1, 1]} : vector<64x256xf32> to vector<8x128xf32>
    %89 = vector.extract_strided_slice %3 {offsets = [1, 0], sizes = [1, 128], strides = [1, 1]} : vector<3x128xf32> to vector<1x128xf32>
    %90 = vector.broadcast %89 : vector<1x128xf32> to vector<8x128xf32>
    %91 = arith.mulf %88, %90 : vector<8x128xf32>
    %92 = vector.extract_strided_slice %3 {offsets = [2, 0], sizes = [1, 128], strides = [1, 1]} : vector<3x128xf32> to vector<1x128xf32>
    %93 = vector.broadcast %92 : vector<1x128xf32> to vector<8x128xf32>
    %94 = arith.mulf %91, %93 : vector<8x128xf32>
    %95 = vector.extract_strided_slice %4 {offsets = [0, 72], sizes = [16, 8], strides = [1, 1]} : vector<16x216xf32> to vector<16x8xf32>
    %cst_18 = arith.constant dense<0.000000e+00> : vector<16x128xf32>
    %96 = tpu.matmul %95, %94, %cst_18 {dimension_numbers = #tpu.dot_dimension_numbers<[1], [0], [0], [1], [0, 0, 1, 1], [], []>} : vector<16x8xf32>, vector<8x128xf32>, vector<16x128xf32> -> vector<16x128xf32>
    %97 = arith.addf %87, %96 : vector<16x128xf32>
    %98 = vector.extract_strided_slice %2 {offsets = [16, 124], sizes = [8, 128], strides = [1, 1]} : vector<64x256xf32> to vector<8x128xf32>
    %99 = vector.extract_strided_slice %3 {offsets = [1, 0], sizes = [1, 128], strides = [1, 1]} : vector<3x128xf32> to vector<1x128xf32>
    %100 = vector.broadcast %99 : vector<1x128xf32> to vector<8x128xf32>
    %101 = arith.mulf %98, %100 : vector<8x128xf32>
    %102 = vector.extract_strided_slice %4 {offsets = [0, 80], sizes = [16, 8], strides = [1, 1]} : vector<16x216xf32> to vector<16x8xf32>
    %cst_19 = arith.constant dense<0.000000e+00> : vector<16x128xf32>
    %103 = tpu.matmul %102, %101, %cst_19 {dimension_numbers = #tpu.dot_dimension_numbers<[1], [0], [0], [1], [0, 0, 1, 1], [], []>} : vector<16x8xf32>, vector<8x128xf32>, vector<16x128xf32> -> vector<16x128xf32>
    %104 = arith.addf %97, %103 : vector<16x128xf32>
    %105 = vector.extract_strided_slice %2 {offsets = [24, 124], sizes = [8, 128], strides = [1, 1]} : vector<64x256xf32> to vector<8x128xf32>
    %106 = vector.extract_strided_slice %3 {offsets = [1, 0], sizes = [1, 128], strides = [1, 1]} : vector<3x128xf32> to vector<1x128xf32>
    %107 = vector.broadcast %106 : vector<1x128xf32> to vector<8x128xf32>
    %108 = arith.mulf %105, %107 : vector<8x128xf32>
    %109 = vector.extract_strided_slice %4 {offsets = [0, 88], sizes = [16, 8], strides = [1, 1]} : vector<16x216xf32> to vector<16x8xf32>
    %cst_20 = arith.constant dense<0.000000e+00> : vector<16x128xf32>
    %110 = tpu.matmul %109, %108, %cst_20 {dimension_numbers = #tpu.dot_dimension_numbers<[1], [0], [0], [1], [0, 0, 1, 1], [], []>} : vector<16x8xf32>, vector<8x128xf32>, vector<16x128xf32> -> vector<16x128xf32>
    %111 = arith.addf %104, %110 : vector<16x128xf32>
    %112 = vector.extract_strided_slice %2 {offsets = [8, 127], sizes = [8, 128], strides = [1, 1]} : vector<64x256xf32> to vector<8x128xf32>
    %113 = vector.extract_strided_slice %3 {offsets = [2, 0], sizes = [1, 128], strides = [1, 1]} : vector<3x128xf32> to vector<1x128xf32>
    %114 = vector.broadcast %113 : vector<1x128xf32> to vector<8x128xf32>
    %115 = arith.mulf %112, %114 : vector<8x128xf32>
    %116 = vector.extract_strided_slice %4 {offsets = [0, 96], sizes = [16, 8], strides = [1, 1]} : vector<16x216xf32> to vector<16x8xf32>
    %cst_21 = arith.constant dense<0.000000e+00> : vector<16x128xf32>
    %117 = tpu.matmul %116, %115, %cst_21 {dimension_numbers = #tpu.dot_dimension_numbers<[1], [0], [0], [1], [0, 0, 1, 1], [], []>} : vector<16x8xf32>, vector<8x128xf32>, vector<16x128xf32> -> vector<16x128xf32>
    %118 = arith.addf %111, %117 : vector<16x128xf32>
    %119 = vector.extract_strided_slice %2 {offsets = [0, 128], sizes = [8, 128], strides = [1, 1]} : vector<64x256xf32> to vector<8x128xf32>
    %120 = vector.extract_strided_slice %4 {offsets = [0, 104], sizes = [16, 8], strides = [1, 1]} : vector<16x216xf32> to vector<16x8xf32>
    %cst_22 = arith.constant dense<0.000000e+00> : vector<16x128xf32>
    %121 = tpu.matmul %120, %119, %cst_22 {dimension_numbers = #tpu.dot_dimension_numbers<[1], [0], [0], [1], [0, 0, 1, 1], [], []>} : vector<16x8xf32>, vector<8x128xf32>, vector<16x128xf32> -> vector<16x128xf32>
    %122 = arith.addf %118, %121 : vector<16x128xf32>
    %123 = vector.extract_strided_slice %2 {offsets = [8, 128], sizes = [8, 128], strides = [1, 1]} : vector<64x256xf32> to vector<8x128xf32>
    %124 = vector.extract_strided_slice %4 {offsets = [0, 112], sizes = [16, 8], strides = [1, 1]} : vector<16x216xf32> to vector<16x8xf32>
    %cst_23 = arith.constant dense<0.000000e+00> : vector<16x128xf32>
    %125 = tpu.matmul %124, %123, %cst_23 {dimension_numbers = #tpu.dot_dimension_numbers<[1], [0], [0], [1], [0, 0, 1, 1], [], []>} : vector<16x8xf32>, vector<8x128xf32>, vector<16x128xf32> -> vector<16x128xf32>
    %126 = arith.addf %122, %125 : vector<16x128xf32>
    %127 = vector.extract_strided_slice %2 {offsets = [24, 127], sizes = [8, 128], strides = [1, 1]} : vector<64x256xf32> to vector<8x128xf32>
    %128 = vector.extract_strided_slice %3 {offsets = [2, 0], sizes = [1, 128], strides = [1, 1]} : vector<3x128xf32> to vector<1x128xf32>
    %129 = vector.broadcast %128 : vector<1x128xf32> to vector<8x128xf32>
    %130 = arith.mulf %127, %129 : vector<8x128xf32>
    %131 = vector.extract_strided_slice %4 {offsets = [0, 120], sizes = [16, 8], strides = [1, 1]} : vector<16x216xf32> to vector<16x8xf32>
    %cst_24 = arith.constant dense<0.000000e+00> : vector<16x128xf32>
    %132 = tpu.matmul %131, %130, %cst_24 {dimension_numbers = #tpu.dot_dimension_numbers<[1], [0], [0], [1], [0, 0, 1, 1], [], []>} : vector<16x8xf32>, vector<8x128xf32>, vector<16x128xf32> -> vector<16x128xf32>
    %133 = arith.addf %126, %132 : vector<16x128xf32>
    %134 = vector.extract_strided_slice %2 {offsets = [16, 128], sizes = [8, 128], strides = [1, 1]} : vector<64x256xf32> to vector<8x128xf32>
    %135 = vector.extract_strided_slice %4 {offsets = [0, 128], sizes = [16, 8], strides = [1, 1]} : vector<16x216xf32> to vector<16x8xf32>
    %cst_25 = arith.constant dense<0.000000e+00> : vector<16x128xf32>
    %136 = tpu.matmul %135, %134, %cst_25 {dimension_numbers = #tpu.dot_dimension_numbers<[1], [0], [0], [1], [0, 0, 1, 1], [], []>} : vector<16x8xf32>, vector<8x128xf32>, vector<16x128xf32> -> vector<16x128xf32>
    %137 = arith.addf %133, %136 : vector<16x128xf32>
    %138 = vector.extract_strided_slice %2 {offsets = [24, 128], sizes = [8, 128], strides = [1, 1]} : vector<64x256xf32> to vector<8x128xf32>
    %139 = vector.extract_strided_slice %4 {offsets = [0, 136], sizes = [16, 8], strides = [1, 1]} : vector<16x216xf32> to vector<16x8xf32>
    %cst_26 = arith.constant dense<0.000000e+00> : vector<16x128xf32>
    %140 = tpu.matmul %139, %138, %cst_26 {dimension_numbers = #tpu.dot_dimension_numbers<[1], [0], [0], [1], [0, 0, 1, 1], [], []>} : vector<16x8xf32>, vector<8x128xf32>, vector<16x128xf32> -> vector<16x128xf32>
    %141 = arith.addf %137, %140 : vector<16x128xf32>
    %142 = vector.extract_strided_slice %2 {offsets = [56, 123], sizes = [8, 128], strides = [1, 1]} : vector<64x256xf32> to vector<8x128xf32>
    %143 = vector.extract_strided_slice %3 {offsets = [1, 0], sizes = [1, 128], strides = [1, 1]} : vector<3x128xf32> to vector<1x128xf32>
    %144 = vector.broadcast %143 : vector<1x128xf32> to vector<8x128xf32>
    %145 = arith.mulf %142, %144 : vector<8x128xf32>
    %146 = vector.extract_strided_slice %3 {offsets = [2, 0], sizes = [1, 128], strides = [1, 1]} : vector<3x128xf32> to vector<1x128xf32>
    %147 = vector.broadcast %146 : vector<1x128xf32> to vector<8x128xf32>
    %148 = arith.mulf %145, %147 : vector<8x128xf32>
    %149 = vector.extract_strided_slice %4 {offsets = [0, 144], sizes = [16, 8], strides = [1, 1]} : vector<16x216xf32> to vector<16x8xf32>
    %cst_27 = arith.constant dense<0.000000e+00> : vector<16x128xf32>
    %150 = tpu.matmul %149, %148, %cst_27 {dimension_numbers = #tpu.dot_dimension_numbers<[1], [0], [0], [1], [0, 0, 1, 1], [], []>} : vector<16x8xf32>, vector<8x128xf32>, vector<16x128xf32> -> vector<16x128xf32>
    %151 = arith.addf %141, %150 : vector<16x128xf32>
    %152 = vector.extract_strided_slice %2 {offsets = [48, 124], sizes = [8, 128], strides = [1, 1]} : vector<64x256xf32> to vector<8x128xf32>
    %153 = vector.extract_strided_slice %3 {offsets = [1, 0], sizes = [1, 128], strides = [1, 1]} : vector<3x128xf32> to vector<1x128xf32>
    %154 = vector.broadcast %153 : vector<1x128xf32> to vector<8x128xf32>
    %155 = arith.mulf %152, %154 : vector<8x128xf32>
    %156 = vector.extract_strided_slice %4 {offsets = [0, 152], sizes = [16, 8], strides = [1, 1]} : vector<16x216xf32> to vector<16x8xf32>
    %cst_28 = arith.constant dense<0.000000e+00> : vector<16x128xf32>
    %157 = tpu.matmul %156, %155, %cst_28 {dimension_numbers = #tpu.dot_dimension_numbers<[1], [0], [0], [1], [0, 0, 1, 1], [], []>} : vector<16x8xf32>, vector<8x128xf32>, vector<16x128xf32> -> vector<16x128xf32>
    %158 = arith.addf %151, %157 : vector<16x128xf32>
    %159 = vector.extract_strided_slice %2 {offsets = [56, 124], sizes = [8, 128], strides = [1, 1]} : vector<64x256xf32> to vector<8x128xf32>
    %160 = vector.extract_strided_slice %3 {offsets = [1, 0], sizes = [1, 128], strides = [1, 1]} : vector<3x128xf32> to vector<1x128xf32>
    %161 = vector.broadcast %160 : vector<1x128xf32> to vector<8x128xf32>
    %162 = arith.mulf %159, %161 : vector<8x128xf32>
    %163 = vector.extract_strided_slice %4 {offsets = [0, 160], sizes = [16, 8], strides = [1, 1]} : vector<16x216xf32> to vector<16x8xf32>
    %cst_29 = arith.constant dense<0.000000e+00> : vector<16x128xf32>
    %164 = tpu.matmul %163, %162, %cst_29 {dimension_numbers = #tpu.dot_dimension_numbers<[1], [0], [0], [1], [0, 0, 1, 1], [], []>} : vector<16x8xf32>, vector<8x128xf32>, vector<16x128xf32> -> vector<16x128xf32>
    %165 = arith.addf %158, %164 : vector<16x128xf32>
    %166 = vector.extract_strided_slice %2 {offsets = [40, 127], sizes = [8, 128], strides = [1, 1]} : vector<64x256xf32> to vector<8x128xf32>
    %167 = vector.extract_strided_slice %3 {offsets = [2, 0], sizes = [1, 128], strides = [1, 1]} : vector<3x128xf32> to vector<1x128xf32>
    %168 = vector.broadcast %167 : vector<1x128xf32> to vector<8x128xf32>
    %169 = arith.mulf %166, %168 : vector<8x128xf32>
    %170 = vector.extract_strided_slice %4 {offsets = [0, 168], sizes = [16, 8], strides = [1, 1]} : vector<16x216xf32> to vector<16x8xf32>
    %cst_30 = arith.constant dense<0.000000e+00> : vector<16x128xf32>
    %171 = tpu.matmul %170, %169, %cst_30 {dimension_numbers = #tpu.dot_dimension_numbers<[1], [0], [0], [1], [0, 0, 1, 1], [], []>} : vector<16x8xf32>, vector<8x128xf32>, vector<16x128xf32> -> vector<16x128xf32>
    %172 = arith.addf %165, %171 : vector<16x128xf32>
    %173 = vector.extract_strided_slice %2 {offsets = [32, 128], sizes = [8, 128], strides = [1, 1]} : vector<64x256xf32> to vector<8x128xf32>
    %174 = vector.extract_strided_slice %4 {offsets = [0, 176], sizes = [16, 8], strides = [1, 1]} : vector<16x216xf32> to vector<16x8xf32>
    %cst_31 = arith.constant dense<0.000000e+00> : vector<16x128xf32>
    %175 = tpu.matmul %174, %173, %cst_31 {dimension_numbers = #tpu.dot_dimension_numbers<[1], [0], [0], [1], [0, 0, 1, 1], [], []>} : vector<16x8xf32>, vector<8x128xf32>, vector<16x128xf32> -> vector<16x128xf32>
    %176 = arith.addf %172, %175 : vector<16x128xf32>
    %177 = vector.extract_strided_slice %2 {offsets = [40, 128], sizes = [8, 128], strides = [1, 1]} : vector<64x256xf32> to vector<8x128xf32>
    %178 = vector.extract_strided_slice %4 {offsets = [0, 184], sizes = [16, 8], strides = [1, 1]} : vector<16x216xf32> to vector<16x8xf32>
    %cst_32 = arith.constant dense<0.000000e+00> : vector<16x128xf32>
    %179 = tpu.matmul %178, %177, %cst_32 {dimension_numbers = #tpu.dot_dimension_numbers<[1], [0], [0], [1], [0, 0, 1, 1], [], []>} : vector<16x8xf32>, vector<8x128xf32>, vector<16x128xf32> -> vector<16x128xf32>
    %180 = arith.addf %176, %179 : vector<16x128xf32>
    %181 = vector.extract_strided_slice %2 {offsets = [56, 127], sizes = [8, 128], strides = [1, 1]} : vector<64x256xf32> to vector<8x128xf32>
    %182 = vector.extract_strided_slice %3 {offsets = [2, 0], sizes = [1, 128], strides = [1, 1]} : vector<3x128xf32> to vector<1x128xf32>
    %183 = vector.broadcast %182 : vector<1x128xf32> to vector<8x128xf32>
    %184 = arith.mulf %181, %183 : vector<8x128xf32>
    %185 = vector.extract_strided_slice %4 {offsets = [0, 192], sizes = [16, 8], strides = [1, 1]} : vector<16x216xf32> to vector<16x8xf32>
    %cst_33 = arith.constant dense<0.000000e+00> : vector<16x128xf32>
    %186 = tpu.matmul %185, %184, %cst_33 {dimension_numbers = #tpu.dot_dimension_numbers<[1], [0], [0], [1], [0, 0, 1, 1], [], []>} : vector<16x8xf32>, vector<8x128xf32>, vector<16x128xf32> -> vector<16x128xf32>
    %187 = arith.addf %180, %186 : vector<16x128xf32>
    %188 = vector.extract_strided_slice %2 {offsets = [48, 128], sizes = [8, 128], strides = [1, 1]} : vector<64x256xf32> to vector<8x128xf32>
    %189 = vector.extract_strided_slice %4 {offsets = [0, 200], sizes = [16, 8], strides = [1, 1]} : vector<16x216xf32> to vector<16x8xf32>
    %cst_34 = arith.constant dense<0.000000e+00> : vector<16x128xf32>
    %190 = tpu.matmul %189, %188, %cst_34 {dimension_numbers = #tpu.dot_dimension_numbers<[1], [0], [0], [1], [0, 0, 1, 1], [], []>} : vector<16x8xf32>, vector<8x128xf32>, vector<16x128xf32> -> vector<16x128xf32>
    %191 = arith.addf %187, %190 : vector<16x128xf32>
    %192 = vector.extract_strided_slice %2 {offsets = [56, 128], sizes = [8, 128], strides = [1, 1]} : vector<64x256xf32> to vector<8x128xf32>
    %193 = vector.extract_strided_slice %4 {offsets = [0, 208], sizes = [16, 8], strides = [1, 1]} : vector<16x216xf32> to vector<16x8xf32>
    %cst_35 = arith.constant dense<0.000000e+00> : vector<16x128xf32>
    %194 = tpu.matmul %193, %192, %cst_35 {dimension_numbers = #tpu.dot_dimension_numbers<[1], [0], [0], [1], [0, 0, 1, 1], [], []>} : vector<16x8xf32>, vector<8x128xf32>, vector<16x128xf32> -> vector<16x128xf32>
    %195 = arith.addf %191, %194 : vector<16x128xf32>
    %196 = vector.broadcast %5 : vector<16x1xf32> to vector<16x128xf32>
    %197 = arith.addf %195, %196 : vector<16x128xf32>
    %cst_36 = arith.constant 0.000000e+00 : f32
    %198 = vector.broadcast %cst_36 : f32 to vector<16x128xf32>
    %199 = arith.maximumf %197, %198 : vector<16x128xf32>
    %c0_37 = arith.constant 0 : index
    %c0_38 = arith.constant 0 : index
    %200 = vector.load %arg6[%c0_37, %c0_38] : memref<16x128xf32, #tpu.memory_space<vmem>>, vector<16x128xf32>
    tpu.vector_store %arg6[%c0_37, %c0_38], %199 {strides = array<i32>} : memref<16x128xf32, #tpu.memory_space<vmem>>, vector<16x128xf32>,
    return
  }
  func.func @transform_0(%arg0: i32) -> (i32, i32) {
    %c0_i32 = arith.constant 0 : i32
    %c0_i32_0 = arith.constant 0 : i32
    %c0_i32_1 = arith.constant 0 : i32
    return %c0_i32, %c0_i32_0 : i32, i32
  }
  func.func @transform_1(%arg0: i32) -> (i32, i32) {
    %c0_i32 = arith.constant 0 : i32
    %c0_i32_0 = arith.constant 0 : i32
    %c0_i32_1 = arith.constant 0 : i32
    return %c0_i32, %c0_i32_0 : i32, i32
  }
  func.func @transform_2(%arg0: i32) -> (i32, i32) {
    %c0_i32 = arith.constant 0 : i32
    %c0_i32_0 = arith.constant 0 : i32
    return %c0_i32, %arg0 : i32, i32
  }
  func.func @transform_3(%arg0: i32) -> (i32, i32) {
    %c0_i32 = arith.constant 0 : i32
    %0 = arith.addi %arg0, %c0_i32 : i32
    %c0_i32_0 = arith.constant 0 : i32
    %c0_i32_1 = arith.constant 0 : i32
    return %c0_i32_0, %0 : i32, i32
  }
  func.func @transform_4(%arg0: i32) -> (i32, i32) {
    %c1_i32 = arith.constant 1 : i32
    %0 = arith.addi %arg0, %c1_i32 : i32
    %c0_i32 = arith.constant 0 : i32
    %c0_i32_0 = arith.constant 0 : i32
    return %c0_i32, %0 : i32, i32
  }
  func.func @transform_5(%arg0: i32) -> (i32, i32) {
    %c0_i32 = arith.constant 0 : i32
    %c0_i32_0 = arith.constant 0 : i32
    return %c0_i32, %arg0 : i32, i32
  }
}

module attributes {stable_mosaic.version = 11 : i64} {
  func.func @_fused_conv_kernel(%arg0: i32, %arg1: memref<16x432xf32, #tpu.memory_space<vmem>>, %arg2: memref<16x1xf32, #tpu.memory_space<vmem>>, %arg3: memref<6x128xf32, #tpu.memory_space<vmem>>, %arg4: memref<16x128xf32, #tpu.memory_space<vmem>>, %arg5: memref<16x128xf32, #tpu.memory_space<vmem>>, %arg6: memref<16x128xf32, #tpu.memory_space<vmem>>, %arg7: memref<16x128xf32, #tpu.memory_space<vmem>>) attributes {dimension_semantics = [#tpu.dimension_semantics<parallel>], iteration_bounds = array<i64: 1>, scalar_prefetch = 0 : i64, scratch_operands = 0 : i64, tpu.core_type = #tpu.core_type<tc>, window_params = [{pipeline_mode = #tpu.pipeline_mode<synchronous>, transform_indices = @transform_0, window_bounds = array<i64: 16, 432>}, {pipeline_mode = #tpu.pipeline_mode<synchronous>, transform_indices = @transform_1, window_bounds = array<i64: 16, 1>}, {transform_indices = @transform_2, window_bounds = array<i64: 6, 128>}, {transform_indices = @transform_3, window_bounds = array<i64: 16, 128>}, {transform_indices = @transform_4, window_bounds = array<i64: 16, 128>}, {transform_indices = @transform_5, window_bounds = array<i64: 16, 128>}, {transform_indices = @transform_6, window_bounds = array<i64: 16, 128>}]} {
    %c0 = arith.constant 0 : index
    %c0_0 = arith.constant 0 : index
    %0 = vector.load %arg4[%c0, %c0_0] : memref<16x128xf32, #tpu.memory_space<vmem>>, vector<16x128xf32>
    %c0_1 = arith.constant 0 : index
    %c0_2 = arith.constant 0 : index
    %1 = vector.load %arg5[%c0_1, %c0_2] : memref<16x128xf32, #tpu.memory_space<vmem>>, vector<16x128xf32>
    %c0_3 = arith.constant 0 : index
    %c0_4 = arith.constant 0 : index
    %2 = vector.load %arg6[%c0_3, %c0_4] : memref<16x128xf32, #tpu.memory_space<vmem>>, vector<16x128xf32>
    %3 = tpu.concatenate %0, %1, %2 in 1 : vector<16x128xf32>, vector<16x128xf32>, vector<16x128xf32> -> vector<16x384xf32>
    %c0_5 = arith.constant 0 : index
    %c0_6 = arith.constant 0 : index
    %4 = vector.load %arg3[%c0_5, %c0_6] : memref<6x128xf32, #tpu.memory_space<vmem>>, vector<6x128xf32>
    %c0_7 = arith.constant 0 : index
    %c0_8 = arith.constant 0 : index
    %5 = vector.load %arg1[%c0_7, %c0_8] : memref<16x432xf32, #tpu.memory_space<vmem>>, vector<16x432xf32>
    %c0_9 = arith.constant 0 : index
    %c0_10 = arith.constant 0 : index
    %6 = vector.load %arg2[%c0_9, %c0_10] : memref<16x1xf32, #tpu.memory_space<vmem>>, vector<16x1xf32>
    %cst = arith.constant 0.000000e+00 : f32
    %7 = vector.broadcast %cst : f32 to vector<16x128xf32>
    %8 = vector.extract_strided_slice %3 {offsets = [0, 107], sizes = [16, 128], strides = [1, 1]} : vector<16x384xf32> to vector<16x128xf32>
    %9 = vector.extract_strided_slice %4 {offsets = [0, 0], sizes = [1, 128], strides = [1, 1]} : vector<6x128xf32> to vector<1x128xf32>
    %10 = vector.broadcast %9 : vector<1x128xf32> to vector<16x128xf32>
    %11 = arith.mulf %8, %10 : vector<16x128xf32>
    %12 = vector.extract_strided_slice %4 {offsets = [1, 0], sizes = [1, 128], strides = [1, 1]} : vector<6x128xf32> to vector<1x128xf32>
    %13 = vector.broadcast %12 : vector<1x128xf32> to vector<16x128xf32>
    %14 = arith.mulf %11, %13 : vector<16x128xf32>
    %15 = vector.extract_strided_slice %4 {offsets = [2, 0], sizes = [1, 128], strides = [1, 1]} : vector<6x128xf32> to vector<1x128xf32>
    %16 = vector.broadcast %15 : vector<1x128xf32> to vector<16x128xf32>
    %17 = arith.mulf %14, %16 : vector<16x128xf32>
    %18 = vector.extract_strided_slice %5 {offsets = [0, 0], sizes = [16, 16], strides = [1, 1]} : vector<16x432xf32> to vector<16x16xf32>
    %cst_11 = arith.constant dense<0.000000e+00> : vector<16x128xf32>
    %19 = tpu.matmul %18, %17, %cst_11 {dimension_numbers = #tpu.dot_dimension_numbers<[1], [0], [0], [1], [0, 0, 1, 1], [], []>} : vector<16x16xf32>, vector<16x128xf32>, vector<16x128xf32> -> vector<16x128xf32>
    %20 = arith.addf %7, %19 : vector<16x128xf32>
    %21 = vector.extract_strided_slice %3 {offsets = [0, 108], sizes = [16, 128], strides = [1, 1]} : vector<16x384xf32> to vector<16x128xf32>
    %22 = vector.extract_strided_slice %4 {offsets = [0, 0], sizes = [1, 128], strides = [1, 1]} : vector<6x128xf32> to vector<1x128xf32>
    %23 = vector.broadcast %22 : vector<1x128xf32> to vector<16x128xf32>
    %24 = arith.mulf %21, %23 : vector<16x128xf32>
    %25 = vector.extract_strided_slice %4 {offsets = [1, 0], sizes = [1, 128], strides = [1, 1]} : vector<6x128xf32> to vector<1x128xf32>
    %26 = vector.broadcast %25 : vector<1x128xf32> to vector<16x128xf32>
    %27 = arith.mulf %24, %26 : vector<16x128xf32>
    %28 = vector.extract_strided_slice %5 {offsets = [0, 16], sizes = [16, 16], strides = [1, 1]} : vector<16x432xf32> to vector<16x16xf32>
    %cst_12 = arith.constant dense<0.000000e+00> : vector<16x128xf32>
    %29 = tpu.matmul %28, %27, %cst_12 {dimension_numbers = #tpu.dot_dimension_numbers<[1], [0], [0], [1], [0, 0, 1, 1], [], []>} : vector<16x16xf32>, vector<16x128xf32>, vector<16x128xf32> -> vector<16x128xf32>
    %30 = arith.addf %20, %29 : vector<16x128xf32>
    %31 = vector.extract_strided_slice %3 {offsets = [0, 109], sizes = [16, 128], strides = [1, 1]} : vector<16x384xf32> to vector<16x128xf32>
    %32 = vector.extract_strided_slice %4 {offsets = [0, 0], sizes = [1, 128], strides = [1, 1]} : vector<6x128xf32> to vector<1x128xf32>
    %33 = vector.broadcast %32 : vector<1x128xf32> to vector<16x128xf32>
    %34 = arith.mulf %31, %33 : vector<16x128xf32>
    %35 = vector.extract_strided_slice %4 {offsets = [1, 0], sizes = [1, 128], strides = [1, 1]} : vector<6x128xf32> to vector<1x128xf32>
    %36 = vector.broadcast %35 : vector<1x128xf32> to vector<16x128xf32>
    %37 = arith.mulf %34, %36 : vector<16x128xf32>
    %38 = vector.extract_strided_slice %4 {offsets = [3, 0], sizes = [1, 128], strides = [1, 1]} : vector<6x128xf32> to vector<1x128xf32>
    %39 = vector.broadcast %38 : vector<1x128xf32> to vector<16x128xf32>
    %40 = arith.mulf %37, %39 : vector<16x128xf32>
    %41 = vector.extract_strided_slice %5 {offsets = [0, 32], sizes = [16, 16], strides = [1, 1]} : vector<16x432xf32> to vector<16x16xf32>
    %cst_13 = arith.constant dense<0.000000e+00> : vector<16x128xf32>
    %42 = tpu.matmul %41, %40, %cst_13 {dimension_numbers = #tpu.dot_dimension_numbers<[1], [0], [0], [1], [0, 0, 1, 1], [], []>} : vector<16x16xf32>, vector<16x128xf32>, vector<16x128xf32> -> vector<16x128xf32>
    %43 = arith.addf %30, %42 : vector<16x128xf32>
    %44 = vector.extract_strided_slice %3 {offsets = [0, 111], sizes = [16, 128], strides = [1, 1]} : vector<16x384xf32> to vector<16x128xf32>
    %45 = vector.extract_strided_slice %4 {offsets = [0, 0], sizes = [1, 128], strides = [1, 1]} : vector<6x128xf32> to vector<1x128xf32>
    %46 = vector.broadcast %45 : vector<1x128xf32> to vector<16x128xf32>
    %47 = arith.mulf %44, %46 : vector<16x128xf32>
    %48 = vector.extract_strided_slice %4 {offsets = [2, 0], sizes = [1, 128], strides = [1, 1]} : vector<6x128xf32> to vector<1x128xf32>
    %49 = vector.broadcast %48 : vector<1x128xf32> to vector<16x128xf32>
    %50 = arith.mulf %47, %49 : vector<16x128xf32>
    %51 = vector.extract_strided_slice %5 {offsets = [0, 48], sizes = [16, 16], strides = [1, 1]} : vector<16x432xf32> to vector<16x16xf32>
    %cst_14 = arith.constant dense<0.000000e+00> : vector<16x128xf32>
    %52 = tpu.matmul %51, %50, %cst_14 {dimension_numbers = #tpu.dot_dimension_numbers<[1], [0], [0], [1], [0, 0, 1, 1], [], []>} : vector<16x16xf32>, vector<16x128xf32>, vector<16x128xf32> -> vector<16x128xf32>
    %53 = arith.addf %43, %52 : vector<16x128xf32>
    %54 = vector.extract_strided_slice %3 {offsets = [0, 112], sizes = [16, 128], strides = [1, 1]} : vector<16x384xf32> to vector<16x128xf32>
    %55 = vector.extract_strided_slice %4 {offsets = [0, 0], sizes = [1, 128], strides = [1, 1]} : vector<6x128xf32> to vector<1x128xf32>
    %56 = vector.broadcast %55 : vector<1x128xf32> to vector<16x128xf32>
    %57 = arith.mulf %54, %56 : vector<16x128xf32>
    %58 = vector.extract_strided_slice %5 {offsets = [0, 64], sizes = [16, 16], strides = [1, 1]} : vector<16x432xf32> to vector<16x16xf32>
    %cst_15 = arith.constant dense<0.000000e+00> : vector<16x128xf32>
    %59 = tpu.matmul %58, %57, %cst_15 {dimension_numbers = #tpu.dot_dimension_numbers<[1], [0], [0], [1], [0, 0, 1, 1], [], []>} : vector<16x16xf32>, vector<16x128xf32>, vector<16x128xf32> -> vector<16x128xf32>
    %60 = arith.addf %53, %59 : vector<16x128xf32>
    %61 = vector.extract_strided_slice %3 {offsets = [0, 113], sizes = [16, 128], strides = [1, 1]} : vector<16x384xf32> to vector<16x128xf32>
    %62 = vector.extract_strided_slice %4 {offsets = [0, 0], sizes = [1, 128], strides = [1, 1]} : vector<6x128xf32> to vector<1x128xf32>
    %63 = vector.broadcast %62 : vector<1x128xf32> to vector<16x128xf32>
    %64 = arith.mulf %61, %63 : vector<16x128xf32>
    %65 = vector.extract_strided_slice %4 {offsets = [3, 0], sizes = [1, 128], strides = [1, 1]} : vector<6x128xf32> to vector<1x128xf32>
    %66 = vector.broadcast %65 : vector<1x128xf32> to vector<16x128xf32>
    %67 = arith.mulf %64, %66 : vector<16x128xf32>
    %68 = vector.extract_strided_slice %5 {offsets = [0, 80], sizes = [16, 16], strides = [1, 1]} : vector<16x432xf32> to vector<16x16xf32>
    %cst_16 = arith.constant dense<0.000000e+00> : vector<16x128xf32>
    %69 = tpu.matmul %68, %67, %cst_16 {dimension_numbers = #tpu.dot_dimension_numbers<[1], [0], [0], [1], [0, 0, 1, 1], [], []>} : vector<16x16xf32>, vector<16x128xf32>, vector<16x128xf32> -> vector<16x128xf32>
    %70 = arith.addf %60, %69 : vector<16x128xf32>
    %71 = vector.extract_strided_slice %3 {offsets = [0, 115], sizes = [16, 128], strides = [1, 1]} : vector<16x384xf32> to vector<16x128xf32>
    %72 = vector.extract_strided_slice %4 {offsets = [0, 0], sizes = [1, 128], strides = [1, 1]} : vector<6x128xf32> to vector<1x128xf32>
    %73 = vector.broadcast %72 : vector<1x128xf32> to vector<16x128xf32>
    %74 = arith.mulf %71, %73 : vector<16x128xf32>
    %75 = vector.extract_strided_slice %4 {offsets = [4, 0], sizes = [1, 128], strides = [1, 1]} : vector<6x128xf32> to vector<1x128xf32>
    %76 = vector.broadcast %75 : vector<1x128xf32> to vector<16x128xf32>
    %77 = arith.mulf %74, %76 : vector<16x128xf32>
    %78 = vector.extract_strided_slice %4 {offsets = [2, 0], sizes = [1, 128], strides = [1, 1]} : vector<6x128xf32> to vector<1x128xf32>
    %79 = vector.broadcast %78 : vector<1x128xf32> to vector<16x128xf32>
    %80 = arith.mulf %77, %79 : vector<16x128xf32>
    %81 = vector.extract_strided_slice %5 {offsets = [0, 96], sizes = [16, 16], strides = [1, 1]} : vector<16x432xf32> to vector<16x16xf32>
    %cst_17 = arith.constant dense<0.000000e+00> : vector<16x128xf32>
    %82 = tpu.matmul %81, %80, %cst_17 {dimension_numbers = #tpu.dot_dimension_numbers<[1], [0], [0], [1], [0, 0, 1, 1], [], []>} : vector<16x16xf32>, vector<16x128xf32>, vector<16x128xf32> -> vector<16x128xf32>
    %83 = arith.addf %70, %82 : vector<16x128xf32>
    %84 = vector.extract_strided_slice %3 {offsets = [0, 116], sizes = [16, 128], strides = [1, 1]} : vector<16x384xf32> to vector<16x128xf32>
    %85 = vector.extract_strided_slice %4 {offsets = [0, 0], sizes = [1, 128], strides = [1, 1]} : vector<6x128xf32> to vector<1x128xf32>
    %86 = vector.broadcast %85 : vector<1x128xf32> to vector<16x128xf32>
    %87 = arith.mulf %84, %86 : vector<16x128xf32>
    %88 = vector.extract_strided_slice %4 {offsets = [4, 0], sizes = [1, 128], strides = [1, 1]} : vector<6x128xf32> to vector<1x128xf32>
    %89 = vector.broadcast %88 : vector<1x128xf32> to vector<16x128xf32>
    %90 = arith.mulf %87, %89 : vector<16x128xf32>
    %91 = vector.extract_strided_slice %5 {offsets = [0, 112], sizes = [16, 16], strides = [1, 1]} : vector<16x432xf32> to vector<16x16xf32>
    %cst_18 = arith.constant dense<0.000000e+00> : vector<16x128xf32>
    %92 = tpu.matmul %91, %90, %cst_18 {dimension_numbers = #tpu.dot_dimension_numbers<[1], [0], [0], [1], [0, 0, 1, 1], [], []>} : vector<16x16xf32>, vector<16x128xf32>, vector<16x128xf32> -> vector<16x128xf32>
    %93 = arith.addf %83, %92 : vector<16x128xf32>
    %94 = vector.extract_strided_slice %3 {offsets = [0, 117], sizes = [16, 128], strides = [1, 1]} : vector<16x384xf32> to vector<16x128xf32>
    %95 = vector.extract_strided_slice %4 {offsets = [0, 0], sizes = [1, 128], strides = [1, 1]} : vector<6x128xf32> to vector<1x128xf32>
    %96 = vector.broadcast %95 : vector<1x128xf32> to vector<16x128xf32>
    %97 = arith.mulf %94, %96 : vector<16x128xf32>
    %98 = vector.extract_strided_slice %4 {offsets = [4, 0], sizes = [1, 128], strides = [1, 1]} : vector<6x128xf32> to vector<1x128xf32>
    %99 = vector.broadcast %98 : vector<1x128xf32> to vector<16x128xf32>
    %100 = arith.mulf %97, %99 : vector<16x128xf32>
    %101 = vector.extract_strided_slice %4 {offsets = [3, 0], sizes = [1, 128], strides = [1, 1]} : vector<6x128xf32> to vector<1x128xf32>
    %102 = vector.broadcast %101 : vector<1x128xf32> to vector<16x128xf32>
    %103 = arith.mulf %100, %102 : vector<16x128xf32>
    %104 = vector.extract_strided_slice %5 {offsets = [0, 128], sizes = [16, 16], strides = [1, 1]} : vector<16x432xf32> to vector<16x16xf32>
    %cst_19 = arith.constant dense<0.000000e+00> : vector<16x128xf32>
    %105 = tpu.matmul %104, %103, %cst_19 {dimension_numbers = #tpu.dot_dimension_numbers<[1], [0], [0], [1], [0, 0, 1, 1], [], []>} : vector<16x16xf32>, vector<16x128xf32>, vector<16x128xf32> -> vector<16x128xf32>
    %106 = arith.addf %93, %105 : vector<16x128xf32>
    %107 = vector.extract_strided_slice %3 {offsets = [0, 123], sizes = [16, 128], strides = [1, 1]} : vector<16x384xf32> to vector<16x128xf32>
    %108 = vector.extract_strided_slice %4 {offsets = [1, 0], sizes = [1, 128], strides = [1, 1]} : vector<6x128xf32> to vector<1x128xf32>
    %109 = vector.broadcast %108 : vector<1x128xf32> to vector<16x128xf32>
    %110 = arith.mulf %107, %109 : vector<16x128xf32>
    %111 = vector.extract_strided_slice %4 {offsets = [2, 0], sizes = [1, 128], strides = [1, 1]} : vector<6x128xf32> to vector<1x128xf32>
    %112 = vector.broadcast %111 : vector<1x128xf32> to vector<16x128xf32>
    %113 = arith.mulf %110, %112 : vector<16x128xf32>
    %114 = vector.extract_strided_slice %5 {offsets = [0, 144], sizes = [16, 16], strides = [1, 1]} : vector<16x432xf32> to vector<16x16xf32>
    %cst_20 = arith.constant dense<0.000000e+00> : vector<16x128xf32>
    %115 = tpu.matmul %114, %113, %cst_20 {dimension_numbers = #tpu.dot_dimension_numbers<[1], [0], [0], [1], [0, 0, 1, 1], [], []>} : vector<16x16xf32>, vector<16x128xf32>, vector<16x128xf32> -> vector<16x128xf32>
    %116 = arith.addf %106, %115 : vector<16x128xf32>
    %117 = vector.extract_strided_slice %3 {offsets = [0, 124], sizes = [16, 128], strides = [1, 1]} : vector<16x384xf32> to vector<16x128xf32>
    %118 = vector.extract_strided_slice %4 {offsets = [1, 0], sizes = [1, 128], strides = [1, 1]} : vector<6x128xf32> to vector<1x128xf32>
    %119 = vector.broadcast %118 : vector<1x128xf32> to vector<16x128xf32>
    %120 = arith.mulf %117, %119 : vector<16x128xf32>
    %121 = vector.extract_strided_slice %5 {offsets = [0, 160], sizes = [16, 16], strides = [1, 1]} : vector<16x432xf32> to vector<16x16xf32>
    %cst_21 = arith.constant dense<0.000000e+00> : vector<16x128xf32>
    %122 = tpu.matmul %121, %120, %cst_21 {dimension_numbers = #tpu.dot_dimension_numbers<[1], [0], [0], [1], [0, 0, 1, 1], [], []>} : vector<16x16xf32>, vector<16x128xf32>, vector<16x128xf32> -> vector<16x128xf32>
    %123 = arith.addf %116, %122 : vector<16x128xf32>
    %124 = vector.extract_strided_slice %3 {offsets = [0, 125], sizes = [16, 128], strides = [1, 1]} : vector<16x384xf32> to vector<16x128xf32>
    %125 = vector.extract_strided_slice %4 {offsets = [1, 0], sizes = [1, 128], strides = [1, 1]} : vector<6x128xf32> to vector<1x128xf32>
    %126 = vector.broadcast %125 : vector<1x128xf32> to vector<16x128xf32>
    %127 = arith.mulf %124, %126 : vector<16x128xf32>
    %128 = vector.extract_strided_slice %4 {offsets = [3, 0], sizes = [1, 128], strides = [1, 1]} : vector<6x128xf32> to vector<1x128xf32>
    %129 = vector.broadcast %128 : vector<1x128xf32> to vector<16x128xf32>
    %130 = arith.mulf %127, %129 : vector<16x128xf32>
    %131 = vector.extract_strided_slice %5 {offsets = [0, 176], sizes = [16, 16], strides = [1, 1]} : vector<16x432xf32> to vector<16x16xf32>
    %cst_22 = arith.constant dense<0.000000e+00> : vector<16x128xf32>
    %132 = tpu.matmul %131, %130, %cst_22 {dimension_numbers = #tpu.dot_dimension_numbers<[1], [0], [0], [1], [0, 0, 1, 1], [], []>} : vector<16x16xf32>, vector<16x128xf32>, vector<16x128xf32> -> vector<16x128xf32>
    %133 = arith.addf %123, %132 : vector<16x128xf32>
    %134 = vector.extract_strided_slice %3 {offsets = [0, 127], sizes = [16, 128], strides = [1, 1]} : vector<16x384xf32> to vector<16x128xf32>
    %135 = vector.extract_strided_slice %4 {offsets = [2, 0], sizes = [1, 128], strides = [1, 1]} : vector<6x128xf32> to vector<1x128xf32>
    %136 = vector.broadcast %135 : vector<1x128xf32> to vector<16x128xf32>
    %137 = arith.mulf %134, %136 : vector<16x128xf32>
    %138 = vector.extract_strided_slice %5 {offsets = [0, 192], sizes = [16, 16], strides = [1, 1]} : vector<16x432xf32> to vector<16x16xf32>
    %cst_23 = arith.constant dense<0.000000e+00> : vector<16x128xf32>
    %139 = tpu.matmul %138, %137, %cst_23 {dimension_numbers = #tpu.dot_dimension_numbers<[1], [0], [0], [1], [0, 0, 1, 1], [], []>} : vector<16x16xf32>, vector<16x128xf32>, vector<16x128xf32> -> vector<16x128xf32>
    %140 = arith.addf %133, %139 : vector<16x128xf32>
    %141 = vector.extract_strided_slice %3 {offsets = [0, 128], sizes = [16, 128], strides = [1, 1]} : vector<16x384xf32> to vector<16x128xf32>
    %142 = vector.extract_strided_slice %5 {offsets = [0, 208], sizes = [16, 16], strides = [1, 1]} : vector<16x432xf32> to vector<16x16xf32>
    %cst_24 = arith.constant dense<0.000000e+00> : vector<16x128xf32>
    %143 = tpu.matmul %142, %141, %cst_24 {dimension_numbers = #tpu.dot_dimension_numbers<[1], [0], [0], [1], [0, 0, 1, 1], [], []>} : vector<16x16xf32>, vector<16x128xf32>, vector<16x128xf32> -> vector<16x128xf32>
    %144 = arith.addf %140, %143 : vector<16x128xf32>
    %145 = vector.extract_strided_slice %3 {offsets = [0, 129], sizes = [16, 128], strides = [1, 1]} : vector<16x384xf32> to vector<16x128xf32>
    %146 = vector.extract_strided_slice %4 {offsets = [3, 0], sizes = [1, 128], strides = [1, 1]} : vector<6x128xf32> to vector<1x128xf32>
    %147 = vector.broadcast %146 : vector<1x128xf32> to vector<16x128xf32>
    %148 = arith.mulf %145, %147 : vector<16x128xf32>
    %149 = vector.extract_strided_slice %5 {offsets = [0, 224], sizes = [16, 16], strides = [1, 1]} : vector<16x432xf32> to vector<16x16xf32>
    %cst_25 = arith.constant dense<0.000000e+00> : vector<16x128xf32>
    %150 = tpu.matmul %149, %148, %cst_25 {dimension_numbers = #tpu.dot_dimension_numbers<[1], [0], [0], [1], [0, 0, 1, 1], [], []>} : vector<16x16xf32>, vector<16x128xf32>, vector<16x128xf32> -> vector<16x128xf32>
    %151 = arith.addf %144, %150 : vector<16x128xf32>
    %152 = vector.extract_strided_slice %3 {offsets = [0, 131], sizes = [16, 128], strides = [1, 1]} : vector<16x384xf32> to vector<16x128xf32>
    %153 = vector.extract_strided_slice %4 {offsets = [4, 0], sizes = [1, 128], strides = [1, 1]} : vector<6x128xf32> to vector<1x128xf32>
    %154 = vector.broadcast %153 : vector<1x128xf32> to vector<16x128xf32>
    %155 = arith.mulf %152, %154 : vector<16x128xf32>
    %156 = vector.extract_strided_slice %4 {offsets = [2, 0], sizes = [1, 128], strides = [1, 1]} : vector<6x128xf32> to vector<1x128xf32>
    %157 = vector.broadcast %156 : vector<1x128xf32> to vector<16x128xf32>
    %158 = arith.mulf %155, %157 : vector<16x128xf32>
    %159 = vector.extract_strided_slice %5 {offsets = [0, 240], sizes = [16, 16], strides = [1, 1]} : vector<16x432xf32> to vector<16x16xf32>
    %cst_26 = arith.constant dense<0.000000e+00> : vector<16x128xf32>
    %160 = tpu.matmul %159, %158, %cst_26 {dimension_numbers = #tpu.dot_dimension_numbers<[1], [0], [0], [1], [0, 0, 1, 1], [], []>} : vector<16x16xf32>, vector<16x128xf32>, vector<16x128xf32> -> vector<16x128xf32>
    %161 = arith.addf %151, %160 : vector<16x128xf32>
    %162 = vector.extract_strided_slice %3 {offsets = [0, 132], sizes = [16, 128], strides = [1, 1]} : vector<16x384xf32> to vector<16x128xf32>
    %163 = vector.extract_strided_slice %4 {offsets = [4, 0], sizes = [1, 128], strides = [1, 1]} : vector<6x128xf32> to vector<1x128xf32>
    %164 = vector.broadcast %163 : vector<1x128xf32> to vector<16x128xf32>
    %165 = arith.mulf %162, %164 : vector<16x128xf32>
    %166 = vector.extract_strided_slice %5 {offsets = [0, 256], sizes = [16, 16], strides = [1, 1]} : vector<16x432xf32> to vector<16x16xf32>
    %cst_27 = arith.constant dense<0.000000e+00> : vector<16x128xf32>
    %167 = tpu.matmul %166, %165, %cst_27 {dimension_numbers = #tpu.dot_dimension_numbers<[1], [0], [0], [1], [0, 0, 1, 1], [], []>} : vector<16x16xf32>, vector<16x128xf32>, vector<16x128xf32> -> vector<16x128xf32>
    %168 = arith.addf %161, %167 : vector<16x128xf32>
    %169 = vector.extract_strided_slice %3 {offsets = [0, 133], sizes = [16, 128], strides = [1, 1]} : vector<16x384xf32> to vector<16x128xf32>
    %170 = vector.extract_strided_slice %4 {offsets = [4, 0], sizes = [1, 128], strides = [1, 1]} : vector<6x128xf32> to vector<1x128xf32>
    %171 = vector.broadcast %170 : vector<1x128xf32> to vector<16x128xf32>
    %172 = arith.mulf %169, %171 : vector<16x128xf32>
    %173 = vector.extract_strided_slice %4 {offsets = [3, 0], sizes = [1, 128], strides = [1, 1]} : vector<6x128xf32> to vector<1x128xf32>
    %174 = vector.broadcast %173 : vector<1x128xf32> to vector<16x128xf32>
    %175 = arith.mulf %172, %174 : vector<16x128xf32>
    %176 = vector.extract_strided_slice %5 {offsets = [0, 272], sizes = [16, 16], strides = [1, 1]} : vector<16x432xf32> to vector<16x16xf32>
    %cst_28 = arith.constant dense<0.000000e+00> : vector<16x128xf32>
    %177 = tpu.matmul %176, %175, %cst_28 {dimension_numbers = #tpu.dot_dimension_numbers<[1], [0], [0], [1], [0, 0, 1, 1], [], []>} : vector<16x16xf32>, vector<16x128xf32>, vector<16x128xf32> -> vector<16x128xf32>
    %178 = arith.addf %168, %177 : vector<16x128xf32>
    %179 = vector.extract_strided_slice %3 {offsets = [0, 139], sizes = [16, 128], strides = [1, 1]} : vector<16x384xf32> to vector<16x128xf32>
    %180 = vector.extract_strided_slice %4 {offsets = [5, 0], sizes = [1, 128], strides = [1, 1]} : vector<6x128xf32> to vector<1x128xf32>
    %181 = vector.broadcast %180 : vector<1x128xf32> to vector<16x128xf32>
    %182 = arith.mulf %179, %181 : vector<16x128xf32>
    %183 = vector.extract_strided_slice %4 {offsets = [1, 0], sizes = [1, 128], strides = [1, 1]} : vector<6x128xf32> to vector<1x128xf32>
    %184 = vector.broadcast %183 : vector<1x128xf32> to vector<16x128xf32>
    %185 = arith.mulf %182, %184 : vector<16x128xf32>
    %186 = vector.extract_strided_slice %4 {offsets = [2, 0], sizes = [1, 128], strides = [1, 1]} : vector<6x128xf32> to vector<1x128xf32>
    %187 = vector.broadcast %186 : vector<1x128xf32> to vector<16x128xf32>
    %188 = arith.mulf %185, %187 : vector<16x128xf32>
    %189 = vector.extract_strided_slice %5 {offsets = [0, 288], sizes = [16, 16], strides = [1, 1]} : vector<16x432xf32> to vector<16x16xf32>
    %cst_29 = arith.constant dense<0.000000e+00> : vector<16x128xf32>
    %190 = tpu.matmul %189, %188, %cst_29 {dimension_numbers = #tpu.dot_dimension_numbers<[1], [0], [0], [1], [0, 0, 1, 1], [], []>} : vector<16x16xf32>, vector<16x128xf32>, vector<16x128xf32> -> vector<16x128xf32>
    %191 = arith.addf %178, %190 : vector<16x128xf32>
    %192 = vector.extract_strided_slice %3 {offsets = [0, 140], sizes = [16, 128], strides = [1, 1]} : vector<16x384xf32> to vector<16x128xf32>
    %193 = vector.extract_strided_slice %4 {offsets = [5, 0], sizes = [1, 128], strides = [1, 1]} : vector<6x128xf32> to vector<1x128xf32>
    %194 = vector.broadcast %193 : vector<1x128xf32> to vector<16x128xf32>
    %195 = arith.mulf %192, %194 : vector<16x128xf32>
    %196 = vector.extract_strided_slice %4 {offsets = [1, 0], sizes = [1, 128], strides = [1, 1]} : vector<6x128xf32> to vector<1x128xf32>
    %197 = vector.broadcast %196 : vector<1x128xf32> to vector<16x128xf32>
    %198 = arith.mulf %195, %197 : vector<16x128xf32>
    %199 = vector.extract_strided_slice %5 {offsets = [0, 304], sizes = [16, 16], strides = [1, 1]} : vector<16x432xf32> to vector<16x16xf32>
    %cst_30 = arith.constant dense<0.000000e+00> : vector<16x128xf32>
    %200 = tpu.matmul %199, %198, %cst_30 {dimension_numbers = #tpu.dot_dimension_numbers<[1], [0], [0], [1], [0, 0, 1, 1], [], []>} : vector<16x16xf32>, vector<16x128xf32>, vector<16x128xf32> -> vector<16x128xf32>
    %201 = arith.addf %191, %200 : vector<16x128xf32>
    %202 = vector.extract_strided_slice %3 {offsets = [0, 141], sizes = [16, 128], strides = [1, 1]} : vector<16x384xf32> to vector<16x128xf32>
    %203 = vector.extract_strided_slice %4 {offsets = [5, 0], sizes = [1, 128], strides = [1, 1]} : vector<6x128xf32> to vector<1x128xf32>
    %204 = vector.broadcast %203 : vector<1x128xf32> to vector<16x128xf32>
    %205 = arith.mulf %202, %204 : vector<16x128xf32>
    %206 = vector.extract_strided_slice %4 {offsets = [1, 0], sizes = [1, 128], strides = [1, 1]} : vector<6x128xf32> to vector<1x128xf32>
    %207 = vector.broadcast %206 : vector<1x128xf32> to vector<16x128xf32>
    %208 = arith.mulf %205, %207 : vector<16x128xf32>
    %209 = vector.extract_strided_slice %4 {offsets = [3, 0], sizes = [1, 128], strides = [1, 1]} : vector<6x128xf32> to vector<1x128xf32>
    %210 = vector.broadcast %209 : vector<1x128xf32> to vector<16x128xf32>
    %211 = arith.mulf %208, %210 : vector<16x128xf32>
    %212 = vector.extract_strided_slice %5 {offsets = [0, 320], sizes = [16, 16], strides = [1, 1]} : vector<16x432xf32> to vector<16x16xf32>
    %cst_31 = arith.constant dense<0.000000e+00> : vector<16x128xf32>
    %213 = tpu.matmul %212, %211, %cst_31 {dimension_numbers = #tpu.dot_dimension_numbers<[1], [0], [0], [1], [0, 0, 1, 1], [], []>} : vector<16x16xf32>, vector<16x128xf32>, vector<16x128xf32> -> vector<16x128xf32>
    %214 = arith.addf %201, %213 : vector<16x128xf32>
    %215 = vector.extract_strided_slice %3 {offsets = [0, 143], sizes = [16, 128], strides = [1, 1]} : vector<16x384xf32> to vector<16x128xf32>
    %216 = vector.extract_strided_slice %4 {offsets = [5, 0], sizes = [1, 128], strides = [1, 1]} : vector<6x128xf32> to vector<1x128xf32>
    %217 = vector.broadcast %216 : vector<1x128xf32> to vector<16x128xf32>
    %218 = arith.mulf %215, %217 : vector<16x128xf32>
    %219 = vector.extract_strided_slice %4 {offsets = [2, 0], sizes = [1, 128], strides = [1, 1]} : vector<6x128xf32> to vector<1x128xf32>
    %220 = vector.broadcast %219 : vector<1x128xf32> to vector<16x128xf32>
    %221 = arith.mulf %218, %220 : vector<16x128xf32>
    %222 = vector.extract_strided_slice %5 {offsets = [0, 336], sizes = [16, 16], strides = [1, 1]} : vector<16x432xf32> to vector<16x16xf32>
    %cst_32 = arith.constant dense<0.000000e+00> : vector<16x128xf32>
    %223 = tpu.matmul %222, %221, %cst_32 {dimension_numbers = #tpu.dot_dimension_numbers<[1], [0], [0], [1], [0, 0, 1, 1], [], []>} : vector<16x16xf32>, vector<16x128xf32>, vector<16x128xf32> -> vector<16x128xf32>
    %224 = arith.addf %214, %223 : vector<16x128xf32>
    %225 = vector.extract_strided_slice %3 {offsets = [0, 144], sizes = [16, 128], strides = [1, 1]} : vector<16x384xf32> to vector<16x128xf32>
    %226 = vector.extract_strided_slice %4 {offsets = [5, 0], sizes = [1, 128], strides = [1, 1]} : vector<6x128xf32> to vector<1x128xf32>
    %227 = vector.broadcast %226 : vector<1x128xf32> to vector<16x128xf32>
    %228 = arith.mulf %225, %227 : vector<16x128xf32>
    %229 = vector.extract_strided_slice %5 {offsets = [0, 352], sizes = [16, 16], strides = [1, 1]} : vector<16x432xf32> to vector<16x16xf32>
    %cst_33 = arith.constant dense<0.000000e+00> : vector<16x128xf32>
    %230 = tpu.matmul %229, %228, %cst_33 {dimension_numbers = #tpu.dot_dimension_numbers<[1], [0], [0], [1], [0, 0, 1, 1], [], []>} : vector<16x16xf32>, vector<16x128xf32>, vector<16x128xf32> -> vector<16x128xf32>
    %231 = arith.addf %224, %230 : vector<16x128xf32>
    %232 = vector.extract_strided_slice %3 {offsets = [0, 145], sizes = [16, 128], strides = [1, 1]} : vector<16x384xf32> to vector<16x128xf32>
    %233 = vector.extract_strided_slice %4 {offsets = [5, 0], sizes = [1, 128], strides = [1, 1]} : vector<6x128xf32> to vector<1x128xf32>
    %234 = vector.broadcast %233 : vector<1x128xf32> to vector<16x128xf32>
    %235 = arith.mulf %232, %234 : vector<16x128xf32>
    %236 = vector.extract_strided_slice %4 {offsets = [3, 0], sizes = [1, 128], strides = [1, 1]} : vector<6x128xf32> to vector<1x128xf32>
    %237 = vector.broadcast %236 : vector<1x128xf32> to vector<16x128xf32>
    %238 = arith.mulf %235, %237 : vector<16x128xf32>
    %239 = vector.extract_strided_slice %5 {offsets = [0, 368], sizes = [16, 16], strides = [1, 1]} : vector<16x432xf32> to vector<16x16xf32>
    %cst_34 = arith.constant dense<0.000000e+00> : vector<16x128xf32>
    %240 = tpu.matmul %239, %238, %cst_34 {dimension_numbers = #tpu.dot_dimension_numbers<[1], [0], [0], [1], [0, 0, 1, 1], [], []>} : vector<16x16xf32>, vector<16x128xf32>, vector<16x128xf32> -> vector<16x128xf32>
    %241 = arith.addf %231, %240 : vector<16x128xf32>
    %242 = vector.extract_strided_slice %3 {offsets = [0, 147], sizes = [16, 128], strides = [1, 1]} : vector<16x384xf32> to vector<16x128xf32>
    %243 = vector.extract_strided_slice %4 {offsets = [5, 0], sizes = [1, 128], strides = [1, 1]} : vector<6x128xf32> to vector<1x128xf32>
    %244 = vector.broadcast %243 : vector<1x128xf32> to vector<16x128xf32>
    %245 = arith.mulf %242, %244 : vector<16x128xf32>
    %246 = vector.extract_strided_slice %4 {offsets = [4, 0], sizes = [1, 128], strides = [1, 1]} : vector<6x128xf32> to vector<1x128xf32>
    %247 = vector.broadcast %246 : vector<1x128xf32> to vector<16x128xf32>
    %248 = arith.mulf %245, %247 : vector<16x128xf32>
    %249 = vector.extract_strided_slice %4 {offsets = [2, 0], sizes = [1, 128], strides = [1, 1]} : vector<6x128xf32> to vector<1x128xf32>
    %250 = vector.broadcast %249 : vector<1x128xf32> to vector<16x128xf32>
    %251 = arith.mulf %248, %250 : vector<16x128xf32>
    %252 = vector.extract_strided_slice %5 {offsets = [0, 384], sizes = [16, 16], strides = [1, 1]} : vector<16x432xf32> to vector<16x16xf32>
    %cst_35 = arith.constant dense<0.000000e+00> : vector<16x128xf32>
    %253 = tpu.matmul %252, %251, %cst_35 {dimension_numbers = #tpu.dot_dimension_numbers<[1], [0], [0], [1], [0, 0, 1, 1], [], []>} : vector<16x16xf32>, vector<16x128xf32>, vector<16x128xf32> -> vector<16x128xf32>
    %254 = arith.addf %241, %253 : vector<16x128xf32>
    %255 = vector.extract_strided_slice %3 {offsets = [0, 148], sizes = [16, 128], strides = [1, 1]} : vector<16x384xf32> to vector<16x128xf32>
    %256 = vector.extract_strided_slice %4 {offsets = [5, 0], sizes = [1, 128], strides = [1, 1]} : vector<6x128xf32> to vector<1x128xf32>
    %257 = vector.broadcast %256 : vector<1x128xf32> to vector<16x128xf32>
    %258 = arith.mulf %255, %257 : vector<16x128xf32>
    %259 = vector.extract_strided_slice %4 {offsets = [4, 0], sizes = [1, 128], strides = [1, 1]} : vector<6x128xf32> to vector<1x128xf32>
    %260 = vector.broadcast %259 : vector<1x128xf32> to vector<16x128xf32>
    %261 = arith.mulf %258, %260 : vector<16x128xf32>
    %262 = vector.extract_strided_slice %5 {offsets = [0, 400], sizes = [16, 16], strides = [1, 1]} : vector<16x432xf32> to vector<16x16xf32>
    %cst_36 = arith.constant dense<0.000000e+00> : vector<16x128xf32>
    %263 = tpu.matmul %262, %261, %cst_36 {dimension_numbers = #tpu.dot_dimension_numbers<[1], [0], [0], [1], [0, 0, 1, 1], [], []>} : vector<16x16xf32>, vector<16x128xf32>, vector<16x128xf32> -> vector<16x128xf32>
    %264 = arith.addf %254, %263 : vector<16x128xf32>
    %265 = vector.extract_strided_slice %3 {offsets = [0, 149], sizes = [16, 128], strides = [1, 1]} : vector<16x384xf32> to vector<16x128xf32>
    %266 = vector.extract_strided_slice %4 {offsets = [5, 0], sizes = [1, 128], strides = [1, 1]} : vector<6x128xf32> to vector<1x128xf32>
    %267 = vector.broadcast %266 : vector<1x128xf32> to vector<16x128xf32>
    %268 = arith.mulf %265, %267 : vector<16x128xf32>
    %269 = vector.extract_strided_slice %4 {offsets = [4, 0], sizes = [1, 128], strides = [1, 1]} : vector<6x128xf32> to vector<1x128xf32>
    %270 = vector.broadcast %269 : vector<1x128xf32> to vector<16x128xf32>
    %271 = arith.mulf %268, %270 : vector<16x128xf32>
    %272 = vector.extract_strided_slice %4 {offsets = [3, 0], sizes = [1, 128], strides = [1, 1]} : vector<6x128xf32> to vector<1x128xf32>
    %273 = vector.broadcast %272 : vector<1x128xf32> to vector<16x128xf32>
    %274 = arith.mulf %271, %273 : vector<16x128xf32>
    %275 = vector.extract_strided_slice %5 {offsets = [0, 416], sizes = [16, 16], strides = [1, 1]} : vector<16x432xf32> to vector<16x16xf32>
    %cst_37 = arith.constant dense<0.000000e+00> : vector<16x128xf32>
    %276 = tpu.matmul %275, %274, %cst_37 {dimension_numbers = #tpu.dot_dimension_numbers<[1], [0], [0], [1], [0, 0, 1, 1], [], []>} : vector<16x16xf32>, vector<16x128xf32>, vector<16x128xf32> -> vector<16x128xf32>
    %277 = arith.addf %264, %276 : vector<16x128xf32>
    %278 = vector.broadcast %6 : vector<16x1xf32> to vector<16x128xf32>
    %279 = arith.addf %277, %278 : vector<16x128xf32>
    %cst_38 = arith.constant 0.000000e+00 : f32
    %280 = vector.broadcast %cst_38 : f32 to vector<16x128xf32>
    %281 = arith.maximumf %279, %280 : vector<16x128xf32>
    %c0_39 = arith.constant 0 : index
    %c0_40 = arith.constant 0 : index
    %282 = vector.load %arg7[%c0_39, %c0_40] : memref<16x128xf32, #tpu.memory_space<vmem>>, vector<16x128xf32>
    tpu.vector_store %arg7[%c0_39, %c0_40], %281 {strides = array<i32>} : memref<16x128xf32, #tpu.memory_space<vmem>>, vector<16x128xf32>,
    return
  }
  func.func @transform_0(%arg0: i32) -> (i32, i32) {
    %c0_i32 = arith.constant 0 : i32
    %c0_i32_0 = arith.constant 0 : i32
    %c0_i32_1 = arith.constant 0 : i32
    return %c0_i32, %c0_i32_0 : i32, i32
  }
  func.func @transform_1(%arg0: i32) -> (i32, i32) {
    %c0_i32 = arith.constant 0 : i32
    %c0_i32_0 = arith.constant 0 : i32
    %c0_i32_1 = arith.constant 0 : i32
    return %c0_i32, %c0_i32_0 : i32, i32
  }
  func.func @transform_2(%arg0: i32) -> (i32, i32) {
    %c0_i32 = arith.constant 0 : i32
    %c0_i32_0 = arith.constant 0 : i32
    return %c0_i32, %arg0 : i32, i32
  }
  func.func @transform_3(%arg0: i32) -> (i32, i32) {
    %c0_i32 = arith.constant 0 : i32
    %0 = arith.addi %arg0, %c0_i32 : i32
    %c0_i32_0 = arith.constant 0 : i32
    %c0_i32_1 = arith.constant 0 : i32
    return %c0_i32_0, %0 : i32, i32
  }
  func.func @transform_4(%arg0: i32) -> (i32, i32) {
    %c1_i32 = arith.constant 1 : i32
    %0 = arith.addi %arg0, %c1_i32 : i32
    %c0_i32 = arith.constant 0 : i32
    %c0_i32_0 = arith.constant 0 : i32
    return %c0_i32, %0 : i32, i32
  }
  func.func @transform_5(%arg0: i32) -> (i32, i32) {
    %c2_i32 = arith.constant 2 : i32
    %0 = arith.addi %arg0, %c2_i32 : i32
    %c0_i32 = arith.constant 0 : i32
    %c0_i32_0 = arith.constant 0 : i32
    return %c0_i32, %0 : i32, i32
  }
  func.func @transform_6(%arg0: i32) -> (i32, i32) {
    %c0_i32 = arith.constant 0 : i32
    %c0_i32_0 = arith.constant 0 : i32
    return %c0_i32, %arg0 : i32, i32
  }
}

module attributes {stable_mosaic.version = 11 : i64} {
  func.func @_fused_conv_kernel(%arg0: i32, %arg1: memref<64x496xf32, #tpu.memory_space<vmem>>, %arg2: memref<64x1xf32, #tpu.memory_space<vmem>>, %arg3: memref<3x128xf32, #tpu.memory_space<vmem>>, %arg4: memref<16x128xf32, #tpu.memory_space<vmem>>, %arg5: memref<16x128xf32, #tpu.memory_space<vmem>>, %arg6: memref<64x128xf32, #tpu.memory_space<vmem>>, %arg7: memref<64x128xf32, #tpu.memory_space<vmem>>) attributes {dimension_semantics = [#tpu.dimension_semantics<parallel>], iteration_bounds = array<i64: 1>, scalar_prefetch = 0 : i64, scratch_operands = 0 : i64, tpu.core_type = #tpu.core_type<tc>, window_params = [{pipeline_mode = #tpu.pipeline_mode<synchronous>, transform_indices = @transform_0, window_bounds = array<i64: 64, 496>}, {pipeline_mode = #tpu.pipeline_mode<synchronous>, transform_indices = @transform_1, window_bounds = array<i64: 64, 1>}, {transform_indices = @transform_2, window_bounds = array<i64: 3, 128>}, {transform_indices = @transform_3, window_bounds = array<i64: 16, 128>}, {transform_indices = @transform_4, window_bounds = array<i64: 16, 128>}, {transform_indices = @transform_5, window_bounds = array<i64: 64, 128>}, {transform_indices = @transform_6, window_bounds = array<i64: 64, 128>}]} {
    %c0 = arith.constant 0 : index
    %c0_0 = arith.constant 0 : index
    %0 = vector.load %arg4[%c0, %c0_0] : memref<16x128xf32, #tpu.memory_space<vmem>>, vector<16x128xf32>
    %c0_1 = arith.constant 0 : index
    %c0_2 = arith.constant 0 : index
    %1 = vector.load %arg5[%c0_1, %c0_2] : memref<16x128xf32, #tpu.memory_space<vmem>>, vector<16x128xf32>
    %2 = tpu.concatenate %0, %1 in 1 : vector<16x128xf32>, vector<16x128xf32> -> vector<16x256xf32>
    %c0_3 = arith.constant 0 : index
    %c0_4 = arith.constant 0 : index
    %3 = vector.load %arg6[%c0_3, %c0_4] : memref<64x128xf32, #tpu.memory_space<vmem>>, vector<64x128xf32>
    %c0_5 = arith.constant 0 : index
    %c0_6 = arith.constant 0 : index
    %4 = vector.load %arg3[%c0_5, %c0_6] : memref<3x128xf32, #tpu.memory_space<vmem>>, vector<3x128xf32>
    %c0_7 = arith.constant 0 : index
    %c0_8 = arith.constant 0 : index
    %5 = vector.load %arg1[%c0_7, %c0_8] : memref<64x496xf32, #tpu.memory_space<vmem>>, vector<64x496xf32>
    %c0_9 = arith.constant 0 : index
    %c0_10 = arith.constant 0 : index
    %6 = vector.load %arg2[%c0_9, %c0_10] : memref<64x1xf32, #tpu.memory_space<vmem>>, vector<64x1xf32>
    %cst = arith.constant 0.000000e+00 : f32
    %7 = vector.broadcast %cst : f32 to vector<8x128xf32>
    %8 = vector.extract_strided_slice %2 {offsets = [0, 0], sizes = [16, 128], strides = [1, 1]} : vector<16x256xf32> to vector<16x128xf32>
    %9 = vector.extract_strided_slice %5 {offsets = [0, 0], sizes = [8, 16], strides = [1, 1]} : vector<64x496xf32> to vector<8x16xf32>
    %cst_11 = arith.constant dense<0.000000e+00> : vector<8x128xf32>
    %10 = tpu.matmul %9, %8, %cst_11 {dimension_numbers = #tpu.dot_dimension_numbers<[1], [0], [0], [1], [0, 0, 1, 1], [], []>} : vector<8x16xf32>, vector<16x128xf32>, vector<8x128xf32> -> vector<8x128xf32>
    %11 = arith.addf %7, %10 : vector<8x128xf32>
    %12 = vector.extract_strided_slice %3 {offsets = [0, 0], sizes = [8, 128], strides = [1, 1]} : vector<64x128xf32> to vector<8x128xf32>
    %13 = vector.extract_strided_slice %5 {offsets = [0, 16], sizes = [8, 8], strides = [1, 1]} : vector<64x496xf32> to vector<8x8xf32>
    %cst_12 = arith.constant dense<0.000000e+00> : vector<8x128xf32>
    %14 = tpu.matmul %13, %12, %cst_12 {dimension_numbers = #tpu.dot_dimension_numbers<[1], [0], [0], [1], [0, 0, 1, 1], [], []>} : vector<8x8xf32>, vector<8x128xf32>, vector<8x128xf32> -> vector<8x128xf32>
    %15 = arith.addf %11, %14 : vector<8x128xf32>
    %16 = vector.extract_strided_slice %6 {offsets = [0, 0], sizes = [8, 1], strides = [1, 1]} : vector<64x1xf32> to vector<8x1xf32>
    %17 = vector.broadcast %16 : vector<8x1xf32> to vector<8x128xf32>
    %18 = arith.addf %15, %17 : vector<8x128xf32>
    %cst_13 = arith.constant 0.000000e+00 : f32
    %19 = vector.broadcast %cst_13 : f32 to vector<8x128xf32>
    %20 = arith.maximumf %18, %19 : vector<8x128xf32>
    %cst_14 = arith.constant 0.000000e+00 : f32
    %21 = vector.broadcast %cst_14 : f32 to vector<8x128xf32>
    %22 = vector.extract_strided_slice %2 {offsets = [0, 1], sizes = [16, 128], strides = [1, 1]} : vector<16x256xf32> to vector<16x128xf32>
    %23 = vector.extract_strided_slice %4 {offsets = [0, 0], sizes = [1, 128], strides = [1, 1]} : vector<3x128xf32> to vector<1x128xf32>
    %24 = vector.broadcast %23 : vector<1x128xf32> to vector<16x128xf32>
    %25 = arith.mulf %22, %24 : vector<16x128xf32>
    %26 = vector.extract_strided_slice %5 {offsets = [8, 24], sizes = [8, 16], strides = [1, 1]} : vector<64x496xf32> to vector<8x16xf32>
    %cst_15 = arith.constant dense<0.000000e+00> : vector<8x128xf32>
    %27 = tpu.matmul %26, %25, %cst_15 {dimension_numbers = #tpu.dot_dimension_numbers<[1], [0], [0], [1], [0, 0, 1, 1], [], []>} : vector<8x16xf32>, vector<16x128xf32>, vector<8x128xf32> -> vector<8x128xf32>
    %28 = arith.addf %21, %27 : vector<8x128xf32>
    %29 = vector.extract_strided_slice %2 {offsets = [0, 0], sizes = [16, 128], strides = [1, 1]} : vector<16x256xf32> to vector<16x128xf32>
    %30 = vector.extract_strided_slice %5 {offsets = [8, 40], sizes = [8, 16], strides = [1, 1]} : vector<64x496xf32> to vector<8x16xf32>
    %cst_16 = arith.constant dense<0.000000e+00> : vector<8x128xf32>
    %31 = tpu.matmul %30, %29, %cst_16 {dimension_numbers = #tpu.dot_dimension_numbers<[1], [0], [0], [1], [0, 0, 1, 1], [], []>} : vector<8x16xf32>, vector<16x128xf32>, vector<8x128xf32> -> vector<8x128xf32>
    %32 = arith.addf %28, %31 : vector<8x128xf32>
    %33 = vector.extract_strided_slice %3 {offsets = [8, 0], sizes = [8, 128], strides = [1, 1]} : vector<64x128xf32> to vector<8x128xf32>
    %34 = vector.extract_strided_slice %5 {offsets = [8, 56], sizes = [8, 8], strides = [1, 1]} : vector<64x496xf32> to vector<8x8xf32>
    %cst_17 = arith.constant dense<0.000000e+00> : vector<8x128xf32>
    %35 = tpu.matmul %34, %33, %cst_17 {dimension_numbers = #tpu.dot_dimension_numbers<[1], [0], [0], [1], [0, 0, 1, 1], [], []>} : vector<8x8xf32>, vector<8x128xf32>, vector<8x128xf32> -> vector<8x128xf32>
    %36 = arith.addf %32, %35 : vector<8x128xf32>
    %37 = vector.extract_strided_slice %6 {offsets = [8, 0], sizes = [8, 1], strides = [1, 1]} : vector<64x1xf32> to vector<8x1xf32>
    %38 = vector.broadcast %37 : vector<8x1xf32> to vector<8x128xf32>
    %39 = arith.addf %36, %38 : vector<8x128xf32>
    %cst_18 = arith.constant 0.000000e+00 : f32
    %40 = vector.broadcast %cst_18 : f32 to vector<8x128xf32>
    %41 = arith.maximumf %39, %40 : vector<8x128xf32>
    %cst_19 = arith.constant 0.000000e+00 : f32
    %42 = vector.broadcast %cst_19 : f32 to vector<8x128xf32>
    %43 = vector.extract_strided_slice %2 {offsets = [0, 4], sizes = [16, 128], strides = [1, 1]} : vector<16x256xf32> to vector<16x128xf32>
    %44 = vector.extract_strided_slice %4 {offsets = [1, 0], sizes = [1, 128], strides = [1, 1]} : vector<3x128xf32> to vector<1x128xf32>
    %45 = vector.broadcast %44 : vector<1x128xf32> to vector<16x128xf32>
    %46 = arith.mulf %43, %45 : vector<16x128xf32>
    %47 = vector.extract_strided_slice %5 {offsets = [16, 64], sizes = [8, 16], strides = [1, 1]} : vector<64x496xf32> to vector<8x16xf32>
    %cst_20 = arith.constant dense<0.000000e+00> : vector<8x128xf32>
    %48 = tpu.matmul %47, %46, %cst_20 {dimension_numbers = #tpu.dot_dimension_numbers<[1], [0], [0], [1], [0, 0, 1, 1], [], []>} : vector<8x16xf32>, vector<16x128xf32>, vector<8x128xf32> -> vector<8x128xf32>
    %49 = arith.addf %42, %48 : vector<8x128xf32>
    %50 = vector.extract_strided_slice %2 {offsets = [0, 0], sizes = [16, 128], strides = [1, 1]} : vector<16x256xf32> to vector<16x128xf32>
    %51 = vector.extract_strided_slice %5 {offsets = [16, 80], sizes = [8, 16], strides = [1, 1]} : vector<64x496xf32> to vector<8x16xf32>
    %cst_21 = arith.constant dense<0.000000e+00> : vector<8x128xf32>
    %52 = tpu.matmul %51, %50, %cst_21 {dimension_numbers = #tpu.dot_dimension_numbers<[1], [0], [0], [1], [0, 0, 1, 1], [], []>} : vector<8x16xf32>, vector<16x128xf32>, vector<8x128xf32> -> vector<8x128xf32>
    %53 = arith.addf %49, %52 : vector<8x128xf32>
    %54 = vector.extract_strided_slice %3 {offsets = [16, 0], sizes = [8, 128], strides = [1, 1]} : vector<64x128xf32> to vector<8x128xf32>
    %55 = vector.extract_strided_slice %5 {offsets = [16, 96], sizes = [8, 8], strides = [1, 1]} : vector<64x496xf32> to vector<8x8xf32>
    %cst_22 = arith.constant dense<0.000000e+00> : vector<8x128xf32>
    %56 = tpu.matmul %55, %54, %cst_22 {dimension_numbers = #tpu.dot_dimension_numbers<[1], [0], [0], [1], [0, 0, 1, 1], [], []>} : vector<8x8xf32>, vector<8x128xf32>, vector<8x128xf32> -> vector<8x128xf32>
    %57 = arith.addf %53, %56 : vector<8x128xf32>
    %58 = vector.extract_strided_slice %6 {offsets = [16, 0], sizes = [8, 1], strides = [1, 1]} : vector<64x1xf32> to vector<8x1xf32>
    %59 = vector.broadcast %58 : vector<8x1xf32> to vector<8x128xf32>
    %60 = arith.addf %57, %59 : vector<8x128xf32>
    %cst_23 = arith.constant 0.000000e+00 : f32
    %61 = vector.broadcast %cst_23 : f32 to vector<8x128xf32>
    %62 = arith.maximumf %60, %61 : vector<8x128xf32>
    %cst_24 = arith.constant 0.000000e+00 : f32
    %63 = vector.broadcast %cst_24 : f32 to vector<8x128xf32>
    %64 = vector.extract_strided_slice %2 {offsets = [0, 5], sizes = [16, 128], strides = [1, 1]} : vector<16x256xf32> to vector<16x128xf32>
    %65 = vector.extract_strided_slice %4 {offsets = [1, 0], sizes = [1, 128], strides = [1, 1]} : vector<3x128xf32> to vector<1x128xf32>
    %66 = vector.broadcast %65 : vector<1x128xf32> to vector<16x128xf32>
    %67 = arith.mulf %64, %66 : vector<16x128xf32>
    %68 = vector.extract_strided_slice %4 {offsets = [0, 0], sizes = [1, 128], strides = [1, 1]} : vector<3x128xf32> to vector<1x128xf32>
    %69 = vector.broadcast %68 : vector<1x128xf32> to vector<16x128xf32>
    %70 = arith.mulf %67, %69 : vector<16x128xf32>
    %71 = vector.extract_strided_slice %5 {offsets = [24, 104], sizes = [8, 16], strides = [1, 1]} : vector<64x496xf32> to vector<8x16xf32>
    %cst_25 = arith.constant dense<0.000000e+00> : vector<8x128xf32>
    %72 = tpu.matmul %71, %70, %cst_25 {dimension_numbers = #tpu.dot_dimension_numbers<[1], [0], [0], [1], [0, 0, 1, 1], [], []>} : vector<8x16xf32>, vector<16x128xf32>, vector<8x128xf32> -> vector<8x128xf32>
    %73 = arith.addf %63, %72 : vector<8x128xf32>
    %74 = vector.extract_strided_slice %2 {offsets = [0, 4], sizes = [16, 128], strides = [1, 1]} : vector<16x256xf32> to vector<16x128xf32>
    %75 = vector.extract_strided_slice %4 {offsets = [1, 0], sizes = [1, 128], strides = [1, 1]} : vector<3x128xf32> to vector<1x128xf32>
    %76 = vector.broadcast %75 : vector<1x128xf32> to vector<16x128xf32>
    %77 = arith.mulf %74, %76 : vector<16x128xf32>
    %78 = vector.extract_strided_slice %5 {offsets = [24, 120], sizes = [8, 16], strides = [1, 1]} : vector<64x496xf32> to vector<8x16xf32>
    %cst_26 = arith.constant dense<0.000000e+00> : vector<8x128xf32>
    %79 = tpu.matmul %78, %77, %cst_26 {dimension_numbers = #tpu.dot_dimension_numbers<[1], [0], [0], [1], [0, 0, 1, 1], [], []>} : vector<8x16xf32>, vector<16x128xf32>, vector<8x128xf32> -> vector<8x128xf32>
    %80 = arith.addf %73, %79 : vector<8x128xf32>
    %81 = vector.extract_strided_slice %2 {offsets = [0, 1], sizes = [16, 128], strides = [1, 1]} : vector<16x256xf32> to vector<16x128xf32>
    %82 = vector.extract_strided_slice %4 {offsets = [0, 0], sizes = [1, 128], strides = [1, 1]} : vector<3x128xf32> to vector<1x128xf32>
    %83 = vector.broadcast %82 : vector<1x128xf32> to vector<16x128xf32>
    %84 = arith.mulf %81, %83 : vector<16x128xf32>
    %85 = vector.extract_strided_slice %5 {offsets = [24, 136], sizes = [8, 16], strides = [1, 1]} : vector<64x496xf32> to vector<8x16xf32>
    %cst_27 = arith.constant dense<0.000000e+00> : vector<8x128xf32>
    %86 = tpu.matmul %85, %84, %cst_27 {dimension_numbers = #tpu.dot_dimension_numbers<[1], [0], [0], [1], [0, 0, 1, 1], [], []>} : vector<8x16xf32>, vector<16x128xf32>, vector<8x128xf32> -> vector<8x128xf32>
    %87 = arith.addf %80, %86 : vector<8x128xf32>
    %88 = vector.extract_strided_slice %2 {offsets = [0, 0], sizes = [16, 128], strides = [1, 1]} : vector<16x256xf32> to vector<16x128xf32>
    %89 = vector.extract_strided_slice %5 {offsets = [24, 152], sizes = [8, 16], strides = [1, 1]} : vector<64x496xf32> to vector<8x16xf32>
    %cst_28 = arith.constant dense<0.000000e+00> : vector<8x128xf32>
    %90 = tpu.matmul %89, %88, %cst_28 {dimension_numbers = #tpu.dot_dimension_numbers<[1], [0], [0], [1], [0, 0, 1, 1], [], []>} : vector<8x16xf32>, vector<16x128xf32>, vector<8x128xf32> -> vector<8x128xf32>
    %91 = arith.addf %87, %90 : vector<8x128xf32>
    %92 = vector.extract_strided_slice %3 {offsets = [24, 0], sizes = [8, 128], strides = [1, 1]} : vector<64x128xf32> to vector<8x128xf32>
    %93 = vector.extract_strided_slice %5 {offsets = [24, 168], sizes = [8, 8], strides = [1, 1]} : vector<64x496xf32> to vector<8x8xf32>
    %cst_29 = arith.constant dense<0.000000e+00> : vector<8x128xf32>
    %94 = tpu.matmul %93, %92, %cst_29 {dimension_numbers = #tpu.dot_dimension_numbers<[1], [0], [0], [1], [0, 0, 1, 1], [], []>} : vector<8x8xf32>, vector<8x128xf32>, vector<8x128xf32> -> vector<8x128xf32>
    %95 = arith.addf %91, %94 : vector<8x128xf32>
    %96 = vector.extract_strided_slice %6 {offsets = [24, 0], sizes = [8, 1], strides = [1, 1]} : vector<64x1xf32> to vector<8x1xf32>
    %97 = vector.broadcast %96 : vector<8x1xf32> to vector<8x128xf32>
    %98 = arith.addf %95, %97 : vector<8x128xf32>
    %cst_30 = arith.constant 0.000000e+00 : f32
    %99 = vector.broadcast %cst_30 : f32 to vector<8x128xf32>
    %100 = arith.maximumf %98, %99 : vector<8x128xf32>
    %cst_31 = arith.constant 0.000000e+00 : f32
    %101 = vector.broadcast %cst_31 : f32 to vector<8x128xf32>
    %102 = vector.extract_strided_slice %2 {offsets = [0, 16], sizes = [16, 128], strides = [1, 1]} : vector<16x256xf32> to vector<16x128xf32>
    %103 = vector.extract_strided_slice %4 {offsets = [2, 0], sizes = [1, 128], strides = [1, 1]} : vector<3x128xf32> to vector<1x128xf32>
    %104 = vector.broadcast %103 : vector<1x128xf32> to vector<16x128xf32>
    %105 = arith.mulf %102, %104 : vector<16x128xf32>
    %106 = vector.extract_strided_slice %5 {offsets = [32, 176], sizes = [8, 16], strides = [1, 1]} : vector<64x496xf32> to vector<8x16xf32>
    %cst_32 = arith.constant dense<0.000000e+00> : vector<8x128xf32>
    %107 = tpu.matmul %106, %105, %cst_32 {dimension_numbers = #tpu.dot_dimension_numbers<[1], [0], [0], [1], [0, 0, 1, 1], [], []>} : vector<8x16xf32>, vector<16x128xf32>, vector<8x128xf32> -> vector<8x128xf32>
    %108 = arith.addf %101, %107 : vector<8x128xf32>
    %109 = vector.extract_strided_slice %2 {offsets = [0, 0], sizes = [16, 128], strides = [1, 1]} : vector<16x256xf32> to vector<16x128xf32>
    %110 = vector.extract_strided_slice %5 {offsets = [32, 192], sizes = [8, 16], strides = [1, 1]} : vector<64x496xf32> to vector<8x16xf32>
    %cst_33 = arith.constant dense<0.000000e+00> : vector<8x128xf32>
    %111 = tpu.matmul %110, %109, %cst_33 {dimension_numbers = #tpu.dot_dimension_numbers<[1], [0], [0], [1], [0, 0, 1, 1], [], []>} : vector<8x16xf32>, vector<16x128xf32>, vector<8x128xf32> -> vector<8x128xf32>
    %112 = arith.addf %108, %111 : vector<8x128xf32>
    %113 = vector.extract_strided_slice %3 {offsets = [32, 0], sizes = [8, 128], strides = [1, 1]} : vector<64x128xf32> to vector<8x128xf32>
    %114 = vector.extract_strided_slice %5 {offsets = [32, 208], sizes = [8, 8], strides = [1, 1]} : vector<64x496xf32> to vector<8x8xf32>
    %cst_34 = arith.constant dense<0.000000e+00> : vector<8x128xf32>
    %115 = tpu.matmul %114, %113, %cst_34 {dimension_numbers = #tpu.dot_dimension_numbers<[1], [0], [0], [1], [0, 0, 1, 1], [], []>} : vector<8x8xf32>, vector<8x128xf32>, vector<8x128xf32> -> vector<8x128xf32>
    %116 = arith.addf %112, %115 : vector<8x128xf32>
    %117 = vector.extract_strided_slice %6 {offsets = [32, 0], sizes = [8, 1], strides = [1, 1]} : vector<64x1xf32> to vector<8x1xf32>
    %118 = vector.broadcast %117 : vector<8x1xf32> to vector<8x128xf32>
    %119 = arith.addf %116, %118 : vector<8x128xf32>
    %cst_35 = arith.constant 0.000000e+00 : f32
    %120 = vector.broadcast %cst_35 : f32 to vector<8x128xf32>
    %121 = arith.maximumf %119, %120 : vector<8x128xf32>
    %cst_36 = arith.constant 0.000000e+00 : f32
    %122 = vector.broadcast %cst_36 : f32 to vector<8x128xf32>
    %123 = vector.extract_strided_slice %2 {offsets = [0, 17], sizes = [16, 128], strides = [1, 1]} : vector<16x256xf32> to vector<16x128xf32>
    %124 = vector.extract_strided_slice %4 {offsets = [2, 0], sizes = [1, 128], strides = [1, 1]} : vector<3x128xf32> to vector<1x128xf32>
    %125 = vector.broadcast %124 : vector<1x128xf32> to vector<16x128xf32>
    %126 = arith.mulf %123, %125 : vector<16x128xf32>
    %127 = vector.extract_strided_slice %4 {offsets = [0, 0], sizes = [1, 128], strides = [1, 1]} : vector<3x128xf32> to vector<1x128xf32>
    %128 = vector.broadcast %127 : vector<1x128xf32> to vector<16x128xf32>
    %129 = arith.mulf %126, %128 : vector<16x128xf32>
    %130 = vector.extract_strided_slice %5 {offsets = [40, 216], sizes = [8, 16], strides = [1, 1]} : vector<64x496xf32> to vector<8x16xf32>
    %cst_37 = arith.constant dense<0.000000e+00> : vector<8x128xf32>
    %131 = tpu.matmul %130, %129, %cst_37 {dimension_numbers = #tpu.dot_dimension_numbers<[1], [0], [0], [1], [0, 0, 1, 1], [], []>} : vector<8x16xf32>, vector<16x128xf32>, vector<8x128xf32> -> vector<8x128xf32>
    %132 = arith.addf %122, %131 : vector<8x128xf32>
    %133 = vector.extract_strided_slice %2 {offsets = [0, 16], sizes = [16, 128], strides = [1, 1]} : vector<16x256xf32> to vector<16x128xf32>
    %134 = vector.extract_strided_slice %4 {offsets = [2, 0], sizes = [1, 128], strides = [1, 1]} : vector<3x128xf32> to vector<1x128xf32>
    %135 = vector.broadcast %134 : vector<1x128xf32> to vector<16x128xf32>
    %136 = arith.mulf %133, %135 : vector<16x128xf32>
    %137 = vector.extract_strided_slice %5 {offsets = [40, 232], sizes = [8, 16], strides = [1, 1]} : vector<64x496xf32> to vector<8x16xf32>
    %cst_38 = arith.constant dense<0.000000e+00> : vector<8x128xf32>
    %138 = tpu.matmul %137, %136, %cst_38 {dimension_numbers = #tpu.dot_dimension_numbers<[1], [0], [0], [1], [0, 0, 1, 1], [], []>} : vector<8x16xf32>, vector<16x128xf32>, vector<8x128xf32> -> vector<8x128xf32>
    %139 = arith.addf %132, %138 : vector<8x128xf32>
    %140 = vector.extract_strided_slice %2 {offsets = [0, 1], sizes = [16, 128], strides = [1, 1]} : vector<16x256xf32> to vector<16x128xf32>
    %141 = vector.extract_strided_slice %4 {offsets = [0, 0], sizes = [1, 128], strides = [1, 1]} : vector<3x128xf32> to vector<1x128xf32>
    %142 = vector.broadcast %141 : vector<1x128xf32> to vector<16x128xf32>
    %143 = arith.mulf %140, %142 : vector<16x128xf32>
    %144 = vector.extract_strided_slice %5 {offsets = [40, 248], sizes = [8, 16], strides = [1, 1]} : vector<64x496xf32> to vector<8x16xf32>
    %cst_39 = arith.constant dense<0.000000e+00> : vector<8x128xf32>
    %145 = tpu.matmul %144, %143, %cst_39 {dimension_numbers = #tpu.dot_dimension_numbers<[1], [0], [0], [1], [0, 0, 1, 1], [], []>} : vector<8x16xf32>, vector<16x128xf32>, vector<8x128xf32> -> vector<8x128xf32>
    %146 = arith.addf %139, %145 : vector<8x128xf32>
    %147 = vector.extract_strided_slice %2 {offsets = [0, 0], sizes = [16, 128], strides = [1, 1]} : vector<16x256xf32> to vector<16x128xf32>
    %148 = vector.extract_strided_slice %5 {offsets = [40, 264], sizes = [8, 16], strides = [1, 1]} : vector<64x496xf32> to vector<8x16xf32>
    %cst_40 = arith.constant dense<0.000000e+00> : vector<8x128xf32>
    %149 = tpu.matmul %148, %147, %cst_40 {dimension_numbers = #tpu.dot_dimension_numbers<[1], [0], [0], [1], [0, 0, 1, 1], [], []>} : vector<8x16xf32>, vector<16x128xf32>, vector<8x128xf32> -> vector<8x128xf32>
    %150 = arith.addf %146, %149 : vector<8x128xf32>
    %151 = vector.extract_strided_slice %3 {offsets = [40, 0], sizes = [8, 128], strides = [1, 1]} : vector<64x128xf32> to vector<8x128xf32>
    %152 = vector.extract_strided_slice %5 {offsets = [40, 280], sizes = [8, 8], strides = [1, 1]} : vector<64x496xf32> to vector<8x8xf32>
    %cst_41 = arith.constant dense<0.000000e+00> : vector<8x128xf32>
    %153 = tpu.matmul %152, %151, %cst_41 {dimension_numbers = #tpu.dot_dimension_numbers<[1], [0], [0], [1], [0, 0, 1, 1], [], []>} : vector<8x8xf32>, vector<8x128xf32>, vector<8x128xf32> -> vector<8x128xf32>
    %154 = arith.addf %150, %153 : vector<8x128xf32>
    %155 = vector.extract_strided_slice %6 {offsets = [40, 0], sizes = [8, 1], strides = [1, 1]} : vector<64x1xf32> to vector<8x1xf32>
    %156 = vector.broadcast %155 : vector<8x1xf32> to vector<8x128xf32>
    %157 = arith.addf %154, %156 : vector<8x128xf32>
    %cst_42 = arith.constant 0.000000e+00 : f32
    %158 = vector.broadcast %cst_42 : f32 to vector<8x128xf32>
    %159 = arith.maximumf %157, %158 : vector<8x128xf32>
    %cst_43 = arith.constant 0.000000e+00 : f32
    %160 = vector.broadcast %cst_43 : f32 to vector<8x128xf32>
    %161 = vector.extract_strided_slice %2 {offsets = [0, 20], sizes = [16, 128], strides = [1, 1]} : vector<16x256xf32> to vector<16x128xf32>
    %162 = vector.extract_strided_slice %4 {offsets = [2, 0], sizes = [1, 128], strides = [1, 1]} : vector<3x128xf32> to vector<1x128xf32>
    %163 = vector.broadcast %162 : vector<1x128xf32> to vector<16x128xf32>
    %164 = arith.mulf %161, %163 : vector<16x128xf32>
    %165 = vector.extract_strided_slice %4 {offsets = [1, 0], sizes = [1, 128], strides = [1, 1]} : vector<3x128xf32> to vector<1x128xf32>
    %166 = vector.broadcast %165 : vector<1x128xf32> to vector<16x128xf32>
    %167 = arith.mulf %164, %166 : vector<16x128xf32>
    %168 = vector.extract_strided_slice %5 {offsets = [48, 288], sizes = [8, 16], strides = [1, 1]} : vector<64x496xf32> to vector<8x16xf32>
    %cst_44 = arith.constant dense<0.000000e+00> : vector<8x128xf32>
    %169 = tpu.matmul %168, %167, %cst_44 {dimension_numbers = #tpu.dot_dimension_numbers<[1], [0], [0], [1], [0, 0, 1, 1], [], []>} : vector<8x16xf32>, vector<16x128xf32>, vector<8x128xf32> -> vector<8x128xf32>
    %170 = arith.addf %160, %169 : vector<8x128xf32>
    %171 = vector.extract_strided_slice %2 {offsets = [0, 16], sizes = [16, 128], strides = [1, 1]} : vector<16x256xf32> to vector<16x128xf32>
    %172 = vector.extract_strided_slice %4 {offsets = [2, 0], sizes = [1, 128], strides = [1, 1]} : vector<3x128xf32> to vector<1x128xf32>
    %173 = vector.broadcast %172 : vector<1x128xf32> to vector<16x128xf32>
    %174 = arith.mulf %171, %173 : vector<16x128xf32>
    %175 = vector.extract_strided_slice %5 {offsets = [48, 304], sizes = [8, 16], strides = [1, 1]} : vector<64x496xf32> to vector<8x16xf32>
    %cst_45 = arith.constant dense<0.000000e+00> : vector<8x128xf32>
    %176 = tpu.matmul %175, %174, %cst_45 {dimension_numbers = #tpu.dot_dimension_numbers<[1], [0], [0], [1], [0, 0, 1, 1], [], []>} : vector<8x16xf32>, vector<16x128xf32>, vector<8x128xf32> -> vector<8x128xf32>
    %177 = arith.addf %170, %176 : vector<8x128xf32>
    %178 = vector.extract_strided_slice %2 {offsets = [0, 4], sizes = [16, 128], strides = [1, 1]} : vector<16x256xf32> to vector<16x128xf32>
    %179 = vector.extract_strided_slice %4 {offsets = [1, 0], sizes = [1, 128], strides = [1, 1]} : vector<3x128xf32> to vector<1x128xf32>
    %180 = vector.broadcast %179 : vector<1x128xf32> to vector<16x128xf32>
    %181 = arith.mulf %178, %180 : vector<16x128xf32>
    %182 = vector.extract_strided_slice %5 {offsets = [48, 320], sizes = [8, 16], strides = [1, 1]} : vector<64x496xf32> to vector<8x16xf32>
    %cst_46 = arith.constant dense<0.000000e+00> : vector<8x128xf32>
    %183 = tpu.matmul %182, %181, %cst_46 {dimension_numbers = #tpu.dot_dimension_numbers<[1], [0], [0], [1], [0, 0, 1, 1], [], []>} : vector<8x16xf32>, vector<16x128xf32>, vector<8x128xf32> -> vector<8x128xf32>
    %184 = arith.addf %177, %183 : vector<8x128xf32>
    %185 = vector.extract_strided_slice %2 {offsets = [0, 0], sizes = [16, 128], strides = [1, 1]} : vector<16x256xf32> to vector<16x128xf32>
    %186 = vector.extract_strided_slice %5 {offsets = [48, 336], sizes = [8, 16], strides = [1, 1]} : vector<64x496xf32> to vector<8x16xf32>
    %cst_47 = arith.constant dense<0.000000e+00> : vector<8x128xf32>
    %187 = tpu.matmul %186, %185, %cst_47 {dimension_numbers = #tpu.dot_dimension_numbers<[1], [0], [0], [1], [0, 0, 1, 1], [], []>} : vector<8x16xf32>, vector<16x128xf32>, vector<8x128xf32> -> vector<8x128xf32>
    %188 = arith.addf %184, %187 : vector<8x128xf32>
    %189 = vector.extract_strided_slice %3 {offsets = [48, 0], sizes = [8, 128], strides = [1, 1]} : vector<64x128xf32> to vector<8x128xf32>
    %190 = vector.extract_strided_slice %5 {offsets = [48, 352], sizes = [8, 8], strides = [1, 1]} : vector<64x496xf32> to vector<8x8xf32>
    %cst_48 = arith.constant dense<0.000000e+00> : vector<8x128xf32>
    %191 = tpu.matmul %190, %189, %cst_48 {dimension_numbers = #tpu.dot_dimension_numbers<[1], [0], [0], [1], [0, 0, 1, 1], [], []>} : vector<8x8xf32>, vector<8x128xf32>, vector<8x128xf32> -> vector<8x128xf32>
    %192 = arith.addf %188, %191 : vector<8x128xf32>
    %193 = vector.extract_strided_slice %6 {offsets = [48, 0], sizes = [8, 1], strides = [1, 1]} : vector<64x1xf32> to vector<8x1xf32>
    %194 = vector.broadcast %193 : vector<8x1xf32> to vector<8x128xf32>
    %195 = arith.addf %192, %194 : vector<8x128xf32>
    %cst_49 = arith.constant 0.000000e+00 : f32
    %196 = vector.broadcast %cst_49 : f32 to vector<8x128xf32>
    %197 = arith.maximumf %195, %196 : vector<8x128xf32>
    %cst_50 = arith.constant 0.000000e+00 : f32
    %198 = vector.broadcast %cst_50 : f32 to vector<8x128xf32>
    %199 = vector.extract_strided_slice %2 {offsets = [0, 21], sizes = [16, 128], strides = [1, 1]} : vector<16x256xf32> to vector<16x128xf32>
    %200 = vector.extract_strided_slice %4 {offsets = [2, 0], sizes = [1, 128], strides = [1, 1]} : vector<3x128xf32> to vector<1x128xf32>
    %201 = vector.broadcast %200 : vector<1x128xf32> to vector<16x128xf32>
    %202 = arith.mulf %199, %201 : vector<16x128xf32>
    %203 = vector.extract_strided_slice %4 {offsets = [1, 0], sizes = [1, 128], strides = [1, 1]} : vector<3x128xf32> to vector<1x128xf32>
    %204 = vector.broadcast %203 : vector<1x128xf32> to vector<16x128xf32>
    %205 = arith.mulf %202, %204 : vector<16x128xf32>
    %206 = vector.extract_strided_slice %4 {offsets = [0, 0], sizes = [1, 128], strides = [1, 1]} : vector<3x128xf32> to vector<1x128xf32>
    %207 = vector.broadcast %206 : vector<1x128xf32> to vector<16x128xf32>
    %208 = arith.mulf %205, %207 : vector<16x128xf32>
    %209 = vector.extract_strided_slice %5 {offsets = [56, 360], sizes = [8, 16], strides = [1, 1]} : vector<64x496xf32> to vector<8x16xf32>
    %cst_51 = arith.constant dense<0.000000e+00> : vector<8x128xf32>
    %210 = tpu.matmul %209, %208, %cst_51 {dimension_numbers = #tpu.dot_dimension_numbers<[1], [0], [0], [1], [0, 0, 1, 1], [], []>} : vector<8x16xf32>, vector<16x128xf32>, vector<8x128xf32> -> vector<8x128xf32>
    %211 = arith.addf %198, %210 : vector<8x128xf32>
    %212 = vector.extract_strided_slice %2 {offsets = [0, 20], sizes = [16, 128], strides = [1, 1]} : vector<16x256xf32> to vector<16x128xf32>
    %213 = vector.extract_strided_slice %4 {offsets = [2, 0], sizes = [1, 128], strides = [1, 1]} : vector<3x128xf32> to vector<1x128xf32>
    %214 = vector.broadcast %213 : vector<1x128xf32> to vector<16x128xf32>
    %215 = arith.mulf %212, %214 : vector<16x128xf32>
    %216 = vector.extract_strided_slice %4 {offsets = [1, 0], sizes = [1, 128], strides = [1, 1]} : vector<3x128xf32> to vector<1x128xf32>
    %217 = vector.broadcast %216 : vector<1x128xf32> to vector<16x128xf32>
    %218 = arith.mulf %215, %217 : vector<16x128xf32>
    %219 = vector.extract_strided_slice %5 {offsets = [56, 376], sizes = [8, 16], strides = [1, 1]} : vector<64x496xf32> to vector<8x16xf32>
    %cst_52 = arith.constant dense<0.000000e+00> : vector<8x128xf32>
    %220 = tpu.matmul %219, %218, %cst_52 {dimension_numbers = #tpu.dot_dimension_numbers<[1], [0], [0], [1], [0, 0, 1, 1], [], []>} : vector<8x16xf32>, vector<16x128xf32>, vector<8x128xf32> -> vector<8x128xf32>
    %221 = arith.addf %211, %220 : vector<8x128xf32>
    %222 = vector.extract_strided_slice %2 {offsets = [0, 17], sizes = [16, 128], strides = [1, 1]} : vector<16x256xf32> to vector<16x128xf32>
    %223 = vector.extract_strided_slice %4 {offsets = [2, 0], sizes = [1, 128], strides = [1, 1]} : vector<3x128xf32> to vector<1x128xf32>
    %224 = vector.broadcast %223 : vector<1x128xf32> to vector<16x128xf32>
    %225 = arith.mulf %222, %224 : vector<16x128xf32>
    %226 = vector.extract_strided_slice %4 {offsets = [0, 0], sizes = [1, 128], strides = [1, 1]} : vector<3x128xf32> to vector<1x128xf32>
    %227 = vector.broadcast %226 : vector<1x128xf32> to vector<16x128xf32>
    %228 = arith.mulf %225, %227 : vector<16x128xf32>
    %229 = vector.extract_strided_slice %5 {offsets = [56, 392], sizes = [8, 16], strides = [1, 1]} : vector<64x496xf32> to vector<8x16xf32>
    %cst_53 = arith.constant dense<0.000000e+00> : vector<8x128xf32>
    %230 = tpu.matmul %229, %228, %cst_53 {dimension_numbers = #tpu.dot_dimension_numbers<[1], [0], [0], [1], [0, 0, 1, 1], [], []>} : vector<8x16xf32>, vector<16x128xf32>, vector<8x128xf32> -> vector<8x128xf32>
    %231 = arith.addf %221, %230 : vector<8x128xf32>
    %232 = vector.extract_strided_slice %2 {offsets = [0, 16], sizes = [16, 128], strides = [1, 1]} : vector<16x256xf32> to vector<16x128xf32>
    %233 = vector.extract_strided_slice %4 {offsets = [2, 0], sizes = [1, 128], strides = [1, 1]} : vector<3x128xf32> to vector<1x128xf32>
    %234 = vector.broadcast %233 : vector<1x128xf32> to vector<16x128xf32>
    %235 = arith.mulf %232, %234 : vector<16x128xf32>
    %236 = vector.extract_strided_slice %5 {offsets = [56, 408], sizes = [8, 16], strides = [1, 1]} : vector<64x496xf32> to vector<8x16xf32>
    %cst_54 = arith.constant dense<0.000000e+00> : vector<8x128xf32>
    %237 = tpu.matmul %236, %235, %cst_54 {dimension_numbers = #tpu.dot_dimension_numbers<[1], [0], [0], [1], [0, 0, 1, 1], [], []>} : vector<8x16xf32>, vector<16x128xf32>, vector<8x128xf32> -> vector<8x128xf32>
    %238 = arith.addf %231, %237 : vector<8x128xf32>
    %239 = vector.extract_strided_slice %2 {offsets = [0, 5], sizes = [16, 128], strides = [1, 1]} : vector<16x256xf32> to vector<16x128xf32>
    %240 = vector.extract_strided_slice %4 {offsets = [1, 0], sizes = [1, 128], strides = [1, 1]} : vector<3x128xf32> to vector<1x128xf32>
    %241 = vector.broadcast %240 : vector<1x128xf32> to vector<16x128xf32>
    %242 = arith.mulf %239, %241 : vector<16x128xf32>
    %243 = vector.extract_strided_slice %4 {offsets = [0, 0], sizes = [1, 128], strides = [1, 1]} : vector<3x128xf32> to vector<1x128xf32>
    %244 = vector.broadcast %243 : vector<1x128xf32> to vector<16x128xf32>
    %245 = arith.mulf %242, %244 : vector<16x128xf32>
    %246 = vector.extract_strided_slice %5 {offsets = [56, 424], sizes = [8, 16], strides = [1, 1]} : vector<64x496xf32> to vector<8x16xf32>
    %cst_55 = arith.constant dense<0.000000e+00> : vector<8x128xf32>
    %247 = tpu.matmul %246, %245, %cst_55 {dimension_numbers = #tpu.dot_dimension_numbers<[1], [0], [0], [1], [0, 0, 1, 1], [], []>} : vector<8x16xf32>, vector<16x128xf32>, vector<8x128xf32> -> vector<8x128xf32>
    %248 = arith.addf %238, %247 : vector<8x128xf32>
    %249 = vector.extract_strided_slice %2 {offsets = [0, 4], sizes = [16, 128], strides = [1, 1]} : vector<16x256xf32> to vector<16x128xf32>
    %250 = vector.extract_strided_slice %4 {offsets = [1, 0], sizes = [1, 128], strides = [1, 1]} : vector<3x128xf32> to vector<1x128xf32>
    %251 = vector.broadcast %250 : vector<1x128xf32> to vector<16x128xf32>
    %252 = arith.mulf %249, %251 : vector<16x128xf32>
    %253 = vector.extract_strided_slice %5 {offsets = [56, 440], sizes = [8, 16], strides = [1, 1]} : vector<64x496xf32> to vector<8x16xf32>
    %cst_56 = arith.constant dense<0.000000e+00> : vector<8x128xf32>
    %254 = tpu.matmul %253, %252, %cst_56 {dimension_numbers = #tpu.dot_dimension_numbers<[1], [0], [0], [1], [0, 0, 1, 1], [], []>} : vector<8x16xf32>, vector<16x128xf32>, vector<8x128xf32> -> vector<8x128xf32>
    %255 = arith.addf %248, %254 : vector<8x128xf32>
    %256 = vector.extract_strided_slice %2 {offsets = [0, 1], sizes = [16, 128], strides = [1, 1]} : vector<16x256xf32> to vector<16x128xf32>
    %257 = vector.extract_strided_slice %4 {offsets = [0, 0], sizes = [1, 128], strides = [1, 1]} : vector<3x128xf32> to vector<1x128xf32>
    %258 = vector.broadcast %257 : vector<1x128xf32> to vector<16x128xf32>
    %259 = arith.mulf %256, %258 : vector<16x128xf32>
    %260 = vector.extract_strided_slice %5 {offsets = [56, 456], sizes = [8, 16], strides = [1, 1]} : vector<64x496xf32> to vector<8x16xf32>
    %cst_57 = arith.constant dense<0.000000e+00> : vector<8x128xf32>
    %261 = tpu.matmul %260, %259, %cst_57 {dimension_numbers = #tpu.dot_dimension_numbers<[1], [0], [0], [1], [0, 0, 1, 1], [], []>} : vector<8x16xf32>, vector<16x128xf32>, vector<8x128xf32> -> vector<8x128xf32>
    %262 = arith.addf %255, %261 : vector<8x128xf32>
    %263 = vector.extract_strided_slice %2 {offsets = [0, 0], sizes = [16, 128], strides = [1, 1]} : vector<16x256xf32> to vector<16x128xf32>
    %264 = vector.extract_strided_slice %5 {offsets = [56, 472], sizes = [8, 16], strides = [1, 1]} : vector<64x496xf32> to vector<8x16xf32>
    %cst_58 = arith.constant dense<0.000000e+00> : vector<8x128xf32>
    %265 = tpu.matmul %264, %263, %cst_58 {dimension_numbers = #tpu.dot_dimension_numbers<[1], [0], [0], [1], [0, 0, 1, 1], [], []>} : vector<8x16xf32>, vector<16x128xf32>, vector<8x128xf32> -> vector<8x128xf32>
    %266 = arith.addf %262, %265 : vector<8x128xf32>
    %267 = vector.extract_strided_slice %3 {offsets = [56, 0], sizes = [8, 128], strides = [1, 1]} : vector<64x128xf32> to vector<8x128xf32>
    %268 = vector.extract_strided_slice %5 {offsets = [56, 488], sizes = [8, 8], strides = [1, 1]} : vector<64x496xf32> to vector<8x8xf32>
    %cst_59 = arith.constant dense<0.000000e+00> : vector<8x128xf32>
    %269 = tpu.matmul %268, %267, %cst_59 {dimension_numbers = #tpu.dot_dimension_numbers<[1], [0], [0], [1], [0, 0, 1, 1], [], []>} : vector<8x8xf32>, vector<8x128xf32>, vector<8x128xf32> -> vector<8x128xf32>
    %270 = arith.addf %266, %269 : vector<8x128xf32>
    %271 = vector.extract_strided_slice %6 {offsets = [56, 0], sizes = [8, 1], strides = [1, 1]} : vector<64x1xf32> to vector<8x1xf32>
    %272 = vector.broadcast %271 : vector<8x1xf32> to vector<8x128xf32>
    %273 = arith.addf %270, %272 : vector<8x128xf32>
    %cst_60 = arith.constant 0.000000e+00 : f32
    %274 = vector.broadcast %cst_60 : f32 to vector<8x128xf32>
    %275 = arith.maximumf %273, %274 : vector<8x128xf32>
    %276 = tpu.concatenate %20, %41, %62, %100, %121, %159, %197, %275 in 0 : vector<8x128xf32>, vector<8x128xf32>, vector<8x128xf32>, vector<8x128xf32>, vector<8x128xf32>, vector<8x128xf32>, vector<8x128xf32>, vector<8x128xf32> -> vector<64x128xf32>
    %c0_61 = arith.constant 0 : index
    %c0_62 = arith.constant 0 : index
    %277 = vector.load %arg7[%c0_61, %c0_62] : memref<64x128xf32, #tpu.memory_space<vmem>>, vector<64x128xf32>
    tpu.vector_store %arg7[%c0_61, %c0_62], %276 {strides = array<i32>} : memref<64x128xf32, #tpu.memory_space<vmem>>, vector<64x128xf32>,
    return
  }
  func.func @transform_0(%arg0: i32) -> (i32, i32) {
    %c0_i32 = arith.constant 0 : i32
    %c0_i32_0 = arith.constant 0 : i32
    %c0_i32_1 = arith.constant 0 : i32
    return %c0_i32, %c0_i32_0 : i32, i32
  }
  func.func @transform_1(%arg0: i32) -> (i32, i32) {
    %c0_i32 = arith.constant 0 : i32
    %c0_i32_0 = arith.constant 0 : i32
    %c0_i32_1 = arith.constant 0 : i32
    return %c0_i32, %c0_i32_0 : i32, i32
  }
  func.func @transform_2(%arg0: i32) -> (i32, i32) {
    %c0_i32 = arith.constant 0 : i32
    %c0_i32_0 = arith.constant 0 : i32
    return %c0_i32, %arg0 : i32, i32
  }
  func.func @transform_3(%arg0: i32) -> (i32, i32) {
    %c0_i32 = arith.constant 0 : i32
    %0 = arith.addi %arg0, %c0_i32 : i32
    %c0_i32_0 = arith.constant 0 : i32
    %c0_i32_1 = arith.constant 0 : i32
    return %c0_i32_0, %0 : i32, i32
  }
  func.func @transform_4(%arg0: i32) -> (i32, i32) {
    %c1_i32 = arith.constant 1 : i32
    %0 = arith.addi %arg0, %c1_i32 : i32
    %c0_i32 = arith.constant 0 : i32
    %c0_i32_0 = arith.constant 0 : i32
    return %c0_i32, %0 : i32, i32
  }
  func.func @transform_5(%arg0: i32) -> (i32, i32) {
    %c0_i32 = arith.constant 0 : i32
    %0 = arith.addi %arg0, %c0_i32 : i32
    %c0_i32_0 = arith.constant 0 : i32
    %c0_i32_1 = arith.constant 0 : i32
    return %c0_i32_0, %0 : i32, i32
  }
  func.func @transform_6(%arg0: i32) -> (i32, i32) {
    %c0_i32 = arith.constant 0 : i32
    %c0_i32_0 = arith.constant 0 : i32
    return %c0_i32, %arg0 : i32, i32
  }
}

module attributes {stable_mosaic.version = 11 : i64} {
  func.func @_fused_conv_kernel(%arg0: i32, %arg1: memref<32x248xf32, #tpu.memory_space<vmem>>, %arg2: memref<32x1xf32, #tpu.memory_space<vmem>>, %arg3: memref<3x128xf32, #tpu.memory_space<vmem>>, %arg4: memref<8x128xf32, #tpu.memory_space<vmem>>, %arg5: memref<8x128xf32, #tpu.memory_space<vmem>>, %arg6: memref<32x128xf32, #tpu.memory_space<vmem>>, %arg7: memref<32x128xf32, #tpu.memory_space<vmem>>) attributes {dimension_semantics = [#tpu.dimension_semantics<parallel>], iteration_bounds = array<i64: 4>, scalar_prefetch = 0 : i64, scratch_operands = 0 : i64, tpu.core_type = #tpu.core_type<tc>, window_params = [{pipeline_mode = #tpu.pipeline_mode<synchronous>, transform_indices = @transform_0, window_bounds = array<i64: 32, 248>}, {pipeline_mode = #tpu.pipeline_mode<synchronous>, transform_indices = @transform_1, window_bounds = array<i64: 32, 1>}, {transform_indices = @transform_2, window_bounds = array<i64: 3, 128>}, {transform_indices = @transform_3, window_bounds = array<i64: 8, 128>}, {transform_indices = @transform_4, window_bounds = array<i64: 8, 128>}, {transform_indices = @transform_5, window_bounds = array<i64: 32, 128>}, {transform_indices = @transform_6, window_bounds = array<i64: 32, 128>}]} {
    %c0 = arith.constant 0 : index
    %c0_0 = arith.constant 0 : index
    %0 = vector.load %arg4[%c0, %c0_0] : memref<8x128xf32, #tpu.memory_space<vmem>>, vector<8x128xf32>
    %c0_1 = arith.constant 0 : index
    %c0_2 = arith.constant 0 : index
    %1 = vector.load %arg5[%c0_1, %c0_2] : memref<8x128xf32, #tpu.memory_space<vmem>>, vector<8x128xf32>
    %2 = tpu.concatenate %0, %1 in 1 : vector<8x128xf32>, vector<8x128xf32> -> vector<8x256xf32>
    %c0_3 = arith.constant 0 : index
    %c0_4 = arith.constant 0 : index
    %3 = vector.load %arg6[%c0_3, %c0_4] : memref<32x128xf32, #tpu.memory_space<vmem>>, vector<32x128xf32>
    %c0_5 = arith.constant 0 : index
    %c0_6 = arith.constant 0 : index
    %4 = vector.load %arg3[%c0_5, %c0_6] : memref<3x128xf32, #tpu.memory_space<vmem>>, vector<3x128xf32>
    %c0_7 = arith.constant 0 : index
    %c0_8 = arith.constant 0 : index
    %5 = vector.load %arg1[%c0_7, %c0_8] : memref<32x248xf32, #tpu.memory_space<vmem>>, vector<32x248xf32>
    %c0_9 = arith.constant 0 : index
    %c0_10 = arith.constant 0 : index
    %6 = vector.load %arg2[%c0_9, %c0_10] : memref<32x1xf32, #tpu.memory_space<vmem>>, vector<32x1xf32>
    %cst = arith.constant 0.000000e+00 : f32
    %7 = vector.broadcast %cst : f32 to vector<4x128xf32>
    %8 = vector.extract_strided_slice %2 {offsets = [0, 0], sizes = [8, 128], strides = [1, 1]} : vector<8x256xf32> to vector<8x128xf32>
    %9 = vector.extract_strided_slice %5 {offsets = [0, 0], sizes = [4, 8], strides = [1, 1]} : vector<32x248xf32> to vector<4x8xf32>
    %cst_11 = arith.constant dense<0.000000e+00> : vector<4x128xf32>
    %10 = tpu.matmul %9, %8, %cst_11 {dimension_numbers = #tpu.dot_dimension_numbers<[1], [0], [0], [1], [0, 0, 1, 1], [], []>} : vector<4x8xf32>, vector<8x128xf32>, vector<4x128xf32> -> vector<4x128xf32>
    %11 = arith.addf %7, %10 : vector<4x128xf32>
    %12 = vector.extract_strided_slice %3 {offsets = [0, 0], sizes = [4, 128], strides = [1, 1]} : vector<32x128xf32> to vector<4x128xf32>
    %13 = vector.extract_strided_slice %5 {offsets = [0, 8], sizes = [4, 4], strides = [1, 1]} : vector<32x248xf32> to vector<4x4xf32>
    %cst_12 = arith.constant dense<0.000000e+00> : vector<4x128xf32>
    %14 = tpu.matmul %13, %12, %cst_12 {dimension_numbers = #tpu.dot_dimension_numbers<[1], [0], [0], [1], [0, 0, 1, 1], [], []>} : vector<4x4xf32>, vector<4x128xf32>, vector<4x128xf32> -> vector<4x128xf32>
    %15 = arith.addf %11, %14 : vector<4x128xf32>
    %16 = vector.extract_strided_slice %6 {offsets = [0, 0], sizes = [4, 1], strides = [1, 1]} : vector<32x1xf32> to vector<4x1xf32>
    %17 = vector.broadcast %16 : vector<4x1xf32> to vector<4x128xf32>
    %18 = arith.addf %15, %17 : vector<4x128xf32>
    %cst_13 = arith.constant 0.000000e+00 : f32
    %19 = vector.broadcast %cst_13 : f32 to vector<4x128xf32>
    %20 = arith.maximumf %18, %19 : vector<4x128xf32>
    %cst_14 = arith.constant 0.000000e+00 : f32
    %21 = vector.broadcast %cst_14 : f32 to vector<4x128xf32>
    %22 = vector.extract_strided_slice %2 {offsets = [0, 1], sizes = [8, 128], strides = [1, 1]} : vector<8x256xf32> to vector<8x128xf32>
    %23 = vector.extract_strided_slice %4 {offsets = [0, 0], sizes = [1, 128], strides = [1, 1]} : vector<3x128xf32> to vector<1x128xf32>
    %24 = vector.broadcast %23 : vector<1x128xf32> to vector<8x128xf32>
    %25 = arith.mulf %22, %24 : vector<8x128xf32>
    %26 = vector.extract_strided_slice %5 {offsets = [4, 12], sizes = [4, 8], strides = [1, 1]} : vector<32x248xf32> to vector<4x8xf32>
    %cst_15 = arith.constant dense<0.000000e+00> : vector<4x128xf32>
    %27 = tpu.matmul %26, %25, %cst_15 {dimension_numbers = #tpu.dot_dimension_numbers<[1], [0], [0], [1], [0, 0, 1, 1], [], []>} : vector<4x8xf32>, vector<8x128xf32>, vector<4x128xf32> -> vector<4x128xf32>
    %28 = arith.addf %21, %27 : vector<4x128xf32>
    %29 = vector.extract_strided_slice %2 {offsets = [0, 0], sizes = [8, 128], strides = [1, 1]} : vector<8x256xf32> to vector<8x128xf32>
    %30 = vector.extract_strided_slice %5 {offsets = [4, 20], sizes = [4, 8], strides = [1, 1]} : vector<32x248xf32> to vector<4x8xf32>
    %cst_16 = arith.constant dense<0.000000e+00> : vector<4x128xf32>
    %31 = tpu.matmul %30, %29, %cst_16 {dimension_numbers = #tpu.dot_dimension_numbers<[1], [0], [0], [1], [0, 0, 1, 1], [], []>} : vector<4x8xf32>, vector<8x128xf32>, vector<4x128xf32> -> vector<4x128xf32>
    %32 = arith.addf %28, %31 : vector<4x128xf32>
    %33 = vector.extract_strided_slice %3 {offsets = [4, 0], sizes = [4, 128], strides = [1, 1]} : vector<32x128xf32> to vector<4x128xf32>
    %34 = vector.extract_strided_slice %5 {offsets = [4, 28], sizes = [4, 4], strides = [1, 1]} : vector<32x248xf32> to vector<4x4xf32>
    %cst_17 = arith.constant dense<0.000000e+00> : vector<4x128xf32>
    %35 = tpu.matmul %34, %33, %cst_17 {dimension_numbers = #tpu.dot_dimension_numbers<[1], [0], [0], [1], [0, 0, 1, 1], [], []>} : vector<4x4xf32>, vector<4x128xf32>, vector<4x128xf32> -> vector<4x128xf32>
    %36 = arith.addf %32, %35 : vector<4x128xf32>
    %37 = vector.extract_strided_slice %6 {offsets = [4, 0], sizes = [4, 1], strides = [1, 1]} : vector<32x1xf32> to vector<4x1xf32>
    %38 = vector.broadcast %37 : vector<4x1xf32> to vector<4x128xf32>
    %39 = arith.addf %36, %38 : vector<4x128xf32>
    %cst_18 = arith.constant 0.000000e+00 : f32
    %40 = vector.broadcast %cst_18 : f32 to vector<4x128xf32>
    %41 = arith.maximumf %39, %40 : vector<4x128xf32>
    %cst_19 = arith.constant 0.000000e+00 : f32
    %42 = vector.broadcast %cst_19 : f32 to vector<4x128xf32>
    %43 = vector.extract_strided_slice %2 {offsets = [0, 8], sizes = [8, 128], strides = [1, 1]} : vector<8x256xf32> to vector<8x128xf32>
    %44 = vector.extract_strided_slice %4 {offsets = [1, 0], sizes = [1, 128], strides = [1, 1]} : vector<3x128xf32> to vector<1x128xf32>
    %45 = vector.broadcast %44 : vector<1x128xf32> to vector<8x128xf32>
    %46 = arith.mulf %43, %45 : vector<8x128xf32>
    %47 = vector.extract_strided_slice %5 {offsets = [8, 32], sizes = [4, 8], strides = [1, 1]} : vector<32x248xf32> to vector<4x8xf32>
    %cst_20 = arith.constant dense<0.000000e+00> : vector<4x128xf32>
    %48 = tpu.matmul %47, %46, %cst_20 {dimension_numbers = #tpu.dot_dimension_numbers<[1], [0], [0], [1], [0, 0, 1, 1], [], []>} : vector<4x8xf32>, vector<8x128xf32>, vector<4x128xf32> -> vector<4x128xf32>
    %49 = arith.addf %42, %48 : vector<4x128xf32>
    %50 = vector.extract_strided_slice %2 {offsets = [0, 0], sizes = [8, 128], strides = [1, 1]} : vector<8x256xf32> to vector<8x128xf32>
    %51 = vector.extract_strided_slice %5 {offsets = [8, 40], sizes = [4, 8], strides = [1, 1]} : vector<32x248xf32> to vector<4x8xf32>
    %cst_21 = arith.constant dense<0.000000e+00> : vector<4x128xf32>
    %52 = tpu.matmul %51, %50, %cst_21 {dimension_numbers = #tpu.dot_dimension_numbers<[1], [0], [0], [1], [0, 0, 1, 1], [], []>} : vector<4x8xf32>, vector<8x128xf32>, vector<4x128xf32> -> vector<4x128xf32>
    %53 = arith.addf %49, %52 : vector<4x128xf32>
    %54 = vector.extract_strided_slice %3 {offsets = [8, 0], sizes = [4, 128], strides = [1, 1]} : vector<32x128xf32> to vector<4x128xf32>
    %55 = vector.extract_strided_slice %5 {offsets = [8, 48], sizes = [4, 4], strides = [1, 1]} : vector<32x248xf32> to vector<4x4xf32>
    %cst_22 = arith.constant dense<0.000000e+00> : vector<4x128xf32>
    %56 = tpu.matmul %55, %54, %cst_22 {dimension_numbers = #tpu.dot_dimension_numbers<[1], [0], [0], [1], [0, 0, 1, 1], [], []>} : vector<4x4xf32>, vector<4x128xf32>, vector<4x128xf32> -> vector<4x128xf32>
    %57 = arith.addf %53, %56 : vector<4x128xf32>
    %58 = vector.extract_strided_slice %6 {offsets = [8, 0], sizes = [4, 1], strides = [1, 1]} : vector<32x1xf32> to vector<4x1xf32>
    %59 = vector.broadcast %58 : vector<4x1xf32> to vector<4x128xf32>
    %60 = arith.addf %57, %59 : vector<4x128xf32>
    %cst_23 = arith.constant 0.000000e+00 : f32
    %61 = vector.broadcast %cst_23 : f32 to vector<4x128xf32>
    %62 = arith.maximumf %60, %61 : vector<4x128xf32>
    %cst_24 = arith.constant 0.000000e+00 : f32
    %63 = vector.broadcast %cst_24 : f32 to vector<4x128xf32>
    %64 = vector.extract_strided_slice %2 {offsets = [0, 9], sizes = [8, 128], strides = [1, 1]} : vector<8x256xf32> to vector<8x128xf32>
    %65 = vector.extract_strided_slice %4 {offsets = [1, 0], sizes = [1, 128], strides = [1, 1]} : vector<3x128xf32> to vector<1x128xf32>
    %66 = vector.broadcast %65 : vector<1x128xf32> to vector<8x128xf32>
    %67 = arith.mulf %64, %66 : vector<8x128xf32>
    %68 = vector.extract_strided_slice %4 {offsets = [0, 0], sizes = [1, 128], strides = [1, 1]} : vector<3x128xf32> to vector<1x128xf32>
    %69 = vector.broadcast %68 : vector<1x128xf32> to vector<8x128xf32>
    %70 = arith.mulf %67, %69 : vector<8x128xf32>
    %71 = vector.extract_strided_slice %5 {offsets = [12, 52], sizes = [4, 8], strides = [1, 1]} : vector<32x248xf32> to vector<4x8xf32>
    %cst_25 = arith.constant dense<0.000000e+00> : vector<4x128xf32>
    %72 = tpu.matmul %71, %70, %cst_25 {dimension_numbers = #tpu.dot_dimension_numbers<[1], [0], [0], [1], [0, 0, 1, 1], [], []>} : vector<4x8xf32>, vector<8x128xf32>, vector<4x128xf32> -> vector<4x128xf32>
    %73 = arith.addf %63, %72 : vector<4x128xf32>
    %74 = vector.extract_strided_slice %2 {offsets = [0, 8], sizes = [8, 128], strides = [1, 1]} : vector<8x256xf32> to vector<8x128xf32>
    %75 = vector.extract_strided_slice %4 {offsets = [1, 0], sizes = [1, 128], strides = [1, 1]} : vector<3x128xf32> to vector<1x128xf32>
    %76 = vector.broadcast %75 : vector<1x128xf32> to vector<8x128xf32>
    %77 = arith.mulf %74, %76 : vector<8x128xf32>
    %78 = vector.extract_strided_slice %5 {offsets = [12, 60], sizes = [4, 8], strides = [1, 1]} : vector<32x248xf32> to vector<4x8xf32>
    %cst_26 = arith.constant dense<0.000000e+00> : vector<4x128xf32>
    %79 = tpu.matmul %78, %77, %cst_26 {dimension_numbers = #tpu.dot_dimension_numbers<[1], [0], [0], [1], [0, 0, 1, 1], [], []>} : vector<4x8xf32>, vector<8x128xf32>, vector<4x128xf32> -> vector<4x128xf32>
    %80 = arith.addf %73, %79 : vector<4x128xf32>
    %81 = vector.extract_strided_slice %2 {offsets = [0, 1], sizes = [8, 128], strides = [1, 1]} : vector<8x256xf32> to vector<8x128xf32>
    %82 = vector.extract_strided_slice %4 {offsets = [0, 0], sizes = [1, 128], strides = [1, 1]} : vector<3x128xf32> to vector<1x128xf32>
    %83 = vector.broadcast %82 : vector<1x128xf32> to vector<8x128xf32>
    %84 = arith.mulf %81, %83 : vector<8x128xf32>
    %85 = vector.extract_strided_slice %5 {offsets = [12, 68], sizes = [4, 8], strides = [1, 1]} : vector<32x248xf32> to vector<4x8xf32>
    %cst_27 = arith.constant dense<0.000000e+00> : vector<4x128xf32>
    %86 = tpu.matmul %85, %84, %cst_27 {dimension_numbers = #tpu.dot_dimension_numbers<[1], [0], [0], [1], [0, 0, 1, 1], [], []>} : vector<4x8xf32>, vector<8x128xf32>, vector<4x128xf32> -> vector<4x128xf32>
    %87 = arith.addf %80, %86 : vector<4x128xf32>
    %88 = vector.extract_strided_slice %2 {offsets = [0, 0], sizes = [8, 128], strides = [1, 1]} : vector<8x256xf32> to vector<8x128xf32>
    %89 = vector.extract_strided_slice %5 {offsets = [12, 76], sizes = [4, 8], strides = [1, 1]} : vector<32x248xf32> to vector<4x8xf32>
    %cst_28 = arith.constant dense<0.000000e+00> : vector<4x128xf32>
    %90 = tpu.matmul %89, %88, %cst_28 {dimension_numbers = #tpu.dot_dimension_numbers<[1], [0], [0], [1], [0, 0, 1, 1], [], []>} : vector<4x8xf32>, vector<8x128xf32>, vector<4x128xf32> -> vector<4x128xf32>
    %91 = arith.addf %87, %90 : vector<4x128xf32>
    %92 = vector.extract_strided_slice %3 {offsets = [12, 0], sizes = [4, 128], strides = [1, 1]} : vector<32x128xf32> to vector<4x128xf32>
    %93 = vector.extract_strided_slice %5 {offsets = [12, 84], sizes = [4, 4], strides = [1, 1]} : vector<32x248xf32> to vector<4x4xf32>
    %cst_29 = arith.constant dense<0.000000e+00> : vector<4x128xf32>
    %94 = tpu.matmul %93, %92, %cst_29 {dimension_numbers = #tpu.dot_dimension_numbers<[1], [0], [0], [1], [0, 0, 1, 1], [], []>} : vector<4x4xf32>, vector<4x128xf32>, vector<4x128xf32> -> vector<4x128xf32>
    %95 = arith.addf %91, %94 : vector<4x128xf32>
    %96 = vector.extract_strided_slice %6 {offsets = [12, 0], sizes = [4, 1], strides = [1, 1]} : vector<32x1xf32> to vector<4x1xf32>
    %97 = vector.broadcast %96 : vector<4x1xf32> to vector<4x128xf32>
    %98 = arith.addf %95, %97 : vector<4x128xf32>
    %cst_30 = arith.constant 0.000000e+00 : f32
    %99 = vector.broadcast %cst_30 : f32 to vector<4x128xf32>
    %100 = arith.maximumf %98, %99 : vector<4x128xf32>
    %cst_31 = arith.constant 0.000000e+00 : f32
    %101 = vector.broadcast %cst_31 : f32 to vector<4x128xf32>
    %102 = vector.extract_strided_slice %2 {offsets = [0, 64], sizes = [8, 128], strides = [1, 1]} : vector<8x256xf32> to vector<8x128xf32>
    %103 = vector.extract_strided_slice %4 {offsets = [2, 0], sizes = [1, 128], strides = [1, 1]} : vector<3x128xf32> to vector<1x128xf32>
    %104 = vector.broadcast %103 : vector<1x128xf32> to vector<8x128xf32>
    %105 = arith.mulf %102, %104 : vector<8x128xf32>
    %106 = vector.extract_strided_slice %5 {offsets = [16, 88], sizes = [4, 8], strides = [1, 1]} : vector<32x248xf32> to vector<4x8xf32>
    %cst_32 = arith.constant dense<0.000000e+00> : vector<4x128xf32>
    %107 = tpu.matmul %106, %105, %cst_32 {dimension_numbers = #tpu.dot_dimension_numbers<[1], [0], [0], [1], [0, 0, 1, 1], [], []>} : vector<4x8xf32>, vector<8x128xf32>, vector<4x128xf32> -> vector<4x128xf32>
    %108 = arith.addf %101, %107 : vector<4x128xf32>
    %109 = vector.extract_strided_slice %2 {offsets = [0, 0], sizes = [8, 128], strides = [1, 1]} : vector<8x256xf32> to vector<8x128xf32>
    %110 = vector.extract_strided_slice %5 {offsets = [16, 96], sizes = [4, 8], strides = [1, 1]} : vector<32x248xf32> to vector<4x8xf32>
    %cst_33 = arith.constant dense<0.000000e+00> : vector<4x128xf32>
    %111 = tpu.matmul %110, %109, %cst_33 {dimension_numbers = #tpu.dot_dimension_numbers<[1], [0], [0], [1], [0, 0, 1, 1], [], []>} : vector<4x8xf32>, vector<8x128xf32>, vector<4x128xf32> -> vector<4x128xf32>
    %112 = arith.addf %108, %111 : vector<4x128xf32>
    %113 = vector.extract_strided_slice %3 {offsets = [16, 0], sizes = [4, 128], strides = [1, 1]} : vector<32x128xf32> to vector<4x128xf32>
    %114 = vector.extract_strided_slice %5 {offsets = [16, 104], sizes = [4, 4], strides = [1, 1]} : vector<32x248xf32> to vector<4x4xf32>
    %cst_34 = arith.constant dense<0.000000e+00> : vector<4x128xf32>
    %115 = tpu.matmul %114, %113, %cst_34 {dimension_numbers = #tpu.dot_dimension_numbers<[1], [0], [0], [1], [0, 0, 1, 1], [], []>} : vector<4x4xf32>, vector<4x128xf32>, vector<4x128xf32> -> vector<4x128xf32>
    %116 = arith.addf %112, %115 : vector<4x128xf32>
    %117 = vector.extract_strided_slice %6 {offsets = [16, 0], sizes = [4, 1], strides = [1, 1]} : vector<32x1xf32> to vector<4x1xf32>
    %118 = vector.broadcast %117 : vector<4x1xf32> to vector<4x128xf32>
    %119 = arith.addf %116, %118 : vector<4x128xf32>
    %cst_35 = arith.constant 0.000000e+00 : f32
    %120 = vector.broadcast %cst_35 : f32 to vector<4x128xf32>
    %121 = arith.maximumf %119, %120 : vector<4x128xf32>
    %cst_36 = arith.constant 0.000000e+00 : f32
    %122 = vector.broadcast %cst_36 : f32 to vector<4x128xf32>
    %123 = vector.extract_strided_slice %2 {offsets = [0, 65], sizes = [8, 128], strides = [1, 1]} : vector<8x256xf32> to vector<8x128xf32>
    %124 = vector.extract_strided_slice %4 {offsets = [2, 0], sizes = [1, 128], strides = [1, 1]} : vector<3x128xf32> to vector<1x128xf32>
    %125 = vector.broadcast %124 : vector<1x128xf32> to vector<8x128xf32>
    %126 = arith.mulf %123, %125 : vector<8x128xf32>
    %127 = vector.extract_strided_slice %4 {offsets = [0, 0], sizes = [1, 128], strides = [1, 1]} : vector<3x128xf32> to vector<1x128xf32>
    %128 = vector.broadcast %127 : vector<1x128xf32> to vector<8x128xf32>
    %129 = arith.mulf %126, %128 : vector<8x128xf32>
    %130 = vector.extract_strided_slice %5 {offsets = [20, 108], sizes = [4, 8], strides = [1, 1]} : vector<32x248xf32> to vector<4x8xf32>
    %cst_37 = arith.constant dense<0.000000e+00> : vector<4x128xf32>
    %131 = tpu.matmul %130, %129, %cst_37 {dimension_numbers = #tpu.dot_dimension_numbers<[1], [0], [0], [1], [0, 0, 1, 1], [], []>} : vector<4x8xf32>, vector<8x128xf32>, vector<4x128xf32> -> vector<4x128xf32>
    %132 = arith.addf %122, %131 : vector<4x128xf32>
    %133 = vector.extract_strided_slice %2 {offsets = [0, 64], sizes = [8, 128], strides = [1, 1]} : vector<8x256xf32> to vector<8x128xf32>
    %134 = vector.extract_strided_slice %4 {offsets = [2, 0], sizes = [1, 128], strides = [1, 1]} : vector<3x128xf32> to vector<1x128xf32>
    %135 = vector.broadcast %134 : vector<1x128xf32> to vector<8x128xf32>
    %136 = arith.mulf %133, %135 : vector<8x128xf32>
    %137 = vector.extract_strided_slice %5 {offsets = [20, 116], sizes = [4, 8], strides = [1, 1]} : vector<32x248xf32> to vector<4x8xf32>
    %cst_38 = arith.constant dense<0.000000e+00> : vector<4x128xf32>
    %138 = tpu.matmul %137, %136, %cst_38 {dimension_numbers = #tpu.dot_dimension_numbers<[1], [0], [0], [1], [0, 0, 1, 1], [], []>} : vector<4x8xf32>, vector<8x128xf32>, vector<4x128xf32> -> vector<4x128xf32>
    %139 = arith.addf %132, %138 : vector<4x128xf32>
    %140 = vector.extract_strided_slice %2 {offsets = [0, 1], sizes = [8, 128], strides = [1, 1]} : vector<8x256xf32> to vector<8x128xf32>
    %141 = vector.extract_strided_slice %4 {offsets = [0, 0], sizes = [1, 128], strides = [1, 1]} : vector<3x128xf32> to vector<1x128xf32>
    %142 = vector.broadcast %141 : vector<1x128xf32> to vector<8x128xf32>
    %143 = arith.mulf %140, %142 : vector<8x128xf32>
    %144 = vector.extract_strided_slice %5 {offsets = [20, 124], sizes = [4, 8], strides = [1, 1]} : vector<32x248xf32> to vector<4x8xf32>
    %cst_39 = arith.constant dense<0.000000e+00> : vector<4x128xf32>
    %145 = tpu.matmul %144, %143, %cst_39 {dimension_numbers = #tpu.dot_dimension_numbers<[1], [0], [0], [1], [0, 0, 1, 1], [], []>} : vector<4x8xf32>, vector<8x128xf32>, vector<4x128xf32> -> vector<4x128xf32>
    %146 = arith.addf %139, %145 : vector<4x128xf32>
    %147 = vector.extract_strided_slice %2 {offsets = [0, 0], sizes = [8, 128], strides = [1, 1]} : vector<8x256xf32> to vector<8x128xf32>
    %148 = vector.extract_strided_slice %5 {offsets = [20, 132], sizes = [4, 8], strides = [1, 1]} : vector<32x248xf32> to vector<4x8xf32>
    %cst_40 = arith.constant dense<0.000000e+00> : vector<4x128xf32>
    %149 = tpu.matmul %148, %147, %cst_40 {dimension_numbers = #tpu.dot_dimension_numbers<[1], [0], [0], [1], [0, 0, 1, 1], [], []>} : vector<4x8xf32>, vector<8x128xf32>, vector<4x128xf32> -> vector<4x128xf32>
    %150 = arith.addf %146, %149 : vector<4x128xf32>
    %151 = vector.extract_strided_slice %3 {offsets = [20, 0], sizes = [4, 128], strides = [1, 1]} : vector<32x128xf32> to vector<4x128xf32>
    %152 = vector.extract_strided_slice %5 {offsets = [20, 140], sizes = [4, 4], strides = [1, 1]} : vector<32x248xf32> to vector<4x4xf32>
    %cst_41 = arith.constant dense<0.000000e+00> : vector<4x128xf32>
    %153 = tpu.matmul %152, %151, %cst_41 {dimension_numbers = #tpu.dot_dimension_numbers<[1], [0], [0], [1], [0, 0, 1, 1], [], []>} : vector<4x4xf32>, vector<4x128xf32>, vector<4x128xf32> -> vector<4x128xf32>
    %154 = arith.addf %150, %153 : vector<4x128xf32>
    %155 = vector.extract_strided_slice %6 {offsets = [20, 0], sizes = [4, 1], strides = [1, 1]} : vector<32x1xf32> to vector<4x1xf32>
    %156 = vector.broadcast %155 : vector<4x1xf32> to vector<4x128xf32>
    %157 = arith.addf %154, %156 : vector<4x128xf32>
    %cst_42 = arith.constant 0.000000e+00 : f32
    %158 = vector.broadcast %cst_42 : f32 to vector<4x128xf32>
    %159 = arith.maximumf %157, %158 : vector<4x128xf32>
    %cst_43 = arith.constant 0.000000e+00 : f32
    %160 = vector.broadcast %cst_43 : f32 to vector<4x128xf32>
    %161 = vector.extract_strided_slice %2 {offsets = [0, 72], sizes = [8, 128], strides = [1, 1]} : vector<8x256xf32> to vector<8x128xf32>
    %162 = vector.extract_strided_slice %4 {offsets = [2, 0], sizes = [1, 128], strides = [1, 1]} : vector<3x128xf32> to vector<1x128xf32>
    %163 = vector.broadcast %162 : vector<1x128xf32> to vector<8x128xf32>
    %164 = arith.mulf %161, %163 : vector<8x128xf32>
    %165 = vector.extract_strided_slice %4 {offsets = [1, 0], sizes = [1, 128], strides = [1, 1]} : vector<3x128xf32> to vector<1x128xf32>
    %166 = vector.broadcast %165 : vector<1x128xf32> to vector<8x128xf32>
    %167 = arith.mulf %164, %166 : vector<8x128xf32>
    %168 = vector.extract_strided_slice %5 {offsets = [24, 144], sizes = [4, 8], strides = [1, 1]} : vector<32x248xf32> to vector<4x8xf32>
    %cst_44 = arith.constant dense<0.000000e+00> : vector<4x128xf32>
    %169 = tpu.matmul %168, %167, %cst_44 {dimension_numbers = #tpu.dot_dimension_numbers<[1], [0], [0], [1], [0, 0, 1, 1], [], []>} : vector<4x8xf32>, vector<8x128xf32>, vector<4x128xf32> -> vector<4x128xf32>
    %170 = arith.addf %160, %169 : vector<4x128xf32>
    %171 = vector.extract_strided_slice %2 {offsets = [0, 64], sizes = [8, 128], strides = [1, 1]} : vector<8x256xf32> to vector<8x128xf32>
    %172 = vector.extract_strided_slice %4 {offsets = [2, 0], sizes = [1, 128], strides = [1, 1]} : vector<3x128xf32> to vector<1x128xf32>
    %173 = vector.broadcast %172 : vector<1x128xf32> to vector<8x128xf32>
    %174 = arith.mulf %171, %173 : vector<8x128xf32>
    %175 = vector.extract_strided_slice %5 {offsets = [24, 152], sizes = [4, 8], strides = [1, 1]} : vector<32x248xf32> to vector<4x8xf32>
    %cst_45 = arith.constant dense<0.000000e+00> : vector<4x128xf32>
    %176 = tpu.matmul %175, %174, %cst_45 {dimension_numbers = #tpu.dot_dimension_numbers<[1], [0], [0], [1], [0, 0, 1, 1], [], []>} : vector<4x8xf32>, vector<8x128xf32>, vector<4x128xf32> -> vector<4x128xf32>
    %177 = arith.addf %170, %176 : vector<4x128xf32>
    %178 = vector.extract_strided_slice %2 {offsets = [0, 8], sizes = [8, 128], strides = [1, 1]} : vector<8x256xf32> to vector<8x128xf32>
    %179 = vector.extract_strided_slice %4 {offsets = [1, 0], sizes = [1, 128], strides = [1, 1]} : vector<3x128xf32> to vector<1x128xf32>
    %180 = vector.broadcast %179 : vector<1x128xf32> to vector<8x128xf32>
    %181 = arith.mulf %178, %180 : vector<8x128xf32>
    %182 = vector.extract_strided_slice %5 {offsets = [24, 160], sizes = [4, 8], strides = [1, 1]} : vector<32x248xf32> to vector<4x8xf32>
    %cst_46 = arith.constant dense<0.000000e+00> : vector<4x128xf32>
    %183 = tpu.matmul %182, %181, %cst_46 {dimension_numbers = #tpu.dot_dimension_numbers<[1], [0], [0], [1], [0, 0, 1, 1], [], []>} : vector<4x8xf32>, vector<8x128xf32>, vector<4x128xf32> -> vector<4x128xf32>
    %184 = arith.addf %177, %183 : vector<4x128xf32>
    %185 = vector.extract_strided_slice %2 {offsets = [0, 0], sizes = [8, 128], strides = [1, 1]} : vector<8x256xf32> to vector<8x128xf32>
    %186 = vector.extract_strided_slice %5 {offsets = [24, 168], sizes = [4, 8], strides = [1, 1]} : vector<32x248xf32> to vector<4x8xf32>
    %cst_47 = arith.constant dense<0.000000e+00> : vector<4x128xf32>
    %187 = tpu.matmul %186, %185, %cst_47 {dimension_numbers = #tpu.dot_dimension_numbers<[1], [0], [0], [1], [0, 0, 1, 1], [], []>} : vector<4x8xf32>, vector<8x128xf32>, vector<4x128xf32> -> vector<4x128xf32>
    %188 = arith.addf %184, %187 : vector<4x128xf32>
    %189 = vector.extract_strided_slice %3 {offsets = [24, 0], sizes = [4, 128], strides = [1, 1]} : vector<32x128xf32> to vector<4x128xf32>
    %190 = vector.extract_strided_slice %5 {offsets = [24, 176], sizes = [4, 4], strides = [1, 1]} : vector<32x248xf32> to vector<4x4xf32>
    %cst_48 = arith.constant dense<0.000000e+00> : vector<4x128xf32>
    %191 = tpu.matmul %190, %189, %cst_48 {dimension_numbers = #tpu.dot_dimension_numbers<[1], [0], [0], [1], [0, 0, 1, 1], [], []>} : vector<4x4xf32>, vector<4x128xf32>, vector<4x128xf32> -> vector<4x128xf32>
    %192 = arith.addf %188, %191 : vector<4x128xf32>
    %193 = vector.extract_strided_slice %6 {offsets = [24, 0], sizes = [4, 1], strides = [1, 1]} : vector<32x1xf32> to vector<4x1xf32>
    %194 = vector.broadcast %193 : vector<4x1xf32> to vector<4x128xf32>
    %195 = arith.addf %192, %194 : vector<4x128xf32>
    %cst_49 = arith.constant 0.000000e+00 : f32
    %196 = vector.broadcast %cst_49 : f32 to vector<4x128xf32>
    %197 = arith.maximumf %195, %196 : vector<4x128xf32>
    %cst_50 = arith.constant 0.000000e+00 : f32
    %198 = vector.broadcast %cst_50 : f32 to vector<4x128xf32>
    %199 = vector.extract_strided_slice %2 {offsets = [0, 73], sizes = [8, 128], strides = [1, 1]} : vector<8x256xf32> to vector<8x128xf32>
    %200 = vector.extract_strided_slice %4 {offsets = [2, 0], sizes = [1, 128], strides = [1, 1]} : vector<3x128xf32> to vector<1x128xf32>
    %201 = vector.broadcast %200 : vector<1x128xf32> to vector<8x128xf32>
    %202 = arith.mulf %199, %201 : vector<8x128xf32>
    %203 = vector.extract_strided_slice %4 {offsets = [1, 0], sizes = [1, 128], strides = [1, 1]} : vector<3x128xf32> to vector<1x128xf32>
    %204 = vector.broadcast %203 : vector<1x128xf32> to vector<8x128xf32>
    %205 = arith.mulf %202, %204 : vector<8x128xf32>
    %206 = vector.extract_strided_slice %4 {offsets = [0, 0], sizes = [1, 128], strides = [1, 1]} : vector<3x128xf32> to vector<1x128xf32>
    %207 = vector.broadcast %206 : vector<1x128xf32> to vector<8x128xf32>
    %208 = arith.mulf %205, %207 : vector<8x128xf32>
    %209 = vector.extract_strided_slice %5 {offsets = [28, 180], sizes = [4, 8], strides = [1, 1]} : vector<32x248xf32> to vector<4x8xf32>
    %cst_51 = arith.constant dense<0.000000e+00> : vector<4x128xf32>
    %210 = tpu.matmul %209, %208, %cst_51 {dimension_numbers = #tpu.dot_dimension_numbers<[1], [0], [0], [1], [0, 0, 1, 1], [], []>} : vector<4x8xf32>, vector<8x128xf32>, vector<4x128xf32> -> vector<4x128xf32>
    %211 = arith.addf %198, %210 : vector<4x128xf32>
    %212 = vector.extract_strided_slice %2 {offsets = [0, 72], sizes = [8, 128], strides = [1, 1]} : vector<8x256xf32> to vector<8x128xf32>
    %213 = vector.extract_strided_slice %4 {offsets = [2, 0], sizes = [1, 128], strides = [1, 1]} : vector<3x128xf32> to vector<1x128xf32>
    %214 = vector.broadcast %213 : vector<1x128xf32> to vector<8x128xf32>
    %215 = arith.mulf %212, %214 : vector<8x128xf32>
    %216 = vector.extract_strided_slice %4 {offsets = [1, 0], sizes = [1, 128], strides = [1, 1]} : vector<3x128xf32> to vector<1x128xf32>
    %217 = vector.broadcast %216 : vector<1x128xf32> to vector<8x128xf32>
    %218 = arith.mulf %215, %217 : vector<8x128xf32>
    %219 = vector.extract_strided_slice %5 {offsets = [28, 188], sizes = [4, 8], strides = [1, 1]} : vector<32x248xf32> to vector<4x8xf32>
    %cst_52 = arith.constant dense<0.000000e+00> : vector<4x128xf32>
    %220 = tpu.matmul %219, %218, %cst_52 {dimension_numbers = #tpu.dot_dimension_numbers<[1], [0], [0], [1], [0, 0, 1, 1], [], []>} : vector<4x8xf32>, vector<8x128xf32>, vector<4x128xf32> -> vector<4x128xf32>
    %221 = arith.addf %211, %220 : vector<4x128xf32>
    %222 = vector.extract_strided_slice %2 {offsets = [0, 65], sizes = [8, 128], strides = [1, 1]} : vector<8x256xf32> to vector<8x128xf32>
    %223 = vector.extract_strided_slice %4 {offsets = [2, 0], sizes = [1, 128], strides = [1, 1]} : vector<3x128xf32> to vector<1x128xf32>
    %224 = vector.broadcast %223 : vector<1x128xf32> to vector<8x128xf32>
    %225 = arith.mulf %222, %224 : vector<8x128xf32>
    %226 = vector.extract_strided_slice %4 {offsets = [0, 0], sizes = [1, 128], strides = [1, 1]} : vector<3x128xf32> to vector<1x128xf32>
    %227 = vector.broadcast %226 : vector<1x128xf32> to vector<8x128xf32>
    %228 = arith.mulf %225, %227 : vector<8x128xf32>
    %229 = vector.extract_strided_slice %5 {offsets = [28, 196], sizes = [4, 8], strides = [1, 1]} : vector<32x248xf32> to vector<4x8xf32>
    %cst_53 = arith.constant dense<0.000000e+00> : vector<4x128xf32>
    %230 = tpu.matmul %229, %228, %cst_53 {dimension_numbers = #tpu.dot_dimension_numbers<[1], [0], [0], [1], [0, 0, 1, 1], [], []>} : vector<4x8xf32>, vector<8x128xf32>, vector<4x128xf32> -> vector<4x128xf32>
    %231 = arith.addf %221, %230 : vector<4x128xf32>
    %232 = vector.extract_strided_slice %2 {offsets = [0, 64], sizes = [8, 128], strides = [1, 1]} : vector<8x256xf32> to vector<8x128xf32>
    %233 = vector.extract_strided_slice %4 {offsets = [2, 0], sizes = [1, 128], strides = [1, 1]} : vector<3x128xf32> to vector<1x128xf32>
    %234 = vector.broadcast %233 : vector<1x128xf32> to vector<8x128xf32>
    %235 = arith.mulf %232, %234 : vector<8x128xf32>
    %236 = vector.extract_strided_slice %5 {offsets = [28, 204], sizes = [4, 8], strides = [1, 1]} : vector<32x248xf32> to vector<4x8xf32>
    %cst_54 = arith.constant dense<0.000000e+00> : vector<4x128xf32>
    %237 = tpu.matmul %236, %235, %cst_54 {dimension_numbers = #tpu.dot_dimension_numbers<[1], [0], [0], [1], [0, 0, 1, 1], [], []>} : vector<4x8xf32>, vector<8x128xf32>, vector<4x128xf32> -> vector<4x128xf32>
    %238 = arith.addf %231, %237 : vector<4x128xf32>
    %239 = vector.extract_strided_slice %2 {offsets = [0, 9], sizes = [8, 128], strides = [1, 1]} : vector<8x256xf32> to vector<8x128xf32>
    %240 = vector.extract_strided_slice %4 {offsets = [1, 0], sizes = [1, 128], strides = [1, 1]} : vector<3x128xf32> to vector<1x128xf32>
    %241 = vector.broadcast %240 : vector<1x128xf32> to vector<8x128xf32>
    %242 = arith.mulf %239, %241 : vector<8x128xf32>
    %243 = vector.extract_strided_slice %4 {offsets = [0, 0], sizes = [1, 128], strides = [1, 1]} : vector<3x128xf32> to vector<1x128xf32>
    %244 = vector.broadcast %243 : vector<1x128xf32> to vector<8x128xf32>
    %245 = arith.mulf %242, %244 : vector<8x128xf32>
    %246 = vector.extract_strided_slice %5 {offsets = [28, 212], sizes = [4, 8], strides = [1, 1]} : vector<32x248xf32> to vector<4x8xf32>
    %cst_55 = arith.constant dense<0.000000e+00> : vector<4x128xf32>
    %247 = tpu.matmul %246, %245, %cst_55 {dimension_numbers = #tpu.dot_dimension_numbers<[1], [0], [0], [1], [0, 0, 1, 1], [], []>} : vector<4x8xf32>, vector<8x128xf32>, vector<4x128xf32> -> vector<4x128xf32>
    %248 = arith.addf %238, %247 : vector<4x128xf32>
    %249 = vector.extract_strided_slice %2 {offsets = [0, 8], sizes = [8, 128], strides = [1, 1]} : vector<8x256xf32> to vector<8x128xf32>
    %250 = vector.extract_strided_slice %4 {offsets = [1, 0], sizes = [1, 128], strides = [1, 1]} : vector<3x128xf32> to vector<1x128xf32>
    %251 = vector.broadcast %250 : vector<1x128xf32> to vector<8x128xf32>
    %252 = arith.mulf %249, %251 : vector<8x128xf32>
    %253 = vector.extract_strided_slice %5 {offsets = [28, 220], sizes = [4, 8], strides = [1, 1]} : vector<32x248xf32> to vector<4x8xf32>
    %cst_56 = arith.constant dense<0.000000e+00> : vector<4x128xf32>
    %254 = tpu.matmul %253, %252, %cst_56 {dimension_numbers = #tpu.dot_dimension_numbers<[1], [0], [0], [1], [0, 0, 1, 1], [], []>} : vector<4x8xf32>, vector<8x128xf32>, vector<4x128xf32> -> vector<4x128xf32>
    %255 = arith.addf %248, %254 : vector<4x128xf32>
    %256 = vector.extract_strided_slice %2 {offsets = [0, 1], sizes = [8, 128], strides = [1, 1]} : vector<8x256xf32> to vector<8x128xf32>
    %257 = vector.extract_strided_slice %4 {offsets = [0, 0], sizes = [1, 128], strides = [1, 1]} : vector<3x128xf32> to vector<1x128xf32>
    %258 = vector.broadcast %257 : vector<1x128xf32> to vector<8x128xf32>
    %259 = arith.mulf %256, %258 : vector<8x128xf32>
    %260 = vector.extract_strided_slice %5 {offsets = [28, 228], sizes = [4, 8], strides = [1, 1]} : vector<32x248xf32> to vector<4x8xf32>
    %cst_57 = arith.constant dense<0.000000e+00> : vector<4x128xf32>
    %261 = tpu.matmul %260, %259, %cst_57 {dimension_numbers = #tpu.dot_dimension_numbers<[1], [0], [0], [1], [0, 0, 1, 1], [], []>} : vector<4x8xf32>, vector<8x128xf32>, vector<4x128xf32> -> vector<4x128xf32>
    %262 = arith.addf %255, %261 : vector<4x128xf32>
    %263 = vector.extract_strided_slice %2 {offsets = [0, 0], sizes = [8, 128], strides = [1, 1]} : vector<8x256xf32> to vector<8x128xf32>
    %264 = vector.extract_strided_slice %5 {offsets = [28, 236], sizes = [4, 8], strides = [1, 1]} : vector<32x248xf32> to vector<4x8xf32>
    %cst_58 = arith.constant dense<0.000000e+00> : vector<4x128xf32>
    %265 = tpu.matmul %264, %263, %cst_58 {dimension_numbers = #tpu.dot_dimension_numbers<[1], [0], [0], [1], [0, 0, 1, 1], [], []>} : vector<4x8xf32>, vector<8x128xf32>, vector<4x128xf32> -> vector<4x128xf32>
    %266 = arith.addf %262, %265 : vector<4x128xf32>
    %267 = vector.extract_strided_slice %3 {offsets = [28, 0], sizes = [4, 128], strides = [1, 1]} : vector<32x128xf32> to vector<4x128xf32>
    %268 = vector.extract_strided_slice %5 {offsets = [28, 244], sizes = [4, 4], strides = [1, 1]} : vector<32x248xf32> to vector<4x4xf32>
    %cst_59 = arith.constant dense<0.000000e+00> : vector<4x128xf32>
    %269 = tpu.matmul %268, %267, %cst_59 {dimension_numbers = #tpu.dot_dimension_numbers<[1], [0], [0], [1], [0, 0, 1, 1], [], []>} : vector<4x4xf32>, vector<4x128xf32>, vector<4x128xf32> -> vector<4x128xf32>
    %270 = arith.addf %266, %269 : vector<4x128xf32>
    %271 = vector.extract_strided_slice %6 {offsets = [28, 0], sizes = [4, 1], strides = [1, 1]} : vector<32x1xf32> to vector<4x1xf32>
    %272 = vector.broadcast %271 : vector<4x1xf32> to vector<4x128xf32>
    %273 = arith.addf %270, %272 : vector<4x128xf32>
    %cst_60 = arith.constant 0.000000e+00 : f32
    %274 = vector.broadcast %cst_60 : f32 to vector<4x128xf32>
    %275 = arith.maximumf %273, %274 : vector<4x128xf32>
    %276 = tpu.concatenate %20, %41, %62, %100, %121, %159, %197, %275 in 0 : vector<4x128xf32>, vector<4x128xf32>, vector<4x128xf32>, vector<4x128xf32>, vector<4x128xf32>, vector<4x128xf32>, vector<4x128xf32>, vector<4x128xf32> -> vector<32x128xf32>
    %c0_61 = arith.constant 0 : index
    %c0_62 = arith.constant 0 : index
    %277 = vector.load %arg7[%c0_61, %c0_62] : memref<32x128xf32, #tpu.memory_space<vmem>>, vector<32x128xf32>
    tpu.vector_store %arg7[%c0_61, %c0_62], %276 {strides = array<i32>} : memref<32x128xf32, #tpu.memory_space<vmem>>, vector<32x128xf32>,
    return
  }
  func.func @transform_0(%arg0: i32) -> (i32, i32) {
    %c0_i32 = arith.constant 0 : i32
    %c0_i32_0 = arith.constant 0 : i32
    %c0_i32_1 = arith.constant 0 : i32
    return %c0_i32, %c0_i32_0 : i32, i32
  }
  func.func @transform_1(%arg0: i32) -> (i32, i32) {
    %c0_i32 = arith.constant 0 : i32
    %c0_i32_0 = arith.constant 0 : i32
    %c0_i32_1 = arith.constant 0 : i32
    return %c0_i32, %c0_i32_0 : i32, i32
  }
  func.func @transform_2(%arg0: i32) -> (i32, i32) {
    %c0_i32 = arith.constant 0 : i32
    %c0_i32_0 = arith.constant 0 : i32
    return %c0_i32, %arg0 : i32, i32
  }
  func.func @transform_3(%arg0: i32) -> (i32, i32) {
    %c0_i32 = arith.constant 0 : i32
    %0 = arith.addi %arg0, %c0_i32 : i32
    %c0_i32_0 = arith.constant 0 : i32
    %c0_i32_1 = arith.constant 0 : i32
    return %c0_i32_0, %0 : i32, i32
  }
  func.func @transform_4(%arg0: i32) -> (i32, i32) {
    %c1_i32 = arith.constant 1 : i32
    %0 = arith.addi %arg0, %c1_i32 : i32
    %c0_i32 = arith.constant 0 : i32
    %c0_i32_0 = arith.constant 0 : i32
    return %c0_i32, %0 : i32, i32
  }
  func.func @transform_5(%arg0: i32) -> (i32, i32) {
    %c0_i32 = arith.constant 0 : i32
    %0 = arith.addi %arg0, %c0_i32 : i32
    %c0_i32_0 = arith.constant 0 : i32
    %c0_i32_1 = arith.constant 0 : i32
    return %c0_i32_0, %0 : i32, i32
  }
  func.func @transform_6(%arg0: i32) -> (i32, i32) {
    %c0_i32 = arith.constant 0 : i32
    %c0_i32_0 = arith.constant 0 : i32
    return %c0_i32, %arg0 : i32, i32
  }
}

</mosaic_0001>

<bundles_post_ra>
// kernel: _lambda_.6
= control target key start
LH: loop header
LB: loop body
LE: loop exit
PB: predicated region body
PF: predicated region fallthrough
CT: control target
= control target key end

     0   :  { %s3253_s18 = smov 0   ;;  %s3255_s19 = smov 0   ;;  %s3740_s0 = inlined_call_operand.vmem [shape: f32[8,108], index: 0, kind: input, shape index: {}]   ;;  %s3741_s1 = inlined_call_operand.vmem [shape: f32[8,1], index: 1, kind: input, shape index: {}]   ;;  %s3742_s2 = inlined_call_operand.vmem [shape: f32[3,512], index: 2, kind: input, shape index: {}]   ;;  %s3743_s3 = inlined_call_operand.vmem [shape: f32[32,640], index: 3, kind: input, shape index: {}, may-alias: {3,4}]   ;;  %s3744_s4 = inlined_call_operand.vmem [shape: f32[32,640], index: 4, kind: input, shape index: {}, may-alias: {3,4}]   ;;  %s3745_s5 = inlined_call_operand.vmem [shape: f32[8,512], index: 5, kind: output, shape index: {}]  }
   0x1   :  { %s3257_s20 = smov 0   ;;  %s3259_s21 = smov 0  }
   0x2   :  { %s3261_s22 = smov 0  }
   0x3 LB: > { %s2804_s23 = sadd.s32 4294967295, %s3183_s22   ;;  %s3280_s24 = sadd.s32 1, %s3183_s22   ;;  %s3183_s22 = sphi %s3261_s22, %s3751_s22   ;;  %s3179_s21 = sphi %s3259_s21, %s3750_s21   ;;  %s3175_s20 = sphi %s3257_s20, %s3749_s20   ;;  %s3171_s19 = sphi %s3255_s19, %s3748_s19   ;;  %s3167_s18 = sphi %s3253_s18, %s3747_s18  }
   0x4   : > { %s87_s25 = ssub.s32 %s3183_s22, %s3280_s24  ;;  %s90_s26 = sadd.s32 1, %s3179_s21 }
   0x5   : > { %p88_p0 = scmp.eq.s32.totalorder %s87_s25, 0  ;;  %p97_p1 = scmp.ne.s32.totalorder %s3179_s21, %s3175_s20 }
   0x6   : > { %p98_p2 = scmp.eq.s32.totalorder %s3183_s22, 0  ;;  %s114_s27 = sadd.s32 1, %s3280_s24 }
   0x7   : > { %s3290_s28 = scalar_select %p88_p0, %s3179_s21, %s90_s26  }
   0x8   : > { %p99_p3 = por %p98_p2, %p97_p1  ;;  %s115_s29 = ssub.s32 %s3280_s24, %s114_s27 }
   0x9   : > { %p116_p4 = scmp.eq.s32.totalorder %s115_s29, 0  ;;  %s118_s30 = sadd.s32 1, %s3171_s19 }
   0xa   : > { %p125_p5 = scmp.ne.s32.totalorder %s3171_s19, %s3167_s18  ;;  %p2807_p7 = scmp.ge.s32.totalorder %s3183_s22, 4 }
   0xb   : > { %s3297_s6 = scalar_select %p116_p4, %s3171_s19, %s118_s30  }
   0xc   : > { %p3299_p6 = por %p125_p5, %p98_p2  ;;  %183 = sbr.rel (%p2807_p7) target bundleno = 29 (0x1d), region = 24 }
  0x11   : > { %193 = sbr.rel (!%p99_p3) target bundleno = 23 (0x17), region = 32  ;;  %s195_s8 = sand.u32 (%p99_p3), 1, %s3179_s21  }
  0x12   : > { %s2809_s9 = sshll.u32 (%p99_p3), %s3183_s22, 3  ;;  %s2808_s10 = sshll.u32 (%p99_p3), %s195_s8, 5 }
  0x13   : > { %s199_s13 = scalar_lea.vmem (%p99_p3), %s3743_s3, %s2809_s9  ;;  %s197_s14 = scalar_lea.vmem (%p99_p3), [#allocation2], %s2808_s10 }
  0x14   : > { %v234_v0 = vld [vmem:[%s199_s13] sm:$0xff] (%p99_p3)  ;;  %v236_v1 = vld [vmem:[%s199_s13 + $0x28] sm:$0xff] (%p99_p3)  ;;  %v238_v2 = vld [vmem:[%s199_s13 + $0x50] sm:$0xff] (%p99_p3) }
  0x15   : > { %235 = vst [vmem:[%s197_s14] sm:$0xff] (%p99_p3), %v234_v0  ;;  %237 = vst [vmem:[%s197_s14 + $0x8] sm:$0xff] (%p99_p3), %v236_v1  ;;  %v240_v3 = vld [vmem:[%s199_s13 + $0x78] sm:$0xff] (%p99_p3) }
  0x16   : > { %239 = vst [vmem:[%s197_s14 + $0x10] sm:$0xff] %v238_v2  ;;  %241 = vst [vmem:[%s197_s14 + $0x18] sm:$0xff] %v240_v3 }
  0x17 PF: > { %247 = sbr.rel (!%p3299_p6) target bundleno = 29 (0x1d), region = 70  ;;  %s249_s15 = sand.u32 (%p3299_p6), 1, %s3171_s19  }
  0x18   : > { %s2811_s16 = sshll.u32 (%p3299_p6), %s3183_s22, 3  ;;  %s2810_s17 = sshll.u32 (%p3299_p6), %s249_s15, 5 }
  0x19   : > { %s2742_s27 = scalar_lea.vmem (%p3299_p6), %s3744_s4, %s2811_s16  ;;  %s251_s29 = scalar_lea.vmem (%p3299_p6), [#allocation3], %s2810_s17 }
  0x1a   : > { %v2812_v4 = vld [vmem:[%s2742_s27 + $0x8] sm:$0xff] (%p3299_p6)  ;;  %v2813_v5 = vld [vmem:[%s2742_s27 + $0x30] sm:$0xff] (%p3299_p6)  ;;  %v2814_v6 = vld [vmem:[%s2742_s27 + $0x58] sm:$0xff] (%p3299_p6) }
  0x1b   : > { %290 = vst [vmem:[%s251_s29] sm:$0xff] (%p3299_p6), %v2812_v4  ;;  %292 = vst [vmem:[%s251_s29 + $0x8] sm:$0xff] (%p3299_p6), %v2813_v5  ;;  %v2815_v7 = vld [vmem:[%s2742_s27 + $0x80] sm:$0xff] (%p3299_p6) }
  0x1c   : > { %294 = vst [vmem:[%s251_s29 + $0x10] sm:$0xff] %v2814_v6  ;;  %296 = vst [vmem:[%s251_s29 + $0x18] sm:$0xff] %v2815_v7 }
  0x1d PF: > { %p2816_p8 = scmp.ge.s32.totalorder %s3183_s22, 1  ;;  %p301_p9 = scmp.lt.s32.totalorder %s3183_s22, 5 }
  0x1f   : > { %p302_p10 = pnand %p2816_p8, %p301_p9 }
  0x20   : > { %p349_p11 = scmp.lt.s32.totalorder (!%p302_p10), %s2804_s23, 3  ;;  %s3185_s10 = smov (!%p302_p10), 56  }
  0x21   : > { %305 = sbr.rel (%p302_p10) target bundleno = 592 (0x250), region = 108  ;;  %s3186_s11 = smov (!%p302_p10), 55  }
  0x22   : > { %s3187_s22 = smov (!%p302_p10), 63   ;;  %s3188_s12 = smov (!%p302_p10), 64  }
  0x23   : > { %s3189_s13 = smov (!%p302_p10), 119   ;;  %s3190_s14 = smov (!%p302_p10), 120  }
  0x24   : > { %s3191_s15 = smov (!%p302_p10), 127   ;;  %s3192_s25 = smov (!%p302_p10), 124  }
  0x25   : > { %s3193_s26 = smov (!%p302_p10), 112   ;;  %s3194_s27 = smov (!%p302_p10), 116  }
  0x26   : > { %v369_v8 = vlaneseq  ;;  %s3753_s23 = smov (!%p349_p11, %s2804_s23), 3  ;;  %v3334_v17 = vld [vmem:[%s3740_s0] sm:$0xff]  ;;  %s3195_s29 = smov 104   ;;  %v3203_v39 = vmov 0.0   ;;  %vm3204_vm0 = vmmov 0   ;;  %vm418_vm1 = vcmask 588800  }
  0x27   : > { %s2819_s30 = sshll.u32 %s3753_s23, 2  ;;  %s3197_s7 = smov 96   ;;  %2931 = vmatprep.subr.mxu0 %v3203_v39  ;;  %2933 = vmatprep.mubr.msk.f32.mxu0 %vm3204_vm0, %v3203_v39  ;;  %vm423_vm2 = vcmask 1043456   ;;  %vm420_vm3 = vcmask 31744   ;;  %vm774_vm4 = vcmask 523264   ;;  %vm684_vm5 = vcmask 531456  }
  0x28   : > { %v370_v9 = vshrl.u32 %v369_v8, 7  ;;  %s352_s9 = scalar_lea.vmem %s3742_s2, %s2819_s30  ;;  %s3196_s30 = smov 108   ;;  %2936 = vmatprep.subr.mxu1 %v3203_v39  ;;  %2938 = vmatprep.mubr.msk.f32.mxu1 %vm3204_vm0, %v3203_v39  ;;  %vm1305_vm6 = vcmask 64512   ;;  %vm504_vm7 = vcmask 596992   ;;  %vm1481_vm8 = vcmask 7168  }
  0x29   : > { %v366_v13 = vld [vmem:[%s352_s9] sm:$0x7]  ;;  %s3198_s8 = smov 100   ;;  %s3199_s9 = smov 88   ;;  %vm1215_vm9 = vcmask 72704  }
  0x2a   : > { %v371_v10 = vsub.s32 0, %v370_v9  ;;  %v391_v11 = vsub.s32 2, %v370_v9  ;;  %v381_v12 = vsub.s32 1, %v370_v9 }
  0x2c   : > { %v372_v14 = vrot.slane %v366_v13, %v371_v10  ;;  %v392_v15 = vrot.slane %v366_v13, %v391_v11  ;;  %v382_v16 = vrot.slane %v366_v13, %v381_v12 }
  0x2e   : > { %399 = vrot.lane.b32.xlu1 %v372_v14, %s3185_s10  ;;  %374 = vrot.lane.b32.xlu0 %v372_v14, %s3186_s11 }
  0x32   : > { %394 = vrot.lane.b32.xlu1 %v392_v15, %s3186_s11  ;;  %384 = vrot.lane.b32.xlu0 %v382_v16, %s3186_s11  ;;  %s3200_s11 = smov 92  }
  0x36   : > { %664 = vrot.lane.b32.xlu1 %v372_v14, %s3187_s22  ;;  %404 = vrot.lane.b32.xlu0 %v382_v16, %s3185_s10 }
  0x3a   : > { %761 = vrot.lane.b32.xlu1 %v372_v14, %s3188_s12  ;;  %669 = vrot.lane.b32.xlu0 %v392_v15, %s3187_s22  ;;  %s3201_s22 = smov 80  }
  0x3e   : > { %1195 = vrot.lane.b32.xlu0 %v382_v16, %s3189_s13  ;;  %1200 = vrot.lane.b32.xlu1 %v392_v15, %s3189_s13  ;;  %s3202_s13 = smov 84  }
  0x42   : > { %1292 = vrot.lane.b32.xlu0 %v382_v16, %s3190_s14  ;;  %1466 = vrot.lane.b32.xlu1 %v392_v15, %s3191_s15  ;;  %s315_s15 = sand.u32 1, %s3167_s18   ;;  %s3205_s18 = smov 8  }
  0x43   : > { %s2818_s17 = sshll.u32 %s315_s15, 5  ;;  %s3220_s15 = smov 32  }
  0x46   : > { %580 = vrot.lane.b32.xlu1 %v3334_v17, %s3190_s14  ;;  %410 = vrot.lane.b32.xlu0 %v3334_v17, %s3192_s25  ;;  %s308_s14 = sand.u32 1, %s3175_s20   ;;  %s3206_s20 = smov 72  }
  0x47   : > { %s2817_s16 = sshll.u32 %s308_s14, 5  ;;  %s3219_s14 = smov 36  }
  0x48   : > { %s3358_s25 = scalar_lea.vmem [#allocation2], %s2817_s16  ;;  %s3221_s16 = smov 28  }
  0x49   : > { %v3361_v24 = vld [vmem:[%s3358_s25 + $0x10] sm:$0xff]  ;;  %v3375_v30 = vld [vmem:[%s3358_s25 + $0x18] sm:$0xff]  ;;  %v3389_v36 = vld [vmem:[%s3358_s25 + $0x8] sm:$0xff] }
  0x4a   : > { %766 = vrot.lane.b32.xlu1 %v3334_v17, %s3193_s26  ;;  %674 = vrot.lane.b32.xlu0 %v3334_v17, %s3194_s27  ;;  %s3363_s26 = scalar_lea.vmem [#allocation3], %s2818_s17  ;;  %v358_v52 = vld [vmem:[%s3358_s25] sm:$0xff]  ;;  %s3207_s27 = smov 1  }
  0x4b   : > { %v3366_v25 = vld [vmem:[%s3363_s26 + $0x10] sm:$0xff]  ;;  %v3378_v31 = vld [vmem:[%s3363_s26 + $0x18] sm:$0xff]  ;;  %v3392_v37 = vld [vmem:[%s3363_s26 + $0x8] sm:$0xff]  ;;  %s3222_s17 = smov 24  }
  0x4c   : > { %v3425_v51 = vld [vmem:[%s3363_s26] sm:$0xff] }
  0x4e   : > { %939 = vrot.lane.b32.xlu1 %v3334_v17, %s3195_s29  ;;  %851 = vrot.lane.b32.xlu0 %v3334_v17, %s3196_s30  ;;  %s3208_s29 = smov 65   ;;  %s3209_s30 = smov 9  }
  0x52   : > { %1111 = vrot.lane.b32.xlu1 %v3334_v17, %s3197_s7  ;;  %1027 = vrot.lane.b32.xlu0 %v3334_v17, %s3198_s8  ;;  %s3210_s7 = smov 73   ;;  %s3211_s8 = smov 76  }
  0x56   : > { %1297 = vrot.lane.b32.xlu1 %v3334_v17, %s3199_s9  ;;  %1205 = vrot.lane.b32.xlu0 %v3334_v17, %s3200_s11  ;;  %s3212_s9 = smov 68   ;;  %s3213_s11 = smov 60  }
  0x5a   : > { %1471 = vrot.lane.b32.xlu1 %v3334_v17, %s3201_s22  ;;  %1382 = vrot.lane.b32.xlu0 %v3334_v17, %s3202_s13  ;;  %s3216_s22 = smov 44   ;;  %s3217_s13 = smov 40  }
  0xa0   : > { %v400_v18 = vpop.permute.xlu1 %399  ;;  %v3348_v19 = vpop.permute.xlu0 %374 }
  0xa1   : > { %v402_v42 = vmul.f32 %v400_v18, %v3375_v30  ;;  %v403_v43 = vmul.f32 %v400_v18, %v3378_v31  ;;  %v377_v11 = vmul.f32 %v3348_v19, %v3375_v30  ;;  %v378_v12 = vmul.f32 %v3348_v19, %v3378_v31 }
  0xa4   : > { %v3350_v20 = vpop.permute.xlu1 %394  ;;  %v3352_v21 = vpop.permute.xlu0 %384 }
  0xa5   : > { %v387_v13 = vmul.f32 %v3352_v21, %v377_v11  ;;  %v388_v14 = vmul.f32 %v3352_v21, %v378_v12 }
  0xa8   : > { %v3356_v22 = vpop.permute.xlu1 %664  ;;  %v405_v23 = vpop.permute.xlu0 %404 }
  0xa9   : > { %v407_v45 = vmul.f32 %v405_v23, %v402_v42  ;;  %v408_v46 = vmul.f32 %v405_v23, %v403_v43  ;;  %v667_v61 = vmul.f32 %v3356_v22, %v3361_v24  ;;  %v668_v62 = vmul.f32 %v3356_v22, %v3366_v25 }
  0xaa   : > { %v935_v3 = vmul.f32 %v3356_v22, %v3375_v30  ;;  %v936_v4 = vmul.f32 %v3356_v22, %v3378_v31  ;;  %v397_v23 = vmul.f32 %v3350_v20, %v387_v13 }
  0xab   : > { %v582_v63 = vrot.slane %v407_v45, 4  ;;  %v583_v0 = vrot.slane %v408_v46, 4 }
  0xac   : > { %v762_v26 = vpop.permute.xlu1 %761  ;;  %v3368_v27 = vpop.permute.xlu0 %669 }
  0xad   : > { %v765_v28 = vmul.f32 %v762_v26, %v3366_v25  ;;  %v764_v29 = vmul.f32 %v762_v26, %v3361_v24  ;;  %v1025_v33 = vmul.f32 %v762_v26, %v3375_v30  ;;  %v1026_v34 = vmul.f32 %v762_v26, %v3378_v31 }
  0xae   : > { %v672_v1 = vmul.f32 %v3368_v27, %v667_v61  ;;  %v673_v2 = vmul.f32 %v3368_v27, %v668_v62  ;;  %v938_v5 = vmul.f32 %v936_v4, %v3368_v27  ;;  %v937_v6 = vmul.f32 %v935_v3, %v3368_v27 }
  0xaf   : > { %772 = vrot.lane.b32.xlu0 %v765_v28, %s3188_s12  ;;  %770 = vrot.lane.b32.xlu1 %v764_v29, %s3188_s12  ;;  %v853_v49 = vrot.slane %v764_v29, 4  ;;  %v854_v50 = vrot.slane %v765_v28, 4  ;;  %v1114_v53 = vrot.slane %v1026_v34, 4  ;;  %v1113_v54 = vrot.slane %v1025_v33, 4 }
  0xb0   : > { %v3380_v32 = vpop.permute.xlu0 %1195  ;;  %v3384_v35 = vpop.permute.xlu1 %1200  ;;  %v678_v9 = vrot.slane %v672_v1, 4  ;;  %v679_v10 = vrot.slane %v673_v2, 4  ;;  %v944_v15 = vrot.slane %v938_v5, 4  ;;  %v943_v16 = vrot.slane %v937_v6, 4 }
  0xb1   : > { %v1198_v7 = vmul.f32 %v3380_v32, %v3389_v36  ;;  %v1199_v8 = vmul.f32 %v3380_v32, %v3392_v37  ;;  %v398_v26 = vmul.f32 %v3350_v20, %v388_v14  ;;  %v498_v29 = vrot.slane %v397_v23, 4 }
  0xb2   : > { %v1958_v20 = vmul.f32 %v3380_v32, %v3375_v30 }
  0xb3   : > { %1031 = vrot.lane.b32.xlu0 %v1025_v33, %s3188_s12  ;;  %1033 = vrot.lane.b32.xlu1 %v1026_v34, %s3188_s12  ;;  %v1203_v18 = vmul.f32 %v3384_v35, %v1198_v7  ;;  %v1204_v22 = vmul.f32 %v3384_v35, %v1199_v8  ;;  %v499_v28 = vrot.slane %v398_v26, 4 }
  0xb4   : > { %v3394_v38 = vpop.permute.xlu0 %1292  ;;  %v3410_v44 = vpop.permute.xlu1 %1466 }
  0xb5   : > { %v1296_v40 = vmul.f32 %v3394_v38, %v3392_v37  ;;  %v1295_v41 = vmul.f32 %v3394_v38, %v3389_v36  ;;  %v3414_v47 = vmul.f32 %v3394_v38, %v3375_v30  ;;  %v3418_v48 = vmul.f32 %v3410_v44, %v3375_v30 }
  0xb6   : > { %v1470_v55 = vmul.f32 %v3410_v44, %v3425_v51  ;;  %v1469_v56 = vmul.f32 %v3410_v44, %v358_v52  ;;  %v1209_v19 = vrot.slane %v1203_v18, 4  ;;  %v1210_v27 = vrot.slane %v1204_v22, 4 }
  0xb7   : > { %1303 = vrot.lane.b32.xlu0 %v1296_v40, %s3205_s18  ;;  %1301 = vrot.lane.b32.xlu1 %v1295_v41, %s3205_s18  ;;  %v1385_v57 = vrot.slane %v1296_v40, 4  ;;  %v1384_v58 = vrot.slane %v1295_v41, 4  ;;  %v1714_v21 = vmul.f32 %v3410_v44, %v3389_v36  ;;  %v1715_v33 = vmul.f32 %v3410_v44, %v3392_v37 }
  0xb8   : > { %v1476_v59 = vrot.slane %v1470_v55, 4  ;;  %v1475_v60 = vrot.slane %v1469_v56, 4  ;;  %v1959_v36 = vmul.f32 %v3380_v32, %v3378_v31  ;;  %v1960_v41 = vmul.f32 %v1958_v20, %v3384_v35 }
  0xb9   : > { %v1720_v34 = vrot.slane %v1714_v21, 4  ;;  %v1721_v40 = vrot.slane %v1715_v33, 4  ;;  %v2049_v32 = vmul.f32 %v3394_v38, %v3378_v31  ;;  %v3498_v38 = vpop.permute.xlu1 %580  ;;  %v2463_v55 = vmul.f32 %v3410_v44, %v3378_v31 }
  0xba   : > { %v1966_v42 = vrot.slane %v1960_v41, 4  ;;  %v1961_v30 = vmul.f32 %v1959_v36, %v3384_v35 }
  0xbb   : > { %414 = vrot.lane.b32.xlu0 %v407_v45, %s3206_s20  ;;  %416 = vrot.lane.b32.xlu1 %v408_v46, %s3206_s20  ;;  %v2136_v45 = vrot.slane %v3414_v47, 4  ;;  %v2137_v35 = vrot.slane %v2049_v32, 4  ;;  %v2218_v46 = vmul.f32 %v3410_v44, %v3361_v24 }
  0xbc   : > { %v1967_v43 = vrot.slane %v1961_v30, 4 }
  0xbf   : > { %855 = vrot.lane.b32.xlu0 %v853_v49, %s3188_s12  ;;  %857 = vrot.lane.b32.xlu1 %v854_v50, %s3188_s12  ;;  %v2219_v49 = vmul.f32 %v3410_v44, %v3366_v25  ;;  %v411_v50 = vpop.permute.xlu0 %410 }
  0xc1   : > { %v2225_v52 = vrot.slane %v2219_v49, 4 }
  0xc3   : > { %1117 = vrot.lane.b32.xlu0 %v1114_v53, %s3188_s12  ;;  %1115 = vrot.lane.b32.xlu1 %v1113_v54, %s3188_s12  ;;  %v3504_v53 = vpop.permute.xlu1 %766  ;;  %v3506_v24 = vpop.permute.xlu0 %674  ;;  %v2468_v54 = vrot.slane %v3418_v48, 4 }
  0xc7   : > { %1388 = vrot.lane.b32.xlu1 %v1385_v57, %s3205_s18  ;;  %1386 = vrot.lane.b32.xlu0 %v1384_v58, %s3205_s18  ;;  %v3513_v56 = vpop.permute.xlu1 %939  ;;  %v3515_v57 = vpop.permute.xlu0 %851  ;;  %v3218_v58 = vmov 0  }
  0xc8   : > { %3144 = vset.pattern.permute.xlu0 %v3218_v58 }
  0xcb   : > { %1479 = vrot.lane.b32.xlu0 %v1476_v59, %s3207_s27  ;;  %1477 = vrot.lane.b32.xlu1 %v1475_v60, %s3207_s27  ;;  %v2469_v59 = vrot.slane %v2463_v55, 4  ;;  %v3521_v48 = vpop.permute.xlu1 %1111  ;;  %v3523_v44 = vpop.permute.xlu0 %1027  ;;  %v368_v60 = vld [vmem:[%s3741_s1] sm:$0xff] }
  0xcf   : > { %586 = vrot.lane.b32.xlu0 %v583_v0, %s3206_s20  ;;  %584 = vrot.lane.b32.xlu1 %v582_v63, %s3206_s20  ;;  %v3530_v61 = vpop.permute.xlu1 %1297  ;;  %v3532_v62 = vpop.permute.xlu0 %1205 }
  0xd3   : > { %680 = vrot.lane.b32.xlu0 %v678_v9, %s3208_s29  ;;  %682 = vrot.lane.b32.xlu1 %v679_v10, %s3208_s29  ;;  %v3534_v63 = vpop.permute.xlu1 %1471  ;;  %v3536_v0 = vpop.permute.xlu0 %1382 }
  0xd7   : > { %947 = vrot.lane.b32.xlu0 %v944_v15, %s3208_s29  ;;  %945 = vrot.lane.b32.xlu1 %v943_v16, %s3208_s29 }
  0xdb   : > { %1211 = vrot.lane.b32.xlu0 %v1209_v19, %s3209_s30  ;;  %1213 = vrot.lane.b32.xlu1 %v1210_v27, %s3209_s30 }
  0xdf   : > { %502 = vrot.lane.b32.xlu0 %v499_v28, %s3210_s7  ;;  %500 = vrot.lane.b32.xlu1 %v498_v29, %s3210_s7 }
  0xe3   : > { %1558 = vrot.lane.b32.xlu0 %v3334_v17, %s3211_s8  ;;  %1636 = vrot.lane.b32.xlu1 %v3334_v17, %s3206_s20 }
  0xe7   : > { %1722 = vrot.lane.b32.xlu0 %v1720_v34, %s3207_s27  ;;  %1724 = vrot.lane.b32.xlu1 %v1721_v40, %s3207_s27 }
  0xeb   : > { %1716 = vrot.lane.b32.xlu0 %v3334_v17, %s3212_s9  ;;  %1802 = vrot.lane.b32.xlu1 %v3334_v17, %s3188_s12  ;;  %s3214_s12 = smov 52  }
  0xef   : > { %1880 = vrot.lane.b32.xlu0 %v3334_v17, %s3213_s11  ;;  %1968 = vrot.lane.b32.xlu1 %v1966_v42, %s3209_s30 }
  0xf3   : > { %1970 = vrot.lane.b32.xlu0 %v1967_v43, %s3209_s30  ;;  %1962 = vrot.lane.b32.xlu1 %v3334_v17, %s3185_s10  ;;  %s3215_s10 = smov 48  }
  0xf7   : > { %2054 = vrot.lane.b32.xlu0 %v3414_v47, %s3205_s18  ;;  %2056 = vrot.lane.b32.xlu1 %v2049_v32, %s3205_s18  ;;  %v2224_v47 = vrot.slane %v2218_v46, 4  ;;  %v1638_v46 = vrot.slane %v3425_v51, 4 }
  0xfb   : > { %2050 = vrot.lane.b32.xlu0 %v3334_v17, %s3214_s12  ;;  %2138 = vrot.lane.b32.xlu1 %v2136_v45, %s3205_s18 }
  0xff   : > { %2140 = vrot.lane.b32.xlu0 %v2137_v35, %s3205_s18  ;;  %2134 = vrot.lane.b32.xlu1 %v3334_v17, %s3215_s10  ;;  %s2820_s18 = sshll.u32 %s3753_s23, 3 }
 0x100   : > { %s357_s29 = scalar_lea.vmem %s3745_s5, %s2820_s18 }
 0x103   : > { %2226 = vrot.lane.b32.xlu0 %v2224_v47, %s3207_s27  ;;  %2228 = vrot.lane.b32.xlu1 %v2225_v52, %s3207_s27 }
 0x107   : > { %2220 = vrot.lane.b32.xlu0 %v3334_v17, %s3216_s22  ;;  %2306 = vrot.lane.b32.xlu1 %v3334_v17, %s3217_s13 }
 0x10b   : > { %2384 = vrot.lane.b32.xlu0 %v3334_v17, %s3219_s14  ;;  %2470 = vrot.lane.b32.xlu1 %v2468_v54, %s3207_s27 }
 0x10f   : > { %2472 = vrot.lane.b32.xlu0 %v2469_v59, %s3207_s27  ;;  %2464 = vrot.lane.b32.xlu1 %v3334_v17, %s3220_s15 }
 0x113   : > { %2550 = vrot.lane.b32.xlu0 %v3334_v17, %s3221_s16  ;;  %2628 = vrot.lane.b32.xlu1 %v3334_v17, %s3222_s17 }
 0x117   : > { %2708 = vperm.xlu0 %3144, %v368_v60  }
 0x121   : > { %v773_v1 = vpop.permute.xlu0 %772  ;;  %v771_v2 = vpop.permute.xlu1 %770 }
 0x122   : > { %v775_v19 = vsel %vm774_vm4, %v771_v2, %v773_v1 }
 0x125   : > { %v3538_v3 = vpop.permute.xlu0 %1031  ;;  %v3540_v4 = vpop.permute.xlu1 %1033 }
 0x129   : > { %v1304_v5 = vpop.permute.xlu0 %1303  ;;  %v1302_v6 = vpop.permute.xlu1 %1301 }
 0x12a   : > { %v1306_v36 = vsel %vm1305_vm6, %v1302_v6, %v1304_v5  ;;  %v2386_v6 = vrot.slane %v3366_v25, 4 }
 0x12d   : > { %v415_v7 = vpop.permute.xlu0 %414  ;;  %v417_v8 = vpop.permute.xlu1 %416 }
 0x12e   : > { %v419_v9 = vsel %vm418_vm1, %v415_v7, %v417_v8 }
 0x12f   : > { %2932 = vmatpush3.msk.msra.mxu0 %vm423_vm2, %v419_v9 }
 0x130   : > { %2934 = vmatmul.mubr.msk.f32.vlgmr.msra.gmra.mxu0 %vm420_vm3, %v411_v50  ;;  %2941 = vmatprep.subr.mxu0 %v3203_v39  ;;  %v1035_v50 = vsel %vm774_vm4, %v3538_v3, %v3540_v4 }
 0x131   : > { %v3546_v10 = vpop.permute.xlu0 %855  ;;  %v858_v11 = vpop.permute.xlu1 %857  ;;  %2943 = vmatprep.mubr.msk.f32.mxu0 %vm3204_vm0, %v3203_v39 }
 0x135   : > { %v1118_v12 = vpop.permute.xlu0 %1117  ;;  %v1116_v13 = vpop.permute.xlu1 %1115 }
 0x136   : > { %v1119_v20 = vsel %vm774_vm4, %v1116_v13, %v1118_v12 }
 0x139   : > { %v3550_v14 = vpop.permute.xlu1 %1388  ;;  %v3552_v15 = vpop.permute.xlu0 %1386 }
 0x13a   : > { %v1390_v55 = vsel %vm1305_vm6, %v3552_v15, %v3550_v14 }
 0x13d   : > { %v1480_v16 = vpop.permute.xlu0 %1479  ;;  %v1478_v18 = vpop.permute.xlu1 %1477 }
 0x13e   : > { %v1482_v32 = vsel %vm1481_vm8, %v1478_v18, %v1480_v16 }
 0x141   : > { %v587_v22 = vpop.permute.xlu0 %586  ;;  %v585_v23 = vpop.permute.xlu1 %584 }
 0x142   : > { %v588_v26 = vsel %vm418_vm1, %v585_v23, %v587_v22 }
 0x143   : > { %2942 = vmatpush3.msk.msra.mxu0 %vm423_vm2, %v588_v26 }
 0x144   : > { %2944 = vmatmul.mubr.msk.f32.vlgmr.msra.gmra.mxu0 %vm420_vm3, %v3498_v38  ;;  %2951 = vmatprep.subr.mxu0 %v3203_v39 }
 0x145   : > { %v681_v27 = vpop.permute.xlu0 %680  ;;  %2952 = vmatpush3.msk.msra.mxu0 %vm423_vm2, %v775_v19  ;;  %v683_v28 = vpop.permute.xlu1 %682  ;;  %2953 = vmatprep.mubr.msk.f32.mxu0 %vm3204_vm0, %v3203_v39 }
 0x146   : > { %2961 = vmatprep.subr.mxu0 %v3203_v39  ;;  %v685_v43 = vsel %vm684_vm5, %v681_v27, %v683_v28 }
 0x148   : > { %2954 = vmatmul.mubr.msk.f32.vlgmr.msra.gmra.mxu0 %vm420_vm3, %v3504_v53 }
 0x149   : > { %v948_v29 = vpop.permute.xlu0 %947  ;;  %v946_v21 = vpop.permute.xlu1 %945  ;;  %2963 = vmatprep.mubr.msk.f32.mxu0 %vm3204_vm0, %v3203_v39 }
 0x14a   : > { %v949_v33 = vsel %vm684_vm5, %v946_v21, %v948_v29 }
 0x14b   : > { %2962 = vmatpush3.msk.msra.mxu0 %vm423_vm2, %v949_v33 }
 0x14c   : > { %2964 = vmatmul.mubr.msk.f32.vlgmr.msra.gmra.mxu0 %vm420_vm3, %v3513_v56  ;;  %2971 = vmatprep.subr.mxu0 %v3203_v39 }
 0x14d   : > { %v1212_v34 = vpop.permute.xlu0 %1211  ;;  %2972 = vmatpush3.msk.msra.mxu0 %vm423_vm2, %v1119_v20  ;;  %v1214_v40 = vpop.permute.xlu1 %1213  ;;  %2973 = vmatprep.mubr.msk.f32.mxu0 %vm3204_vm0, %v3203_v39 }
 0x14e   : > { %2981 = vmatprep.subr.mxu0 %v3203_v39  ;;  %v1216_v53 = vsel %vm1215_vm9, %v1212_v34, %v1214_v40 }
 0x150   : > { %2974 = vmatmul.mubr.msk.f32.vlgmr.msra.gmra.mxu0 %vm420_vm3, %v3521_v48 }
 0x151   : > { %2982 = vmatpush3.msk.msra.mxu0 %vm423_vm2, %v1306_v36  ;;  %v503_v41 = vpop.permute.xlu0 %502  ;;  %v501_v42 = vpop.permute.xlu1 %500  ;;  %2983 = vmatprep.mubr.msk.f32.mxu0 %vm3204_vm0, %v3203_v39 }
 0x152   : > { %v505_v30 = vsel %vm504_vm7, %v501_v42, %v503_v41  ;;  %2991 = vmatprep.subr.mxu0 %v3203_v39 }
 0x153   : > { %2937 = vmatpush3.msk.msra.mxu1 %vm423_vm2, %v505_v30 }
 0x154   : > { %2939 = vmatmul.mubr.msk.f32.vlgmr.msra.gmra.mxu1 %vm420_vm3, %v3334_v17  ;;  %2946 = vmatprep.subr.mxu1 %v3203_v39  ;;  %v859_v17 = vsel %vm774_vm4, %v3546_v10, %v858_v11  ;;  %v2630_v10 = vrot.slane %v3378_v31, 4 }
 0x155   : > { %2984 = vmatmul.mubr.msk.f32.vlgmr.msra.gmra.mxu0 %vm420_vm3, %v3530_v61  ;;  %v1559_v45 = vpop.permute.xlu0 %1558  ;;  %2947 = vmatpush3.msk.msra.mxu1 %vm423_vm2, %v685_v43  ;;  %v1637_v35 = vpop.permute.xlu1 %1636 }
 0x156   : > { %2992 = vmatpush3.msk.msra.mxu0 %vm423_vm2, %v1482_v32  ;;  %2948 = vmatprep.mubr.msk.f32.mxu1 %vm3204_vm0, %v3203_v39 }
 0x157   : > { %2956 = vmatprep.subr.mxu1 %v3203_v39  ;;  %2993 = vmatprep.mubr.msk.f32.mxu0 %vm3204_vm0, %v3203_v39 }
 0x158   : > { %2949 = vmatmul.mubr.msk.f32.vlgmr.msra.gmra.mxu1 %vm420_vm3, %v3506_v24  ;;  %3001 = vmatprep.subr.mxu0 %v3203_v39 }
 0x159   : > { %2957 = vmatpush3.msk.msra.mxu1 %vm423_vm2, %v859_v17  ;;  %2994 = vmatmul.mubr.msk.f32.vlgmr.msra.gmra.mxu0 %vm420_vm3, %v3534_v63  ;;  %v1723_v49 = vpop.permute.xlu0 %1722  ;;  %v1725_v38 = vpop.permute.xlu1 %1724 }
 0x15a   : > { %2958 = vmatprep.mubr.msk.f32.mxu1 %vm3204_vm0, %v3203_v39  ;;  %2966 = vmatprep.subr.mxu1 %v3203_v39 }
 0x15b   : > { %3002 = vmatpush3.msk.msra.mxu0 %vm423_vm2, %v1638_v46  ;;  %3003 = vmatprep.mubr.msk.f32.mxu0 %vm3204_vm0, %v3203_v39 }
 0x15c   : > { %2959 = vmatmul.mubr.msk.f32.vlgmr.msra.gmra.mxu1 %vm420_vm3, %v3515_v57  ;;  %3011 = vmatprep.subr.mxu0 %v3203_v39 }
 0x15d   : > { %2967 = vmatpush3.msk.msra.mxu1 %vm423_vm2, %v1035_v50  ;;  %3004 = vmatmul.mubr.msk.f32.vlgmr.msra.gmra.mxu0 %vm420_vm3, %v1637_v35  ;;  %v1717_v47 = vpop.permute.xlu0 %1716  ;;  %v1803_v52 = vpop.permute.xlu1 %1802 }
 0x15e   : > { %2968 = vmatprep.mubr.msk.f32.mxu1 %vm3204_vm0, %v3203_v39  ;;  %2976 = vmatprep.subr.mxu1 %v3203_v39 }
 0x15f   : > { %3012 = vmatpush3.msk.msra.mxu0 %vm423_vm2, %v3392_v37  ;;  %3013 = vmatprep.mubr.msk.f32.mxu0 %vm3204_vm0, %v3203_v39 }
 0x160   : > { %2969 = vmatmul.mubr.msk.f32.vlgmr.msra.gmra.mxu1 %vm420_vm3, %v3523_v44  ;;  %3021 = vmatprep.subr.mxu0 %v3203_v39  ;;  %v1726_v44 = vsel %vm1481_vm8, %v1723_v49, %v1725_v38 }
 0x161   : > { %2977 = vmatpush3.msk.msra.mxu1 %vm423_vm2, %v1216_v53  ;;  %3014 = vmatmul.mubr.msk.f32.vlgmr.msra.gmra.mxu0 %vm420_vm3, %v1803_v52  ;;  %v1881_v24 = vpop.permute.xlu0 %1880  ;;  %v1969_v54 = vpop.permute.xlu1 %1968 }
 0x162   : > { %2978 = vmatprep.mubr.msk.f32.mxu1 %vm3204_vm0, %v3203_v39  ;;  %2986 = vmatprep.subr.mxu1 %v3203_v39 }
 0x163   : > { %3023 = vmatprep.mubr.msk.f32.mxu0 %vm3204_vm0, %v3203_v39 }
 0x164   : > { %2979 = vmatmul.mubr.msk.f32.vlgmr.msra.gmra.mxu1 %vm420_vm3, %v3532_v62 }
 0x165   : > { %2987 = vmatpush3.msk.msra.mxu1 %vm423_vm2, %v1390_v55  ;;  %v1971_v56 = vpop.permute.xlu0 %1970  ;;  %v1963_v57 = vpop.permute.xlu1 %1962  ;;  %2988 = vmatprep.mubr.msk.f32.mxu1 %vm3204_vm0, %v3203_v39 }
 0x166   : > { %v1972_v58 = vsel %vm1215_vm9, %v1969_v54, %v1971_v56  ;;  %2996 = vmatprep.subr.mxu1 %v3203_v39 }
 0x167   : > { %3022 = vmatpush3.msk.msra.mxu0 %vm423_vm2, %v1972_v58 }
 0x168   : > { %2989 = vmatmul.mubr.msk.f32.vlgmr.msra.gmra.mxu1 %vm420_vm3, %v3536_v0  ;;  %3024 = vmatmul.mubr.msk.f32.vlgmr.msra.gmra.mxu0 %vm420_vm3, %v1963_v57 }
 0x169   : > { %v2055_v59 = vpop.permute.xlu0 %2054  ;;  %v2057_v48 = vpop.permute.xlu1 %2056  ;;  %2997 = vmatpush3.msk.msra.mxu1 %vm423_vm2, %v3425_v51  ;;  %2998 = vmatprep.mubr.msk.f32.mxu1 %vm3204_vm0, %v3203_v39  ;;  %v1882_v51 = vrot.slane %v3392_v37, 4 }
 0x16a   : > { %3006 = vmatprep.subr.mxu1 %v3203_v39  ;;  %3031 = vmatprep.subr.mxu0 %v3203_v39  ;;  %v2058_v1 = vsel %vm1305_vm6, %v2055_v59, %v2057_v48 }
 0x16b   : > { %3033 = vmatprep.mubr.msk.f32.mxu0 %vm3204_vm0, %v3203_v39 }
 0x16c   : > { %2999 = vmatmul.mubr.msk.f32.vlgmr.msra.gmra.mxu1 %vm420_vm3, %v1559_v45 }
 0x16d   : > { %3007 = vmatpush3.msk.msra.mxu1 %vm423_vm2, %v1726_v44  ;;  %v2051_v60 = vpop.permute.xlu0 %2050  ;;  %v2139_v61 = vpop.permute.xlu1 %2138  ;;  %3008 = vmatprep.mubr.msk.f32.mxu1 %vm3204_vm0, %v3203_v39 }
 0x16e   : > { %3016 = vmatprep.subr.mxu1 %v3203_v39 }
 0x170   : > { %3009 = vmatmul.mubr.msk.f32.vlgmr.msra.gmra.mxu1 %vm420_vm3, %v1717_v47 }
 0x171   : > { %v2141_v62 = vpop.permute.xlu0 %2140  ;;  %v2135_v63 = vpop.permute.xlu1 %2134  ;;  %3017 = vmatpush3.msk.msra.mxu1 %vm423_vm2, %v1882_v51  ;;  %3018 = vmatprep.mubr.msk.f32.mxu1 %vm3204_vm0, %v3203_v39 }
 0x172   : > { %v2142_v0 = vsel %vm1305_vm6, %v2139_v61, %v2141_v62  ;;  %3026 = vmatprep.subr.mxu1 %v3203_v39 }
 0x173   : > { %3032 = vmatpush3.msk.msra.mxu0 %vm423_vm2, %v2142_v0 }
 0x174   : > { %3019 = vmatmul.mubr.msk.f32.vlgmr.msra.gmra.mxu1 %vm420_vm3, %v1881_v24  ;;  %3034 = vmatmul.mubr.msk.f32.vlgmr.msra.gmra.mxu0 %vm420_vm3, %v2135_v63 }
 0x175   : > { %3027 = vmatpush3.msk.msra.mxu1 %vm423_vm2, %v2058_v1  ;;  %v2227_v37 = vpop.permute.xlu0 %2226  ;;  %v2229_v2 = vpop.permute.xlu1 %2228  ;;  %3028 = vmatprep.mubr.msk.f32.mxu1 %vm3204_vm0, %v3203_v39 }
 0x176   : > { %v2230_v3 = vsel %vm1481_vm8, %v2227_v37, %v2229_v2  ;;  %3036 = vmatprep.subr.mxu1 %v3203_v39  ;;  %3041 = vmatprep.subr.mxu0 %v3203_v39 }
 0x177   : > { %3042 = vmatpush3.msk.msra.mxu0 %vm423_vm2, %v3366_v25  ;;  %3043 = vmatprep.mubr.msk.f32.mxu0 %vm3204_vm0, %v3203_v39 }
 0x178   : > { %3029 = vmatmul.mubr.msk.f32.vlgmr.msra.gmra.mxu1 %vm420_vm3, %v2051_v60  ;;  %3051 = vmatprep.subr.mxu0 %v3203_v39 }
 0x179   : > { %3037 = vmatpush3.msk.msra.mxu1 %vm423_vm2, %v2230_v3  ;;  %v2221_v4 = vpop.permute.xlu0 %2220  ;;  %v2307_v5 = vpop.permute.xlu1 %2306  ;;  %3038 = vmatprep.mubr.msk.f32.mxu1 %vm3204_vm0, %v3203_v39 }
 0x17a   : > { %3044 = vmatmul.mubr.msk.f32.vlgmr.msra.gmra.mxu0 %vm420_vm3, %v2307_v5  ;;  %3046 = vmatprep.subr.mxu1 %v3203_v39 }
 0x17b   : > { %3053 = vmatprep.mubr.msk.f32.mxu0 %vm3204_vm0, %v3203_v39 }
 0x17c   : > { %3039 = vmatmul.mubr.msk.f32.vlgmr.msra.gmra.mxu1 %vm420_vm3, %v2221_v4 }
 0x17d   : > { %v2385_v7 = vpop.permute.xlu0 %2384  ;;  %v2471_v8 = vpop.permute.xlu1 %2470  ;;  %3047 = vmatpush3.msk.msra.mxu1 %vm423_vm2, %v2386_v6  ;;  %3048 = vmatprep.mubr.msk.f32.mxu1 %vm3204_vm0, %v3203_v39 }
 0x17e   : > { %3056 = vmatprep.subr.mxu1 %v3203_v39 }
 0x180   : > { %3049 = vmatmul.mubr.msk.f32.vlgmr.msra.gmra.mxu1 %vm420_vm3, %v2385_v7 }
 0x181   : > { %v2473_v25 = vpop.permute.xlu0 %2472  ;;  %v2465_v9 = vpop.permute.xlu1 %2464  ;;  %3057 = vmatpush3.msk.msra.mxu1 %vm423_vm2, %v3378_v31  ;;  %3058 = vmatprep.mubr.msk.f32.mxu1 %vm3204_vm0, %v3203_v39 }
 0x182   : > { %v2474_v11 = vsel %vm1481_vm8, %v2471_v8, %v2473_v25 }
 0x183   : > { %3052 = vmatpush3.msk.msra.mxu0 %vm423_vm2, %v2474_v11 }
 0x184   : > { %3054 = vmatmul.mubr.msk.f32.vlgmr.msra.gmra.mxu0 %vm420_vm3, %v2465_v9  ;;  %3061 = vmatprep.subr.mxu0 %v3203_v39 }
 0x185   : > { %v2551_v12 = vpop.permute.xlu0 %2550  ;;  %3062 = vmatpush3.msk.msra.mxu0 %vm423_vm2, %v2630_v10  ;;  %3063 = vmatprep.mubr.msk.f32.mxu0 %vm3204_vm0, %v3203_v39  ;;  %v2629_v13 = vpop.permute.xlu1 %2628 }
 0x186   : > { %3059 = vmatmul.mubr.msk.f32.vlgmr.msra.gmra.mxu1 %vm420_vm3, %v2551_v12 }
 0x188   : > { %3064 = vmatmul.mubr.msk.f32.vlgmr.msra.gmra.mxu0 %vm420_vm3, %v2629_v13 }
 0x1f0   : > { %v492_v31 = vpop.f32.mrf.mxu0 }
 0x1f2   : > { %v2935_v14 = vpop.f32.mrf.mxu0 }
 0x204   : > { %v659_v15 = vpop.f32.mrf.mxu0 }
 0x206   : > { %v2945_v16 = vpop.f32.mrf.mxu0 }
 0x208   : > { %v846_v18 = vpop.f32.mrf.mxu0 }
 0x20a   : > { %v2955_v22 = vpop.f32.mrf.mxu0 }
 0x20c   : > { %v1020_v23 = vpop.f32.mrf.mxu0 }
 0x20e   : > { %v2965_v26 = vpop.f32.mrf.mxu0 }
 0x210   : > { %v1190_v19 = vpop.f32.mrf.mxu0 }
 0x212   : > { %v2975_v27 = vpop.f32.mrf.mxu0 }
 0x214   : > { %v576_v28 = vpop.f32.mrf.mxu1 }
 0x215   : > { %v577_v29 = vadd.f32 %v576_v28, %v492_v31  ;;  %v1377_v21 = vpop.f32.mrf.mxu0 }
 0x216   : > { %v2940_v33 = vpop.f32.mrf.mxu1 }
 0x217   : > { %v2985_v39 = vpop.f32.mrf.mxu0  ;;  %v663_v20 = vadd.f32 %v659_v15, %v577_v29 }
 0x218   : > { %v756_v34 = vpop.f32.mrf.mxu1 }
 0x219   : > { %v760_v40 = vadd.f32 %v756_v34, %v663_v20  ;;  %v1553_v36 = vpop.f32.mrf.mxu0 }
 0x21a   : > { %v2950_v41 = vpop.f32.mrf.mxu1 }
 0x21b   : > { %v2995_v42 = vpop.f32.mrf.mxu0  ;;  %v850_v30 = vadd.f32 %v846_v18, %v760_v40 }
 0x21c   : > { %v930_v43 = vpop.f32.mrf.mxu1 }
 0x21d   : > { %v934_v32 = vadd.f32 %v930_v43, %v850_v30  ;;  %v1709_v45 = vpop.f32.mrf.mxu0 }
 0x21e   : > { %v2960_v35 = vpop.f32.mrf.mxu1 }
 0x21f   : > { %v3005_v46 = vpop.f32.mrf.mxu0  ;;  %v1024_v17 = vadd.f32 %v1020_v23, %v934_v32 }
 0x220   : > { %v1106_v49 = vpop.f32.mrf.mxu1 }
 0x221   : > { %v1110_v38 = vadd.f32 %v1106_v49, %v1024_v17  ;;  %v1875_v50 = vpop.f32.mrf.mxu0 }
 0x222   : > { %v2970_v47 = vpop.f32.mrf.mxu1 }
 0x223   : > { %v3015_v52 = vpop.f32.mrf.mxu0  ;;  %v1194_v53 = vadd.f32 %v1190_v19, %v1110_v38 }
 0x224   : > { %v1287_v24 = vpop.f32.mrf.mxu1 }
 0x225   : > { %v1291_v54 = vadd.f32 %v1287_v24, %v1194_v53 }
 0x226   : > { %v2980_v55 = vpop.f32.mrf.mxu1 }
 0x227   : > { %v1381_v56 = vadd.f32 %v1377_v21, %v1291_v54  ;;  %v2709_v21 = vpop.permute.xlu0 %2708 }
 0x228   : > { %v1461_v57 = vpop.f32.mrf.mxu1  ;;  %v2043_v58 = vpop.f32.mrf.mxu0 }
 0x229   : > { %v1465_v59 = vadd.f32 %v1461_v57, %v1381_v56 }
 0x22a   : > { %v2990_v48 = vpop.f32.mrf.mxu1  ;;  %v3025_v44 = vpop.f32.mrf.mxu0 }
 0x22b   : > { %v1557_v60 = vadd.f32 %v1553_v36, %v1465_v59 }
 0x22c   : > { %v1631_v61 = vpop.f32.mrf.mxu1 }
 0x22d   : > { %v1635_v51 = vadd.f32 %v1631_v61, %v1557_v60 }
 0x22e   : > { %v3000_v62 = vpop.f32.mrf.mxu1 }
 0x22f   : > { %v1713_v63 = vadd.f32 %v1709_v45, %v1635_v51 }
 0x230   : > { %v1797_v0 = vpop.f32.mrf.mxu1 }
 0x231   : > { %v1801_v1 = vadd.f32 %v1797_v0, %v1713_v63 }
 0x232   : > { %v3010_v37 = vpop.f32.mrf.mxu1 }
 0x233   : > { %v1879_v2 = vadd.f32 %v1875_v50, %v1801_v1 }
 0x234   : > { %v1953_v3 = vpop.f32.mrf.mxu1  ;;  %v2213_v4 = vpop.f32.mrf.mxu0 }
 0x235   : > { %v1957_v5 = vadd.f32 %v1953_v3, %v1879_v2 }
 0x236   : > { %v3020_v6 = vpop.f32.mrf.mxu1  ;;  %v3035_v7 = vpop.f32.mrf.mxu0 }
 0x237   : > { %v2047_v8 = vadd.f32 %v2043_v58, %v1957_v5 }
 0x238   : > { %v2129_v25 = vpop.f32.mrf.mxu1 }
 0x239   : > { %v2133_v9 = vadd.f32 %v2129_v25, %v2047_v8 }
 0x23a   : > { %v3030_v10 = vpop.f32.mrf.mxu1  ;;  %v2379_v11 = vpop.f32.mrf.mxu0 }
 0x23b   : > { %v2217_v12 = vadd.f32 %v2213_v4, %v2133_v9 }
 0x23c   : > { %v2301_v13 = vpop.f32.mrf.mxu1  ;;  %v3045_v31 = vpop.f32.mrf.mxu0 }
 0x23d   : > { %v2305_v14 = vadd.f32 %v2301_v13, %v2217_v12 }
 0x23e   : > { %v3040_v15 = vpop.f32.mrf.mxu1 }
 0x23f   : > { %v2383_v16 = vadd.f32 %v2379_v11, %v2305_v14 }
 0x240   : > { %v2457_v18 = vpop.f32.mrf.mxu1 }
 0x241   : > { %v2461_v23 = vadd.f32 %v2457_v18, %v2383_v16 }
 0x242   : > { %v3050_v22 = vpop.f32.mrf.mxu1 }
 0x244   : > { %v2545_v26 = vpop.f32.mrf.mxu0 }
 0x245   : > { %v2549_v19 = vadd.f32 %v2545_v26, %v2461_v23 }
 0x246   : > { %v3055_v27 = vpop.f32.mrf.mxu0  ;;  %v2623_v28 = vpop.f32.mrf.mxu1 }
 0x247   : > { %v2627_v29 = vadd.f32 %v2623_v28, %v2549_v19 }
 0x248   : > { %v2701_v33 = vpop.f32.mrf.mxu0  ;;  %v3060_v39 = vpop.f32.mrf.mxu1 }
 0x249   : > { %v2705_v20 = vadd.f32 %v2701_v33, %v2627_v29 }
 0x24a   : > { %v3065_v34 = vpop.f32.mrf.mxu0 }
 0x24b   : > { %v2711_v40 = vadd.f32 %v2709_v21, %v2705_v20 }
 0x24d   : > { %v2712_v36 = vmax.f32 %v2711_v40, 0.0 }
 0x24f   : > { %2713 = vst [vmem:[%s357_s29] sm:$0xff] %v2712_v36 }
 0x250 PF: > { %p12_p12 = scmp.ge.s32.totalorder %s3280_s24, 6   ;;  %s3747_s18 = smov %s3171_s19 }
 0x251   : > { %s3748_s19 = smov %s3297_s6  ;;  %s3749_s20 = smov %s3179_s21 }
 0x252   : > { %s3750_s21 = smov %s3290_s28  ;;  %s3751_s22 = smov %s3280_s24 }
 0x253   :  { %14 = sbr.rel (!%p12_p12) target bundleno = 3 (0x3), region = 162 }

// kernel: _lambda_.7
= control target key start
LH: loop header
LB: loop body
LE: loop exit
PB: predicated region body
PF: predicated region fallthrough
CT: control target
= control target key end

     0   :  { %s3267_s21 = smov 0   ;;  %s3760_s0 = inlined_call_operand.vmem [shape: f32[8,216], index: 0, kind: input, shape index: {}]   ;;  %s3761_s1 = inlined_call_operand.vmem [shape: f32[8,1], index: 1, kind: input, shape index: {}]   ;;  %s3762_s2 = inlined_call_operand.vmem [shape: f32[6,512], index: 2, kind: input, shape index: {}]   ;;  %s3763_s3 = inlined_call_operand.vmem [shape: f32[8,768], index: 3, kind: input, shape index: {}, may-alias: {3,4,5}]   ;;  %s3764_s4 = inlined_call_operand.vmem [shape: f32[8,768], index: 4, kind: input, shape index: {}, may-alias: {3,4,5}]   ;;  %s3765_s5 = inlined_call_operand.vmem [shape: f32[8,768], index: 5, kind: input, shape index: {}, may-alias: {3,4,5}]   ;;  %s3766_s6 = inlined_call_operand.vmem [shape: f32[8,512], index: 6, kind: output, shape index: {}]  }
   0x1 LB: > { %s3273_s22 = sadd.s32 4294967295, %s3200_s21   ;;  %p2930_p0 = scmp.ge.s32.totalorder %s3200_s21, 1  ;;  %s3200_s21 = sphi %s3267_s21, %s16_s21  }
   0x2   : > { %p246_p1 = scmp.lt.s32.totalorder %s3200_s21, 5 }
   0x4   : > { %p247_p2 = pnand %p2930_p0, %p246_p1 }
   0x5   : > { %p288_p3 = scmp.lt.s32.totalorder (!%p247_p2), %s3273_s22, 3  ;;  %s3202_s28 = smov (!%p247_p2), 55  }
   0x6   : > { %250 = sbr.rel (%p247_p2) target bundleno = 609 (0x261), region = 44  ;;  %s3203_s29 = smov (!%p247_p2), 56  }
   0x7   : > { %s3204_s30 = smov (!%p247_p2), 57   ;;  %s3205_s7 = smov (!%p247_p2), 63  }
   0x8   : > { %s3206_s8 = smov (!%p247_p2), 65   ;;  %s3207_s9 = smov (!%p247_p2), 64  }
   0x9   : > { %s3208_s10 = smov (!%p247_p2), 71   ;;  %s3209_s11 = smov (!%p247_p2), 73  }
   0xa   : > { %s3210_s12 = smov (!%p247_p2), 72   ;;  %s3768_s13 = smov (!%p247_p2), 119  }
   0xb   : > { %v319_v0 = vlaneseq  ;;  %s3279_s23 = scalar_select %p288_p3, %s3273_s22, 3  ;;  %v3343_v15 = vld [vmem:[%s3760_s0] sm:$0xff]  ;;  %v3224_v24 = vmov 0.0   ;;  %vm3225_vm0 = vmmov 0   ;;  %vm368_vm1 = vcmask 588800  }
   0xc   : > { %s3775_s14 = smov 120   ;;  %s3777_s15 = smov 121   ;;  %3019 = vmatprep.subr.mxu0 %v3224_v24  ;;  %3021 = vmatprep.mubr.msk.f32.mxu0 %vm3225_vm0, %v3224_v24  ;;  %vm371_vm2 = vcmask 64512   ;;  %vm450_vm3 = vcmask 596992   ;;  %vm647_vm4 = vcmask 531456   ;;  %vm553_vm5 = vcmask 580608  }
   0xd   : > { %v320_v1 = vshrl.u32 %v319_v0, 7  ;;  %s3767_s24 = sshll.u32 %s3279_s23, 3  ;;  %s3214_s16 = smov 1   ;;  %3024 = vmatprep.subr.mxu1 %v3224_v24  ;;  %3026 = vmatprep.mubr.msk.f32.mxu1 %vm3225_vm0, %v3224_v24  ;;  %vm830_vm6 = vcmask 515072   ;;  %vm736_vm7 = vcmask 523264   ;;  %vm934_vm8 = vcmask 465920  }
   0xe   : > { %s291_s27 = scalar_lea.vmem %s3762_s2, %s3767_s24  ;;  %s3779_s17 = smov 127   ;;  %vm1028_vm9 = vcmask 457728   ;;  %vm1127_vm10 = vcmask 449536   ;;  %vm1221_vm11 = vcmask 72704   ;;  %vm1403_vm12 = vcmask 56320  }
   0xf   : > { %v321_v2 = vsub.s32 0, %v320_v1  ;;  %v331_v3 = vsub.s32 1, %v320_v1  ;;  %v2010_v4 = vsub.s32 5, %v320_v1  ;;  %v315_v5 = vld [vmem:[%s291_s27] sm:$0x3f]  ;;  %v341_v9 = vsub.s32 2, %v320_v1 }
  0x10   : > { %v537_v11 = vsub.s32 3, %v320_v1  ;;  %v913_v13 = vsub.s32 4, %v320_v1  ;;  %s3216_s18 = smov 7   ;;  %s3217_s19 = smov 9   ;;  %vm1492_vm13 = vcmask 7168   ;;  %vm1656_vm14 = vcmask 1039360  }
  0x11   : > { %v332_v6 = vrot.slane %v315_v5, %v331_v3  ;;  %v3287_v7 = vrot.slane %v315_v5, %v2010_v4  ;;  %v322_v8 = vrot.slane %v315_v5, %v321_v2  ;;  %v342_v10 = vrot.slane %v315_v5, %v341_v9  ;;  %s3218_s20 = smov 8   ;;  %s3774_s27 = smov 112  }
  0x12   : > { %v538_v12 = vrot.slane %v315_v5, %v537_v11  ;;  %v914_v14 = vrot.slane %v315_v5, %v913_v13  ;;  %s3770_s24 = smov 104   ;;  %s3771_s25 = smov 88   ;;  %vm1750_vm15 = vcmask 990208  }
  0x13   : > { %334 = vrot.lane.b32.xlu1 %v332_v6, %s3202_s28  ;;  %324 = vrot.lane.b32.xlu0 %v322_v8, %s3202_s28  ;;  %s3772_s26 = smov 80   ;;  %p292_p4 = scmp.lt.s32.totalorder %s3273_s22, 5 }
  0x17   : > { %354 = vrot.lane.b32.xlu1 %v332_v6, %s3203_s29  ;;  %349 = vrot.lane.b32.xlu0 %v322_v8, %s3203_s29 }
  0x1b   : > { %344 = vrot.lane.b32.xlu1 %v342_v10, %s3202_s28  ;;  %525 = vrot.lane.b32.xlu0 %v322_v8, %s3204_s30 }
  0x1f   : > { %540 = vrot.lane.b32.xlu1 %v538_v12, %s3204_s30  ;;  %530 = vrot.lane.b32.xlu0 %v332_v6, %s3204_s30 }
  0x23   : > { %634 = vrot.lane.b32.xlu1 %v342_v10, %s3205_s7  ;;  %629 = vrot.lane.b32.xlu0 %v322_v8, %s3205_s7 }
  0x27   : > { %812 = vrot.lane.b32.xlu1 %v322_v8, %s3206_s8  ;;  %723 = vrot.lane.b32.xlu0 %v322_v8, %s3207_s9 }
  0x2b   : > { %817 = vrot.lane.b32.xlu1 %v538_v12, %s3206_s8  ;;  %906 = vrot.lane.b32.xlu0 %v322_v8, %s3208_s10 }
  0x2f   : > { %921 = vrot.lane.b32.xlu1 %v342_v10, %s3208_s10  ;;  %916 = vrot.lane.b32.xlu0 %v914_v14, %s3208_s10 }
  0x33   : > { %1104 = vrot.lane.b32.xlu1 %v322_v8, %s3209_s11  ;;  %1010 = vrot.lane.b32.xlu0 %v322_v8, %s3210_s12 }
  0x37   : > { %1109 = vrot.lane.b32.xlu1 %v914_v14, %s3209_s11  ;;  %1015 = vrot.lane.b32.xlu0 %v914_v14, %s3210_s12 }
  0x3b   : > { %1203 = vrot.lane.b32.xlu1 %v332_v6, %s3768_s13  ;;  %1114 = vrot.lane.b32.xlu0 %v538_v12, %s3209_s11 }
  0x3f   : > { %1297 = vrot.lane.b32.xlu1 %v332_v6, %s3775_s14  ;;  %1208 = vrot.lane.b32.xlu0 %v342_v10, %s3768_s13  ;;  %s3773_s13 = smov 96  }
  0x43   : > { %1390 = vrot.lane.b32.xlu1 %v538_v12, %s3777_s15  ;;  %1385 = vrot.lane.b32.xlu0 %v332_v6, %s3777_s15 }
  0x47   : > { %1643 = vrot.lane.b32.xlu1 %v538_v12, %s3214_s16  ;;  %1479 = vrot.lane.b32.xlu0 %v342_v10, %s3779_s17 }
  0x4b   : > { %1737 = vrot.lane.b32.xlu1 %v342_v10, %s3216_s18  ;;  %1732 = vrot.lane.b32.xlu0 %v914_v14, %s3216_s18 }
  0x4f   : > { %1914 = vrot.lane.b32.xlu1 %v914_v14, %s3217_s19  ;;  %1826 = vrot.lane.b32.xlu0 %v914_v14, %s3218_s20 }
  0x53   : > { %1919 = vrot.lane.b32.xlu1 %v538_v12, %s3217_s19  ;;  %2013 = vrot.lane.b32.xlu0 %v3287_v7, %s3202_s28 }
  0x57   : > { %2195 = vrot.lane.b32.xlu1 %v3287_v7, %s3204_s30  ;;  %2105 = vrot.lane.b32.xlu0 %v3287_v7, %s3203_s29 }
  0x5b   : > { %2377 = vrot.lane.b32.xlu1 %v3287_v7, %s3207_s9  ;;  %2287 = vrot.lane.b32.xlu0 %v3287_v7, %s3205_s7 }
  0x5f   : > { %2555 = vrot.lane.b32.xlu1 %v3287_v7, %s3208_s10  ;;  %2465 = vrot.lane.b32.xlu0 %v3287_v7, %s3206_s8 }
  0x63   : > { %2737 = vrot.lane.b32.xlu1 %v3287_v7, %s3209_s11  ;;  %2647 = vrot.lane.b32.xlu0 %v3287_v7, %s3210_s12 }
  0x67   : > { %360 = vrot.lane.b32.xlu0 %v3343_v15, %s3775_s14  ;;  %545 = vrot.lane.b32.xlu1 %v3343_v15, %s3774_s27  ;;  %s3226_s14 = smov 48  }
  0x6b   : > { %639 = vrot.lane.b32.xlu0 %v3343_v15, %s3770_s24  ;;  %728 = vrot.lane.b32.xlu1 %v3343_v15, %s3773_s13  ;;  %s296_s24 = sadd.s32 1, %s3273_s22 }
  0x6c   : > { %p297_p5 = scmp.lt.s32.totalorder %s296_s24, 5 }
  0x6e   : > { %s3792_s24 = smov (!%p297_p5, %s296_s24), 5 }
  0x6f   : > { %822 = vrot.lane.b32.xlu0 %v3343_v15, %s3771_s25  ;;  %926 = vrot.lane.b32.xlu1 %v3343_v15, %s3772_s26  ;;  %s293_s25 = scalar_select %p292_p4, %s3273_s22, 5 }
  0x70   : > { %s2933_s13 = sshll.u32 %s3792_s24, 3  ;;  %s3782_s24 = smov 121  }
  0x71   : > { %s2932_s26 = sshll.u32 %s293_s25, 3  ;;  %s300_s17 = scalar_lea.vmem %s3764_s4, %s2933_s13 }
  0x72   : > { %s295_s25 = scalar_lea.vmem %s3763_s3, %s2932_s26  ;;  %v3388_v28 = vld [vmem:[%s300_s17] sm:$0xff]  ;;  %s302_s13 = sadd.s32 2, %s3273_s22 }
  0x73   : > { %1020 = vrot.lane.b32.xlu0 %v3343_v15, %s3210_s12  ;;  %v3386_v27 = vld [vmem:[%s295_s25] sm:$0xff]  ;;  %p303_p6 = scmp.lt.s32.totalorder %s302_s13, 5  ;;  %s3227_s22 = smov 40  }
  0x74   : > { %s3229_s26 = smov 24   ;;  %s3781_s25 = smov 127  }
  0x75   : > { %s3794_s13 = smov (!%p303_p6, %s302_s13), 5  ;;  %s3785_s17 = smov 112  }
  0x76   : > { %s2934_s15 = sshll.u32 %s3794_s13, 3  ;;  %s3783_s13 = smov 120  }
  0x77   : > { %s306_s27 = scalar_lea.vmem %s3765_s5, %s2934_s15 }
  0x85   : > { %v3359_v16 = vpop.permute.xlu1 %334  ;;  %v325_v17 = vpop.permute.xlu0 %324 }
  0x86   : > { %v327_v50 = vmul.f32 %v325_v17, %v3386_v27  ;;  %v328_v51 = vmul.f32 %v325_v17, %v3388_v28 }
  0x88   : > { %v337_v60 = vmul.f32 %v3359_v16, %v327_v50  ;;  %v338_v61 = vmul.f32 %v3359_v16, %v328_v51 }
  0x89   : > { %v3362_v18 = vpop.permute.xlu1 %354  ;;  %v350_v19 = vpop.permute.xlu0 %349 }
  0x8a   : > { %v352_v31 = vmul.f32 %v350_v19, %v3386_v27  ;;  %v353_v32 = vmul.f32 %v350_v19, %v3388_v28 }
  0x8c   : > { %v357_v38 = vmul.f32 %v3362_v18, %v352_v31  ;;  %v358_v39 = vmul.f32 %v3362_v18, %v353_v32 }
  0x8d   : > { %v3365_v20 = vpop.permute.xlu1 %344  ;;  %v526_v21 = vpop.permute.xlu0 %525 }
  0x8e   : > { %v528_v57 = vmul.f32 %v526_v21, %v3386_v27  ;;  %v529_v58 = vmul.f32 %v526_v21, %v3388_v28  ;;  %v347_v0 = vmul.f32 %v3365_v20, %v337_v60  ;;  %v348_v1 = vmul.f32 %v3365_v20, %v338_v61 }
  0x91   : > { %v3368_v22 = vpop.permute.xlu1 %540  ;;  %v3370_v23 = vpop.permute.xlu0 %530 }
  0x92   : > { %v533_v62 = vmul.f32 %v3370_v23, %v528_v57  ;;  %v534_v63 = vmul.f32 %v3370_v23, %v529_v58 }
  0x94   : > { %v543_v5 = vmul.f32 %v3368_v22, %v533_v62  ;;  %v544_v6 = vmul.f32 %v3368_v22, %v534_v63 }
  0x95   : > { %v3378_v25 = vpop.permute.xlu1 %634  ;;  %v630_v26 = vpop.permute.xlu0 %629 }
  0x96   : > { %v632_v36 = vmul.f32 %v630_v26, %v3386_v27  ;;  %v633_v37 = vmul.f32 %v630_v26, %v3388_v28 }
  0x98   : > { %v637_v44 = vmul.f32 %v3378_v25, %v632_v36  ;;  %v638_v45 = vmul.f32 %v3378_v25, %v633_v37 }
  0x99   : > { %v813_v29 = vpop.permute.xlu1 %812  ;;  %v724_v30 = vpop.permute.xlu0 %723 }
  0x9a   : > { %v726_v33 = vmul.f32 %v724_v30, %v3386_v27  ;;  %v727_v34 = vmul.f32 %v724_v30, %v3388_v28  ;;  %v815_v42 = vmul.f32 %v813_v29, %v3386_v27  ;;  %v816_v43 = vmul.f32 %v813_v29, %v3388_v28 }
  0x9c   : > { %734 = vrot.lane.b32.xlu0 %v727_v34, %s3207_s9  ;;  %732 = vrot.lane.b32.xlu1 %v726_v33, %s3207_s9 }
  0x9d   : > { %v907_v35 = vpop.permute.xlu0 %906  ;;  %v3400_v40 = vpop.permute.xlu1 %817 }
  0x9e   : > { %v820_v48 = vmul.f32 %v3400_v40, %v815_v42  ;;  %v821_v49 = vmul.f32 %v3400_v40, %v816_v43  ;;  %v909_v2 = vmul.f32 %v907_v35, %v3386_v27  ;;  %v910_v3 = vmul.f32 %v907_v35, %v3388_v28 }
  0xa0   : > { %364 = vrot.lane.b32.xlu0 %v357_v38, %s3210_s12  ;;  %366 = vrot.lane.b32.xlu1 %v358_v39, %s3210_s12 }
  0xa1   : > { %v3404_v41 = vpop.permute.xlu0 %916  ;;  %v3412_v46 = vpop.permute.xlu1 %921 }
  0xa2   : > { %v919_v9 = vmul.f32 %v3404_v41, %v909_v2  ;;  %v920_v10 = vmul.f32 %v3404_v41, %v910_v3 }
  0xa4   : > { %643 = vrot.lane.b32.xlu0 %v637_v44, %s3206_s8  ;;  %645 = vrot.lane.b32.xlu1 %v638_v45, %s3206_s8  ;;  %v924_v12 = vmul.f32 %v3412_v46, %v919_v9  ;;  %v925_v13 = vmul.f32 %v3412_v46, %v920_v10 }
  0xa5   : > { %v1011_v47 = vpop.permute.xlu0 %1010  ;;  %v1105_v59 = vpop.permute.xlu1 %1104 }
  0xa6   : > { %v1013_v52 = vmul.f32 %v1011_v47, %v3386_v27  ;;  %v1014_v53 = vmul.f32 %v1011_v47, %v3388_v28  ;;  %v1107_v7 = vmul.f32 %v1105_v59, %v3386_v27  ;;  %v1108_v8 = vmul.f32 %v1105_v59, %v3388_v28 }
  0xa8   : > { %826 = vrot.lane.b32.xlu0 %v820_v48, %s3205_s7  ;;  %828 = vrot.lane.b32.xlu1 %v821_v49, %s3205_s7 }
  0xa9   : > { %v3422_v54 = vpop.permute.xlu0 %1015  ;;  %v3440_v4 = vpop.permute.xlu1 %1109 }
  0xaa   : > { %v1019_v55 = vmul.f32 %v3422_v54, %v1014_v53  ;;  %v1018_v56 = vmul.f32 %v3422_v54, %v1013_v52  ;;  %v1113_v14 = vmul.f32 %v3440_v4, %v1108_v8  ;;  %v1112_v17 = vmul.f32 %v3440_v4, %v1107_v7  ;;  %v3489_v53 = vld [vmem:[%s306_s27] sm:$0xff]  ;;  %s3788_s27 = smov 88  }
  0xac   : > { %1026 = vrot.lane.b32.xlu1 %v1019_v55, %s3203_s29  ;;  %1024 = vrot.lane.b32.xlu0 %v1018_v56, %s3203_s29 }
  0xad   : > { %v3450_v11 = vpop.permute.xlu0 %1114  ;;  %v1204_v19 = vpop.permute.xlu1 %1203 }
  0xae   : > { %v1206_v21 = vmul.f32 %v1204_v19, %v3386_v27  ;;  %v1118_v26 = vmul.f32 %v3450_v11, %v1113_v14  ;;  %v1117_v29 = vmul.f32 %v3450_v11, %v1112_v17  ;;  %v1207_v32 = vmul.f32 %v1204_v19, %v3388_v28  ;;  %v3518_v17 = vld [vmem:[%s3760_s0 + $0x8] sm:$0xff] }
  0xb0   : > { %446 = vrot.lane.b32.xlu1 %v347_v0, %s3209_s11  ;;  %448 = vrot.lane.b32.xlu0 %v348_v1, %s3209_s11 }
  0xb1   : > { %v1209_v30 = vpop.permute.xlu0 %1208  ;;  %v1298_v33 = vpop.permute.xlu1 %1297 }
  0xb2   : > { %v1211_v31 = vmul.f32 %v1209_v30, %v1206_v21  ;;  %v1212_v34 = vmul.f32 %v1209_v30, %v1207_v32  ;;  %v1300_v36 = vmul.f32 %v1298_v33, %v3386_v27  ;;  %v1301_v37 = vmul.f32 %v1298_v33, %v3388_v28 }
  0xb4   : > { %549 = vrot.lane.b32.xlu1 %v543_v5, %s3208_s10  ;;  %551 = vrot.lane.b32.xlu0 %v544_v6, %s3208_s10 }
  0xb5   : > { %v1386_v35 = vpop.permute.xlu0 %1385  ;;  %v1391_v39 = vpop.permute.xlu1 %1390 }
  0xb6   : > { %v1388_v38 = vmul.f32 %v1386_v35, %v3386_v27  ;;  %v1389_v44 = vmul.f32 %v1386_v35, %v3388_v28 }
  0xb8   : > { %930 = vrot.lane.b32.xlu1 %v924_v12, %s3204_s30  ;;  %932 = vrot.lane.b32.xlu0 %v925_v13, %s3204_s30  ;;  %v1393_v43 = vmul.f32 %v1391_v39, %v1388_v38  ;;  %v1394_v45 = vmul.f32 %v1391_v39, %v1389_v44 }
  0xb9   : > { %v1480_v42 = vpop.permute.xlu0 %1479  ;;  %v1644_v47 = vpop.permute.xlu1 %1643 }
  0xba   : > { %v1482_v49 = vmul.f32 %v1480_v42, %v3386_v27  ;;  %v1483_v50 = vmul.f32 %v1480_v42, %v3388_v28  ;;  %v1646_v27 = vmul.f32 %v1644_v47, %v3388_v28  ;;  %v1647_v55 = vmul.f32 %v1644_v47, %v3489_v53 }
  0xbc   : > { %1125 = vrot.lane.b32.xlu0 %v1118_v26, %s3202_s28  ;;  %1123 = vrot.lane.b32.xlu1 %v1117_v29, %s3202_s28 }
  0xbd   : > { %v1733_v48 = vpop.permute.xlu0 %1732  ;;  %v1738_v51 = vpop.permute.xlu1 %1737 }
  0xbe   : > { %v1735_v56 = vmul.f32 %v1733_v48, %v3388_v28  ;;  %v1736_v60 = vmul.f32 %v1733_v48, %v3489_v53 }
  0xc0   : > { %1119 = vrot.lane.b32.xlu1 %v3343_v15, %s3207_s9  ;;  %1217 = vrot.lane.b32.xlu0 %v1211_v31, %s3217_s19  ;;  %v1740_v59 = vmul.f32 %v1738_v51, %v1735_v56  ;;  %v1741_v63 = vmul.f32 %v1738_v51, %v1736_v60 }
  0xc1   : > { %v1827_v52 = vpop.permute.xlu0 %1826  ;;  %v1915_v57 = vpop.permute.xlu1 %1914 }
  0xc2   : > { %v1829_v0 = vmul.f32 %v1827_v52, %v3388_v28  ;;  %v1830_v1 = vmul.f32 %v1827_v52, %v3489_v53  ;;  %v1917_v2 = vmul.f32 %v1915_v57, %v3388_v28  ;;  %v1918_v6 = vmul.f32 %v1915_v57, %v3489_v53 }
  0xc4   : > { %1219 = vrot.lane.b32.xlu1 %v1212_v34, %s3217_s19  ;;  %1213 = vrot.lane.b32.xlu0 %v3343_v15, %s3203_s29  ;;  %s3787_s19 = smov 96  }
  0xc5   : > { %v2014_v58 = vpop.permute.xlu0 %2013  ;;  %v1920_v61 = vpop.permute.xlu1 %1919 }
  0xc6   : > { %v2016_v7 = vmul.f32 %v2014_v58, %v3388_v28  ;;  %v1922_v8 = vmul.f32 %v1920_v61, %v1917_v2  ;;  %v2017_v9 = vmul.f32 %v2014_v58, %v3489_v53  ;;  %v1923_v10 = vmul.f32 %v1920_v61, %v1918_v6 }
  0xc8   : > { %1306 = vrot.lane.b32.xlu1 %v1300_v36, %s3218_s20  ;;  %1308 = vrot.lane.b32.xlu0 %v1301_v37, %s3218_s20  ;;  %v2018_v12 = vmul.f32 %v2016_v7, %v3359_v16  ;;  %v2019_v19 = vmul.f32 %v2017_v9, %v3359_v16 }
  0xc9   : > { %v2106_v62 = vpop.permute.xlu0 %2105  ;;  %v2196_v3 = vpop.permute.xlu1 %2195 }
  0xca   : > { %v2020_v21 = vmul.f32 %v2018_v12, %v3365_v20  ;;  %v2108_v26 = vmul.f32 %v2106_v62, %v3388_v28  ;;  %v2021_v31 = vmul.f32 %v2019_v19, %v3365_v20  ;;  %v2198_v32 = vmul.f32 %v2196_v3, %v3388_v28 }
  0xcb   : > { %v2109_v33 = vmul.f32 %v2106_v62, %v3489_v53  ;;  %v2199_v16 = vmul.f32 %v2196_v3, %v3489_v53 }
  0xcc   : > { %1302 = vrot.lane.b32.xlu1 %v3343_v15, %s3226_s14  ;;  %1399 = vrot.lane.b32.xlu0 %v1393_v43, %s3216_s18  ;;  %v2110_v34 = vmul.f32 %v2108_v26, %v3362_v18  ;;  %v2200_v36 = vmul.f32 %v2198_v32, %v3370_v23 }
  0xcd   : > { %v2288_v5 = vpop.permute.xlu0 %2287  ;;  %v2378_v13 = vpop.permute.xlu1 %2377  ;;  %v2111_v37 = vmul.f32 %v2109_v33, %v3362_v18  ;;  %v2201_v20 = vmul.f32 %v2199_v16, %v3370_v23 }
  0xce   : > { %v2202_v39 = vmul.f32 %v2200_v36, %v3368_v22  ;;  %v2290_v44 = vmul.f32 %v2288_v5, %v3388_v28  ;;  %v2381_v52 = vmul.f32 %v2378_v13, %v3489_v53 }
  0xcf   : > { %v2203_v18 = vmul.f32 %v2201_v20, %v3368_v22  ;;  %v2380_v22 = vmul.f32 %v2378_v13, %v3388_v28 }
  0xd0   : > { %1401 = vrot.lane.b32.xlu1 %v1394_v45, %s3216_s18  ;;  %1395 = vrot.lane.b32.xlu0 %v3343_v15, %s3227_s22  ;;  %s3228_s18 = smov 32   ;;  %v2291_v45 = vmul.f32 %v2288_v5, %v3489_v53  ;;  %v2292_v23 = vmul.f32 %v2290_v44, %v3378_v25 }
  0xd1   : > { %v2466_v14 = vpop.permute.xlu0 %2465  ;;  %v2556_v29 = vpop.permute.xlu1 %2555 }
  0xd2   : > { %v2559_v56 = vmul.f32 %v2556_v29, %v3489_v53 }
  0xd4   : > { %1488 = vrot.lane.b32.xlu1 %v1482_v49, %s3214_s16  ;;  %1490 = vrot.lane.b32.xlu0 %v1483_v50, %s3214_s16  ;;  %s3230_s16 = smov 16   ;;  %v2293_v49 = vmul.f32 %v2291_v45, %v3378_v25  ;;  %v2558_v25 = vmul.f32 %v2556_v29, %v3388_v28  ;;  %v2561_v62 = vmul.f32 %v2559_v56, %v3404_v41 }
  0xd5   : > { %v3526_v30 = vpop.permute.xlu0 %2647  ;;  %v2738_v38 = vpop.permute.xlu1 %2737 }
  0xd6   : > { %v2560_v60 = vmul.f32 %v2558_v25, %v3404_v41  ;;  %v2650_v41 = vmul.f32 %v3526_v30, %v3388_v28  ;;  %v2740_v6 = vmul.f32 %v2738_v38, %v3388_v28  ;;  %v2651_v7 = vmul.f32 %v3526_v30, %v3489_v53 }
  0xd8   : > { %1484 = vrot.lane.b32.xlu1 %v3343_v15, %s3228_s18  ;;  %1568 = vrot.lane.b32.xlu0 %v3343_v15, %s3229_s26  ;;  %v2742_v12 = vmul.f32 %v2740_v6, %v3440_v4  ;;  %v2653_v13 = vmul.f32 %v2651_v7, %v3422_v54 }
  0xd9   : > { %v361_v35 = vpop.permute.xlu0 %360  ;;  %v3544_v42 = vpop.permute.xlu1 %545 }
  0xda   : > { %v2744_v26 = vmul.f32 %v2742_v12, %v3450_v11 }
  0xdc   : > { %1652 = vrot.lane.b32.xlu1 %v1646_v27, %s3781_s25  ;;  %1654 = vrot.lane.b32.xlu0 %v1647_v55, %s3781_s25  ;;  %v2468_v27 = vmul.f32 %v2466_v14, %v3388_v28  ;;  %v2469_v55 = vmul.f32 %v2466_v14, %v3489_v53 }
  0xdd   : > { %v3546_v43 = vpop.permute.xlu0 %639  ;;  %v3556_v47 = vpop.permute.xlu1 %728 }
  0xde   : > { %v2470_v57 = vmul.f32 %v2468_v27, %v3400_v40  ;;  %v2471_v61 = vmul.f32 %v2469_v55, %v3400_v40  ;;  %v2563_v40 = vmul.f32 %v2561_v62, %v3412_v46 }
  0xe0   : > { %1648 = vrot.lane.b32.xlu1 %v3343_v15, %s3230_s16  ;;  %1746 = vrot.lane.b32.xlu0 %v1740_v59, %s3782_s24 }
  0xe1   : > { %v3558_v48 = vpop.permute.xlu0 %822  ;;  %v3566_v50 = vpop.permute.xlu1 %926 }
  0xe4   : > { %1748 = vrot.lane.b32.xlu1 %v1741_v63, %s3782_s24  ;;  %1742 = vrot.lane.b32.xlu0 %v3343_v15, %s3218_s20  ;;  %s3784_s20 = smov 119  }
  0xe5   : > { %v3568_v51 = vpop.permute.xlu0 %1020 }
  0xe8   : > { %1833 = vrot.lane.b32.xlu1 %v1829_v0, %s3783_s13  ;;  %1835 = vrot.lane.b32.xlu0 %v1830_v1, %s3783_s13  ;;  %v2562_v1 = vmul.f32 %v2560_v60, %v3412_v46  ;;  %v2741_v46 = vmul.f32 %v2738_v38, %v3489_v53 }
  0xea   : > { %v2743_v14 = vmul.f32 %v2741_v46, %v3440_v4 }
  0xec   : > { %1928 = vrot.lane.b32.xlu1 %v1922_v8, %s3784_s20  ;;  %1930 = vrot.lane.b32.xlu0 %v1923_v10, %s3784_s20  ;;  %v2652_v8 = vmul.f32 %v2650_v41, %v3422_v54  ;;  %v2745_v53 = vmul.f32 %v2743_v14, %v3450_v11 }
  0xf0   : > { %1924 = vrot.lane.b32.xlu1 %v3518_v17, %s3783_s13  ;;  %2026 = vrot.lane.b32.xlu0 %v2020_v21, %s3209_s11 }
  0xf4   : > { %2028 = vrot.lane.b32.xlu1 %v2021_v31, %s3209_s11  ;;  %2022 = vrot.lane.b32.xlu0 %v3518_v17, %s3785_s17  ;;  %s3786_s11 = smov 104  }
  0xf8   : > { %2116 = vrot.lane.b32.xlu1 %v2110_v34, %s3210_s12  ;;  %2118 = vrot.lane.b32.xlu0 %v2111_v37, %s3210_s12 }
  0xfc   : > { %2112 = vrot.lane.b32.xlu1 %v3518_v17, %s3786_s11  ;;  %2208 = vrot.lane.b32.xlu0 %v2202_v39, %s3208_s10 }
 0x100   : > { %2210 = vrot.lane.b32.xlu1 %v2203_v18, %s3208_s10  ;;  %2204 = vrot.lane.b32.xlu0 %v3518_v17, %s3787_s19 }
 0x104   : > { %2298 = vrot.lane.b32.xlu1 %v2292_v23, %s3206_s8  ;;  %2300 = vrot.lane.b32.xlu0 %v2293_v49, %s3206_s8  ;;  %s3789_s8 = smov 80  }
 0x108   : > { %2294 = vrot.lane.b32.xlu1 %v3518_v17, %s3788_s27  ;;  %2386 = vrot.lane.b32.xlu0 %v2380_v22, %s3207_s9 }
 0x10c   : > { %2388 = vrot.lane.b32.xlu1 %v2381_v52, %s3207_s9  ;;  %2382 = vrot.lane.b32.xlu0 %v3518_v17, %s3789_s8 }
 0x10e   : > { %v3580_v58 = vpop.permute.xlu1 %732  ;;  %v3582_v59 = vpop.permute.xlu0 %734 }
 0x10f   : > { %v737_v33 = vsel %vm736_vm7, %v3580_v58, %v3582_v59 }
 0x110   : > { %2476 = vrot.lane.b32.xlu1 %v2470_v57, %s3205_s7  ;;  %2478 = vrot.lane.b32.xlu0 %v2471_v61, %s3205_s7 }
 0x112   : > { %v367_v63 = vpop.permute.xlu1 %366  ;;  %v365_v0 = vpop.permute.xlu0 %364 }
 0x113   : > { %v369_v2 = vsel %vm368_vm1, %v365_v0, %v367_v63  ;;  %v318_v0 = vld [vmem:[%s3761_s1] sm:$0xff] }
 0x114   : > { %2472 = vrot.lane.b32.xlu1 %v3518_v17, %s3210_s12  ;;  %3020 = vmatpush3.msra.mxu0 %v369_v2 }
 0x115   : > { %2568 = vrot.lane.b32.xlu0 %v2562_v1, %s3204_s30  ;;  %3022 = vmatmul.mubr.msk.f32.vlgmr.msra.gmra.mxu0 %vm371_vm2, %v361_v35  ;;  %v3231_v1 = vmov 0  }
 0x116   : > { %v646_v3 = vpop.permute.xlu1 %645  ;;  %v644_v5 = vpop.permute.xlu0 %643  ;;  %3029 = vmatprep.subr.mxu0 %v3224_v24  ;;  %3031 = vmatprep.mubr.msk.f32.mxu0 %vm3225_vm0, %v3224_v24 }
 0x117   : > { %v648_v4 = vsel %vm647_vm4, %v644_v5, %v646_v3  ;;  %3192 = vset.pattern.permute.xlu1 %v3231_v1  ;;  %3193 = vset.pattern.permute.xlu0 %v3231_v1 }
 0x118   : > { %2570 = vrot.lane.b32.xlu1 %v2563_v40, %s3204_s30  ;;  %s3790_s30 = sshll.u32 %s3279_s23, 3 }
 0x119   : > { %2564 = vrot.lane.b32.xlu0 %v3518_v17, %s3207_s9  ;;  %s311_s10 = scalar_lea.vmem %s3766_s6, %s3790_s30 }
 0x11a   : > { %v829_v9 = vpop.permute.xlu1 %828  ;;  %v827_v10 = vpop.permute.xlu0 %826 }
 0x11c   : > { %2658 = vrot.lane.b32.xlu1 %v2652_v8, %s3203_s29 }
 0x11d   : > { %2660 = vrot.lane.b32.xlu0 %v2653_v13, %s3203_s29 }
 0x11e   : > { %v1027_v19 = vpop.permute.xlu1 %1026  ;;  %v1025_v21 = vpop.permute.xlu0 %1024 }
 0x11f   : > { %v1029_v36 = vsel %vm1028_vm9, %v1025_v21, %v1027_v19 }
 0x120   : > { %2654 = vrot.lane.b32.xlu1 %v3518_v17, %s3203_s29 }
 0x121   : > { %2750 = vrot.lane.b32.xlu0 %v2744_v26, %s3202_s28 }
 0x122   : > { %v447_v54 = vpop.permute.xlu1 %446  ;;  %v449_v29 = vpop.permute.xlu0 %448 }
 0x123   : > { %v451_v30 = vsel %vm450_vm3, %v447_v54, %v449_v29 }
 0x124   : > { %2752 = vrot.lane.b32.xlu1 %v2745_v53, %s3202_s28  ;;  %3025 = vmatpush3.msra.mxu1 %v451_v30 }
 0x125   : > { %3027 = vmatmul.mubr.msk.f32.vlgmr.msra.gmra.mxu1 %vm371_vm2, %v3343_v15  ;;  %3034 = vmatprep.subr.mxu1 %v3224_v24  ;;  %v831_v15 = vsel %vm830_vm6, %v827_v10, %v829_v9 }
 0x126   : > { %v550_v31 = vpop.permute.xlu1 %549  ;;  %2746 = vrot.lane.b32.xlu0 %v3518_v17, %s3226_s14  ;;  %3035 = vmatpush3.msra.mxu1 %v648_v4  ;;  %v552_v11 = vpop.permute.xlu0 %551 }
 0x127   : > { %v554_v32 = vsel %vm553_vm5, %v550_v31, %v552_v11  ;;  %3036 = vmatprep.mubr.msk.f32.mxu1 %vm3225_vm0, %v3224_v24  ;;  %3044 = vmatprep.subr.mxu1 %v3224_v24 }
 0x128   : > { %3030 = vmatpush3.msra.mxu0 %v554_v32  ;;  %2831 = vperm.xlu1 %3192, %v318_v0  }
 0x129   : > { %3032 = vmatmul.mubr.msk.f32.vlgmr.msra.gmra.mxu0 %vm371_vm2, %v3544_v42  ;;  %3037 = vmatmul.mubr.msk.f32.vlgmr.msra.gmra.mxu1 %vm371_vm2, %v3546_v43 }
 0x12a   : > { %3039 = vmatprep.subr.mxu0 %v3224_v24  ;;  %3045 = vmatpush3.msra.mxu1 %v831_v15  ;;  %v931_v16 = vpop.permute.xlu1 %930  ;;  %v933_v34 = vpop.permute.xlu0 %932 }
 0x12b   : > { %3040 = vmatpush3.msra.mxu0 %v737_v33  ;;  %v935_v35 = vsel %vm934_vm8, %v931_v16, %v933_v34  ;;  %3041 = vmatprep.mubr.msk.f32.mxu0 %vm3225_vm0, %v3224_v24 }
 0x12c   : > { %3046 = vmatprep.mubr.msk.f32.mxu1 %vm3225_vm0, %v3224_v24  ;;  %3049 = vmatprep.subr.mxu0 %v3224_v24 }
 0x12d   : > { %3054 = vmatprep.subr.mxu1 %v3224_v24  ;;  %3042 = vmatmul.mubr.msk.f32.vlgmr.msra.gmra.mxu0 %vm371_vm2, %v3556_v47 }
 0x12e   : > { %3047 = vmatmul.mubr.msk.f32.vlgmr.msra.gmra.mxu1 %vm371_vm2, %v3558_v48  ;;  %3050 = vmatpush3.msra.mxu0 %v935_v35  ;;  %v1124_v37 = vpop.permute.xlu1 %1123  ;;  %v1126_v38 = vpop.permute.xlu0 %1125 }
 0x12f   : > { %3055 = vmatpush3.msra.mxu1 %v1029_v36  ;;  %v1128_v20 = vsel %vm1127_vm10, %v1124_v37, %v1126_v38  ;;  %3051 = vmatprep.mubr.msk.f32.mxu0 %vm3225_vm0, %v3224_v24 }
 0x130   : > { %3056 = vmatprep.mubr.msk.f32.mxu1 %vm3225_vm0, %v3224_v24  ;;  %3059 = vmatprep.subr.mxu0 %v3224_v24 }
 0x131   : > { %3052 = vmatmul.mubr.msk.f32.vlgmr.msra.gmra.mxu0 %vm371_vm2, %v3566_v50  ;;  %3064 = vmatprep.subr.mxu1 %v3224_v24 }
 0x132   : > { %3057 = vmatmul.mubr.msk.f32.vlgmr.msra.gmra.mxu1 %vm371_vm2, %v3568_v51  ;;  %3060 = vmatpush3.msra.mxu0 %v1128_v20  ;;  %v1120_v39 = vpop.permute.xlu1 %1119  ;;  %v1218_v42 = vpop.permute.xlu0 %1217 }
 0x133   : > { %3061 = vmatprep.mubr.msk.f32.mxu0 %vm3225_vm0, %v3224_v24  ;;  %3066 = vmatprep.mubr.msk.f32.mxu1 %vm3225_vm0, %v3224_v24 }
 0x134   : > { %3069 = vmatprep.subr.mxu0 %v3224_v24 }
 0x135   : > { %3062 = vmatmul.mubr.msk.f32.vlgmr.msra.gmra.mxu0 %vm371_vm2, %v1120_v39 }
 0x136   : > { %v1220_v43 = vpop.permute.xlu1 %1219  ;;  %v1214_v18 = vpop.permute.xlu0 %1213  ;;  %3071 = vmatprep.mubr.msk.f32.mxu0 %vm3225_vm0, %v3224_v24 }
 0x137   : > { %v1222_v44 = vsel %vm1221_vm11, %v1218_v42, %v1220_v43  ;;  %vm1837_vm11 = vcmask 982016  }
 0x138   : > { %3065 = vmatpush3.msra.mxu1 %v1222_v44 }
 0x139   : > { %3067 = vmatmul.mubr.msk.f32.vlgmr.msra.gmra.mxu1 %vm371_vm2, %v1214_v18  ;;  %3074 = vmatprep.subr.mxu1 %v3224_v24 }
 0x13a   : > { %v1307_v45 = vpop.permute.xlu1 %1306  ;;  %v1309_v23 = vpop.permute.xlu0 %1308  ;;  %3076 = vmatprep.mubr.msk.f32.mxu1 %vm3225_vm0, %v3224_v24 }
 0x13b   : > { %v1310_v47 = vsel %vm371_vm2, %v1307_v45, %v1309_v23 }
 0x13c   : > { %3070 = vmatpush3.msra.mxu0 %v1310_v47 }
 0x13d   : > { %3079 = vmatprep.subr.mxu0 %v3224_v24 }
 0x13e   : > { %v1303_v48 = vpop.permute.xlu1 %1302  ;;  %v1400_v49 = vpop.permute.xlu0 %1399 }
 0x13f   : > { %3072 = vmatmul.mubr.msk.f32.vlgmr.msra.gmra.mxu0 %vm371_vm2, %v1303_v48 }
 0x140   : > { %3081 = vmatprep.mubr.msk.f32.mxu0 %vm3225_vm0, %v3224_v24 }
 0x142   : > { %v1402_v22 = vpop.permute.xlu1 %1401  ;;  %v1396_v51 = vpop.permute.xlu0 %1395 }
 0x143   : > { %v1404_v50 = vsel %vm1403_vm12, %v1400_v49, %v1402_v22  ;;  %vm1932_vm12 = vcmask 973824  }
 0x144   : > { %3075 = vmatpush3.msra.mxu1 %v1404_v50 }
 0x145   : > { %3077 = vmatmul.mubr.msk.f32.vlgmr.msra.gmra.mxu1 %vm371_vm2, %v1396_v51  ;;  %3084 = vmatprep.subr.mxu1 %v3224_v24 }
 0x146   : > { %v1489_v52 = vpop.permute.xlu1 %1488  ;;  %3085 = vmatpush3.msra.mxu1 %v3388_v28  ;;  %3086 = vmatprep.mubr.msk.f32.mxu1 %vm3225_vm0, %v3224_v24  ;;  %v1491_v27 = vpop.permute.xlu0 %1490 }
 0x147   : > { %3094 = vmatprep.subr.mxu1 %v3224_v24  ;;  %v1493_v25 = vsel %vm1492_vm13, %v1489_v52, %v1491_v27 }
 0x148   : > { %3080 = vmatpush3.msra.mxu0 %v1493_v25 }
 0x149   : > { %3089 = vmatprep.subr.mxu0 %v3224_v24 }
 0x14a   : > { %v1485_v55 = vpop.permute.xlu1 %1484  ;;  %v1569_v56 = vpop.permute.xlu0 %1568 }
 0x14b   : > { %3082 = vmatmul.mubr.msk.f32.vlgmr.msra.gmra.mxu0 %vm371_vm2, %v1485_v55  ;;  %3087 = vmatmul.mubr.msk.f32.vlgmr.msra.gmra.mxu1 %vm371_vm2, %v1569_v56 }
 0x14c   : > { %3091 = vmatprep.mubr.msk.f32.mxu0 %vm3225_vm0, %v3224_v24  ;;  %3096 = vmatprep.mubr.msk.f32.mxu1 %vm3225_vm0, %v3224_v24 }
 0x14e   : > { %v1653_v28 = vpop.permute.xlu1 %1652  ;;  %v1655_v57 = vpop.permute.xlu0 %1654 }
 0x14f   : > { %v1657_v58 = vsel %vm1656_vm14, %v1653_v28, %v1655_v57 }
 0x150   : > { %3090 = vmatpush3.msra.mxu0 %v1657_v58 }
 0x151   : > { %3099 = vmatprep.subr.mxu0 %v3224_v24 }
 0x152   : > { %v1649_v59 = vpop.permute.xlu1 %1648  ;;  %v1747_v60 = vpop.permute.xlu0 %1746 }
 0x153   : > { %3092 = vmatmul.mubr.msk.f32.vlgmr.msra.gmra.mxu0 %vm371_vm2, %v1649_v59 }
 0x154   : > { %3101 = vmatprep.mubr.msk.f32.mxu0 %vm3225_vm0, %v3224_v24 }
 0x156   : > { %v1749_v61 = vpop.permute.xlu1 %1748  ;;  %v1743_v63 = vpop.permute.xlu0 %1742 }
 0x157   : > { %v1751_v62 = vsel %vm1750_vm15, %v1747_v60, %v1749_v61 }
 0x158   : > { %3095 = vmatpush3.msra.mxu1 %v1751_v62 }
 0x159   : > { %3097 = vmatmul.mubr.msk.f32.vlgmr.msra.gmra.mxu1 %vm371_vm2, %v1743_v63  ;;  %3104 = vmatprep.subr.mxu1 %v3224_v24 }
 0x15a   : > { %v1834_v2 = vpop.permute.xlu1 %1833  ;;  %3106 = vmatprep.mubr.msk.f32.mxu1 %vm3225_vm0, %v3224_v24  ;;  %v1836_v40 = vpop.permute.xlu0 %1835 }
 0x15b   : > { %v1838_v41 = vsel %vm1837_vm11, %v1834_v2, %v1836_v40 }
 0x15c   : > { %3100 = vmatpush3.msra.mxu0 %v1838_v41 }
 0x15d   : > { %3102 = vmatmul.mubr.msk.f32.vlgmr.msra.gmra.mxu0 %vm371_vm2, %v3518_v17  ;;  %3109 = vmatprep.subr.mxu0 %v3224_v24 }
 0x15e   : > { %v1929_v3 = vpop.permute.xlu1 %1928  ;;  %v1931_v5 = vpop.permute.xlu0 %1930  ;;  %3111 = vmatprep.mubr.msk.f32.mxu0 %vm3225_vm0, %v3224_v24 }
 0x15f   : > { %v1933_v6 = vsel %vm1932_vm12, %v1929_v3, %v1931_v5 }
 0x160   : > { %3105 = vmatpush3.msra.mxu1 %v1933_v6 }
 0x161   : > { %3114 = vmatprep.subr.mxu1 %v3224_v24 }
 0x162   : > { %v1925_v7 = vpop.permute.xlu1 %1924  ;;  %v2027_v46 = vpop.permute.xlu0 %2026 }
 0x163   : > { %3107 = vmatmul.mubr.msk.f32.vlgmr.msra.gmra.mxu1 %vm371_vm2, %v1925_v7 }
 0x164   : > { %3116 = vmatprep.mubr.msk.f32.mxu1 %vm3225_vm0, %v3224_v24 }
 0x166   : > { %v2029_v8 = vpop.permute.xlu1 %2028  ;;  %v2023_v9 = vpop.permute.xlu0 %2022 }
 0x167   : > { %v2030_v17 = vsel %vm450_vm3, %v2027_v46, %v2029_v8 }
 0x168   : > { %3110 = vmatpush3.msra.mxu0 %v2030_v17 }
 0x169   : > { %3112 = vmatmul.mubr.msk.f32.vlgmr.msra.gmra.mxu0 %vm371_vm2, %v2023_v9  ;;  %3119 = vmatprep.subr.mxu0 %v3224_v24 }
 0x16a   : > { %v2117_v10 = vpop.permute.xlu1 %2116  ;;  %3121 = vmatprep.mubr.msk.f32.mxu0 %vm3225_vm0, %v3224_v24  ;;  %v2119_v12 = vpop.permute.xlu0 %2118 }
 0x16b   : > { %v2120_v13 = vsel %vm368_vm1, %v2117_v10, %v2119_v12 }
 0x16c   : > { %3115 = vmatpush3.msra.mxu1 %v2120_v13 }
 0x16d   : > { %3124 = vmatprep.subr.mxu1 %v3224_v24 }
 0x16e   : > { %v2113_v14 = vpop.permute.xlu1 %2112  ;;  %v2209_v19 = vpop.permute.xlu0 %2208 }
 0x16f   : > { %3117 = vmatmul.mubr.msk.f32.vlgmr.msra.gmra.mxu1 %vm371_vm2, %v2113_v14 }
 0x170   : > { %3126 = vmatprep.mubr.msk.f32.mxu1 %vm3225_vm0, %v3224_v24 }
 0x172   : > { %v2211_v21 = vpop.permute.xlu1 %2210  ;;  %v2205_v53 = vpop.permute.xlu0 %2204 }
 0x173   : > { %v2212_v26 = vsel %vm553_vm5, %v2209_v19, %v2211_v21 }
 0x174   : > { %3120 = vmatpush3.msra.mxu0 %v2212_v26 }
 0x175   : > { %3122 = vmatmul.mubr.msk.f32.vlgmr.msra.gmra.mxu0 %vm371_vm2, %v2205_v53  ;;  %3129 = vmatprep.subr.mxu0 %v3224_v24 }
 0x176   : > { %v2299_v54 = vpop.permute.xlu1 %2298  ;;  %3131 = vmatprep.mubr.msk.f32.mxu0 %vm3225_vm0, %v3224_v24  ;;  %v2301_v29 = vpop.permute.xlu0 %2300 }
 0x177   : > { %v2302_v30 = vsel %vm647_vm4, %v2299_v54, %v2301_v29 }
 0x178   : > { %3125 = vmatpush3.msra.mxu1 %v2302_v30 }
 0x179   : > { %3134 = vmatprep.subr.mxu1 %v3224_v24 }
 0x17a   : > { %v2295_v4 = vpop.permute.xlu1 %2294  ;;  %v2387_v31 = vpop.permute.xlu0 %2386 }
 0x17b   : > { %3127 = vmatmul.mubr.msk.f32.vlgmr.msra.gmra.mxu1 %vm371_vm2, %v2295_v4 }
 0x17c   : > { %3136 = vmatprep.mubr.msk.f32.mxu1 %vm3225_vm0, %v3224_v24 }
 0x17e   : > { %v2389_v11 = vpop.permute.xlu1 %2388  ;;  %v2383_v15 = vpop.permute.xlu0 %2382 }
 0x17f   : > { %v2390_v32 = vsel %vm736_vm7, %v2387_v31, %v2389_v11 }
 0x180   : > { %3130 = vmatpush3.msra.mxu0 %v2390_v32 }
 0x181   : > { %3132 = vmatmul.mubr.msk.f32.vlgmr.msra.gmra.mxu0 %vm371_vm2, %v2383_v15  ;;  %3139 = vmatprep.subr.mxu0 %v3224_v24 }
 0x182   : > { %v2477_v33 = vpop.permute.xlu1 %2476  ;;  %3141 = vmatprep.mubr.msk.f32.mxu0 %vm3225_vm0, %v3224_v24  ;;  %v2479_v16 = vpop.permute.xlu0 %2478 }
 0x183   : > { %v2480_v34 = vsel %vm830_vm6, %v2477_v33, %v2479_v16 }
 0x184   : > { %3135 = vmatpush3.msra.mxu1 %v2480_v34 }
 0x185   : > { %3144 = vmatprep.subr.mxu1 %v3224_v24 }
 0x186   : > { %v2473_v35 = vpop.permute.xlu1 %2472 }
 0x187   : > { %v2569_v36 = vpop.permute.xlu0 %2568  ;;  %3137 = vmatmul.mubr.msk.f32.vlgmr.msra.gmra.mxu1 %vm371_vm2, %v2473_v35 }
 0x188   : > { %3146 = vmatprep.mubr.msk.f32.mxu1 %vm3225_vm0, %v3224_v24 }
 0x18a   : > { %v2571_v37 = vpop.permute.xlu1 %2570 }
 0x18b   : > { %v2572_v38 = vsel %vm934_vm8, %v2569_v36, %v2571_v37  ;;  %v2565_v20 = vpop.permute.xlu0 %2564 }
 0x18c   : > { %3140 = vmatpush3.msra.mxu0 %v2572_v38 }
 0x18d   : > { %3142 = vmatmul.mubr.msk.f32.vlgmr.msra.gmra.mxu0 %vm371_vm2, %v2565_v20  ;;  %3149 = vmatprep.subr.mxu0 %v3224_v24 }
 0x18e   : > { %v2659_v39 = vpop.permute.xlu1 %2658  ;;  %3151 = vmatprep.mubr.msk.f32.mxu0 %vm3225_vm0, %v3224_v24 }
 0x18f   : > { %v2661_v42 = vpop.permute.xlu0 %2660 }
 0x190   : > { %v2662_v43 = vsel %vm1028_vm9, %v2659_v39, %v2661_v42 }
 0x191   : > { %3145 = vmatpush3.msra.mxu1 %v2662_v43 }
 0x192   : > { %v2655_v18 = vpop.permute.xlu1 %2654 }
 0x193   : > { %3147 = vmatmul.mubr.msk.f32.vlgmr.msra.gmra.mxu1 %vm371_vm2, %v2655_v18  ;;  %v2751_v44 = vpop.permute.xlu0 %2750 }
 0x196   : > { %v2753_v45 = vpop.permute.xlu1 %2752 }
 0x197   : > { %v2754_v23 = vsel %vm1127_vm10, %v2751_v44, %v2753_v45 }
 0x198   : > { %3150 = vmatpush3.msra.mxu0 %v2754_v23  ;;  %v2747_v47 = vpop.permute.xlu0 %2746 }
 0x199   : > { %3152 = vmatmul.mubr.msk.f32.vlgmr.msra.gmra.mxu0 %vm371_vm2, %v2747_v47 }
 0x1d5   : > { %v440_v48 = vpop.f32.mrf.mxu0 }
 0x1d7   : > { %v3023_v49 = vpop.f32.mrf.mxu0 }
 0x1e5   : > { %v521_v22 = vpop.f32.mrf.mxu1 }
 0x1e6   : > { %v522_v50 = vadd.f32 %v521_v22, %v440_v48 }
 0x1e7   : > { %v3028_v24 = vpop.f32.mrf.mxu1 }
 0x1e9   : > { %v624_v51 = vpop.f32.mrf.mxu0  ;;  %v718_v52 = vpop.f32.mrf.mxu1 }
 0x1ea   : > { %v628_v27 = vadd.f32 %v624_v51, %v522_v50 }
 0x1eb   : > { %v3033_v25 = vpop.f32.mrf.mxu0  ;;  %v3038_v55 = vpop.f32.mrf.mxu1 }
 0x1ec   : > { %v722_v56 = vadd.f32 %v718_v52, %v628_v27 }
 0x1ed   : > { %v807_v28 = vpop.f32.mrf.mxu0 }
 0x1ee   : > { %v811_v57 = vadd.f32 %v807_v28, %v722_v56  ;;  %v901_v58 = vpop.f32.mrf.mxu1 }
 0x1ef   : > { %v3043_v59 = vpop.f32.mrf.mxu0 }
 0x1f0   : > { %v905_v60 = vadd.f32 %v901_v58, %v811_v57  ;;  %v3048_v61 = vpop.f32.mrf.mxu1  ;;  %v2832_v59 = vpop.permute.xlu1 %2831 }
 0x1f1   : > { %v1005_v62 = vpop.f32.mrf.mxu0 }
 0x1f2   : > { %v1009_v63 = vadd.f32 %v1005_v62, %v905_v60  ;;  %v1099_v0 = vpop.f32.mrf.mxu1 }
 0x1f3   : > { %v3053_v1 = vpop.f32.mrf.mxu0 }
 0x1f4   : > { %v1103_v2 = vadd.f32 %v1099_v0, %v1009_v63  ;;  %v3058_v40 = vpop.f32.mrf.mxu1 }
 0x1f5   : > { %v1198_v41 = vpop.f32.mrf.mxu0 }
 0x1f6   : > { %v1202_v3 = vadd.f32 %v1198_v41, %v1103_v2 }
 0x1f7   : > { %v3063_v5 = vpop.f32.mrf.mxu0 }
 0x1f9   : > { %v1292_v6 = vpop.f32.mrf.mxu1 }
 0x1fa   : > { %v1296_v16 = vadd.f32 %v1292_v6, %v1202_v3 }
 0x1fb   : > { %v3068_v7 = vpop.f32.mrf.mxu1 }
 0x1ff   : > { %v1380_v46 = vpop.f32.mrf.mxu0 }
 0x200   : > { %v1384_v35 = vadd.f32 %v1380_v46, %v1296_v16 }
 0x201   : > { %v3073_v8 = vpop.f32.mrf.mxu0 }
 0x205   : > { %v1474_v17 = vpop.f32.mrf.mxu1 }
 0x206   : > { %v1478_v36 = vadd.f32 %v1474_v17, %v1384_v35 }
 0x207   : > { %v3078_v9 = vpop.f32.mrf.mxu1 }
 0x20b   : > { %v1563_v10 = vpop.f32.mrf.mxu0  ;;  %v1638_v12 = vpop.f32.mrf.mxu1 }
 0x20c   : > { %v1567_v38 = vadd.f32 %v1563_v10, %v1478_v36 }
 0x20d   : > { %v3083_v13 = vpop.f32.mrf.mxu0  ;;  %v3088_v14 = vpop.f32.mrf.mxu1 }
 0x20e   : > { %v1642_v39 = vadd.f32 %v1638_v12, %v1567_v38 }
 0x213   : > { %v1727_v19 = vpop.f32.mrf.mxu0 }
 0x214   : > { %v1731_v43 = vadd.f32 %v1727_v19, %v1642_v39 }
 0x215   : > { %v3093_v21 = vpop.f32.mrf.mxu0 }
 0x219   : > { %v1821_v26 = vpop.f32.mrf.mxu1 }
 0x21a   : > { %v1825_v44 = vadd.f32 %v1821_v26, %v1731_v43 }
 0x21b   : > { %v3098_v53 = vpop.f32.mrf.mxu1 }
 0x21d   : > { %v1909_v54 = vpop.f32.mrf.mxu0 }
 0x21e   : > { %v1913_v45 = vadd.f32 %v1909_v54, %v1825_v44 }
 0x21f   : > { %v3103_v29 = vpop.f32.mrf.mxu0 }
 0x223   : > { %v2003_v30 = vpop.f32.mrf.mxu1 }
 0x224   : > { %v2007_v47 = vadd.f32 %v2003_v30, %v1913_v45 }
 0x225   : > { %v3108_v4 = vpop.f32.mrf.mxu1 }
 0x229   : > { %v2100_v31 = vpop.f32.mrf.mxu0 }
 0x22a   : > { %v2104_v49 = vadd.f32 %v2100_v31, %v2007_v47 }
 0x22b   : > { %v3113_v11 = vpop.f32.mrf.mxu0 }
 0x22f   : > { %v2190_v32 = vpop.f32.mrf.mxu1 }
 0x230   : > { %v2194_v22 = vadd.f32 %v2190_v32, %v2104_v49 }
 0x231   : > { %v3118_v15 = vpop.f32.mrf.mxu1 }
 0x235   : > { %v2282_v33 = vpop.f32.mrf.mxu0 }
 0x236   : > { %v2286_v24 = vadd.f32 %v2282_v33, %v2194_v22 }
 0x237   : > { %v3123_v34 = vpop.f32.mrf.mxu0 }
 0x23b   : > { %v2372_v37 = vpop.f32.mrf.mxu1 }
 0x23c   : > { %v2376_v52 = vadd.f32 %v2372_v37, %v2286_v24 }
 0x23d   : > { %v3128_v20 = vpop.f32.mrf.mxu1 }
 0x241   : > { %v2460_v42 = vpop.f32.mrf.mxu0 }
 0x242   : > { %v2464_v27 = vadd.f32 %v2460_v42, %v2376_v52 }
 0x243   : > { %v3133_v18 = vpop.f32.mrf.mxu0 }
 0x247   : > { %v2550_v23 = vpop.f32.mrf.mxu1 }
 0x248   : > { %v2554_v55 = vadd.f32 %v2550_v23, %v2464_v27 }
 0x249   : > { %v3138_v48 = vpop.f32.mrf.mxu1 }
 0x24d   : > { %v2642_v50 = vpop.f32.mrf.mxu0 }
 0x24e   : > { %v2646_v28 = vadd.f32 %v2642_v50, %v2554_v55 }
 0x24f   : > { %v3143_v51 = vpop.f32.mrf.mxu0 }
 0x253   : > { %v2732_v25 = vpop.f32.mrf.mxu1 }
 0x254   : > { %v2736_v57 = vadd.f32 %v2732_v25, %v2646_v28 }
 0x255   : > { %v3148_v56 = vpop.f32.mrf.mxu1 }
 0x259   : > { %v2824_v58 = vpop.f32.mrf.mxu0 }
 0x25a   : > { %v2828_v60 = vadd.f32 %v2824_v58, %v2736_v57 }
 0x25b   : > { %v3153_v61 = vpop.f32.mrf.mxu0 }
 0x25c   : > { %v2834_v62 = vadd.f32 %v2832_v59, %v2828_v60 }
 0x25e   : > { %v2835_v63 = vmax.f32 %v2834_v62, 0.0 }
 0x260   : > { %2836 = vst [vmem:[%s311_s10] sm:$0xff] %v2835_v63 }
 0x261 PF: > { %s16_s21 = sadd.s32 1, %s3200_s21  }
 0x262   : > { %p13_p7 = scmp.ge.s32.totalorder %s16_s21, 6  }
 0x264   :  { %15 = sbr.rel (!%p13_p7) target bundleno = 1 (0x1), region = 83 }

// kernel: tile.10
= control target key start
LH: loop header
LB: loop body
LE: loop exit
PB: predicated region body
PF: predicated region fallthrough
CT: control target
= control target key end

     0   :  { %s22_s0 = inlined_call_operand.vmem [shape: f32[8], index: 0, kind: input, shape index: {}]   ;;  %s23_s1 = inlined_call_operand.vmem [shape: f32[8,8], index: 1, kind: output, shape index: {}]  }
   0x1   :  { %v4_v0 = vld [vmem:[%s22_s0] ss:$0 sm:$0xff] }
   0x2   :  { %5 = vst [vmem:[%s23_s1] sm:$0xff] %v4_v0 }

// kernel: tile.1
= control target key start
LH: loop header
LB: loop body
LE: loop exit
PB: predicated region body
PF: predicated region fallthrough
CT: control target
= control target key end

     0   :  { %vm3_vm0 = vcmask 7168   ;;  %s84_s8 = smov 125   ;;  %s85_s13 = smov 126   ;;  %s167_s0 = inlined_call_operand.vmem [shape: f32[8,8], index: 0, kind: input, shape index: {}]   ;;  %s168_s1 = inlined_call_operand.vmem [shape: f32[64,1], index: 1, kind: output, shape index: {}]  }
   0x1   :  { %v6_v0 = vld [vmem:[%s167_s0] sm:$0xff]   ;;  %s83_s0 = smov 127   ;;  %s86_s14 = smov 124  }
   0x2   :  { %7 = vrot.lane.b32.xlu0 %v6_v0, %s83_s0  ;;  %23 = vrot.lane.b32.xlu1 %v6_v0, %s84_s8  ;;  %4 = vst.msk [vmem:[%s168_s1] ss:$8 sm:$0xf] %vm3_vm0, %v6_v0   ;;  %5 = vst.msk [vmem:[%s168_s1] ss:$8 sm:$0xf0] %vm3_vm0, %v6_v0  }
   0x3   :  { %s87_s15 = smov 123   ;;  %s88_s16 = smov 122  }
   0x4   :  { %s89_s17 = smov 121  }
   0x6   :  { %15 = vrot.lane.b32.xlu0 %v6_v0, %s85_s13  ;;  %31 = vrot.lane.b32.xlu1 %v6_v0, %s86_s14 }
   0xa   :  { %39 = vrot.lane.b32.xlu0 %v6_v0, %s87_s15  ;;  %47 = vrot.lane.b32.xlu1 %v6_v0, %s88_s16 }
   0xe   :  { %55 = vrot.lane.b32.xlu0 %v6_v0, %s89_s17 }
  0x74   :  { %v8_v1 = vpop.permute.xlu0 %7   ;;  %v24_v2 = vpop.permute.xlu1 %23  }
  0x75   :  { %62 = vst.msk [vmem:[%s168_s1 + $0x1] ss:$8 sm:$0xf] %vm3_vm0, %v8_v1   ;;  %63 = vst.msk [vmem:[%s168_s1 + $0x1] ss:$8 sm:$0xf0] %vm3_vm0, %v8_v1  }
  0x76   :  { %66 = vst.msk [vmem:[%s168_s1 + $0x3] ss:$8 sm:$0xf] %vm3_vm0, %v24_v2   ;;  %67 = vst.msk [vmem:[%s168_s1 + $0x3] ss:$8 sm:$0xf0] %vm3_vm0, %v24_v2  }
  0x78   :  { %v16_v3 = vpop.permute.xlu0 %15   ;;  %v32_v4 = vpop.permute.xlu1 %31  }
  0x79   :  { %64 = vst.msk [vmem:[%s168_s1 + $0x2] ss:$8 sm:$0xf] %vm3_vm0, %v16_v3   ;;  %65 = vst.msk [vmem:[%s168_s1 + $0x2] ss:$8 sm:$0xf0] %vm3_vm0, %v16_v3  }
  0x7a   :  { %68 = vst.msk [vmem:[%s168_s1 + $0x4] ss:$8 sm:$0xf] %vm3_vm0, %v32_v4   ;;  %69 = vst.msk [vmem:[%s168_s1 + $0x4] ss:$8 sm:$0xf0] %vm3_vm0, %v32_v4  }
  0x7c   :  { %v40_v5 = vpop.permute.xlu0 %39   ;;  %v48_v6 = vpop.permute.xlu1 %47  }
  0x7d   :  { %70 = vst.msk [vmem:[%s168_s1 + $0x5] ss:$8 sm:$0xf] %vm3_vm0, %v40_v5   ;;  %71 = vst.msk [vmem:[%s168_s1 + $0x5] ss:$8 sm:$0xf0] %vm3_vm0, %v40_v5  }
  0x7e   :  { %72 = vst.msk [vmem:[%s168_s1 + $0x6] ss:$8 sm:$0xf] %vm3_vm0, %v48_v6   ;;  %73 = vst.msk [vmem:[%s168_s1 + $0x6] ss:$8 sm:$0xf0] %vm3_vm0, %v48_v6  }
  0x80   :  { %v56_v7 = vpop.permute.xlu0 %55  }
  0x81   :  { %74 = vst.msk [vmem:[%s168_s1 + $0x7] ss:$8 sm:$0xf] %vm3_vm0, %v56_v7   ;;  %75 = vst.msk [vmem:[%s168_s1 + $0x7] ss:$8 sm:$0xf0] %vm3_vm0, %v56_v7  }

// kernel: _lambda_.8
= control target key start
LH: loop header
LB: loop body
LE: loop exit
PB: predicated region body
PF: predicated region fallthrough
CT: control target
= control target key end

     0   :  { %v172_v0 = vlaneseq  ;;  %s3061_s20 = smov 107   ;;  %s3062_s21 = smov 108   ;;  %vm227_vm0 = vcmask 64512   ;;  %vm224_vm1 = vcmask 162816   ;;  %vm611_vm2 = vcmask 130048   ;;  %s3637_s0 = inlined_call_operand.vmem [shape: f32[16,216], index: 0, kind: input, shape index: {}]   ;;  %s3638_s1 = inlined_call_operand.vmem [shape: f32[16,1], index: 1, kind: input, shape index: {}]   ;;  %s3639_s2 = inlined_call_operand.vmem [shape: f32[3,128], index: 2, kind: input, shape index: {}]   ;;  %s3640_s3 = inlined_call_operand.vmem [shape: f32[64,256], index: 3, kind: input, shape index: {}, may-alias: {3,4}]   ;;  %s3641_s4 = inlined_call_operand.vmem [shape: f32[64,256], index: 4, kind: input, shape index: {}, may-alias: {3,4}]   ;;  %s3642_s5 = inlined_call_operand.vmem [shape: f32[16,128], index: 5, kind: output, shape index: {}]  }
   0x1   :  { %v165_v2 = vld [vmem:[%s3639_s2] sm:$0x7]  ;;  %s3063_s22 = smov 111   ;;  %s3064_s23 = smov 112   ;;  %v3131_v10 = vld [vmem:[%s3637_s0 + $0x10] sm:$0xff]  ;;  %v3198_v17 = vld [vmem:[%s3641_s4 + $0x48] sm:$0xff] }
   0x2   :  { %v173_v1 = vshrl.u32 %v172_v0, 7  ;;  %s3065_s2 = smov 123   ;;  %s3066_s24 = smov 124   ;;  %v3126_v9 = vld [vmem:[%s3637_s0] sm:$0xff]  ;;  %v3211_v23 = vld [vmem:[%s3640_s3 + $0x50] sm:$0xff]  ;;  %v3216_v24 = vld [vmem:[%s3641_s4 + $0x58] sm:$0xff] }
   0x3   :  { %s3067_s25 = smov 127   ;;  %s3068_s30 = smov 120   ;;  %2903 = vmatprep.mubr.msk.f32.mxu1 %vm227_vm0, %v3126_v9  ;;  %v68_v18 = vld [vmem:[%s3640_s3 + $0x40] sm:$0xff]  ;;  %v3229_v29 = vld [vmem:[%s3641_s4 + $0x68] sm:$0xff]  ;;  %v3242_v35 = vld [vmem:[%s3640_s3 + $0x70] sm:$0xff]  ;;  %vm512_vm3 = vcmask 138240  }
   0x4   :  { %v184_v3 = vsub.s32 1, %v173_v1  ;;  %v174_v4 = vsub.s32 0, %v173_v1  ;;  %v194_v7 = vsub.s32 2, %v173_v1  ;;  %s3069_s6 = smov 104   ;;  %s3070_s7 = smov 96   ;;  %v72_v30 = vld [vmem:[%s3640_s3 + $0x60] sm:$0xff] }
   0x5   :  { %s3071_s8 = smov 88   ;;  %s3072_s9 = smov 80   ;;  %v3252_v37 = vld [vmem:[%s3641_s4 + $0x78] sm:$0xff]  ;;  %v3257_v38 = vld [vmem:[%s3641_s4 + $0x28] sm:$0xff]  ;;  %v64_v39 = vld [vmem:[%s3640_s3 + $0x20] sm:$0xff]  ;;  %vm1196_vm4 = vcmask 31744  }
   0x6   :  { %v185_v5 = vrot.slane %v165_v2, %v184_v3  ;;  %v175_v6 = vrot.slane %v165_v2, %v174_v4  ;;  %v195_v8 = vrot.slane %v165_v2, %v194_v7  ;;  %s3073_s10 = smov 72   ;;  %s3074_s11 = smov 64   ;;  %v66_v48 = vld [vmem:[%s3640_s3 + $0x30] sm:$0xff]  ;;  %v3290_v49 = vld [vmem:[%s3641_s4 + $0x38] sm:$0xff]  ;;  %vm1390_vm5 = vcmask 7168  }
   0x7   :  { %s3075_s12 = smov 56   ;;  %s3076_s13 = smov 48   ;;  %v3295_v50 = vld [vmem:[%s3641_s4 + $0x18] sm:$0xff]  ;;  %v62_v51 = vld [vmem:[%s3640_s3 + $0x10] sm:$0xff]  ;;  %vm313_vm6 = vcmask 171008   ;;  %vm1097_vm7 = vcmask 39936  }
   0x8   :  { %187 = vrot.lane.b32.xlu1 %v185_v5, %s3061_s20  ;;  %177 = vrot.lane.b32.xlu0 %v175_v6, %s3061_s20  ;;  %s3077_s14 = smov 40   ;;  %s3078_s15 = smov 32  }
   0x9   :  { %s3079_s16 = smov 24   ;;  %s3080_s17 = smov 16  }
   0xa   :  { %s3083_s3 = smov 20   ;;  %s3084_s18 = smov 17  }
   0xb   :  { %s3085_s19 = smov 5  }
   0xc   :  { %207 = vrot.lane.b32.xlu1 %v185_v5, %s3062_s21  ;;  %202 = vrot.lane.b32.xlu0 %v175_v6, %s3062_s21  ;;  %s3087_s21 = smov 8  }
  0x10   :  { %492 = vrot.lane.b32.xlu1 %v175_v6, %s3063_s22  ;;  %197 = vrot.lane.b32.xlu0 %v195_v8, %s3061_s20  ;;  %s3086_s20 = smov 21  }
  0x14   :  { %596 = vrot.lane.b32.xlu1 %v175_v6, %s3064_s23  ;;  %497 = vrot.lane.b32.xlu0 %v195_v8, %s3063_s22 }
  0x18   :  { %1077 = vrot.lane.b32.xlu0 %v185_v5, %s3065_s2  ;;  %1082 = vrot.lane.b32.xlu1 %v195_v8, %s3065_s2 }
  0x1c   :  { %1181 = vrot.lane.b32.xlu0 %v185_v5, %s3066_s24  ;;  %1375 = vrot.lane.b32.xlu1 %v195_v8, %s3067_s25  ;;  %s3081_s25 = smov 4  }
  0x20   :  { %214 = vrot.lane.b32.xlu0 %v3126_v9, %s3068_s30  ;;  %216 = vrot.lane.b32.xlu1 %v3131_v10, %s3068_s30 }
  0x24   :  { %399 = vrot.lane.b32.xlu0 %v3126_v9, %s3064_s23  ;;  %401 = vrot.lane.b32.xlu1 %v3131_v10, %s3064_s23 }
  0x28   :  { %502 = vrot.lane.b32.xlu0 %v3126_v9, %s3069_s6  ;;  %504 = vrot.lane.b32.xlu1 %v3131_v10, %s3069_s6 }
  0x2c   :  { %601 = vrot.lane.b32.xlu0 %v3126_v9, %s3070_s7  ;;  %603 = vrot.lane.b32.xlu1 %v3131_v10, %s3070_s7 }
  0x30   :  { %697 = vrot.lane.b32.xlu0 %v3126_v9, %s3071_s8  ;;  %699 = vrot.lane.b32.xlu1 %v3131_v10, %s3071_s8 }
  0x34   :  { %794 = vrot.lane.b32.xlu0 %v3126_v9, %s3072_s9  ;;  %796 = vrot.lane.b32.xlu1 %v3131_v10, %s3072_s9 }
  0x38   :  { %889 = vrot.lane.b32.xlu0 %v3126_v9, %s3073_s10  ;;  %891 = vrot.lane.b32.xlu1 %v3131_v10, %s3073_s10 }
  0x3c   :  { %984 = vrot.lane.b32.xlu0 %v3126_v9, %s3074_s11  ;;  %986 = vrot.lane.b32.xlu1 %v3131_v10, %s3074_s11 }
  0x40   :  { %1087 = vrot.lane.b32.xlu0 %v3126_v9, %s3075_s12  ;;  %1089 = vrot.lane.b32.xlu1 %v3131_v10, %s3075_s12 }
  0x44   :  { %1186 = vrot.lane.b32.xlu0 %v3126_v9, %s3076_s13  ;;  %1188 = vrot.lane.b32.xlu1 %v3131_v10, %s3076_s13 }
  0x48   :  { %1282 = vrot.lane.b32.xlu0 %v3126_v9, %s3077_s14  ;;  %1284 = vrot.lane.b32.xlu1 %v3131_v10, %s3077_s14 }
  0x4c   :  { %1380 = vrot.lane.b32.xlu0 %v3126_v9, %s3078_s15  ;;  %1382 = vrot.lane.b32.xlu1 %v3131_v10, %s3078_s15 }
  0x50   :  { %1474 = vrot.lane.b32.xlu0 %v3126_v9, %s3079_s16  ;;  %1476 = vrot.lane.b32.xlu1 %v3131_v10, %s3079_s16  ;;  %s3082_s16 = smov 1  }
  0x54   :  { %1559 = vrot.lane.b32.xlu0 %v3126_v9, %s3080_s17 }
  0x7a   :  { %v3183_v11 = vpop.permute.xlu1 %187  ;;  %v3185_v12 = vpop.permute.xlu0 %177 }
  0x7e   :  { %v3187_v13 = vpop.permute.xlu1 %207  ;;  %v3189_v14 = vpop.permute.xlu0 %202 }
  0x7f   :  { %v205_v56 = vmul.f32 %v3189_v14, %v72_v30  ;;  %v395_v59 = vmul.f32 %v3189_v14, %v3242_v35  ;;  %v206_v60 = vmul.f32 %v3229_v29, %v3189_v14  ;;  %v396_v63 = vmul.f32 %v3252_v37, %v3189_v14 }
  0x80   :  { %v181_v14 = vmul.f32 %v3252_v37, %v3185_v12 }
  0x81   :  { %v210_v57 = vmul.f32 %v3187_v13, %v205_v56  ;;  %v397_v61 = vmul.f32 %v395_v59, %v3187_v13  ;;  %v211_v62 = vmul.f32 %v3187_v13, %v206_v60  ;;  %v398_v2 = vmul.f32 %v396_v63, %v3187_v13 }
  0x82   :  { %v3191_v15 = vpop.permute.xlu1 %492  ;;  %v3193_v16 = vpop.permute.xlu0 %197 }
  0x83   :  { %v496_v0 = vmul.f32 %v3216_v24, %v3191_v15  ;;  %v495_v3 = vmul.f32 %v3191_v15, %v3211_v23  ;;  %v791_v4 = vmul.f32 %v3252_v37, %v3191_v15 }
  0x86   :  { %v597_v19 = vpop.permute.xlu1 %596  ;;  %v3203_v20 = vpop.permute.xlu0 %497 }
  0x87   :  { %v600_v21 = vmul.f32 %v3198_v17, %v597_v19  ;;  %v599_v22 = vmul.f32 %v597_v19, %v68_v18  ;;  %v696_v26 = vmul.f32 %v3216_v24, %v597_v19  ;;  %v695_v27 = vmul.f32 %v597_v19, %v3211_v23 }
  0x88   :  { %v888_v32 = vmul.f32 %v3229_v29, %v597_v19  ;;  %v887_v33 = vmul.f32 %v597_v19, %v72_v30  ;;  %v983_v43 = vmul.f32 %v3252_v37, %v597_v19  ;;  %v982_v44 = vmul.f32 %v597_v19, %v3242_v35 }
  0x89   :  { %609 = vrot.lane.b32.xlu0 %v600_v21, %s3080_s17  ;;  %607 = vrot.lane.b32.xlu1 %v599_v22, %s3080_s17  ;;  %v501_v1 = vmul.f32 %v3203_v20, %v496_v0  ;;  %v793_v8 = vmul.f32 %v791_v4, %v3203_v20  ;;  %v500_v13 = vmul.f32 %v3203_v20, %v495_v3  ;;  %v170_v3 = vld [vmem:[%s3638_s1] sm:$0xff] }
  0x8a   :  { %v3218_v25 = vpop.permute.xlu0 %1077  ;;  %v3222_v28 = vpop.permute.xlu1 %1082  ;;  %v790_v18 = vmul.f32 %v3191_v15, %v3242_v35 }
  0x8b   :  { %v1081_v7 = vmul.f32 %v3290_v49, %v3218_v25  ;;  %v1080_v19 = vmul.f32 %v3218_v25, %v66_v48 }
  0x8c   :  { %v792_v22 = vmul.f32 %v790_v18, %v3203_v20 }
  0x8d   :  { %705 = vrot.lane.b32.xlu0 %v696_v26, %s3080_s17  ;;  %703 = vrot.lane.b32.xlu1 %v695_v27, %s3080_s17  ;;  %v1086_v21 = vmul.f32 %v3222_v28, %v1081_v7  ;;  %v180_v27 = vmul.f32 %v3185_v12, %v3242_v35 }
  0x8e   :  { %v3234_v31 = vpop.permute.xlu0 %1181  ;;  %v3237_v34 = vpop.permute.xlu1 %1375 }
  0x8f   :  { %v3247_v36 = vmul.f32 %v3234_v31, %v72_v30  ;;  %v3264_v41 = vmul.f32 %v3234_v31, %v3242_v35  ;;  %v3268_v42 = vmul.f32 %v3237_v34, %v3211_v23  ;;  %v3275_v45 = vmul.f32 %v3237_v34, %v3242_v35 }
  0x90   :  { %v1185_v46 = vmul.f32 %v3257_v38, %v3234_v31  ;;  %v1184_v47 = vmul.f32 %v3234_v31, %v64_v39  ;;  %v1281_v52 = vmul.f32 %v3290_v49, %v3234_v31  ;;  %v1280_v53 = vmul.f32 %v3234_v31, %v66_v48 }
  0x91   :  { %897 = vrot.lane.b32.xlu0 %v888_v32, %s3080_s17  ;;  %895 = vrot.lane.b32.xlu1 %v887_v33, %s3080_s17  ;;  %v1379_v54 = vmul.f32 %v3295_v50, %v3237_v34  ;;  %v1378_v55 = vmul.f32 %v3237_v34, %v62_v51  ;;  %v1644_v58 = vmul.f32 %v3237_v34, %v66_v48 }
  0x92   :  { %v215_v40 = vpop.permute.xlu0 %214  ;;  %v3330_v5 = vpop.permute.xlu1 %216  ;;  %v191_v30 = vmul.f32 %v3183_v11, %v181_v14  ;;  %v1085_v32 = vmul.f32 %v3222_v28, %v1080_v19  ;;  %v190_v33 = vmul.f32 %v3183_v11, %v180_v27  ;;  %v3373_v11 = vld [vmem:[%s3637_s0 + $0x8] sm:$0xff] }
  0x93   :  { %2898 = vmatprep.mubr.msk.f32.mxu0 %vm227_vm0, %v215_v40  ;;  %v1645_v40 = vmul.f32 %v3290_v49, %v3237_v34 }
  0x94   :  { %v201_v15 = vmul.f32 %v3193_v16, %v191_v30  ;;  %v200_v12 = vmul.f32 %v3193_v16, %v190_v33  ;;  %v1907_v16 = vmul.f32 %v3218_v25, %v3242_v35  ;;  %v3391_v35 = vld [vmem:[%s3637_s0 + $0x18] sm:$0xff] }
  0x95   :  { %992 = vrot.lane.b32.xlu0 %v983_v43, %s3080_s17  ;;  %990 = vrot.lane.b32.xlu1 %v982_v44, %s3080_s17 }
  0x96   :  { %v3332_v6 = vpop.permute.xlu0 %399  ;;  %v3345_v23 = vpop.permute.xlu1 %401  ;;  %v1909_v51 = vmul.f32 %v1907_v16, %v3222_v28 }
  0x99   :  { %1194 = vrot.lane.b32.xlu0 %v1185_v46, %s3081_s25  ;;  %1192 = vrot.lane.b32.xlu1 %v1184_v47, %s3081_s25  ;;  %v1908_v46 = vmul.f32 %v3252_v37, %v3218_v25 }
  0x9a   :  { %v3347_v26 = vpop.permute.xlu0 %502  ;;  %v3355_v20 = vpop.permute.xlu1 %504 }
  0x9b   :  { %v1910_v48 = vmul.f32 %v1908_v46, %v3222_v28  ;;  %v2005_v28 = vmul.f32 %v3229_v29, %v3234_v31 }
  0x9d   :  { %1290 = vrot.lane.b32.xlu0 %v1281_v52, %s3081_s25  ;;  %1288 = vrot.lane.b32.xlu1 %v1280_v53, %s3081_s25 }
  0x9e   :  { %v3357_v39 = vpop.permute.xlu0 %601  ;;  %v3363_v43 = vpop.permute.xlu1 %603 }
  0xa1   :  { %1388 = vrot.lane.b32.xlu0 %v1379_v54, %s3082_s16  ;;  %1386 = vrot.lane.b32.xlu1 %v1378_v55, %s3082_s16  ;;  %v2100_v55 = vmul.f32 %v3252_v37, %v3234_v31  ;;  %v2195_v31 = vmul.f32 %v3216_v24, %v3237_v34 }
  0xa2   :  { %v3365_v44 = vpop.permute.xlu0 %697 }
  0xa5   :  { %220 = vrot.lane.b32.xlu0 %v210_v57, %s3083_s3  ;;  %1652 = vrot.lane.b32.xlu1 %v1644_v58, %s3082_s16 }
  0xa6   :  { %v3384_v47 = vpop.permute.xlu0 %794 }
  0xa9   :  { %405 = vrot.lane.b32.xlu0 %v397_v61, %s3083_s3  ;;  %222 = vrot.lane.b32.xlu1 %v211_v62, %s3083_s3 }
  0xaa   :  { %v3395_v52 = vpop.permute.xlu0 %889 }
  0xad   :  { %510 = vrot.lane.b32.xlu0 %v501_v1, %s3084_s18  ;;  %407 = vrot.lane.b32.xlu1 %v398_v2, %s3083_s3 }
  0xae   :  { %v3408_v54 = vpop.permute.xlu0 %984 }
  0xb1   :  { %802 = vrot.lane.b32.xlu0 %v793_v8, %s3084_s18  ;;  %508 = vrot.lane.b32.xlu1 %v500_v13, %s3084_s18  ;;  %v171_v8 = vld [vmem:[%s3638_s1 + $0x8] sm:$0xff] }
  0xb2   :  { %v3418_v57 = vpop.permute.xlu0 %1087 }
  0xb5   :  { %1095 = vrot.lane.b32.xlu0 %v1086_v21, %s3085_s19  ;;  %800 = vrot.lane.b32.xlu1 %v792_v22, %s3084_s18 }
  0xb6   :  { %v3429_v58 = vpop.permute.xlu0 %1186 }
  0xb9   :  { %311 = vrot.lane.b32.xlu0 %v201_v15, %s3086_s20  ;;  %1093 = vrot.lane.b32.xlu1 %v1085_v32, %s3085_s19 }
  0xbd   :  { %1654 = vrot.lane.b32.xlu0 %v1645_v40, %s3082_s16  ;;  %309 = vrot.lane.b32.xlu1 %v200_v12, %s3086_s20 }
  0xc1   :  { %1646 = vrot.lane.b32.xlu0 %v3126_v9, %s3087_s21  ;;  %1561 = vrot.lane.b32.xlu1 %v3131_v10, %s3080_s17  ;;  %v3382_v9 = vpop.permute.xlu1 %699 }
  0xc5   :  { %1822 = vrot.lane.b32.xlu0 %v3373_v11, %s3068_s30  ;;  %1648 = vrot.lane.b32.xlu1 %v3131_v10, %s3087_s21  ;;  %v3393_v25 = vpop.permute.xlu1 %796 }
  0xc9   :  { %1919 = vrot.lane.b32.xlu0 %v1910_v48, %s3085_s19  ;;  %1917 = vrot.lane.b32.xlu1 %v1909_v51, %s3085_s19  ;;  %v3406_v53 = vpop.permute.xlu1 %891 }
  0xcd   :  { %1911 = vrot.lane.b32.xlu0 %v3373_v11, %s3064_s23  ;;  %1824 = vrot.lane.b32.xlu1 %v3391_v35, %s3068_s30  ;;  %v3416_v56 = vpop.permute.xlu1 %986 }
  0xd1   :  { %2014 = vrot.lane.b32.xlu0 %v2005_v28, %s3081_s25  ;;  %2012 = vrot.lane.b32.xlu1 %v3247_v36, %s3081_s25  ;;  %v3427_v36 = vpop.permute.xlu1 %1089 }
  0xd5   :  { %2006 = vrot.lane.b32.xlu0 %v3373_v11, %s3069_s6  ;;  %1913 = vrot.lane.b32.xlu1 %v3391_v35, %s3064_s23  ;;  %v3436_v59 = vpop.permute.xlu1 %1188 }
  0xd9   :  { %2109 = vrot.lane.b32.xlu0 %v2100_v55, %s3081_s25  ;;  %2107 = vrot.lane.b32.xlu1 %v3264_v41, %s3081_s25  ;;  %v3438_v41 = vpop.permute.xlu0 %1282  ;;  %v3448_v60 = vpop.permute.xlu1 %1284 }
  0xdd   :  { %2101 = vrot.lane.b32.xlu0 %v3373_v11, %s3070_s7  ;;  %2008 = vrot.lane.b32.xlu1 %v3391_v35, %s3069_s6  ;;  %v3450_v61 = vpop.permute.xlu0 %1380  ;;  %v3458_v62 = vpop.permute.xlu1 %1382 }
  0xe1   :  { %2204 = vrot.lane.b32.xlu0 %v2195_v31, %s3082_s16  ;;  %2202 = vrot.lane.b32.xlu1 %v3268_v42, %s3082_s16  ;;  %v2460_v42 = vmul.f32 %v3252_v37, %v3237_v34  ;;  %v3460_v63 = vpop.permute.xlu0 %1474  ;;  %v3467_v0 = vpop.permute.xlu1 %1476  ;;  %v3088_v34 = vmov 0  }
  0xe2   :  { %3060 = vset.pattern.permute.xlu1 %v3088_v34  ;;  %3059 = vset.pattern.permute.xlu0 %v3088_v34 }
  0xe5   :  { %2196 = vrot.lane.b32.xlu0 %v3373_v11, %s3071_s8  ;;  %2103 = vrot.lane.b32.xlu1 %v3391_v35, %s3070_s7  ;;  %v3469_v1 = vpop.permute.xlu0 %1559 }
  0xe9   :  { %2289 = vrot.lane.b32.xlu0 %v3373_v11, %s3072_s9  ;;  %2198 = vrot.lane.b32.xlu1 %v3391_v35, %s3071_s8 }
  0xed   :  { %2374 = vrot.lane.b32.xlu0 %v3373_v11, %s3073_s10  ;;  %2291 = vrot.lane.b32.xlu1 %v3391_v35, %s3072_s9 }
  0xf1   :  { %2469 = vrot.lane.b32.xlu0 %v2460_v42, %s3082_s16  ;;  %2467 = vrot.lane.b32.xlu1 %v3275_v45, %s3082_s16 }
  0xf5   :  { %2376 = vrot.lane.b32.xlu1 %v3391_v35, %s3073_s10  ;;  %2461 = vrot.lane.b32.xlu0 %v3373_v11, %s3074_s11 }
  0xf9   :  { %2463 = vrot.lane.b32.xlu1 %v3391_v35, %s3074_s11  ;;  %2554 = vrot.lane.b32.xlu0 %v3373_v11, %s3075_s12 }
  0xfb   :  { %v610_v45 = vpop.permute.xlu0 %609  ;;  %v608_v2 = vpop.permute.xlu1 %607 }
  0xfc   :  { %v612_v55 = vsel %vm611_vm2, %v608_v2, %v610_v45 }
  0xfd   :  { %2556 = vrot.lane.b32.xlu1 %v3391_v35, %s3075_s12  ;;  %2639 = vrot.lane.b32.xlu0 %v3373_v11, %s3076_s13 }
  0xff   :  { %v3484_v4 = vpop.permute.xlu0 %705  ;;  %v3486_v7 = vpop.permute.xlu1 %703 }
 0x101   :  { %2641 = vrot.lane.b32.xlu1 %v3391_v35, %s3076_s13  ;;  %2726 = vperm.xlu0 %3059, %v170_v3  }
 0x103   :  { %v3493_v13 = vpop.permute.xlu0 %897  ;;  %v3495_v14 = vpop.permute.xlu1 %895 }
 0x105   :  { %2731 = vperm.xlu1 %3060, %v171_v8  }
 0x107   :  { %v993_v18 = vpop.permute.xlu0 %992  ;;  %v991_v19 = vpop.permute.xlu1 %990 }
 0x10b   :  { %v1195_v21 = vpop.permute.xlu0 %1194  ;;  %v1193_v22 = vpop.permute.xlu1 %1192 }
 0x10f   :  { %v3497_v27 = vpop.permute.xlu0 %1290  ;;  %v3499_v30 = vpop.permute.xlu1 %1288 }
 0x113   :  { %v1389_v15 = vpop.permute.xlu0 %1388  ;;  %v1387_v32 = vpop.permute.xlu1 %1386 }
 0x117   :  { %v221_v33 = vpop.permute.xlu0 %220  ;;  %v3501_v12 = vpop.permute.xlu1 %1652 }
 0x11b   :  { %v406_v40 = vpop.permute.xlu0 %405  ;;  %v223_v16 = vpop.permute.xlu1 %222 }
 0x11c   :  { %v225_v46 = vsel %vm224_vm1, %v221_v33, %v223_v16 }
 0x11d   :  { %2896 = vmatprep.subr.mxu0 %v225_v46 }
 0x11e   :  { %2897 = vmatpush3.msra.mxu0 %v225_v46 }
 0x11f   :  { %v511_v48 = vpop.permute.xlu0 %510  ;;  %2899 = vmatmul.mubr.msk.f32.vlgmr.msra.gmra.mxu0 %vm227_vm0, %v3330_v5  ;;  %v408_v51 = vpop.permute.xlu1 %407 }
 0x120   :  { %2908 = vmatprep.mubr.msk.f32.mxu0 %vm227_vm0, %v3332_v6  ;;  %v409_v28 = vsel %vm224_vm1, %v406_v40, %v408_v51 }
 0x121   :  { %2906 = vmatprep.subr.mxu0 %v409_v28 }
 0x122   :  { %2907 = vmatpush3.msra.mxu0 %v409_v28 }
 0x123   :  { %v803_v31 = vpop.permute.xlu0 %802  ;;  %2909 = vmatmul.mubr.msk.f32.vlgmr.msra.gmra.mxu0 %vm227_vm0, %v3345_v23  ;;  %2916 = vmatprep.subr.mxu0 %v612_v55  ;;  %v509_v42 = vpop.permute.xlu1 %508  ;;  %v994_v23 = vsel %vm611_vm2, %v991_v19, %v993_v18 }
 0x124   :  { %2917 = vmatpush3.msra.mxu0 %v612_v55  ;;  %2918 = vmatprep.mubr.msk.f32.mxu0 %vm227_vm0, %v3357_v39 }
 0x127   :  { %v1096_v5 = vpop.permute.xlu0 %1095  ;;  %2919 = vmatmul.mubr.msk.f32.vlgmr.msra.gmra.mxu0 %vm227_vm0, %v3363_v43  ;;  %v801_v6 = vpop.permute.xlu1 %800  ;;  %v1197_v43 = vsel %vm1196_vm4, %v1193_v22, %v1195_v21 }
 0x128   :  { %2928 = vmatprep.mubr.msk.f32.mxu0 %vm227_vm0, %v3384_v47  ;;  %v804_v34 = vsel %vm512_vm3, %v801_v6, %v803_v31 }
 0x129   :  { %2926 = vmatprep.subr.mxu0 %v804_v34 }
 0x12a   :  { %2927 = vmatpush3.msra.mxu0 %v804_v34 }
 0x12b   :  { %v312_v45 = vpop.permute.xlu0 %311  ;;  %2929 = vmatmul.mubr.msk.f32.vlgmr.msra.gmra.mxu0 %vm227_vm0, %v3393_v25  ;;  %2936 = vmatprep.subr.mxu0 %v994_v23  ;;  %v1094_v39 = vpop.permute.xlu1 %1093  ;;  %v1391_v25 = vsel %vm1390_vm5, %v1387_v32, %v1389_v15 }
 0x12c   :  { %2937 = vmatpush3.msra.mxu0 %v994_v23  ;;  %2938 = vmatprep.mubr.msk.f32.mxu0 %vm227_vm0, %v3408_v54  ;;  %v513_v54 = vsel %vm512_vm3, %v509_v42, %v511_v48 }
 0x12d   :  { %2946 = vmatprep.subr.mxu0 %v1197_v43 }
 0x12f   :  { %v3523_v47 = vpop.permute.xlu0 %1654  ;;  %2939 = vmatmul.mubr.msk.f32.vlgmr.msra.gmra.mxu0 %vm227_vm0, %v3416_v56  ;;  %v310_v2 = vpop.permute.xlu1 %309 }
 0x130   :  { %2947 = vmatpush3.msra.mxu0 %v1197_v43  ;;  %2948 = vmatprep.mubr.msk.f32.mxu0 %vm227_vm0, %v3429_v58  ;;  %v314_v3 = vsel %vm313_vm6, %v310_v2, %v312_v45  ;;  %v707_v58 = vsel %vm611_vm2, %v3486_v7, %v3484_v4 }
 0x131   :  { %2956 = vmatprep.subr.mxu0 %v1391_v25  ;;  %2901 = vmatprep.subr.mxu1 %v314_v3 }
 0x132   :  { %2902 = vmatpush3.msra.mxu1 %v314_v3 }
 0x133   :  { %v3531_v8 = vpop.permute.xlu0 %1646  ;;  %2904 = vmatmul.mubr.msk.f32.vlgmr.msra.gmra.mxu1 %vm227_vm0, %v3131_v10  ;;  %2911 = vmatprep.subr.mxu1 %v513_v54  ;;  %v1562_v56 = vpop.permute.xlu1 %1561 }
 0x134   :  { %2949 = vmatmul.mubr.msk.f32.vlgmr.msra.gmra.mxu0 %vm227_vm0, %v3436_v59  ;;  %2912 = vmatpush3.msra.mxu1 %v513_v54 }
 0x135   :  { %2957 = vmatpush3.msra.mxu0 %v1391_v25  ;;  %2913 = vmatprep.mubr.msk.f32.mxu1 %vm227_vm0, %v3347_v26  ;;  %v899_v26 = vsel %vm611_vm2, %v3495_v14, %v3493_v13 }
 0x136   :  { %2958 = vmatprep.mubr.msk.f32.mxu0 %vm227_vm0, %v3450_v61  ;;  %2921 = vmatprep.subr.mxu1 %v707_v58  ;;  %v1098_v61 = vsel %vm1097_vm7, %v1094_v39, %v1096_v5 }
 0x137   :  { %v3544_v18 = vpop.permute.xlu0 %1822  ;;  %2914 = vmatmul.mubr.msk.f32.vlgmr.msra.gmra.mxu1 %vm227_vm0, %v3355_v20  ;;  %v1649_v10 = vpop.permute.xlu1 %1648  ;;  %2966 = vmatprep.subr.mxu0 %v3295_v50 }
 0x138   :  { %2922 = vmatpush3.msra.mxu1 %v707_v58  ;;  %2959 = vmatmul.mubr.msk.f32.vlgmr.msra.gmra.mxu0 %vm227_vm0, %v3458_v62 }
 0x139   :  { %2923 = vmatprep.mubr.msk.f32.mxu1 %vm227_vm0, %v3365_v44  ;;  %2931 = vmatprep.subr.mxu1 %v899_v26 }
 0x13a   :  { %2968 = vmatprep.mubr.msk.f32.mxu0 %vm227_vm0, %v3469_v1  ;;  %2967 = vmatpush3.msra.mxu0 %v3295_v50 }
 0x13b   :  { %v1920_v20 = vpop.permute.xlu0 %1919  ;;  %2924 = vmatmul.mubr.msk.f32.vlgmr.msra.gmra.mxu1 %vm227_vm0, %v3382_v9  ;;  %2976 = vmatprep.subr.mxu0 %v3257_v38  ;;  %v1918_v59 = vpop.permute.xlu1 %1917 }
 0x13c   :  { %2932 = vmatpush3.msra.mxu1 %v899_v26  ;;  %2969 = vmatmul.mubr.msk.f32.vlgmr.msra.gmra.mxu0 %vm227_vm0, %v1562_v56  ;;  %v1921_v62 = vsel %vm1097_vm7, %v1918_v59, %v1920_v20 }
 0x13d   :  { %2933 = vmatprep.mubr.msk.f32.mxu1 %vm227_vm0, %v3395_v52  ;;  %2941 = vmatprep.subr.mxu1 %v1098_v61 }
 0x13e   :  { %2977 = vmatpush3.msra.mxu0 %v3257_v38  ;;  %2978 = vmatprep.mubr.msk.f32.mxu0 %vm227_vm0, %v3373_v11  ;;  %v1292_v38 = vsel %vm1196_vm4, %v3499_v30, %v3497_v27  ;;  %v2753_v11 = vld [vmem:[%s3641_s4 + $0x8] sm:$0xff] }
 0x13f   :  { %2986 = vmatprep.subr.mxu0 %v1921_v62  ;;  %v1912_v50 = vpop.permute.xlu0 %1911  ;;  %2934 = vmatmul.mubr.msk.f32.vlgmr.msra.gmra.mxu1 %vm227_vm0, %v3406_v53  ;;  %v1825_v44 = vpop.permute.xlu1 %1824 }
 0x140   :  { %2942 = vmatpush3.msra.mxu1 %v1098_v61  ;;  %2979 = vmatmul.mubr.msk.f32.vlgmr.msra.gmra.mxu0 %vm227_vm0, %v3391_v35 }
 0x141   :  { %2987 = vmatpush3.msra.mxu0 %v1921_v62  ;;  %2943 = vmatprep.mubr.msk.f32.mxu1 %vm227_vm0, %v3418_v57  ;;  %v1656_v57 = vsel %vm1390_vm5, %v3501_v12, %v3523_v47 }
 0x142   :  { %2951 = vmatprep.subr.mxu1 %v1292_v38  ;;  %2988 = vmatprep.mubr.msk.f32.mxu0 %vm227_vm0, %v1912_v50 }
 0x143   :  { %v2015_v9 = vpop.permute.xlu0 %2014  ;;  %2944 = vmatmul.mubr.msk.f32.vlgmr.msra.gmra.mxu1 %vm227_vm0, %v3427_v36  ;;  %v2013_v35 = vpop.permute.xlu1 %2012 }
 0x144   :  { %2952 = vmatpush3.msra.mxu1 %v1292_v38  ;;  %2953 = vmatprep.mubr.msk.f32.mxu1 %vm227_vm0, %v3438_v41 }
 0x145   :  { %2961 = vmatprep.subr.mxu1 %v2753_v11 }
 0x147   :  { %v2007_v52 = vpop.permute.xlu0 %2006  ;;  %2954 = vmatmul.mubr.msk.f32.vlgmr.msra.gmra.mxu1 %vm227_vm0, %v3448_v60  ;;  %v1914_v53 = vpop.permute.xlu1 %1913 }
 0x148   :  { %2962 = vmatpush3.msra.mxu1 %v2753_v11  ;;  %2963 = vmatprep.mubr.msk.f32.mxu1 %vm227_vm0, %v3460_v63 }
 0x149   :  { %2971 = vmatprep.subr.mxu1 %v1656_v57  ;;  %2989 = vmatmul.mubr.msk.f32.vlgmr.msra.gmra.mxu0 %vm227_vm0, %v1914_v53 }
 0x14b   :  { %v2110_v36 = vpop.permute.xlu0 %2109  ;;  %2964 = vmatmul.mubr.msk.f32.vlgmr.msra.gmra.mxu1 %vm227_vm0, %v3467_v0  ;;  %v2108_v41 = vpop.permute.xlu1 %2107  ;;  %v2016_v0 = vsel %vm1196_vm4, %v2013_v35, %v2015_v9 }
 0x14c   :  { %2972 = vmatpush3.msra.mxu1 %v1656_v57  ;;  %2973 = vmatprep.mubr.msk.f32.mxu1 %vm227_vm0, %v3531_v8  ;;  %v2111_v60 = vsel %vm1196_vm4, %v2108_v41, %v2110_v36 }
 0x14d   :  { %2996 = vmatprep.subr.mxu0 %v2111_v60  ;;  %2981 = vmatprep.subr.mxu1 %v3290_v49 }
 0x14e   :  { %2997 = vmatpush3.msra.mxu0 %v2111_v60 }
 0x14f   :  { %v2102_v63 = vpop.permute.xlu0 %2101  ;;  %2974 = vmatmul.mubr.msk.f32.vlgmr.msra.gmra.mxu1 %vm227_vm0, %v1649_v10  ;;  %v2009_v1 = vpop.permute.xlu1 %2008  ;;  %3006 = vmatprep.subr.mxu0 %v3198_v17 }
 0x150   :  { %2982 = vmatpush3.msra.mxu1 %v3290_v49  ;;  %2983 = vmatprep.mubr.msk.f32.mxu1 %vm227_vm0, %v3544_v18 }
 0x151   :  { %2991 = vmatprep.subr.mxu1 %v2016_v0  ;;  %2998 = vmatprep.mubr.msk.f32.mxu0 %vm227_vm0, %v2102_v63 }
 0x153   :  { %v2205_v4 = vpop.permute.xlu0 %2204  ;;  %2984 = vmatmul.mubr.msk.f32.vlgmr.msra.gmra.mxu1 %vm227_vm0, %v1825_v44  ;;  %v2203_v7 = vpop.permute.xlu1 %2202 }
 0x154   :  { %2992 = vmatpush3.msra.mxu1 %v2016_v0  ;;  %2993 = vmatprep.mubr.msk.f32.mxu1 %vm227_vm0, %v2007_v52  ;;  %v2206_v13 = vsel %vm1390_vm5, %v2203_v7, %v2205_v4 }
 0x155   :  { %3001 = vmatprep.subr.mxu1 %v2206_v13 }
 0x157   :  { %v2197_v14 = vpop.permute.xlu0 %2196  ;;  %2994 = vmatmul.mubr.msk.f32.vlgmr.msra.gmra.mxu1 %vm227_vm0, %v2009_v1  ;;  %v2104_v49 = vpop.permute.xlu1 %2103 }
 0x158   :  { %3002 = vmatpush3.msra.mxu1 %v2206_v13  ;;  %2999 = vmatmul.mubr.msk.f32.vlgmr.msra.gmra.mxu0 %vm227_vm0, %v2104_v49 }
 0x159   :  { %3003 = vmatprep.mubr.msk.f32.mxu1 %vm227_vm0, %v2197_v14  ;;  %3007 = vmatpush3.msra.mxu0 %v3198_v17 }
 0x15a   :  { %3011 = vmatprep.subr.mxu1 %v3216_v24 }
 0x15b   :  { %v2290_v19 = vpop.permute.xlu0 %2289  ;;  %v2199_v21 = vpop.permute.xlu1 %2198 }
 0x15c   :  { %3004 = vmatmul.mubr.msk.f32.vlgmr.msra.gmra.mxu1 %vm227_vm0, %v2199_v21  ;;  %3008 = vmatprep.mubr.msk.f32.mxu0 %vm227_vm0, %v2290_v19 }
 0x15d   :  { %3012 = vmatpush3.msra.mxu1 %v3216_v24 }
 0x15e   :  { %3021 = vmatprep.subr.mxu1 %v3229_v29 }
 0x15f   :  { %v2375_v22 = vpop.permute.xlu0 %2374  ;;  %v2292_v27 = vpop.permute.xlu1 %2291 }
 0x160   :  { %3009 = vmatmul.mubr.msk.f32.vlgmr.msra.gmra.mxu0 %vm227_vm0, %v2292_v27  ;;  %3013 = vmatprep.mubr.msk.f32.mxu1 %vm227_vm0, %v2375_v22 }
 0x163   :  { %v2470_v30 = vpop.permute.xlu0 %2469  ;;  %v2468_v17 = vpop.permute.xlu1 %2467 }
 0x164   :  { %v2471_v15 = vsel %vm1390_vm5, %v2468_v17, %v2470_v30 }
 0x165   :  { %3016 = vmatprep.subr.mxu0 %v2471_v15 }
 0x166   :  { %3017 = vmatpush3.msra.mxu0 %v2471_v15 }
 0x167   :  { %v2377_v32 = vpop.permute.xlu1 %2376  ;;  %v2462_v33 = vpop.permute.xlu0 %2461  ;;  %3026 = vmatprep.subr.mxu0 %v3252_v37 }
 0x168   :  { %3014 = vmatmul.mubr.msk.f32.vlgmr.msra.gmra.mxu1 %vm227_vm0, %v2377_v32  ;;  %3018 = vmatprep.mubr.msk.f32.mxu0 %vm227_vm0, %v2462_v33 }
 0x169   :  { %3022 = vmatpush3.msra.mxu1 %v3229_v29 }
 0x16b   :  { %v2464_v24 = vpop.permute.xlu1 %2463  ;;  %v2555_v12 = vpop.permute.xlu0 %2554 }
 0x16c   :  { %3019 = vmatmul.mubr.msk.f32.vlgmr.msra.gmra.mxu0 %vm227_vm0, %v2464_v24  ;;  %3023 = vmatprep.mubr.msk.f32.mxu1 %vm227_vm0, %v2555_v12 }
 0x16d   :  { %3027 = vmatpush3.msra.mxu0 %v3252_v37 }
 0x16f   :  { %v2557_v40 = vpop.permute.xlu1 %2556  ;;  %v2640_v16 = vpop.permute.xlu0 %2639 }
 0x170   :  { %3024 = vmatmul.mubr.msk.f32.vlgmr.msra.gmra.mxu1 %vm227_vm0, %v2557_v40  ;;  %3028 = vmatprep.mubr.msk.f32.mxu0 %vm227_vm0, %v2640_v16 }
 0x173   :  { %v2642_v46 = vpop.permute.xlu1 %2641 }
 0x174   :  { %3029 = vmatmul.mubr.msk.f32.vlgmr.msra.gmra.mxu0 %vm227_vm0, %v2642_v46 }
 0x1df   :  { %v2900_v48 = vpop.f32.mrf.mxu0 }
 0x1e1   :  { %v298_v51 = vpop.f32.mrf.mxu0 }
 0x1e3   :  { %v2910_v29 = vpop.f32.mrf.mxu0 }
 0x1e5   :  { %v481_v28 = vpop.f32.mrf.mxu0 }
 0x1e7   :  { %v2920_v55 = vpop.f32.mrf.mxu0 }
 0x1e9   :  { %v684_v31 = vpop.f32.mrf.mxu0 }
 0x1eb   :  { %v2930_v42 = vpop.f32.mrf.mxu0 }
 0x1ed   :  { %v876_v5 = vpop.f32.mrf.mxu0 }
 0x1ef   :  { %v2940_v34 = vpop.f32.mrf.mxu0 }
 0x1f1   :  { %v1066_v47 = vpop.f32.mrf.mxu0 }
 0x1f3   :  { %v2905_v6 = vpop.f32.mrf.mxu1 }
 0x1f4   :  { %v392_v37 = vadd.f32 %v2905_v6, %v2900_v48  ;;  %v2950_v58 = vpop.f32.mrf.mxu0 }
 0x1f5   :  { %v386_v23 = vpop.f32.mrf.mxu1 }
 0x1f6   :  { %v387_v45 = vadd.f32 %v386_v23, %v298_v51  ;;  %v491_v39 = vadd.f32 %v2910_v29, %v392_v37  ;;  %v1269_v62 = vpop.f32.mrf.mxu0 }
 0x1f7   :  { %v2915_v43 = vpop.f32.mrf.mxu1 }
 0x1f8   :  { %v595_v2 = vadd.f32 %v2915_v43, %v491_v39  ;;  %v490_v25 = vadd.f32 %v481_v28, %v387_v45  ;;  %v2960_v52 = vpop.f32.mrf.mxu0 }
 0x1f9   :  { %v585_v3 = vpop.f32.mrf.mxu1 }
 0x1fa   :  { %v594_v54 = vadd.f32 %v585_v3, %v490_v25  ;;  %v694_v8 = vadd.f32 %v2920_v55, %v595_v2  ;;  %v1463_v1 = vpop.f32.mrf.mxu0 }
 0x1fb   :  { %v2925_v56 = vpop.f32.mrf.mxu1 }
 0x1fc   :  { %v789_v18 = vadd.f32 %v2925_v56, %v694_v8  ;;  %v693_v10 = vadd.f32 %v684_v31, %v594_v54  ;;  %v2970_v19 = vpop.f32.mrf.mxu0 }
 0x1fd   :  { %v779_v26 = vpop.f32.mrf.mxu1 }
 0x1fe   :  { %v788_v20 = vadd.f32 %v779_v26, %v693_v10  ;;  %v886_v59 = vadd.f32 %v2930_v42, %v789_v18  ;;  %v1633_v32 = vpop.f32.mrf.mxu0 }
 0x1ff   :  { %v2935_v61 = vpop.f32.mrf.mxu1 }
 0x200   :  { %v981_v50 = vadd.f32 %v2935_v61, %v886_v59  ;;  %v885_v44 = vadd.f32 %v876_v5, %v788_v20  ;;  %v2980_v12 = vpop.f32.mrf.mxu0 }
 0x201   :  { %v971_v38 = vpop.f32.mrf.mxu1 }
 0x202   :  { %v980_v11 = vadd.f32 %v971_v38, %v885_v44  ;;  %v1076_v9 = vadd.f32 %v2940_v34, %v981_v50  ;;  %v1811_v48 = vpop.f32.mrf.mxu0 }
 0x203   :  { %v2945_v35 = vpop.f32.mrf.mxu1 }
 0x204   :  { %v1180_v53 = vadd.f32 %v2945_v35, %v1076_v9  ;;  %v1075_v57 = vadd.f32 %v1066_v47, %v980_v11 }
 0x205   :  { %v1170_v36 = vpop.f32.mrf.mxu1 }
 0x206   :  { %v1179_v41 = vadd.f32 %v1170_v36, %v1075_v57  ;;  %v1279_v60 = vadd.f32 %v2950_v58, %v1180_v53  ;;  %v2732_v57 = vpop.permute.xlu1 %2731 }
 0x207   :  { %v2955_v63 = vpop.f32.mrf.mxu1 }
 0x208   :  { %v1374_v0 = vadd.f32 %v2955_v63, %v1279_v60  ;;  %v1278_v4 = vadd.f32 %v1269_v62, %v1179_v41  ;;  %v2727_v63 = vpop.permute.xlu0 %2726 }
 0x209   :  { %v1364_v7 = vpop.f32.mrf.mxu1  ;;  %v2990_v55 = vpop.f32.mrf.mxu0 }
 0x20a   :  { %v1373_v13 = vadd.f32 %v1364_v7, %v1278_v4  ;;  %v1473_v14 = vadd.f32 %v2960_v52, %v1374_v0 }
 0x20b   :  { %v2965_v49 = vpop.f32.mrf.mxu1  ;;  %v1993_v6 = vpop.f32.mrf.mxu0 }
 0x20c   :  { %v1558_v21 = vadd.f32 %v2965_v49, %v1473_v14  ;;  %v1472_v22 = vadd.f32 %v1463_v1, %v1373_v13 }
 0x20d   :  { %v1548_v27 = vpop.f32.mrf.mxu1 }
 0x20e   :  { %v1557_v30 = vadd.f32 %v1548_v27, %v1472_v22  ;;  %v1643_v17 = vadd.f32 %v2970_v19, %v1558_v21 }
 0x20f   :  { %v2975_v15 = vpop.f32.mrf.mxu1 }
 0x210   :  { %v1642_v33 = vadd.f32 %v1633_v32, %v1557_v30  ;;  %v1738_v40 = vadd.f32 %v2975_v15, %v1643_v17 }
 0x211   :  { %v1728_v24 = vpop.f32.mrf.mxu1 }
 0x212   :  { %v1737_v46 = vadd.f32 %v1728_v24, %v1642_v33  ;;  %v1821_v51 = vadd.f32 %v2980_v12, %v1738_v40 }
 0x213   :  { %v2985_v16 = vpop.f32.mrf.mxu1 }
 0x214   :  { %v1820_v28 = vadd.f32 %v1811_v48, %v1737_v46  ;;  %v1906_v31 = vadd.f32 %v2985_v16, %v1821_v51 }
 0x215   :  { %v1896_v29 = vpop.f32.mrf.mxu1 }
 0x216   :  { %v1905_v5 = vadd.f32 %v1896_v29, %v1820_v28  ;;  %v2003_v34 = vadd.f32 %v2990_v55, %v1906_v31 }
 0x217   :  { %v2995_v42 = vpop.f32.mrf.mxu1 }
 0x218   :  { %v3000_v37 = vpop.f32.mrf.mxu0  ;;  %v2002_v45 = vadd.f32 %v1993_v6, %v1905_v5  ;;  %v2098_v39 = vadd.f32 %v2995_v42, %v2003_v34 }
 0x219   :  { %v2088_v23 = vpop.f32.mrf.mxu1 }
 0x21a   :  { %v2183_v43 = vpop.f32.mrf.mxu0  ;;  %v2097_v2 = vadd.f32 %v2088_v23, %v2002_v45  ;;  %v2193_v3 = vadd.f32 %v3000_v37, %v2098_v39 }
 0x21c   :  { %v3005_v47 = vpop.f32.mrf.mxu1  ;;  %v2192_v8 = vadd.f32 %v2183_v43, %v2097_v2 }
 0x21d   :  { %v2288_v18 = vadd.f32 %v3005_v47, %v2193_v3 }
 0x21e   :  { %v2278_v54 = vpop.f32.mrf.mxu1 }
 0x21f   :  { %v2287_v26 = vadd.f32 %v2278_v54, %v2192_v8 }
 0x220   :  { %v3010_v25 = vpop.f32.mrf.mxu0 }
 0x221   :  { %v2373_v20 = vadd.f32 %v3010_v25, %v2288_v18 }
 0x222   :  { %v2363_v56 = vpop.f32.mrf.mxu0 }
 0x223   :  { %v2372_v61 = vadd.f32 %v2363_v56, %v2287_v26 }
 0x228   :  { %v3015_v58 = vpop.f32.mrf.mxu1 }
 0x229   :  { %v2458_v62 = vadd.f32 %v3015_v58, %v2373_v20 }
 0x22a   :  { %v2448_v59 = vpop.f32.mrf.mxu1 }
 0x22b   :  { %v2457_v38 = vadd.f32 %v2448_v59, %v2372_v61 }
 0x22c   :  { %v3020_v10 = vpop.f32.mrf.mxu0 }
 0x22d   :  { %v2553_v11 = vadd.f32 %v3020_v10, %v2458_v62 }
 0x22e   :  { %v2543_v50 = vpop.f32.mrf.mxu0 }
 0x22f   :  { %v2552_v35 = vadd.f32 %v2543_v50, %v2457_v38 }
 0x230   :  { %v3025_v44 = vpop.f32.mrf.mxu1 }
 0x231   :  { %v2638_v52 = vadd.f32 %v3025_v44, %v2553_v11 }
 0x232   :  { %v2628_v9 = vpop.f32.mrf.mxu1 }
 0x233   :  { %v2637_v36 = vadd.f32 %v2628_v9, %v2552_v35 }
 0x234   :  { %v3030_v53 = vpop.f32.mrf.mxu0 }
 0x235   :  { %v2723_v41 = vadd.f32 %v3030_v53, %v2638_v52 }
 0x236   :  { %v2713_v60 = vpop.f32.mrf.mxu0 }
 0x237   :  { %v2722_v1 = vadd.f32 %v2713_v60, %v2637_v36  ;;  %v2735_v0 = vadd.f32 %v2732_v57, %v2723_v41 }
 0x239   :  { %v2737_v4 = vmax.f32 %v2735_v0, 0.0  ;;  %v2734_v7 = vadd.f32 %v2727_v63, %v2722_v1 }
 0x23b   :  { %2739 = vst [vmem:[%s3642_s5 + $0x8] sm:$0xff] %v2737_v4  ;;  %v2736_v13 = vmax.f32 %v2734_v7, 0.0 }
 0x23d   :  { %2738 = vst [vmem:[%s3642_s5] sm:$0xff] %v2736_v13 }

// kernel: _lambda_.9
= control target key start
LH: loop header
LB: loop body
LE: loop exit
PB: predicated region body
PF: predicated region fallthrough
CT: control target
= control target key end

     0   :  { %v165_v1 = vlaneseq  ;;  %s3723_s23 = smov 112   ;;  %vm238_vm0 = vcmask 130048   ;;  %s4662_s26 = smov 107   ;;  %vm233_vm1 = vcmask 162816   ;;  %vm330_vm2 = vcmask 171008   ;;  %s4655_s0 = inlined_call_operand.vmem [shape: f32[16,432], index: 0, kind: input, shape index: {}]   ;;  %s4656_s1 = inlined_call_operand.vmem [shape: f32[16,1], index: 1, kind: input, shape index: {}]   ;;  %s4657_s2 = inlined_call_operand.vmem [shape: f32[6,128], index: 2, kind: input, shape index: {}]   ;;  %s4658_s3 = inlined_call_operand.vmem [shape: f32[16,384], index: 3, kind: input, shape index: {}, may-alias: {3,4,5}]   ;;  %s4659_s4 = inlined_call_operand.vmem [shape: f32[16,384], index: 4, kind: input, shape index: {}, may-alias: {3,4,5}]   ;;  %s4660_s5 = inlined_call_operand.vmem [shape: f32[16,384], index: 5, kind: input, shape index: {}, may-alias: {3,4,5}]   ;;  %s4661_s6 = inlined_call_operand.vmem [shape: f32[16,128], index: 6, kind: output, shape index: {}]  }
   0x1   :  { %v3793_v0 = vld [vmem:[%s4655_s0] sm:$0xff]  ;;  %s4666_s27 = smov 109   ;;  %s3727_s30 = smov 96   ;;  %v3922_v22 = vld [vmem:[%s4659_s4 + $0x8] sm:$0xff]  ;;  %v3939_v28 = vld [vmem:[%s4658_s3 + $0x18] sm:$0xff]  ;;  %vm456_vm3 = vcmask 154624  }
   0x2   :  { %217 = vrot.lane.b32.xlu1 %v3793_v0, %s3723_s23  ;;  %v166_v2 = vshrl.u32 %v165_v1, 7  ;;  %3509 = vmatprep.mubr.msk.f32.mxu1 %vm238_vm0, %v3793_v0  ;;  %v154_v3 = vld [vmem:[%s4657_s2] sm:$0x3f]  ;;  %s4664_s2 = smov 108   ;;  %s4668_s7 = smov 111   ;;  %vm572_vm4 = vcmask 138240  }
   0x3   :  { %v3822_v14 = vld [vmem:[%s4655_s0 + $0x20] sm:$0xff]  ;;  %s4670_s8 = smov 113   ;;  %s4672_s9 = smov 115   ;;  %vm796_vm5 = vcmask 121856   ;;  %vm924_vm6 = vcmask 105472   ;;  %vm1040_vm7 = vcmask 97280  }
   0x4   :  { %v167_v4 = vsub.s32 0, %v166_v2  ;;  %v191_v5 = vsub.s32 2, %v166_v2  ;;  %v179_v6 = vsub.s32 1, %v166_v2  ;;  %v2232_v7 = vsub.s32 5, %v166_v2  ;;  %s4676_s10 = smov 117   ;;  %s4674_s11 = smov 116  }
   0x5   :  { %v430_v12 = vsub.s32 3, %v166_v2  ;;  %v891_v15 = vsub.s32 4, %v166_v2  ;;  %s4678_s12 = smov 123   ;;  %s4680_s13 = smov 124   ;;  %v3927_v23 = vld [vmem:[%s4658_s3] sm:$0xff]  ;;  %vm1159_vm8 = vcmask 89088  }
   0x6   :  { %v168_v8 = vrot.slane %v154_v3, %v167_v4  ;;  %v3802_v9 = vrot.slane %v154_v3, %v191_v5  ;;  %v3804_v10 = vrot.slane %v154_v3, %v2232_v7  ;;  %v3809_v11 = vrot.slane %v154_v3, %v179_v6  ;;  %s3735_s14 = smov 125   ;;  %s3736_s15 = smov 1   ;;  %v3934_v27 = vld [vmem:[%s4659_s4 + $0x20] sm:$0xff] }
   0x7   :  { %v3817_v13 = vrot.slane %v154_v3, %v430_v12  ;;  %v3842_v16 = vrot.slane %v154_v3, %v891_v15  ;;  %s3737_s16 = smov 127   ;;  %s3738_s17 = smov 3   ;;  %vm1277_vm9 = vcmask 39936   ;;  %vm1386_vm10 = vcmask 31744  }
   0x8   :  { %170 = vrot.lane.b32.xlu0 %v168_v8, %s4662_s26  ;;  %194 = vrot.lane.b32.xlu1 %v3802_v9, %s4662_s26  ;;  %s3739_s18 = smov 5   ;;  %s3740_s19 = smov 4   ;;  %vm1502_vm11 = vcmask 23552   ;;  %vm1611_vm12 = vcmask 7168   ;;  %vm1805_vm13 = vcmask 1039360   ;;  %vm1921_vm14 = vcmask 1022976  }
   0x9   :  { %s3741_s20 = smov 11   ;;  %s3742_s21 = smov 13   ;;  %vm2026_vm15 = vcmask 1014784  }
   0xa   :  { %s3743_s22 = smov 12   ;;  %s3744_s24 = smov 15  }
   0xb   :  { %s3745_s25 = smov 16   ;;  %s3746_s28 = smov 19  }
   0xc   :  { %182 = vrot.lane.b32.xlu0 %v3809_v11, %s4662_s26  ;;  %201 = vrot.lane.b32.xlu1 %v168_v8, %s4664_s2  ;;  %s3747_s29 = smov 17   ;;  %s3748_s26 = smov 20  }
   0xd   :  { %s3750_s3 = smov 80  }
  0x10   :  { %208 = vrot.lane.b32.xlu0 %v3809_v11, %s4664_s2  ;;  %414 = vrot.lane.b32.xlu1 %v168_v8, %s4666_s27  ;;  %s3749_s2 = smov 21  }
  0x14   :  { %219 = vrot.lane.b32.xlu0 %v3822_v14, %s3723_s23  ;;  %433 = vrot.lane.b32.xlu1 %v3817_v13, %s4666_s27 }
  0x18   :  { %421 = vrot.lane.b32.xlu0 %v3809_v11, %s4666_s27  ;;  %442 = vrot.lane.b32.xlu1 %v3822_v14, %s3727_s30  ;;  %s3753_s27 = smov 32  }
  0x1c   :  { %440 = vrot.lane.b32.xlu0 %v3793_v0, %s3727_s30  ;;  %549 = vrot.lane.b32.xlu1 %v3802_v9, %s4668_s7 }
  0x20   :  { %542 = vrot.lane.b32.xlu0 %v168_v8, %s4668_s7  ;;  %766 = vrot.lane.b32.xlu1 %v168_v8, %s4670_s8 }
  0x24   :  { %658 = vrot.lane.b32.xlu0 %v168_v8, %s3723_s23  ;;  %773 = vrot.lane.b32.xlu1 %v3817_v13, %s4670_s8 }
  0x28   :  { %882 = vrot.lane.b32.xlu0 %v168_v8, %s4672_s9  ;;  %901 = vrot.lane.b32.xlu1 %v3802_v9, %s4672_s9 }
  0x2c   :  { %894 = vrot.lane.b32.xlu0 %v3842_v16, %s4672_s9  ;;  %1126 = vrot.lane.b32.xlu1 %v168_v8, %s4676_s10 }
  0x30   :  { %1010 = vrot.lane.b32.xlu0 %v168_v8, %s4674_s11  ;;  %1133 = vrot.lane.b32.xlu1 %v3842_v16, %s4676_s10 }
  0x34   :  { %1017 = vrot.lane.b32.xlu0 %v3842_v16, %s4674_s11  ;;  %1247 = vrot.lane.b32.xlu1 %v3809_v11, %s4678_s12 }
  0x38   :  { %1140 = vrot.lane.b32.xlu0 %v3817_v13, %s4676_s10  ;;  %1363 = vrot.lane.b32.xlu1 %v3809_v11, %s4680_s13 }
  0x3c   :  { %1254 = vrot.lane.b32.xlu0 %v3802_v9, %s4678_s12  ;;  %1479 = vrot.lane.b32.xlu1 %v3817_v13, %s3735_s14 }
  0x40   :  { %1472 = vrot.lane.b32.xlu0 %v3809_v11, %s3735_s14  ;;  %1782 = vrot.lane.b32.xlu1 %v3817_v13, %s3736_s15 }
  0x44   :  { %1588 = vrot.lane.b32.xlu0 %v3802_v9, %s3737_s16  ;;  %1898 = vrot.lane.b32.xlu1 %v3802_v9, %s3738_s17 }
  0x48   :  { %1891 = vrot.lane.b32.xlu0 %v3842_v16, %s3738_s17  ;;  %2114 = vrot.lane.b32.xlu1 %v3842_v16, %s3739_s18 }
  0x4c   :  { %2007 = vrot.lane.b32.xlu0 %v3842_v16, %s3740_s19  ;;  %2121 = vrot.lane.b32.xlu1 %v3817_v13, %s3739_s18 }
  0x50   :  { %2235 = vrot.lane.b32.xlu0 %v3804_v10, %s3741_s20  ;;  %2249 = vrot.lane.b32.xlu1 %v3802_v9, %s3741_s20 }
  0x54   :  { %2242 = vrot.lane.b32.xlu0 %v3809_v11, %s3741_s20  ;;  %2474 = vrot.lane.b32.xlu1 %v3804_v10, %s3742_s21 }
  0x58   :  { %2358 = vrot.lane.b32.xlu0 %v3804_v10, %s3743_s22  ;;  %2481 = vrot.lane.b32.xlu1 %v3809_v11, %s3742_s21 }
  0x5c   :  { %2365 = vrot.lane.b32.xlu0 %v3809_v11, %s3743_s22  ;;  %2597 = vrot.lane.b32.xlu1 %v3804_v10, %s3744_s24 }
  0x60   :  { %2488 = vrot.lane.b32.xlu0 %v3817_v13, %s3742_s21  ;;  %2713 = vrot.lane.b32.xlu1 %v3804_v10, %s3745_s25 }
  0x64   :  { %2604 = vrot.lane.b32.xlu0 %v3802_v9, %s3744_s24  ;;  %2938 = vrot.lane.b32.xlu1 %v3804_v10, %s3746_s28 }
  0x68   :  { %2822 = vrot.lane.b32.xlu0 %v3804_v10, %s3747_s29  ;;  %2945 = vrot.lane.b32.xlu1 %v3842_v16, %s3746_s28 }
  0x6c   :  { %2829 = vrot.lane.b32.xlu0 %v3817_v13, %s3747_s29  ;;  %3059 = vrot.lane.b32.xlu1 %v3804_v10, %s3748_s26 }
  0x70   :  { %2952 = vrot.lane.b32.xlu0 %v3802_v9, %s3746_s28  ;;  %3066 = vrot.lane.b32.xlu1 %v3842_v16, %s3748_s26 }
  0x74   :  { %v218_v17 = vpop.permute.xlu1 %217  ;;  %3175 = vrot.lane.b32.xlu0 %v3804_v10, %s3749_s2 }
  0x75   :  { %3502 = vmatprep.mubr.msk.f32.mxu0 %vm238_vm0, %v218_v17 }
  0x7a   :  { %v171_v18 = vpop.permute.xlu0 %170  ;;  %v195_v19 = vpop.permute.xlu1 %194 }
  0x7b   :  { %v174_v34 = vmul.f32 %v3922_v22, %v171_v18  ;;  %v173_v35 = vmul.f32 %v171_v18, %v3927_v23  ;;  %v176_v42 = vmul.f32 %v3934_v27, %v171_v18  ;;  %v175_v43 = vmul.f32 %v171_v18, %v3939_v28 }
  0x7e   :  { %v183_v20 = vpop.permute.xlu0 %182  ;;  %v202_v21 = vpop.permute.xlu1 %201 }
  0x7f   :  { %v205_v24 = vmul.f32 %v3922_v22, %v202_v21  ;;  %v204_v25 = vmul.f32 %v202_v21, %v3927_v23  ;;  %v207_v32 = vmul.f32 %v3934_v27, %v202_v21  ;;  %v206_v33 = vmul.f32 %v202_v21, %v3939_v28 }
  0x80   :  { %v186_v40 = vmul.f32 %v183_v20, %v174_v34  ;;  %v185_v41 = vmul.f32 %v183_v20, %v173_v35  ;;  %v188_v50 = vmul.f32 %v183_v20, %v176_v42  ;;  %v187_v51 = vmul.f32 %v183_v20, %v175_v43 }
  0x82   :  { %v209_v26 = vpop.permute.xlu0 %208  ;;  %v415_v29 = vpop.permute.xlu1 %414  ;;  %v198_v48 = vmul.f32 %v195_v19, %v186_v40  ;;  %v197_v49 = vmul.f32 %v195_v19, %v185_v41  ;;  %v200_v56 = vmul.f32 %v195_v19, %v188_v50  ;;  %v199_v57 = vmul.f32 %v195_v19, %v187_v51 }
  0x83   :  { %v212_v30 = vmul.f32 %v209_v26, %v205_v24  ;;  %v211_v31 = vmul.f32 %v209_v26, %v204_v25  ;;  %v214_v38 = vmul.f32 %v209_v26, %v207_v32  ;;  %v213_v39 = vmul.f32 %v209_v26, %v206_v33 }
  0x84   :  { %v417_v44 = vmul.f32 %v415_v29, %v3927_v23  ;;  %v418_v45 = vmul.f32 %v3922_v22, %v415_v29  ;;  %v419_v62 = vmul.f32 %v415_v29, %v3939_v28  ;;  %v420_v63 = vmul.f32 %v3934_v27, %v415_v29 }
  0x85   :  { %227 = vrot.lane.b32.xlu0 %v212_v30, %s3748_s26  ;;  %225 = vrot.lane.b32.xlu1 %v211_v31, %s3748_s26 }
  0x86   :  { %v3947_v36 = vpop.permute.xlu0 %219  ;;  %v434_v37 = vpop.permute.xlu1 %433 }
  0x89   :  { %231 = vrot.lane.b32.xlu0 %v214_v38, %s3748_s26  ;;  %229 = vrot.lane.b32.xlu1 %v213_v39, %s3748_s26  ;;  %s3751_s26 = smov 64  }
  0x8a   :  { %v422_v46 = vpop.permute.xlu0 %421  ;;  %v3955_v47 = vpop.permute.xlu1 %442 }
  0x8b   :  { %v424_v52 = vmul.f32 %v422_v46, %v417_v44  ;;  %v425_v53 = vmul.f32 %v422_v46, %v418_v45  ;;  %v426_v3 = vmul.f32 %v422_v46, %v419_v62  ;;  %v427_v4 = vmul.f32 %v422_v46, %v420_v63 }
  0x8d   :  { %324 = vrot.lane.b32.xlu0 %v198_v48, %s3749_s2  ;;  %322 = vrot.lane.b32.xlu1 %v197_v49, %s3749_s2  ;;  %v436_v58 = vmul.f32 %v434_v37, %v424_v52  ;;  %v437_v59 = vmul.f32 %v434_v37, %v425_v53  ;;  %v438_v9 = vmul.f32 %v434_v37, %v426_v3 }
  0x8e   :  { %v3959_v54 = vpop.permute.xlu0 %440  ;;  %v550_v55 = vpop.permute.xlu1 %549  ;;  %v439_v10 = vmul.f32 %v434_v37, %v427_v4 }
  0x91   :  { %328 = vrot.lane.b32.xlu0 %v200_v56, %s3749_s2  ;;  %326 = vrot.lane.b32.xlu1 %v199_v57, %s3749_s2 }
  0x92   :  { %v543_v60 = vpop.permute.xlu0 %542  ;;  %v3963_v61 = vpop.permute.xlu1 %766 }
  0x93   :  { %v547_v5 = vmul.f32 %v543_v60, %v3939_v28  ;;  %v548_v6 = vmul.f32 %v3934_v27, %v543_v60  ;;  %v546_v17 = vmul.f32 %v3922_v22, %v543_v60  ;;  %v771_v33 = vmul.f32 %v3963_v61, %v3939_v28 }
  0x94   :  { %v772_v39 = vmul.f32 %v3934_v27, %v3963_v61  ;;  %v769_v43 = vmul.f32 %v3963_v61, %v3927_v23  ;;  %v770_v49 = vmul.f32 %v3922_v22, %v3963_v61 }
  0x95   :  { %448 = vrot.lane.b32.xlu0 %v436_v58, %s3746_s28  ;;  %450 = vrot.lane.b32.xlu1 %v437_v59, %s3746_s28  ;;  %v554_v11 = vmul.f32 %v550_v55, %v547_v5  ;;  %v555_v12 = vmul.f32 %v550_v55, %v548_v6  ;;  %v553_v21 = vmul.f32 %v550_v55, %v546_v17 }
  0x96   :  { %v659_v1 = vpop.permute.xlu0 %658  ;;  %v3969_v2 = vpop.permute.xlu1 %773 }
  0x97   :  { %v663_v26 = vmul.f32 %v659_v1, %v3939_v28  ;;  %v664_v29 = vmul.f32 %v3934_v27, %v659_v1  ;;  %v661_v32 = vmul.f32 %v659_v1, %v3927_v23  ;;  %v662_v37 = vmul.f32 %v3922_v22, %v659_v1 }
  0x98   :  { %v778_v38 = vmul.f32 %v3969_v2, %v771_v33  ;;  %v779_v42 = vmul.f32 %v3969_v2, %v772_v39  ;;  %v776_v48 = vmul.f32 %v3969_v2, %v769_v43 }
  0x99   :  { %3182 = vrot.lane.b32.xlu0 %v3842_v16, %s3749_s2  ;;  %3189 = vrot.lane.b32.xlu1 %v3817_v13, %s3749_s2  ;;  %v545_v13 = vmul.f32 %v543_v60, %v3927_v23  ;;  %s3752_s2 = smov 48  }
  0x9a   :  { %v3977_v7 = vpop.permute.xlu0 %882  ;;  %v3979_v8 = vpop.permute.xlu1 %901 }
  0x9b   :  { %v552_v20 = vmul.f32 %v550_v55, %v545_v13  ;;  %v887_v44 = vmul.f32 %v3977_v7, %v3939_v28  ;;  %v888_v51 = vmul.f32 %v3934_v27, %v3977_v7  ;;  %v777_v55 = vmul.f32 %v3969_v2, %v770_v49 }
  0x9c   :  { %v885_v58 = vmul.f32 %v3977_v7, %v3927_v23  ;;  %v886_v63 = vmul.f32 %v3922_v22, %v3977_v7 }
  0x9d   :  { %452 = vrot.lane.b32.xlu0 %v438_v9, %s3746_s28  ;;  %454 = vrot.lane.b32.xlu1 %v439_v10, %s3746_s28 }
  0x9e   :  { %v3983_v15 = vpop.permute.xlu0 %894  ;;  %v3985_v16 = vpop.permute.xlu1 %1126 }
  0x9f   :  { %v899_v50 = vmul.f32 %v3983_v15, %v887_v44  ;;  %v900_v57 = vmul.f32 %v3983_v15, %v888_v51  ;;  %v897_v62 = vmul.f32 %v3983_v15, %v885_v58  ;;  %v898_v4 = vmul.f32 %v3983_v15, %v886_v63 }
  0xa0   :  { %v1129_v33 = vmul.f32 %v3985_v16, %v3927_v23  ;;  %v1130_v43 = vmul.f32 %v3922_v22, %v3985_v16 }
  0xa1   :  { %568 = vrot.lane.b32.xlu0 %v554_v11, %s3747_s29  ;;  %570 = vrot.lane.b32.xlu1 %v555_v12, %s3747_s29  ;;  %v906_v56 = vmul.f32 %v3979_v8, %v899_v50  ;;  %v907_v61 = vmul.f32 %v3979_v8, %v900_v57  ;;  %v904_v3 = vmul.f32 %v3979_v8, %v897_v62 }
  0xa2   :  { %v3991_v18 = vpop.permute.xlu0 %1010  ;;  %v3993_v19 = vpop.permute.xlu1 %1133  ;;  %v905_v7 = vmul.f32 %v3979_v8, %v898_v4  ;;  %v1131_v8 = vmul.f32 %v3985_v16, %v3939_v28 }
  0xa3   :  { %v1015_v5 = vmul.f32 %v3991_v18, %v3939_v28  ;;  %v1016_v10 = vmul.f32 %v3934_v27, %v3991_v18  ;;  %v1013_v13 = vmul.f32 %v3991_v18, %v3927_v23  ;;  %v1136_v44 = vmul.f32 %v3993_v19, %v1129_v33 }
  0xa4   :  { %v1137_v49 = vmul.f32 %v3993_v19, %v1130_v43 }
  0xa5   :  { %564 = vrot.lane.b32.xlu0 %v552_v20, %s3747_s29  ;;  %566 = vrot.lane.b32.xlu1 %v553_v21, %s3747_s29  ;;  %v1132_v20 = vmul.f32 %v3934_v27, %v3985_v16 }
  0xa6   :  { %v3997_v24 = vpop.permute.xlu0 %1017  ;;  %v3999_v25 = vpop.permute.xlu1 %1247 }
  0xa7   :  { %v1022_v9 = vmul.f32 %v3997_v24, %v1015_v5  ;;  %v1023_v15 = vmul.f32 %v3997_v24, %v1016_v10  ;;  %v1020_v21 = vmul.f32 %v3997_v24, %v1013_v13  ;;  %v1252_v50 = vmul.f32 %v3999_v25, %v3939_v28 }
  0xa8   :  { %v1253_v16 = vmul.f32 %v3934_v27, %v3999_v25 }
  0xa9   :  { %677 = vrot.lane.b32.xlu0 %v663_v26, %s3745_s25  ;;  %679 = vrot.lane.b32.xlu1 %v664_v29, %s3745_s25  ;;  %v1014_v26 = vmul.f32 %v3922_v22, %v3991_v18  ;;  %v1138_v29 = vmul.f32 %v3993_v19, %v1131_v8 }
  0xaa   :  { %v4005_v30 = vpop.permute.xlu0 %1140  ;;  %v4007_v31 = vpop.permute.xlu1 %1363 }
  0xab   :  { %v1145_v39 = vmul.f32 %v4005_v30, %v1138_v29  ;;  %v1143_v51 = vmul.f32 %v4005_v30, %v1136_v44  ;;  %v1369_v5 = vmul.f32 %v3934_v27, %v4007_v31  ;;  %v4207_v29 = vld [vmem:[%s4655_s0 + $0x28] sm:$0xff] }
  0xad   :  { %556 = vrot.lane.b32.xlu0 %v3793_v0, %s3750_s3  ;;  %673 = vrot.lane.b32.xlu1 %v661_v32, %s3745_s25 }
  0xae   :  { %v4015_v34 = vpop.permute.xlu0 %1254  ;;  %v4017_v35 = vpop.permute.xlu1 %1479 }
  0xaf   :  { %v1259_v57 = vmul.f32 %v4015_v34, %v1252_v50  ;;  %v1260_v62 = vmul.f32 %v4015_v34, %v1253_v16 }
  0xb1   :  { %675 = vrot.lane.b32.xlu0 %v662_v37, %s3745_s25  ;;  %792 = vrot.lane.b32.xlu1 %v778_v38, %s3744_s24  ;;  %v1139_v37 = vmul.f32 %v3993_v19, %v1132_v20  ;;  %v1021_v38 = vmul.f32 %v3997_v24, %v1014_v26 }
  0xb2   :  { %v4025_v40 = vpop.permute.xlu0 %1472  ;;  %v4027_v41 = vpop.permute.xlu1 %1782 }
  0xb3   :  { %v1477_v10 = vmul.f32 %v4025_v40, %v3939_v28  ;;  %v1478_v20 = vmul.f32 %v3934_v27, %v4025_v40 }
  0xb5   :  { %794 = vrot.lane.b32.xlu0 %v779_v42, %s3744_s24  ;;  %558 = vrot.lane.b32.xlu1 %v3822_v14, %s3750_s3  ;;  %v1484_v26 = vmul.f32 %v4017_v35, %v1477_v10  ;;  %v1787_v10 = vmul.f32 %v3934_v27, %v4027_v41 }
  0xb6   :  { %v4037_v45 = vpop.permute.xlu0 %1588  ;;  %v4039_v46 = vpop.permute.xlu1 %1898 }
  0xb9   :  { %665 = vrot.lane.b32.xlu0 %v3793_v0, %s3751_s26  ;;  %788 = vrot.lane.b32.xlu1 %v776_v48, %s3744_s24  ;;  %v1146_v48 = vmul.f32 %v4005_v30, %v1139_v37 }
  0xba   :  { %v4050_v52 = vpop.permute.xlu0 %1891  ;;  %v4052_v53 = vpop.permute.xlu1 %2114 }
  0xbd   :  { %790 = vrot.lane.b32.xlu0 %v777_v55, %s3744_s24  ;;  %920 = vrot.lane.b32.xlu1 %v906_v56, %s3742_s21  ;;  %v1144_v56 = vmul.f32 %v4005_v30, %v1137_v49  ;;  %s4687_s24 = smov 113  }
  0xbe   :  { %v4061_v59 = vpop.permute.xlu0 %2007  ;;  %v4063_v60 = vpop.permute.xlu1 %2121 }
  0xc1   :  { %922 = vrot.lane.b32.xlu0 %v907_v61, %s3742_s21  ;;  %667 = vrot.lane.b32.xlu1 %v3822_v14, %s3751_s26  ;;  %v1251_v61 = vmul.f32 %v3922_v22, %v3999_v25 }
  0xc2   :  { %v4072_v1 = vpop.permute.xlu0 %2235  ;;  %v4074_v2 = vpop.permute.xlu1 %2249 }
  0xc3   :  { %v1258_v4 = vmul.f32 %v4015_v34, %v1251_v61  ;;  %v1594_v61 = vmul.f32 %v3934_v27, %v4037_v45 }
  0xc5   :  { %780 = vrot.lane.b32.xlu0 %v3793_v0, %s3752_s2  ;;  %916 = vrot.lane.b32.xlu1 %v904_v3, %s3742_s21 }
  0xc6   :  { %v4083_v6 = vpop.permute.xlu0 %2242  ;;  %v4089_v11 = vpop.permute.xlu1 %2474 }
  0xc9   :  { %918 = vrot.lane.b32.xlu0 %v905_v7, %s3742_s21  ;;  %1036 = vrot.lane.b32.xlu1 %v1022_v9, %s3743_s22 }
  0xca   :  { %v4093_v12 = vpop.permute.xlu0 %2358  ;;  %v4103_v17 = vpop.permute.xlu1 %2481 }
  0xcd   :  { %1038 = vrot.lane.b32.xlu0 %v1023_v15, %s3743_s22  ;;  %782 = vrot.lane.b32.xlu1 %v3822_v14, %s3752_s2  ;;  %v1366_v15 = vmul.f32 %v4007_v31, %v3927_v23 }
  0xce   :  { %v4111_v32 = vpop.permute.xlu0 %2365  ;;  %v4121_v18 = vpop.permute.xlu1 %2597 }
  0xd1   :  { %908 = vrot.lane.b32.xlu0 %v3793_v0, %s3753_s27  ;;  %1032 = vrot.lane.b32.xlu1 %v1020_v21, %s3743_s22  ;;  %v1367_v21 = vmul.f32 %v3922_v22, %v4007_v31 }
  0xd2   :  { %v4125_v42 = vpop.permute.xlu0 %2488  ;;  %v4134_v24 = vpop.permute.xlu1 %2713 }
  0xd5   :  { %1034 = vrot.lane.b32.xlu0 %v1021_v38, %s3743_s22  ;;  %1155 = vrot.lane.b32.xlu1 %v1145_v39, %s3741_s20  ;;  %v1485_v38 = vmul.f32 %v4017_v35, %v1478_v20  ;;  %v1475_v39 = vmul.f32 %v4025_v40, %v3927_v23  ;;  %s4686_s22 = smov 115  }
  0xd6   :  { %v4140_v55 = vpop.permute.xlu0 %2604  ;;  %v4149_v19 = vpop.permute.xlu1 %2938 }
  0xd7   :  { %v1482_v49 = vmul.f32 %v4017_v35, %v1475_v39  ;;  %v4272_v39 = vld [vmem:[%s4660_s5 + $0x10] sm:$0xff] }
  0xd9   :  { %1157 = vrot.lane.b32.xlu0 %v1146_v48, %s3741_s20  ;;  %910 = vrot.lane.b32.xlu1 %v3822_v14, %s3753_s27 }
  0xda   :  { %v4153_v58 = vpop.permute.xlu0 %2822  ;;  %v4163_v30 = vpop.permute.xlu1 %2945 }
  0xdd   :  { %1024 = vrot.lane.b32.xlu0 %v3793_v0, %s3745_s25  ;;  %1151 = vrot.lane.b32.xlu1 %v1143_v51, %s3741_s20  ;;  %v1250_v0 = vmul.f32 %v3999_v25, %v3927_v23  ;;  %v1368_v25 = vmul.f32 %v4007_v31, %v3939_v28  ;;  %v1476_v31 = vmul.f32 %v3922_v22, %v4025_v40 }
  0xde   :  { %v4165_v63 = vpop.permute.xlu0 %2829  ;;  %v4175_v7 = vpop.permute.xlu1 %3059  ;;  %v1593_v40 = vmul.f32 %v4037_v45, %v3939_v28 }
  0xdf   :  { %v1257_v3 = vmul.f32 %v4015_v34, %v1250_v0  ;;  %v4184_v34 = vld [vmem:[%s4655_s0 + $0x8] sm:$0xff] }
  0xe1   :  { %1153 = vrot.lane.b32.xlu0 %v1144_v56, %s3741_s20  ;;  %1273 = vrot.lane.b32.xlu1 %v1259_v57, %s3739_s18  ;;  %v1483_v56 = vmul.f32 %v4017_v35, %v1476_v31  ;;  %v1896_v31 = vmul.f32 %v3934_v27, %v4050_v52 }
  0xe2   :  { %v4177_v9 = vpop.permute.xlu0 %2952  ;;  %v4193_v13 = vpop.permute.xlu1 %3066 }
  0xe5   :  { %1275 = vrot.lane.b32.xlu0 %v1260_v62, %s3739_s18  ;;  %1026 = vrot.lane.b32.xlu1 %v3822_v14, %s3745_s25 }
  0xe6   :  { %v4195_v8 = vpop.permute.xlu0 %3175 }
  0xe9   :  { %1269 = vrot.lane.b32.xlu0 %v1257_v3, %s3739_s18  ;;  %1271 = vrot.lane.b32.xlu1 %v1258_v4, %s3739_s18 }
  0xed   :  { %1382 = vrot.lane.b32.xlu0 %v1368_v25, %s3740_s19  ;;  %1384 = vrot.lane.b32.xlu1 %v1369_v5, %s3740_s19  ;;  %v1592_v25 = vmul.f32 %v3922_v22, %v4037_v45 }
  0xf1   :  { %1261 = vrot.lane.b32.xlu0 %v4184_v34, %s3723_s23  ;;  %1378 = vrot.lane.b32.xlu1 %v1366_v15, %s3740_s19 }
  0xf5   :  { %1380 = vrot.lane.b32.xlu0 %v1367_v21, %s3740_s19  ;;  %1498 = vrot.lane.b32.xlu1 %v1484_v26, %s3738_s17  ;;  %s4685_s19 = smov 116  }
  0xf7   :  { %v228_v33 = vpop.permute.xlu0 %227  ;;  %v226_v37 = vpop.permute.xlu1 %225 }
  0xf8   :  { %v234_v50 = vsel %vm233_vm1, %v226_v37, %v228_v33 }
  0xf9   :  { %1500 = vrot.lane.b32.xlu0 %v1485_v38, %s3738_s17  ;;  %1263 = vrot.lane.b32.xlu1 %v4207_v29, %s3723_s23 }
  0xfb   :  { %v232_v43 = vpop.permute.xlu0 %231  ;;  %v230_v44 = vpop.permute.xlu1 %229 }
  0xfc   :  { %v235_v48 = vsel %vm233_vm1, %v230_v44, %v232_v43  ;;  %v1785_v43 = vmul.f32 %v3922_v22, %v4027_v41  ;;  %vm2144_vm1 = vcmask 1006592  }
  0xfd   :  { %1370 = vrot.lane.b32.xlu0 %v4184_v34, %s3727_s30  ;;  %3498 = vmatprep.subr.mxu0 %v235_v48 }
  0xfe   :  { %1494 = vrot.lane.b32.xlu1 %v1482_v49, %s3738_s17  ;;  %3499 = vmatpush3.msra.mxu0 %v235_v48 }
  0xff   :  { %v325_v51 = vpop.permute.xlu0 %324  ;;  %3500 = vmatprep.subr.mxu0 %v234_v50  ;;  %v323_v16 = vpop.permute.xlu1 %322 }
 0x100   :  { %3501 = vmatpush3.msra.mxu0 %v234_v50  ;;  %v331_v28 = vsel %vm330_vm2, %v323_v16, %v325_v51  ;;  %v1786_v50 = vmul.f32 %v4272_v39, %v4027_v41  ;;  %v1903_v51 = vmul.f32 %v4039_v46, %v1896_v31  ;;  %v2011_v31 = vmul.f32 %v4272_v39, %v4061_v59 }
 0x101   :  { %1496 = vrot.lane.b32.xlu0 %v1483_v56, %s3738_s17  ;;  %3503 = vmatmul.mubr.msk.f32.vlgmr.msra.gmra.mxu0 %vm238_vm0, %v3947_v36 }
 0x102   :  { %1607 = vrot.lane.b32.xlu1 %v1593_v40, %s3736_s15  ;;  %3516 = vmatprep.mubr.msk.f32.mxu0 %vm238_vm0, %v3959_v54  ;;  %v1591_v54 = vmul.f32 %v4037_v45, %v3927_v23 }
 0x103   :  { %v329_v57 = vpop.permute.xlu0 %328  ;;  %v327_v0 = vpop.permute.xlu1 %326 }
 0x104   :  { %v332_v35 = vsel %vm330_vm2, %v327_v0, %v329_v57  ;;  %v1894_v0 = vmul.f32 %v3922_v22, %v4050_v52  ;;  %vm2272_vm2 = vcmask 957440  }
 0x105   :  { %1609 = vrot.lane.b32.xlu0 %v1594_v61, %s3736_s15  ;;  %3505 = vmatprep.subr.mxu1 %v332_v35 }
 0x106   :  { %1372 = vrot.lane.b32.xlu1 %v4207_v29, %s3727_s30  ;;  %3506 = vmatpush3.msra.mxu1 %v332_v35 }
 0x107   :  { %v449_v36 = vpop.permute.xlu0 %448  ;;  %3507 = vmatprep.subr.mxu1 %v331_v28  ;;  %v451_v62 = vpop.permute.xlu1 %450 }
 0x108   :  { %3508 = vmatpush3.msra.mxu1 %v331_v28  ;;  %v457_v45 = vsel %vm456_vm3, %v449_v36, %v451_v62  ;;  %v1901_v28 = vmul.f32 %v4039_v46, %v1894_v0 }
 0x109   :  { %1486 = vrot.lane.b32.xlu0 %v4184_v34, %s3750_s3  ;;  %3510 = vmatmul.mubr.msk.f32.vlgmr.msra.gmra.mxu1 %vm238_vm0, %v3822_v14  ;;  %v4254_v14 = vld [vmem:[%s4660_s5 + $0x28] sm:$0xff]  ;;  %s4682_s5 = smov 124  }
 0x10a   :  { %1603 = vrot.lane.b32.xlu1 %v1591_v54, %s3736_s15  ;;  %v1788_v26 = vmul.f32 %v4254_v14, %v4027_v41  ;;  %v1897_v44 = vmul.f32 %v4254_v14, %v4050_v52  ;;  %v1895_v41 = vmul.f32 %v4272_v39, %v4050_v52  ;;  %v2012_v52 = vmul.f32 %v3934_v27, %v4061_v59 }
 0x10b   :  { %v4242_v3 = vpop.permute.xlu0 %3182  ;;  %v4244_v4 = vpop.permute.xlu1 %3189 }
 0x10c   :  { %v1904_v57 = vmul.f32 %v4039_v46, %v1897_v44  ;;  %v2117_v44 = vmul.f32 %v3922_v22, %v4052_v53 }
 0x10d   :  { %1605 = vrot.lane.b32.xlu0 %v1592_v25, %s3736_s15  ;;  %v1902_v25 = vmul.f32 %v4039_v46, %v1895_v41  ;;  %v2238_v41 = vmul.f32 %v3922_v22, %v4072_v1 }
 0x10e   :  { %1488 = vrot.lane.b32.xlu1 %v4207_v29, %s3750_s3  ;;  %v2124_v0 = vmul.f32 %v4063_v60, %v2117_v44 }
 0x10f   :  { %v453_v23 = vpop.permute.xlu0 %452  ;;  %v455_v5 = vpop.permute.xlu1 %454 }
 0x110   :  { %v458_v15 = vsel %vm456_vm3, %v453_v23, %v455_v5  ;;  %vm2388_vm3 = vcmask 949248  }
 0x111   :  { %1595 = vrot.lane.b32.xlu0 %v4184_v34, %s3751_s26  ;;  %3512 = vmatprep.subr.mxu0 %v458_v15 }
 0x112   :  { %1801 = vrot.lane.b32.xlu1 %v1787_v10, %s3737_s16  ;;  %3513 = vmatpush3.msra.mxu0 %v458_v15  ;;  %v2013_v15 = vmul.f32 %v4254_v14, %v4061_v59 }
 0x113   :  { %v569_v20 = vpop.permute.xlu0 %568  ;;  %3514 = vmatprep.subr.mxu0 %v457_v45  ;;  %v571_v21 = vpop.permute.xlu1 %570 }
 0x114   :  { %3515 = vmatpush3.msra.mxu0 %v457_v45  ;;  %v574_v33 = vsel %vm572_vm4, %v569_v20, %v571_v21  ;;  %v2119_v20 = vmul.f32 %v3934_v27, %v4052_v53  ;;  %v2010_v21 = vmul.f32 %v3922_v22, %v4061_v59 }
 0x115   :  { %1803 = vrot.lane.b32.xlu0 %v1788_v26, %s3737_s16  ;;  %3517 = vmatmul.mubr.msk.f32.vlgmr.msra.gmra.mxu0 %vm238_vm0, %v3955_v47 }
 0x116   :  { %1597 = vrot.lane.b32.xlu1 %v4207_v29, %s3751_s26  ;;  %3519 = vmatprep.subr.mxu1 %v574_v33 }
 0x117   :  { %3520 = vmatpush3.msra.mxu1 %v574_v33  ;;  %v565_v37 = vpop.permute.xlu0 %564  ;;  %v567_v38 = vpop.permute.xlu1 %566  ;;  %v2120_v33 = vmul.f32 %v4254_v14, %v4052_v53 }
 0x118   :  { %v573_v47 = vsel %vm572_vm4, %v565_v37, %v567_v38  ;;  %vm2511_vm4 = vcmask 941056  }
 0x119   :  { %1697 = vrot.lane.b32.xlu0 %v4184_v34, %s3752_s2  ;;  %3521 = vmatprep.subr.mxu1 %v573_v47 }
 0x11a   :  { %1797 = vrot.lane.b32.xlu1 %v1785_v43, %s3737_s16  ;;  %3522 = vmatpush3.msra.mxu1 %v573_v47  ;;  %v2126_v43 = vmul.f32 %v4063_v60, %v2119_v20 }
 0x11b   :  { %v678_v48 = vpop.permute.xlu0 %677  ;;  %v680_v49 = vpop.permute.xlu1 %679 }
 0x11c   :  { %v682_v16 = vsel %vm238_vm0, %v678_v48, %v680_v49  ;;  %v2240_v48 = vmul.f32 %v3934_v27, %v4072_v1 }
 0x11d   :  { %1799 = vrot.lane.b32.xlu0 %v1786_v50, %s3737_s16  ;;  %3526 = vmatprep.subr.mxu0 %v682_v16  ;;  %v2127_v50 = vmul.f32 %v4063_v60, %v2120_v33  ;;  %s4684_s16 = smov 117  }
 0x11e   :  { %1917 = vrot.lane.b32.xlu1 %v1903_v51, %s3735_s14  ;;  %3527 = vmatpush3.msra.mxu0 %v682_v16  ;;  %v2118_v51 = vmul.f32 %v4272_v39, %v4052_v53  ;;  %v2241_v16 = vmul.f32 %v4254_v14, %v4072_v1 }
 0x11f   :  { %v557_v56 = vpop.permute.xlu0 %556  ;;  %v674_v40 = vpop.permute.xlu1 %673 }
 0x120   :  { %3523 = vmatprep.mubr.msk.f32.mxu1 %vm238_vm0, %v557_v56  ;;  %v2247_v56 = vmul.f32 %v4083_v6, %v2240_v48  ;;  %v2248_v53 = vmul.f32 %v4083_v6, %v2241_v16  ;;  %v2362_v48 = vmul.f32 %v4272_v39, %v4093_v12 }
 0x121   :  { %1919 = vrot.lane.b32.xlu0 %v1904_v57, %s3735_s14 }
 0x122   :  { %1699 = vrot.lane.b32.xlu1 %v4207_v29, %s3752_s2 }
 0x123   :  { %v676_v61 = vpop.permute.xlu0 %675  ;;  %v793_v35 = vpop.permute.xlu1 %792 }
 0x124   :  { %v681_v36 = vsel %vm238_vm0, %v674_v40, %v676_v61  ;;  %v2125_v61 = vmul.f32 %v4063_v60, %v2118_v51  ;;  %v2255_v60 = vmul.f32 %v4074_v2, %v2248_v53  ;;  %v2478_v53 = vmul.f32 %v4272_v39, %v4089_v11 }
 0x125   :  { %1789 = vrot.lane.b32.xlu0 %v4184_v34, %s3753_s27  ;;  %3528 = vmatprep.subr.mxu0 %v681_v36 }
 0x126   :  { %1913 = vrot.lane.b32.xlu1 %v1901_v28, %s3735_s14  ;;  %3529 = vmatpush3.msra.mxu0 %v681_v36  ;;  %v2239_v28 = vmul.f32 %v4272_v39, %v4072_v1  ;;  %v4368_v1 = vld [vmem:[%s4655_s0 + $0x10] sm:$0xff] }
 0x127   :  { %v795_v62 = vpop.permute.xlu0 %794  ;;  %v559_v54 = vpop.permute.xlu1 %558 }
 0x128   :  { %3524 = vmatmul.mubr.msk.f32.vlgmr.msra.gmra.mxu1 %vm238_vm0, %v559_v54  ;;  %v798_v23 = vsel %vm796_vm5, %v793_v35, %v795_v62  ;;  %v2254_v54 = vmul.f32 %v4074_v2, %v2247_v56 }
 0x129   :  { %1915 = vrot.lane.b32.xlu0 %v1902_v25, %s3735_s14  ;;  %3533 = vmatprep.subr.mxu1 %v798_v23  ;;  %s4683_s14 = smov 123   ;;  %v2245_v25 = vmul.f32 %v4083_v6, %v2238_v41 }
 0x12a   :  { %2022 = vrot.lane.b32.xlu1 %v2012_v52, %s4682_s5  ;;  %3534 = vmatpush3.msra.mxu1 %v798_v23  ;;  %v2246_v23 = vmul.f32 %v4083_v6, %v2239_v28 }
 0x12b   :  { %v666_v5 = vpop.permute.xlu0 %665  ;;  %v789_v10 = vpop.permute.xlu1 %788 }
 0x12c   :  { %3530 = vmatprep.mubr.msk.f32.mxu0 %vm238_vm0, %v666_v5  ;;  %v2253_v6 = vmul.f32 %v4074_v2, %v2246_v23 }
 0x12d   :  { %2024 = vrot.lane.b32.xlu0 %v2013_v15, %s4682_s5  ;;  %v2363_v15 = vmul.f32 %v3934_v27, %v4093_v12 }
 0x12e   :  { %1791 = vrot.lane.b32.xlu1 %v4207_v29, %s3753_s27 }
 0x12f   :  { %v791_v46 = vpop.permute.xlu0 %790  ;;  %v921_v45 = vpop.permute.xlu1 %920 }
 0x130   :  { %v797_v26 = vsel %vm796_vm5, %v789_v10, %v791_v46  ;;  %v2252_v46 = vmul.f32 %v4074_v2, %v2245_v25  ;;  %v2361_v2 = vmul.f32 %v3922_v22, %v4093_v12  ;;  %vm2627_vm5 = vcmask 924672  }
 0x131   :  { %1905 = vrot.lane.b32.xlu0 %v4184_v34, %s3745_s25  ;;  %3535 = vmatprep.subr.mxu1 %v797_v26 }
 0x132   :  { %2018 = vrot.lane.b32.xlu1 %v2010_v21, %s4682_s5  ;;  %3536 = vmatpush3.msra.mxu1 %v797_v26  ;;  %v2370_v26 = vmul.f32 %v4111_v32, %v2363_v15  ;;  %v2368_v16 = vmul.f32 %v4111_v32, %v2361_v2 }
 0x133   :  { %v923_v37 = vpop.permute.xlu0 %922  ;;  %v668_v38 = vpop.permute.xlu1 %667 }
 0x134   :  { %3531 = vmatmul.mubr.msk.f32.vlgmr.msra.gmra.mxu0 %vm238_vm0, %v668_v38  ;;  %v926_v47 = vsel %vm924_vm6, %v921_v45, %v923_v37  ;;  %v2364_v45 = vmul.f32 %v4254_v14, %v4093_v12 }
 0x135   :  { %2020 = vrot.lane.b32.xlu0 %v2011_v31, %s4682_s5  ;;  %3540 = vmatprep.subr.mxu0 %v926_v47 }
 0x136   :  { %2140 = vrot.lane.b32.xlu1 %v2126_v43, %s4683_s14  ;;  %3541 = vmatpush3.msra.mxu0 %v926_v47  ;;  %v2371_v31 = vmul.f32 %v4111_v32, %v2364_v45  ;;  %v4389_v43 = vld [vmem:[%s4655_s0 + $0x30] sm:$0xff]  ;;  %v2479_v47 = vmul.f32 %v3934_v27, %v4089_v11 }
 0x137   :  { %v781_v49 = vpop.permute.xlu0 %780  ;;  %v917_v59 = vpop.permute.xlu1 %916 }
 0x138   :  { %3537 = vmatprep.mubr.msk.f32.mxu1 %vm238_vm0, %v781_v49  ;;  %v2480_v49 = vmul.f32 %v4254_v14, %v4089_v11  ;;  %v2486_v51 = vmul.f32 %v4103_v17, %v2479_v47 }
 0x139   :  { %2142 = vrot.lane.b32.xlu0 %v2127_v50, %s4683_s14 }
 0x13a   :  { %1907 = vrot.lane.b32.xlu1 %v4207_v29, %s3745_s25  ;;  %v2487_v12 = vmul.f32 %v4103_v17, %v2480_v49 }
 0x13b   :  { %v919_v40 = vpop.permute.xlu0 %918  ;;  %v1037_v57 = vpop.permute.xlu1 %1036 }
 0x13c   :  { %v925_v35 = vsel %vm924_vm6, %v917_v59, %v919_v40  ;;  %vm2736_vm6 = vcmask 916480  }
 0x13d   :  { %2136 = vrot.lane.b32.xlu0 %v2124_v0, %s4683_s14  ;;  %3542 = vmatprep.subr.mxu0 %v925_v35  ;;  %v2493_v0 = vmul.f32 %v4125_v42, %v2486_v51 }
 0x13e   :  { %2138 = vrot.lane.b32.xlu1 %v2125_v61, %s4683_s14  ;;  %3543 = vmatpush3.msra.mxu0 %v925_v35 }
 0x13f   :  { %v1039_v36 = vpop.permute.xlu0 %1038  ;;  %v783_v62 = vpop.permute.xlu1 %782 }
 0x140   :  { %3538 = vmatmul.mubr.msk.f32.vlgmr.msra.gmra.mxu1 %vm238_vm0, %v783_v62  ;;  %v1042_v52 = vsel %vm1040_vm7, %v1037_v57, %v1039_v36  ;;  %v2369_v57 = vmul.f32 %v4111_v32, %v2362_v48  ;;  %v2494_v32 = vmul.f32 %v4125_v42, %v2487_v12  ;;  %v2828_v12 = vmul.f32 %v4254_v14, %v4153_v58 }
 0x141   :  { %2268 = vrot.lane.b32.xlu0 %v2254_v54, %s4684_s16  ;;  %3547 = vmatprep.subr.mxu1 %v1042_v52 }
 0x142   :  { %2270 = vrot.lane.b32.xlu1 %v2255_v60, %s4684_s16  ;;  %3548 = vmatpush3.msra.mxu1 %v1042_v52 }
 0x143   :  { %v909_v5 = vpop.permute.xlu0 %908  ;;  %v1033_v10 = vpop.permute.xlu1 %1032 }
 0x144   :  { %3544 = vmatprep.mubr.msk.f32.mxu0 %vm238_vm0, %v909_v5 }
 0x145   :  { %2128 = vrot.lane.b32.xlu0 %v4368_v1, %s3723_s23 }
 0x146   :  { %2264 = vrot.lane.b32.xlu1 %v2252_v46, %s4684_s16 }
 0x147   :  { %v1035_v20 = vpop.permute.xlu0 %1034  ;;  %v1156_v21 = vpop.permute.xlu1 %1155 }
 0x148   :  { %v1041_v33 = vsel %vm1040_vm7, %v1033_v10, %v1035_v20  ;;  %vm2852_vm7 = vcmask 908288  }
 0x149   :  { %2266 = vrot.lane.b32.xlu0 %v2253_v6, %s4684_s16  ;;  %3549 = vmatprep.subr.mxu1 %v1041_v33 }
 0x14a   :  { %2384 = vrot.lane.b32.xlu1 %v2370_v26, %s4685_s19  ;;  %3550 = vmatpush3.msra.mxu1 %v1041_v33 }
 0x14b   :  { %v1158_v37 = vpop.permute.xlu0 %1157  ;;  %v911_v38 = vpop.permute.xlu1 %910 }
 0x14c   :  { %3545 = vmatmul.mubr.msk.f32.vlgmr.msra.gmra.mxu0 %vm238_vm0, %v911_v38  ;;  %v1161_v44 = vsel %vm1159_vm8, %v1156_v21, %v1158_v37  ;;  %v2600_v21 = vmul.f32 %v3922_v22, %v4121_v18 }
 0x14d   :  { %2386 = vrot.lane.b32.xlu0 %v2371_v31, %s4685_s19  ;;  %3554 = vmatprep.subr.mxu0 %v1161_v44 }
 0x14e   :  { %2130 = vrot.lane.b32.xlu1 %v4389_v43, %s3723_s23  ;;  %3555 = vmatpush3.msra.mxu0 %v1161_v44  ;;  %v2607_v33 = vmul.f32 %v4140_v55, %v2600_v21  ;;  %v2719_v44 = vmul.f32 %v4254_v14, %v4134_v24 }
 0x14f   :  { %v1025_v59 = vpop.permute.xlu0 %1024  ;;  %v1152_v50 = vpop.permute.xlu1 %1151  ;;  %3558 = vmatprep.mubr.msk.f32.mxu0 %vm238_vm0, %v4184_v34  ;;  %v2477_v34 = vmul.f32 %v3922_v22, %v4089_v11  ;;  %v2485_v11 = vmul.f32 %v4103_v17, %v2478_v53  ;;  %v2835_v53 = vmul.f32 %v4165_v63, %v2828_v12 }
 0x150   :  { %3551 = vmatprep.mubr.msk.f32.mxu1 %vm238_vm0, %v1025_v59 }
 0x151   :  { %2256 = vrot.lane.b32.xlu0 %v4368_v1, %s3727_s30  ;;  %v2484_v28 = vmul.f32 %v4103_v17, %v2477_v34  ;;  %v2603_v17 = vmul.f32 %v4254_v14, %v4121_v18  ;;  %v2492_v5 = vmul.f32 %v4125_v42, %v2485_v11 }
 0x152   :  { %2380 = vrot.lane.b32.xlu1 %v2368_v16, %s4685_s19 }
 0x153   :  { %v1154_v56 = vpop.permute.xlu0 %1153  ;;  %v1274_v40 = vpop.permute.xlu1 %1273  ;;  %v2491_v25 = vmul.f32 %v4125_v42, %v2484_v28  ;;  %v2610_v20 = vmul.f32 %v4140_v55, %v2603_v17  ;;  %v2601_v42 = vmul.f32 %v4272_v39, %v4121_v18  ;;  %v2944_v28 = vmul.f32 %v4254_v14, %v4149_v19 }
 0x154   :  { %v1160_v41 = vsel %vm1159_vm8, %v1152_v50, %v1154_v56  ;;  %v4483_v50 = vld [vmem:[%s4659_s4 + $0x8] sm:$0xff]  ;;  %vm2971_vm8 = vcmask 891904  }
 0x155   :  { %2382 = vrot.lane.b32.xlu0 %v2369_v57, %s4685_s19  ;;  %3556 = vmatprep.subr.mxu0 %v1160_v41  ;;  %v2608_v31 = vmul.f32 %v4140_v55, %v2601_v42  ;;  %v2716_v51 = vmul.f32 %v4483_v50, %v4134_v24  ;;  %v2941_v17 = vmul.f32 %v4483_v50, %v4149_v19 }
 0x156   :  { %2507 = vrot.lane.b32.xlu1 %v2493_v0, %s4686_s22  ;;  %3557 = vmatpush3.msra.mxu0 %v1160_v41 }
 0x157   :  { %v1276_v61 = vpop.permute.xlu0 %1275  ;;  %v1027_v35 = vpop.permute.xlu1 %1026  ;;  %3559 = vmatmul.mubr.msk.f32.vlgmr.msra.gmra.mxu0 %vm238_vm0, %v4207_v29  ;;  %v2602_v29 = vmul.f32 %v3934_v27, %v4121_v18  ;;  %v2718_v18 = vmul.f32 %v3934_v27, %v4134_v24 }
 0x158   :  { %3552 = vmatmul.mubr.msk.f32.vlgmr.msra.gmra.mxu1 %vm238_vm0, %v1027_v35  ;;  %v1279_v36 = vsel %vm1277_vm9, %v1274_v40, %v1276_v61  ;;  %v2717_v40 = vmul.f32 %v4272_v39, %v4134_v24  ;;  %v2825_v24 = vmul.f32 %v4483_v50, %v4153_v58 }
 0x159   :  { %2509 = vrot.lane.b32.xlu0 %v2494_v32, %s4686_s22  ;;  %3561 = vmatprep.subr.mxu1 %v1279_v36  ;;  %v2609_v10 = vmul.f32 %v4140_v55, %v2602_v29  ;;  %v4476_v55 = vld [vmem:[%s4659_s4 + $0x20] sm:$0xff]  ;;  %s4688_s4 = smov 111   ;;  %v2826_v32 = vmul.f32 %v4272_v39, %v4153_v58 }
 0x15a   :  { %2258 = vrot.lane.b32.xlu1 %v4389_v43, %s3727_s30  ;;  %3562 = vmatpush3.msra.mxu1 %v1279_v36  ;;  %v2827_v49 = vmul.f32 %v4476_v55, %v4153_v58  ;;  %v2943_v61 = vmul.f32 %v4476_v55, %v4149_v19  ;;  %v2951_v58 = vmul.f32 %v4163_v30, %v2944_v28 }
 0x15b   :  { %v1270_v62 = vpop.permute.xlu0 %1269  ;;  %v1272_v54 = vpop.permute.xlu1 %1271  ;;  %v3064_v21 = vmul.f32 %v4476_v55, %v4175_v7 }
 0x15c   :  { %v1278_v60 = vsel %vm1277_vm9, %v1270_v62, %v1272_v54  ;;  %v2834_v34 = vmul.f32 %v4165_v63, %v2827_v49  ;;  %v2950_v11 = vmul.f32 %v4163_v30, %v2943_v61  ;;  %v2832_v54 = vmul.f32 %v4165_v63, %v2825_v24 }
 0x15d   :  { %2372 = vrot.lane.b32.xlu0 %v4368_v1, %s3750_s3  ;;  %3563 = vmatprep.subr.mxu1 %v1278_v60  ;;  %vm3089_vm9 = vcmask 883712  }
 0x15e   :  { %2503 = vrot.lane.b32.xlu1 %v2491_v25, %s4686_s22  ;;  %3564 = vmatpush3.msra.mxu1 %v1278_v60  ;;  %v2833_v60 = vmul.f32 %v4165_v63, %v2826_v32  ;;  %v2942_v63 = vmul.f32 %v4272_v39, %v4149_v19 }
 0x15f   :  { %v1383_v52 = vpop.permute.xlu0 %1382  ;;  %v1385_v23 = vpop.permute.xlu1 %1384 }
 0x160   :  { %v1388_v15 = vsel %vm1386_vm10, %v1383_v52, %v1385_v23  ;;  %v2957_v23 = vmul.f32 %v4177_v9, %v2950_v11 }
 0x161   :  { %2505 = vrot.lane.b32.xlu0 %v2492_v5, %s4686_s22  ;;  %3568 = vmatprep.subr.mxu0 %v1388_v15 }
 0x162   :  { %2623 = vrot.lane.b32.xlu1 %v2609_v10, %s4687_s24  ;;  %3569 = vmatpush3.msra.mxu0 %v1388_v15  ;;  %v2958_v10 = vmul.f32 %v4177_v9, %v2951_v58  ;;  %v2948_v15 = vmul.f32 %v4163_v30, %v2941_v17 }
 0x163   :  { %v1262_v46 = vpop.permute.xlu0 %1261  ;;  %v1379_v45 = vpop.permute.xlu1 %1378 }
 0x164   :  { %3565 = vmatprep.mubr.msk.f32.mxu1 %vm238_vm0, %v1262_v46 }
 0x165   :  { %2625 = vrot.lane.b32.xlu0 %v2610_v20, %s4687_s24  ;;  %v2949_v20 = vmul.f32 %v4163_v30, %v2942_v63 }
 0x166   :  { %2374 = vrot.lane.b32.xlu1 %v4389_v43, %s3750_s3 }
 0x167   :  { %v1381_v6 = vpop.permute.xlu0 %1380  ;;  %v1499_v26 = vpop.permute.xlu1 %1498  ;;  %v2956_v30 = vmul.f32 %v4177_v9, %v2949_v20 }
 0x168   :  { %v1387_v37 = vsel %vm1386_vm10, %v1379_v45, %v1381_v6  ;;  %v2955_v6 = vmul.f32 %v4177_v9, %v2948_v15  ;;  %v3063_v9 = vmul.f32 %v4272_v39, %v4175_v7  ;;  %vm3212_vm10 = vcmask 875520  }
 0x169   :  { %2495 = vrot.lane.b32.xlu0 %v4368_v1, %s3751_s26  ;;  %3570 = vmatprep.subr.mxu0 %v1387_v37 }
 0x16a   :  { %2619 = vrot.lane.b32.xlu1 %v2607_v33, %s4687_s24  ;;  %3571 = vmatpush3.msra.mxu0 %v1387_v37 }
 0x16b   :  { %v1501_v22 = vpop.permute.xlu0 %1500  ;;  %v1264_v38 = vpop.permute.xlu1 %1263 }
 0x16c   :  { %3566 = vmatmul.mubr.msk.f32.vlgmr.msra.gmra.mxu1 %vm238_vm0, %v1264_v38  ;;  %v1504_v2 = vsel %vm1502_vm11, %v1499_v26, %v1501_v22  ;;  %v3065_v26 = vmul.f32 %v4254_v14, %v4175_v7  ;;  %v3071_v22 = vmul.f32 %v4193_v13, %v3064_v21 }
 0x16d   :  { %2621 = vrot.lane.b32.xlu0 %v2608_v31, %s4687_s24  ;;  %3575 = vmatprep.subr.mxu1 %v1504_v2  ;;  %v3062_v31 = vmul.f32 %v4483_v50, %v4175_v7 }
 0x16e   :  { %2732 = vrot.lane.b32.xlu1 %v2718_v18, %s3723_s23  ;;  %3576 = vmatpush3.msra.mxu1 %v1504_v2  ;;  %v3072_v2 = vmul.f32 %v4193_v13, %v3065_v26 }
 0x16f   :  { %v1371_v47 = vpop.permute.xlu0 %1370 }
 0x170   :  { %v1495_v48 = vpop.permute.xlu1 %1494  ;;  %3572 = vmatprep.mubr.msk.f32.mxu0 %vm238_vm0, %v1371_v47 }
 0x171   :  { %2734 = vrot.lane.b32.xlu0 %v2719_v44, %s3723_s23 }
 0x172   :  { %2497 = vrot.lane.b32.xlu1 %v4389_v43, %s3751_s26  ;;  %s4689_s26 = smov 109  }
 0x173   :  { %v1497_v27 = vpop.permute.xlu0 %1496 }
 0x174   :  { %v1608_v59 = vpop.permute.xlu1 %1607  ;;  %v1503_v16 = vsel %vm1502_vm11, %v1495_v48, %v1497_v27  ;;  %v3180_v48 = vmul.f32 %v4476_v55, %v4195_v8  ;;  %v3181_v27 = vmul.f32 %v4254_v14, %v4195_v8  ;;  %v3178_v14 = vmul.f32 %v4483_v50, %v4195_v8 }
 0x175   :  { %2611 = vrot.lane.b32.xlu0 %v4368_v1, %s3752_s2  ;;  %3577 = vmatprep.subr.mxu1 %v1503_v16 }
 0x176   :  { %2728 = vrot.lane.b32.xlu1 %v2716_v51, %s3723_s23  ;;  %3578 = vmatpush3.msra.mxu1 %v1503_v16  ;;  %v3187_v49 = vmul.f32 %v4242_v3, %v3180_v48  ;;  %v3188_v51 = vmul.f32 %v4242_v3, %v3181_v27  ;;  %v3070_v16 = vmul.f32 %v4193_v13, %v3063_v9 }
 0x177   :  { %v1610_v56 = vpop.permute.xlu0 %1609  ;;  %3589 = vmatprep.subr.mxu1 %v4476_v55 }
 0x178   :  { %v1373_v57 = vpop.permute.xlu1 %1372  ;;  %v1613_v0 = vsel %vm1611_vm12, %v1608_v59, %v1610_v56  ;;  %v3069_v59 = vmul.f32 %v4193_v13, %v3062_v31  ;;  %v3194_v56 = vmul.f32 %v4244_v4, %v3187_v49  ;;  %v3179_v13 = vmul.f32 %v4272_v39, %v4195_v8 }
 0x179   :  { %3573 = vmatmul.mubr.msk.f32.vlgmr.msra.gmra.mxu0 %vm238_vm0, %v1373_v57  ;;  %2730 = vrot.lane.b32.xlu0 %v2717_v40, %s3723_s23  ;;  %v3185_v40 = vmul.f32 %v4242_v3, %v3178_v14  ;;  %v163_v14 = vld [vmem:[%s4656_s1] sm:$0xff] }
 0x17a   :  { %2848 = vrot.lane.b32.xlu1 %v2834_v34, %s4688_s4  ;;  %3582 = vmatprep.subr.mxu0 %v1613_v0  ;;  %v3195_v34 = vmul.f32 %v4244_v4, %v3188_v51 }
 0x17b   :  { %3583 = vmatpush3.msra.mxu0 %v1613_v0  ;;  %v1487_v41 = vpop.permute.xlu0 %1486  ;;  %v3192_v61 = vmul.f32 %v4244_v4, %v3185_v40 }
 0x17c   :  { %v1604_v35 = vpop.permute.xlu1 %1603  ;;  %3579 = vmatprep.mubr.msk.f32.mxu1 %vm238_vm0, %v1487_v41  ;;  %v3186_v41 = vmul.f32 %v4242_v3, %v3179_v13  ;;  %v4603_v3 = vld [vmem:[%s4655_s0 + $0x38] sm:$0xff] }
 0x17d   :  { %2850 = vrot.lane.b32.xlu0 %v2835_v53, %s4688_s4 }
 0x17e   :  { %2613 = vrot.lane.b32.xlu1 %v4389_v43, %s3752_s2  ;;  %s4690_s2 = smov 108  }
 0x17f   :  { %v1606_v36 = vpop.permute.xlu0 %1605 }
 0x180   :  { %v1489_v62 = vpop.permute.xlu1 %1488  ;;  %v1612_v29 = vsel %vm1611_vm12, %v1604_v35, %v1606_v36  ;;  %v3193_v35 = vmul.f32 %v4244_v4, %v3186_v41 }
 0x181   :  { %3580 = vmatmul.mubr.msk.f32.vlgmr.msra.gmra.mxu1 %vm238_vm0, %v1489_v62  ;;  %2720 = vrot.lane.b32.xlu0 %v4368_v1, %s3753_s27 }
 0x182   :  { %2844 = vrot.lane.b32.xlu1 %v2832_v54, %s4688_s4  ;;  %3584 = vmatprep.subr.mxu0 %v1612_v29 }
 0x183   :  { %3585 = vmatpush3.msra.mxu0 %v1612_v29  ;;  %v1596_v25 = vpop.permute.xlu0 %1595  ;;  %3590 = vmatpush3.msra.mxu1 %v4476_v55 }
 0x184   :  { %v1802_v52 = vpop.permute.xlu1 %1801  ;;  %3586 = vmatprep.mubr.msk.f32.mxu0 %vm238_vm0, %v1596_v25  ;;  %3591 = vmatprep.subr.mxu1 %v4483_v50 }
 0x185   :  { %2846 = vrot.lane.b32.xlu0 %v2833_v60, %s4688_s4  ;;  %3592 = vmatpush3.msra.mxu1 %v4483_v50  ;;  %v4590_v50 = vld [vmem:[%s4655_s0 + $0x18] sm:$0xff] }
 0x186   :  { %2967 = vrot.lane.b32.xlu1 %v2957_v23, %s4689_s26 }
 0x187   :  { %v1804_v5 = vpop.permute.xlu0 %1803 }
 0x188   :  { %v1598_v46 = vpop.permute.xlu1 %1597  ;;  %v1807_v45 = vsel %vm1805_vm13, %v1802_v52, %v1804_v5 }
 0x189   :  { %3587 = vmatmul.mubr.msk.f32.vlgmr.msra.gmra.mxu0 %vm238_vm0, %v1598_v46  ;;  %2969 = vrot.lane.b32.xlu0 %v2958_v10, %s4689_s26 }
 0x18a   :  { %2722 = vrot.lane.b32.xlu1 %v4389_v43, %s3753_s27  ;;  %3596 = vmatprep.subr.mxu0 %v1807_v45 }
 0x18b   :  { %3597 = vmatpush3.msra.mxu0 %v1807_v45  ;;  %v1698_v19 = vpop.permute.xlu0 %1697 }
 0x18c   :  { %v1798_v42 = vpop.permute.xlu1 %1797  ;;  %3593 = vmatprep.mubr.msk.f32.mxu1 %vm238_vm0, %v1698_v19 }
 0x18d   :  { %2836 = vrot.lane.b32.xlu0 %v4368_v1, %s3745_s25 }
 0x18e   :  { %2963 = vrot.lane.b32.xlu1 %v2955_v6, %s4689_s26 }
 0x18f   :  { %v1800_v33 = vpop.permute.xlu0 %1799 }
 0x190   :  { %v1918_v37 = vpop.permute.xlu1 %1917  ;;  %v1806_v38 = vsel %vm1805_vm13, %v1798_v42, %v1800_v33 }
 0x191   :  { %2965 = vrot.lane.b32.xlu0 %v2956_v30, %s4689_s26  ;;  %3598 = vmatprep.subr.mxu0 %v1806_v38 }
 0x192   :  { %3085 = vrot.lane.b32.xlu1 %v3071_v22, %s4690_s2  ;;  %3599 = vmatpush3.msra.mxu0 %v1806_v38 }
 0x193   :  { %v1920_v18 = vpop.permute.xlu0 %1919 }
 0x194   :  { %v1700_v47 = vpop.permute.xlu1 %1699  ;;  %v1923_v44 = vsel %vm1921_vm14, %v1918_v37, %v1920_v18 }
 0x195   :  { %3594 = vmatmul.mubr.msk.f32.vlgmr.msra.gmra.mxu1 %vm238_vm0, %v1700_v47  ;;  %3087 = vrot.lane.b32.xlu0 %v3072_v2, %s4690_s2 }
 0x196   :  { %2838 = vrot.lane.b32.xlu1 %v4389_v43, %s3745_s25  ;;  %3603 = vmatprep.subr.mxu1 %v1923_v44  ;;  %s4691_s25 = smov 107  }
 0x197   :  { %3604 = vmatpush3.msra.mxu1 %v1923_v44  ;;  %v1790_v7 = vpop.permute.xlu0 %1789 }
 0x198   :  { %v1914_v55 = vpop.permute.xlu1 %1913  ;;  %3600 = vmatprep.mubr.msk.f32.mxu0 %vm238_vm0, %v1790_v7 }
 0x199   :  { %3081 = vrot.lane.b32.xlu0 %v3069_v59, %s4690_s2 }
 0x19a   :  { %3083 = vrot.lane.b32.xlu1 %v3070_v16, %s4690_s2  ;;  %v164_v16 = vld [vmem:[%s4656_s1 + $0x8] sm:$0xff] }
 0x19b   :  { %v1916_v12 = vpop.permute.xlu0 %1915 }
 0x19c   :  { %v2023_v57 = vpop.permute.xlu1 %2022  ;;  %v1922_v0 = vsel %vm1921_vm14, %v1914_v55, %v1916_v12  ;;  %v3754_v55 = vmov 0  }
 0x19d   :  { %3208 = vrot.lane.b32.xlu0 %v3194_v56, %s4691_s25  ;;  %3605 = vmatprep.subr.mxu1 %v1922_v0 }
 0x19e   :  { %3210 = vrot.lane.b32.xlu1 %v3195_v34, %s4691_s25  ;;  %3606 = vmatpush3.msra.mxu1 %v1922_v0 }
 0x19f   :  { %v2025_v53 = vpop.permute.xlu0 %2024  ;;  %3720 = vset.pattern.permute.xlu1 %v3754_v55  ;;  %3719 = vset.pattern.permute.xlu0 %v3754_v55 }
 0x1a0   :  { %v1792_v24 = vpop.permute.xlu1 %1791  ;;  %v2028_v8 = vsel %vm2026_vm15, %v2023_v57, %v2025_v53 }
 0x1a1   :  { %3601 = vmatmul.mubr.msk.f32.vlgmr.msra.gmra.mxu0 %vm238_vm0, %v1792_v24  ;;  %3073 = vrot.lane.b32.xlu0 %v4590_v50, %s3723_s23 }
 0x1a2   :  { %3204 = vrot.lane.b32.xlu1 %v3192_v61, %s4691_s25  ;;  %3610 = vmatprep.subr.mxu0 %v2028_v8 }
 0x1a3   :  { %3611 = vmatpush3.msra.mxu0 %v2028_v8  ;;  %v1906_v39 = vpop.permute.xlu0 %1905  ;;  %3614 = vmatprep.mubr.msk.f32.mxu0 %vm238_vm0, %v4368_v1 }
 0x1a4   :  { %v2019_v32 = vpop.permute.xlu1 %2018  ;;  %3607 = vmatprep.mubr.msk.f32.mxu1 %vm238_vm0, %v1906_v39 }
 0x1a5   :  { %3206 = vrot.lane.b32.xlu0 %v3193_v35, %s4691_s25 }
 0x1a6   :  { %3075 = vrot.lane.b32.xlu1 %v4603_v3, %s3723_s23 }
 0x1a7   :  { %v2021_v28 = vpop.permute.xlu0 %2020 }
 0x1a8   :  { %v2141_v36 = vpop.permute.xlu1 %2140  ;;  %v2027_v4 = vsel %vm2026_vm15, %v2019_v32, %v2021_v28 }
 0x1a9   :  { %3196 = vrot.lane.b32.xlu0 %v4590_v50, %s3727_s30  ;;  %3612 = vmatprep.subr.mxu0 %v2027_v4 }
 0x1aa   :  { %3198 = vrot.lane.b32.xlu1 %v4603_v3, %s3727_s30  ;;  %3613 = vmatpush3.msra.mxu0 %v2027_v4 }
 0x1ab   :  { %v2143_v1 = vpop.permute.xlu0 %2142  ;;  %3615 = vmatmul.mubr.msk.f32.vlgmr.msra.gmra.mxu0 %vm238_vm0, %v4389_v43 }
 0x1ac   :  { %v1908_v11 = vpop.permute.xlu1 %1907  ;;  %v2146_v62 = vsel %vm2144_vm1, %v2141_v36, %v2143_v1 }
 0x1ad   :  { %3608 = vmatmul.mubr.msk.f32.vlgmr.msra.gmra.mxu1 %vm238_vm0, %v1908_v11  ;;  %3617 = vmatprep.subr.mxu1 %v2146_v62 }
 0x1ae   :  { %3618 = vmatpush3.msra.mxu1 %v2146_v62  ;;  %3305 = vperm.xlu1 %3720, %v164_v16  }
 0x1af   :  { %v2137_v54 = vpop.permute.xlu0 %2136  ;;  %3300 = vperm.xlu0 %3719, %v163_v14  }
 0x1b0   :  { %v2139_v29 = vpop.permute.xlu1 %2138 }
 0x1b1   :  { %v2145_v58 = vsel %vm2144_vm1, %v2137_v54, %v2139_v29 }
 0x1b2   :  { %3619 = vmatprep.subr.mxu1 %v2145_v58 }
 0x1b3   :  { %3620 = vmatpush3.msra.mxu1 %v2145_v58  ;;  %v2269_v25 = vpop.permute.xlu0 %2268 }
 0x1b4   :  { %v2271_v60 = vpop.permute.xlu1 %2270 }
 0x1b5   :  { %v2274_v17 = vsel %vm2272_vm2, %v2269_v25, %v2271_v60 }
 0x1b6   :  { %3624 = vmatprep.subr.mxu0 %v2274_v17 }
 0x1b7   :  { %3625 = vmatpush3.msra.mxu0 %v2274_v17  ;;  %v2129_v52 = vpop.permute.xlu0 %2128 }
 0x1b8   :  { %v2265_v23 = vpop.permute.xlu1 %2264  ;;  %3621 = vmatprep.mubr.msk.f32.mxu1 %vm238_vm0, %v2129_v52 }
 0x1bb   :  { %v2267_v43 = vpop.permute.xlu0 %2266 }
 0x1bc   :  { %v2385_v63 = vpop.permute.xlu1 %2384  ;;  %v2273_v5 = vsel %vm2272_vm2, %v2265_v23, %v2267_v43 }
 0x1bd   :  { %3626 = vmatprep.subr.mxu0 %v2273_v5 }
 0x1be   :  { %3627 = vmatpush3.msra.mxu0 %v2273_v5 }
 0x1bf   :  { %v2387_v10 = vpop.permute.xlu0 %2386 }
 0x1c0   :  { %v2131_v15 = vpop.permute.xlu1 %2130  ;;  %v2390_v46 = vsel %vm2388_vm3, %v2385_v63, %v2387_v10 }
 0x1c1   :  { %3622 = vmatmul.mubr.msk.f32.vlgmr.msra.gmra.mxu1 %vm238_vm0, %v2131_v15  ;;  %3631 = vmatprep.subr.mxu1 %v2390_v46 }
 0x1c2   :  { %3632 = vmatpush3.msra.mxu1 %v2390_v46 }
 0x1c3   :  { %v2257_v45 = vpop.permute.xlu0 %2256 }
 0x1c4   :  { %v2381_v20 = vpop.permute.xlu1 %2380  ;;  %3628 = vmatprep.mubr.msk.f32.mxu0 %vm238_vm0, %v2257_v45  ;;  %v3504_v45 = vpop.f32.mrf.mxu0 }
 0x1c7   :  { %v2383_v19 = vpop.permute.xlu0 %2382 }
 0x1c8   :  { %v2508_v21 = vpop.permute.xlu1 %2507  ;;  %v2389_v42 = vsel %vm2388_vm3, %v2381_v20, %v2383_v19  ;;  %v309_v19 = vpop.f32.mrf.mxu0 }
 0x1c9   :  { %3633 = vmatprep.subr.mxu1 %v2389_v42  ;;  %v3511_v20 = vpop.f32.mrf.mxu1 }
 0x1ca   :  { %3634 = vmatpush3.msra.mxu1 %v2389_v42 }
 0x1cb   :  { %v2510_v6 = vpop.permute.xlu0 %2509 }
 0x1cc   :  { %v2259_v26 = vpop.permute.xlu1 %2258  ;;  %v2513_v33 = vsel %vm2511_vm4, %v2508_v21, %v2510_v6  ;;  %v405_v21 = vpop.f32.mrf.mxu1 }
 0x1cd   :  { %3629 = vmatmul.mubr.msk.f32.vlgmr.msra.gmra.mxu0 %vm238_vm0, %v2259_v26  ;;  %3638 = vmatprep.subr.mxu0 %v2513_v33 }
 0x1ce   :  { %3639 = vmatpush3.msra.mxu0 %v2513_v33 }
 0x1cf   :  { %v2373_v30 = vpop.permute.xlu0 %2372 }
 0x1d0   :  { %v2504_v37 = vpop.permute.xlu1 %2503  ;;  %3635 = vmatprep.mubr.msk.f32.mxu1 %vm238_vm0, %v2373_v30 }
 0x1d3   :  { %v2506_v22 = vpop.permute.xlu0 %2505 }
 0x1d4   :  { %v2624_v38 = vpop.permute.xlu1 %2623  ;;  %v2512_v31 = vsel %vm2511_vm4, %v2504_v37, %v2506_v22 }
 0x1d5   :  { %3640 = vmatprep.subr.mxu0 %v2512_v31  ;;  %v3518_v42 = vpop.f32.mrf.mxu0 }
 0x1d6   :  { %3641 = vmatpush3.msra.mxu0 %v2512_v31 }
 0x1d7   :  { %v2626_v18 = vpop.permute.xlu0 %2625  ;;  %v531_v26 = vpop.f32.mrf.mxu0 }
 0x1d8   :  { %v2375_v2 = vpop.permute.xlu1 %2374  ;;  %v2629_v9 = vsel %vm2627_vm5, %v2624_v38, %v2626_v18 }
 0x1d9   :  { %3636 = vmatmul.mubr.msk.f32.vlgmr.msra.gmra.mxu1 %vm238_vm0, %v2375_v2  ;;  %3645 = vmatprep.subr.mxu1 %v2629_v9 }
 0x1da   :  { %3646 = vmatpush3.msra.mxu1 %v2629_v9 }
 0x1db   :  { %v2496_v47 = vpop.permute.xlu0 %2495 }
 0x1dc   :  { %v2620_v44 = vpop.permute.xlu1 %2619  ;;  %3642 = vmatprep.mubr.msk.f32.mxu0 %vm238_vm0, %v2496_v47 }
 0x1df   :  { %v2622_v48 = vpop.permute.xlu0 %2621 }
 0x1e0   :  { %v2733_v27 = vpop.permute.xlu1 %2732  ;;  %v2628_v49 = vsel %vm2627_vm5, %v2620_v44, %v2622_v48  ;;  %v411_v44 = vadd.f32 %v3511_v20, %v3504_v45 }
 0x1e1   :  { %3647 = vmatprep.subr.mxu1 %v2628_v49 }
 0x1e2   :  { %3648 = vmatpush3.msra.mxu1 %v2628_v49  ;;  %v541_v49 = vadd.f32 %v3518_v42, %v411_v44 }
 0x1e3   :  { %v2735_v7 = vpop.permute.xlu0 %2734 }
 0x1e4   :  { %v2498_v59 = vpop.permute.xlu1 %2497  ;;  %v2738_v51 = vsel %vm2736_vm6, %v2733_v27, %v2735_v7  ;;  %v406_v27 = vadd.f32 %v405_v21, %v309_v19 }
 0x1e5   :  { %3643 = vmatmul.mubr.msk.f32.vlgmr.msra.gmra.mxu0 %vm238_vm0, %v2498_v59  ;;  %3652 = vmatprep.subr.mxu0 %v2738_v51 }
 0x1e6   :  { %3653 = vmatpush3.msra.mxu0 %v2738_v51  ;;  %v540_v59 = vadd.f32 %v531_v26, %v406_v27 }
 0x1e7   :  { %v2612_v12 = vpop.permute.xlu0 %2611 }
 0x1e8   :  { %v2729_v56 = vpop.permute.xlu1 %2728  ;;  %3649 = vmatprep.mubr.msk.f32.mxu1 %vm238_vm0, %v2612_v12  ;;  %v3525_v6 = vpop.f32.mrf.mxu1 }
 0x1e9   :  { %v657_v51 = vadd.f32 %v3525_v6, %v541_v49 }
 0x1ea   :  { %v647_v33 = vpop.f32.mrf.mxu1 }
 0x1eb   :  { %v2731_v40 = vpop.permute.xlu0 %2730  ;;  %v656_v14 = vadd.f32 %v647_v33, %v540_v59 }
 0x1ec   :  { %v2849_v57 = vpop.permute.xlu1 %2848  ;;  %v2737_v34 = vsel %vm2736_vm6, %v2729_v56, %v2731_v40 }
 0x1ed   :  { %3654 = vmatprep.subr.mxu0 %v2737_v34 }
 0x1ee   :  { %3655 = vmatpush3.msra.mxu0 %v2737_v34 }
 0x1ef   :  { %v2851_v0 = vpop.permute.xlu0 %2850 }
 0x1f0   :  { %v2614_v13 = vpop.permute.xlu1 %2613  ;;  %v2854_v41 = vsel %vm2852_vm7, %v2849_v57, %v2851_v0 }
 0x1f1   :  { %3650 = vmatmul.mubr.msk.f32.vlgmr.msra.gmra.mxu1 %vm238_vm0, %v2614_v13  ;;  %3659 = vmatprep.subr.mxu1 %v2854_v41 }
 0x1f2   :  { %3660 = vmatpush3.msra.mxu1 %v2854_v41 }
 0x1f3   :  { %v2721_v53 = vpop.permute.xlu0 %2720 }
 0x1f4   :  { %v2845_v24 = vpop.permute.xlu1 %2844  ;;  %3656 = vmatprep.mubr.msk.f32.mxu0 %vm238_vm0, %v2721_v53  ;;  %v3532_v30 = vpop.f32.mrf.mxu0 }
 0x1f5   :  { %v765_v12 = vadd.f32 %v3532_v30, %v657_v51 }
 0x1f6   :  { %v755_v22 = vpop.f32.mrf.mxu0 }
 0x1f7   :  { %v2847_v61 = vpop.permute.xlu0 %2846  ;;  %v764_v40 = vadd.f32 %v755_v22, %v656_v14 }
 0x1f8   :  { %v2968_v8 = vpop.permute.xlu1 %2967  ;;  %v2853_v39 = vsel %vm2852_vm7, %v2845_v24, %v2847_v61 }
 0x1f9   :  { %3661 = vmatprep.subr.mxu1 %v2853_v39 }
 0x1fa   :  { %3662 = vmatpush3.msra.mxu1 %v2853_v39 }
 0x1fb   :  { %v2970_v35 = vpop.permute.xlu0 %2969 }
 0x1fc   :  { %v2723_v32 = vpop.permute.xlu1 %2722  ;;  %v2973_v28 = vsel %vm2971_vm8, %v2968_v8, %v2970_v35 }
 0x1fd   :  { %3657 = vmatmul.mubr.msk.f32.vlgmr.msra.gmra.mxu0 %vm238_vm0, %v2723_v32  ;;  %3666 = vmatprep.subr.mxu0 %v2973_v28 }
 0x1fe   :  { %3667 = vmatpush3.msra.mxu0 %v2973_v28  ;;  %3670 = vmatprep.mubr.msk.f32.mxu0 %vm238_vm0, %v4590_v50 }
 0x1ff   :  { %v2837_v36 = vpop.permute.xlu0 %2836 }
 0x200   :  { %v2964_v4 = vpop.permute.xlu1 %2963  ;;  %3663 = vmatprep.mubr.msk.f32.mxu1 %vm238_vm0, %v2837_v36  ;;  %v3539_v37 = vpop.f32.mrf.mxu1 }
 0x201   :  { %v881_v57 = vadd.f32 %v3539_v37, %v765_v12 }
 0x202   :  { %v871_v38 = vpop.f32.mrf.mxu1 }
 0x203   :  { %v2966_v1 = vpop.permute.xlu0 %2965  ;;  %v880_v0 = vadd.f32 %v871_v38, %v764_v40 }
 0x204   :  { %v3086_v11 = vpop.permute.xlu1 %3085  ;;  %v2972_v62 = vsel %vm2971_vm8, %v2964_v4, %v2966_v1 }
 0x205   :  { %3668 = vmatprep.subr.mxu0 %v2972_v62 }
 0x206   :  { %3669 = vmatpush3.msra.mxu0 %v2972_v62 }
 0x207   :  { %v3088_v54 = vpop.permute.xlu0 %3087  ;;  %3671 = vmatmul.mubr.msk.f32.vlgmr.msra.gmra.mxu0 %vm238_vm0, %v4603_v3 }
 0x208   :  { %v2839_v29 = vpop.permute.xlu1 %2838  ;;  %v3091_v58 = vsel %vm3089_vm9, %v3086_v11, %v3088_v54 }
 0x209   :  { %3664 = vmatmul.mubr.msk.f32.vlgmr.msra.gmra.mxu1 %vm238_vm0, %v2839_v29  ;;  %3673 = vmatprep.subr.mxu1 %v3091_v58 }
 0x20a   :  { %3674 = vmatpush3.msra.mxu1 %v3091_v58 }
 0x20b   :  { %v3082_v50 = vpop.permute.xlu0 %3081 }
 0x20c   :  { %v3084_v25 = vpop.permute.xlu1 %3083  ;;  %v3546_v31 = vpop.f32.mrf.mxu0 }
 0x20d   :  { %v3090_v60 = vsel %vm3089_vm9, %v3082_v50, %v3084_v25  ;;  %v1009_v13 = vadd.f32 %v3546_v31, %v881_v57 }
 0x20e   :  { %3675 = vmatprep.subr.mxu1 %v3090_v60  ;;  %v999_v2 = vpop.f32.mrf.mxu0 }
 0x20f   :  { %3676 = vmatpush3.msra.mxu1 %v3090_v60  ;;  %v3209_v17 = vpop.permute.xlu0 %3208  ;;  %v1008_v24 = vadd.f32 %v999_v2, %v880_v0 }
 0x210   :  { %v3211_v52 = vpop.permute.xlu1 %3210 }
 0x211   :  { %v3214_v23 = vsel %vm3212_vm10, %v3209_v17, %v3211_v52 }
 0x212   :  { %3680 = vmatprep.subr.mxu0 %v3214_v23 }
 0x213   :  { %3681 = vmatpush3.msra.mxu0 %v3214_v23  ;;  %v3074_v43 = vpop.permute.xlu0 %3073 }
 0x214   :  { %v3205_v63 = vpop.permute.xlu1 %3204  ;;  %3677 = vmatprep.mubr.msk.f32.mxu1 %vm238_vm0, %v3074_v43 }
 0x217   :  { %v3207_v3 = vpop.permute.xlu0 %3206  ;;  %v3560_v47 = vpop.f32.mrf.mxu0 }
 0x218   :  { %v3076_v5 = vpop.permute.xlu1 %3075  ;;  %v3213_v10 = vsel %vm3212_vm10, %v3205_v63, %v3207_v3  ;;  %v3553_v18 = vpop.f32.mrf.mxu1 }
 0x219   :  { %3678 = vmatmul.mubr.msk.f32.vlgmr.msra.gmra.mxu1 %vm238_vm0, %v3076_v5  ;;  %3682 = vmatprep.subr.mxu0 %v3213_v10  ;;  %v1236_v7 = vpop.f32.mrf.mxu0  ;;  %v1125_v61 = vadd.f32 %v3553_v18, %v1009_v13 }
 0x21a   :  { %3683 = vmatpush3.msra.mxu0 %v3213_v10  ;;  %v1115_v9 = vpop.f32.mrf.mxu1 }
 0x21b   :  { %v3197_v15 = vpop.permute.xlu0 %3196  ;;  %v1124_v39 = vadd.f32 %v1115_v9, %v1008_v24  ;;  %v1246_v32 = vadd.f32 %v3560_v47, %v1125_v61 }
 0x21c   :  { %3684 = vmatprep.mubr.msk.f32.mxu0 %vm238_vm0, %v3197_v15  ;;  %v3199_v46 = vpop.permute.xlu1 %3198 }
 0x21d   :  { %3685 = vmatmul.mubr.msk.f32.vlgmr.msra.gmra.mxu0 %vm238_vm0, %v3199_v46  ;;  %v1245_v4 = vadd.f32 %v1236_v7, %v1124_v39 }
 0x22c   :  { %v3567_v48 = vpop.f32.mrf.mxu1 }
 0x22d   :  { %v1362_v1 = vadd.f32 %v3567_v48, %v1246_v32 }
 0x22e   :  { %v1352_v55 = vpop.f32.mrf.mxu1 }
 0x22f   :  { %v1361_v62 = vadd.f32 %v1352_v55, %v1245_v4 }
 0x239   :  { %v3574_v16 = vpop.f32.mrf.mxu0 }
 0x23a   :  { %v1471_v54 = vadd.f32 %v3574_v16, %v1362_v1 }
 0x23b   :  { %v1461_v34 = vpop.f32.mrf.mxu0 }
 0x23c   :  { %v1470_v58 = vadd.f32 %v1461_v34, %v1361_v62 }
 0x241   :  { %v3581_v56 = vpop.f32.mrf.mxu1 }
 0x242   :  { %v1587_v50 = vadd.f32 %v3581_v56, %v1471_v54 }
 0x243   :  { %v1577_v41 = vpop.f32.mrf.mxu1 }
 0x244   :  { %v1586_v17 = vadd.f32 %v1577_v41, %v1470_v58 }
 0x249   :  { %v3588_v53 = vpop.f32.mrf.mxu0 }
 0x24a   :  { %v1696_v52 = vadd.f32 %v3588_v53, %v1587_v50 }
 0x24b   :  { %v1686_v35 = vpop.f32.mrf.mxu0 }
 0x24c   :  { %v1695_v43 = vadd.f32 %v1686_v35, %v1586_v17 }
 0x255   :  { %v3595_v8 = vpop.f32.mrf.mxu1 }
 0x256   :  { %v1781_v63 = vadd.f32 %v3595_v8, %v1696_v52  ;;  %v3306_v8 = vpop.permute.xlu1 %3305 }
 0x257   :  { %v1771_v28 = vpop.f32.mrf.mxu1 }
 0x258   :  { %v1780_v5 = vadd.f32 %v1771_v28, %v1695_v43  ;;  %v3301_v28 = vpop.permute.xlu0 %3300 }
 0x261   :  { %v3602_v36 = vpop.f32.mrf.mxu0 }
 0x262   :  { %v1890_v10 = vadd.f32 %v3602_v36, %v1781_v63 }
 0x263   :  { %v1880_v29 = vpop.f32.mrf.mxu0 }
 0x264   :  { %v1889_v45 = vadd.f32 %v1880_v29, %v1780_v5 }
 0x26b   :  { %v3616_v60 = vpop.f32.mrf.mxu0 }
 0x26d   :  { %v3609_v11 = vpop.f32.mrf.mxu1  ;;  %v2103_v3 = vpop.f32.mrf.mxu0 }
 0x26e   :  { %v2006_v20 = vadd.f32 %v3609_v11, %v1890_v10 }
 0x26f   :  { %v1996_v25 = vpop.f32.mrf.mxu1 }
 0x270   :  { %v2005_v21 = vadd.f32 %v1996_v25, %v1889_v45  ;;  %v2113_v6 = vadd.f32 %v3616_v60, %v2006_v20 }
 0x272   :  { %v2112_v30 = vadd.f32 %v2103_v3, %v2005_v21 }
 0x281   :  { %v3623_v23 = vpop.f32.mrf.mxu1 }
 0x282   :  { %v2229_v37 = vadd.f32 %v3623_v23, %v2113_v6 }
 0x283   :  { %v2219_v15 = vpop.f32.mrf.mxu1 }
 0x284   :  { %v2228_v38 = vadd.f32 %v2219_v15, %v2112_v30 }
 0x28d   :  { %v3630_v46 = vpop.f32.mrf.mxu0 }
 0x28e   :  { %v2357_v31 = vadd.f32 %v3630_v46, %v2229_v37 }
 0x28f   :  { %v2347_v42 = vpop.f32.mrf.mxu0 }
 0x290   :  { %v2356_v2 = vadd.f32 %v2347_v42, %v2228_v38 }
 0x299   :  { %v3637_v19 = vpop.f32.mrf.mxu1 }
 0x29a   :  { %v2473_v9 = vadd.f32 %v3637_v19, %v2357_v31 }
 0x29b   :  { %v2463_v26 = vpop.f32.mrf.mxu1 }
 0x29c   :  { %v2472_v48 = vadd.f32 %v2463_v26, %v2356_v2 }
 0x2a5   :  { %v3644_v33 = vpop.f32.mrf.mxu0 }
 0x2a6   :  { %v2596_v27 = vadd.f32 %v3644_v33, %v2473_v9 }
 0x2a7   :  { %v2586_v18 = vpop.f32.mrf.mxu0 }
 0x2a8   :  { %v2595_v7 = vadd.f32 %v2586_v18, %v2472_v48 }
 0x2b1   :  { %v3651_v22 = vpop.f32.mrf.mxu1 }
 0x2b2   :  { %v2712_v59 = vadd.f32 %v3651_v22, %v2596_v27 }
 0x2b3   :  { %v2702_v47 = vpop.f32.mrf.mxu1 }
 0x2b4   :  { %v2711_v55 = vadd.f32 %v2702_v47, %v2595_v7 }
 0x2bd   :  { %v3658_v44 = vpop.f32.mrf.mxu0 }
 0x2be   :  { %v2821_v16 = vadd.f32 %v3658_v44, %v2712_v59 }
 0x2bf   :  { %v2811_v51 = vpop.f32.mrf.mxu0 }
 0x2c0   :  { %v2820_v56 = vadd.f32 %v2811_v51, %v2711_v55 }
 0x2c7   :  { %v3672_v12 = vpop.f32.mrf.mxu0 }
 0x2c9   :  { %v3665_v49 = vpop.f32.mrf.mxu1  ;;  %v3048_v34 = vpop.f32.mrf.mxu0 }
 0x2ca   :  { %v2937_v40 = vadd.f32 %v3665_v49, %v2821_v16 }
 0x2cb   :  { %v2927_v14 = vpop.f32.mrf.mxu1 }
 0x2cc   :  { %v2936_v57 = vadd.f32 %v2927_v14, %v2820_v56  ;;  %v3058_v13 = vadd.f32 %v3672_v12, %v2937_v40 }
 0x2ce   :  { %v3057_v53 = vadd.f32 %v3048_v34, %v2936_v57 }
 0x2d9   :  { %v3679_v0 = vpop.f32.mrf.mxu1 }
 0x2da   :  { %v3174_v24 = vadd.f32 %v3679_v0, %v3058_v13 }
 0x2db   :  { %v3164_v41 = vpop.f32.mrf.mxu1 }
 0x2dc   :  { %v3173_v39 = vadd.f32 %v3164_v41, %v3057_v53 }
 0x2dd   :  { %v3686_v61 = vpop.f32.mrf.mxu0 }
 0x2de   :  { %v3297_v35 = vadd.f32 %v3686_v61, %v3174_v24 }
 0x2df   :  { %v3287_v32 = vpop.f32.mrf.mxu0 }
 0x2e0   :  { %v3296_v36 = vadd.f32 %v3287_v32, %v3173_v39  ;;  %v3309_v4 = vadd.f32 %v3306_v8, %v3297_v35 }
 0x2e2   :  { %v3311_v1 = vmax.f32 %v3309_v4, 0.0  ;;  %v3308_v11 = vadd.f32 %v3301_v28, %v3296_v36 }
 0x2e4   :  { %3313 = vst [vmem:[%s4661_s6 + $0x8] sm:$0xff] %v3311_v1  ;;  %v3310_v62 = vmax.f32 %v3308_v11, 0.0 }
 0x2e6   :  { %3312 = vst [vmem:[%s4661_s6] sm:$0xff] %v3310_v62 }

// kernel: tile.14
= control target key start
LH: loop header
LB: loop body
LE: loop exit
PB: predicated region body
PF: predicated region fallthrough
CT: control target
= control target key end

     0   :  { %s22_s0 = inlined_call_operand.vmem [shape: f32[4], index: 0, kind: input, shape index: {}]   ;;  %s23_s1 = inlined_call_operand.vmem [shape: f32[8,4], index: 1, kind: output, shape index: {}]  }
   0x1   :  { %v4_v0 = vld [vmem:[%s22_s0] ss:$0 sm:$0xff] }
   0x2   :  { %5 = vst [vmem:[%s23_s1] sm:$0xff] %v4_v0 }

// kernel: tile.0
= control target key start
LH: loop header
LB: loop body
LE: loop exit
PB: predicated region body
PF: predicated region fallthrough
CT: control target
= control target key end

     0   :  { %vm3_vm0 = vcmask 7168   ;;  %s30_s8 = smov 125   ;;  %s31_s11 = smov 126   ;;  %s57_s0 = inlined_call_operand.vmem [shape: f32[8,4], index: 0, kind: input, shape index: {}]   ;;  %s58_s1 = inlined_call_operand.vmem [shape: f32[32,1], index: 1, kind: output, shape index: {}]  }
   0x1   :  { %v5_v0 = vld [vmem:[%s57_s0] sm:$0xff]   ;;  %s29_s0 = smov 127  }
   0x2   :  { %6 = vrot.lane.b32.xlu0 %v5_v0, %s29_s0  ;;  %18 = vrot.lane.b32.xlu1 %v5_v0, %s30_s8  ;;  %4 = vst.msk [vmem:[%s58_s1] ss:$4 sm:$0xff] %vm3_vm0, %v5_v0  }
   0x6   :  { %12 = vrot.lane.b32.xlu0 %v5_v0, %s31_s11 }
  0x74   :  { %v7_v1 = vpop.permute.xlu0 %6   ;;  %v19_v2 = vpop.permute.xlu1 %18  }
  0x75   :  { %23 = vst.msk [vmem:[%s58_s1 + $0x1] ss:$4 sm:$0xff] %vm3_vm0, %v7_v1   ;;  %25 = vst.msk [vmem:[%s58_s1 + $0x3] ss:$4 sm:$0xff] %vm3_vm0, %v19_v2  }
  0x78   :  { %v13_v3 = vpop.permute.xlu0 %12  }
  0x79   :  { %24 = vst.msk [vmem:[%s58_s1 + $0x2] ss:$4 sm:$0xff] %vm3_vm0, %v13_v3  }

// kernel: _lambda_.10
= control target key start
LH: loop header
LB: loop body
LE: loop exit
PB: predicated region body
PF: predicated region fallthrough
CT: control target
= control target key end

     0   :  { %v293_v0 = vlaneseq  ;;  %s3456_s23 = smov 1   ;;  %s3457_s24 = smov 5   ;;  %v3473_v16 = vmov 0.0   ;;  %vm3474_vm0 = vmmov 0   ;;  %vm213_vm1 = vcmask 130048   ;;  %s4087_s0 = inlined_call_operand.vmem [shape: f32[64,496], index: 0, kind: input, shape index: {}]   ;;  %s4088_s1 = inlined_call_operand.vmem [shape: f32[64,1], index: 1, kind: input, shape index: {}]   ;;  %s4089_s2 = inlined_call_operand.vmem [shape: f32[3,128], index: 2, kind: input, shape index: {}]   ;;  %s4090_s3 = inlined_call_operand.vmem [shape: f32[16,256], index: 3, kind: input, shape index: {}, may-alias: {3,4}]   ;;  %s4091_s4 = inlined_call_operand.vmem [shape: f32[16,256], index: 4, kind: input, shape index: {}, may-alias: {3,4}]   ;;  %s4092_s5 = inlined_call_operand.vmem [shape: f32[64,128], index: 5, kind: input, shape index: {}]   ;;  %s4093_s6 = inlined_call_operand.vmem [shape: f32[64,128], index: 6, kind: output, shape index: {}]  }
   0x1   :  { %v117_v2 = vld [vmem:[%s4089_s2] sm:$0x7]  ;;  %s3458_s25 = smov 4   ;;  %s3459_s26 = smov 16   ;;  %v122_v13 = vld [vmem:[%s4087_s0 + $0x68] sm:$0xff]  ;;  %3195 = vmatprep.subr.mxu0 %v3473_v16  ;;  %3197 = vmatprep.mubr.msk.f32.mxu0 %vm3474_vm0, %v3473_v16  ;;  %v3567_v17 = vld [vmem:[%s4090_s3 + $0x10] sm:$0xff] }
   0x2   :  { %v294_v1 = vshrl.u32 %v293_v0, 7  ;;  %s3460_s27 = smov 17   ;;  %s3461_s28 = smov 20   ;;  %v118_v9 = vld [vmem:[%s4087_s0] sm:$0xff]  ;;  %v123_v14 = vld [vmem:[%s4087_s0 + $0x88] sm:$0xff]  ;;  %3200 = vmatprep.subr.mxu1 %v3473_v16  ;;  %3204 = vmatprep.mubr.msk.f32.mxu1 %vm3474_vm0, %v3473_v16  ;;  %v125_v20 = vld [vmem:[%s4087_s0 + $0xb0] sm:$0xff] }
   0x3   :  { %s3462_s2 = smov 21   ;;  %v119_v10 = vld [vmem:[%s4087_s0 + $0x20] sm:$0xff]  ;;  %s3463_s9 = smov 112   ;;  %v124_v18 = vld [vmem:[%s4087_s0 + $0xa8] sm:$0xff]  ;;  %3201 = vmatpush3.msra.mxu1 %v3567_v17  ;;  %v3599_v21 = vld [vmem:[%s4087_s0 + $0xd0] sm:$0xff]  ;;  %v3479_v44 = vmov 0  }
   0x4   :  { %v295_v3 = vsub.s32 0, %v294_v1  ;;  %v555_v4 = vsub.s32 1, %v294_v1  ;;  %v1231_v7 = vsub.s32 2, %v294_v1  ;;  %s3464_s10 = smov 88   ;;  %s3465_s11 = smov 104   ;;  %v120_v11 = vld [vmem:[%s4087_s0 + $0x40] sm:$0xff]  ;;  %3202 = vmatprep.subr.mxu1 %v3473_v16  ;;  %3454 = vset.pattern.permute.xlu1 %v3479_v44 }
   0x5   :  { %s3466_s12 = smov 72   ;;  %s3467_s15 = smov 48   ;;  %v121_v12 = vld [vmem:[%s4087_s0 + $0x60] sm:$0xff]  ;;  %v3605_v22 = vld [vmem:[%s4091_s4 + $0x18] sm:$0xff]  ;;  %v3612_v27 = vld [vmem:[%s4091_s4 + $0x8] sm:$0xff]  ;;  %3455 = vset.pattern.permute.xlu0 %v3479_v44  ;;  %vm140_vm2 = vcmask 64512  }
   0x6   :  { %v296_v5 = vrot.slane %v117_v2, %v295_v3  ;;  %v556_v6 = vrot.slane %v117_v2, %v555_v4  ;;  %v1232_v8 = vrot.slane %v117_v2, %v1231_v7  ;;  %s3468_s16 = smov 64   ;;  %s3469_s19 = smov 32   ;;  %v109_v15 = vld [vmem:[%s4092_s5] sm:$0xff]  ;;  %v110_v59 = vld [vmem:[%s4092_s5 + $0x8] sm:$0xff]  ;;  %vm394_vm3 = vcmask 1039360  }
   0x7   :  { %s3470_s20 = smov 8   ;;  %3196 = vmatpush3.msra.mxu0 %v109_v15  ;;  %v3577_v19 = vld [vmem:[%s4090_s3] sm:$0xff]  ;;  %s3476_s17 = smov 40   ;;  %vm654_vm4 = vcmask 1014784   ;;  %vm920_vm5 = vcmask 1006592   ;;  %vm1330_vm6 = vcmask 916480  }
   0x8   :  { %298 = vrot.lane.b32.xlu0 %v296_v5, %s3456_s23  ;;  %813 = vrot.lane.b32.xlu1 %v556_v6, %s3457_s24  ;;  %s3471_s23 = smov 24   ;;  %s3477_s29 = smov 127   ;;  %v133_v44 = vld [vmem:[%s4088_s1 + $0x20] sm:$0xff]  ;;  %vm1592_vm7 = vcmask 908288   ;;  %vm2008_vm8 = vcmask 883712   ;;  %vm2431_vm9 = vcmask 875520  }
   0x9   :  { %3207 = vmatprep.subr.mxu0 %v3473_v16  ;;  %3203 = vmatpush3.msra.mxu1 %v3577_v19  ;;  %s3478_s4 = smov 124   ;;  %s3481_s7 = smov 96  }
   0xa   :  { %3214 = vmatprep.subr.mxu1 %v3473_v16  ;;  %3205 = vmatmul.mubr.msk.f32.vlgmr.msra.gmra.mxu1 %vm213_vm1, %v118_v9  ;;  %s3483_s8 = smov 108   ;;  %s3484_s13 = smov 107  }
   0xb   :  { %3218 = vmatprep.mubr.msk.f32.mxu1 %vm3474_vm0, %v3473_v16 }
   0xc   :  { %558 = vrot.lane.b32.xlu0 %v556_v6, %s3458_s25  ;;  %820 = vrot.lane.b32.xlu1 %v296_v5, %s3457_s24  ;;  %s3472_s24 = smov 120  }
  0x10   :  { %1234 = vrot.lane.b32.xlu0 %v1232_v8, %s3459_s26  ;;  %1489 = vrot.lane.b32.xlu1 %v1232_v8, %s3460_s27 }
  0x14   :  { %1496 = vrot.lane.b32.xlu0 %v296_v5, %s3460_s27  ;;  %1905 = vrot.lane.b32.xlu1 %v1232_v8, %s3461_s28 }
  0x18   :  { %1912 = vrot.lane.b32.xlu0 %v556_v6, %s3461_s28  ;;  %2317 = vrot.lane.b32.xlu1 %v1232_v8, %s3462_s2  ;;  %v127_v8 = vld [vmem:[%s4087_s0 + $0xf0] sm:$0xff] }
  0x1c   :  { %2324 = vrot.lane.b32.xlu0 %v556_v6, %s3462_s2  ;;  %2331 = vrot.lane.b32.xlu1 %v296_v5, %s3462_s2  ;;  %s3475_s2 = smov 80  }
  0x20   :  { %138 = vrot.lane.b32.xlu0 %v118_v9, %s3463_s9  ;;  %306 = vrot.lane.b32.xlu1 %v119_v10, %s3464_s10 }
  0x24   :  { %380 = vrot.lane.b32.xlu0 %v119_v10, %s3465_s11  ;;  %471 = vrot.lane.b32.xlu1 %v119_v10, %s3466_s12 }
  0x28   :  { %566 = vrot.lane.b32.xlu0 %v120_v11, %s3467_s15  ;;  %640 = vrot.lane.b32.xlu1 %v120_v11, %s3468_s16 }
  0x2c   :  { %731 = vrot.lane.b32.xlu0 %v120_v11, %s3469_s19  ;;  %829 = vrot.lane.b32.xlu1 %v121_v12, %s3470_s20 }
  0x30   :  { %831 = vrot.lane.b32.xlu0 %v122_v13, %s3470_s20  ;;  %906 = vrot.lane.b32.xlu1 %v121_v12, %s3471_s23 }
  0x34   :  { %997 = vrot.lane.b32.xlu0 %v122_v13, %s3472_s24  ;;  %1072 = vrot.lane.b32.xlu1 %v122_v13, %s3465_s11 }
  0x38   :  { %1147 = vrot.lane.b32.xlu0 %v122_v13, %s3464_s10  ;;  %1242 = vrot.lane.b32.xlu1 %v123_v14, %s3468_s16 }
  0x3c   :  { %1316 = vrot.lane.b32.xlu0 %v123_v14, %s3475_s2  ;;  %1407 = vrot.lane.b32.xlu1 %v123_v14, %s3467_s15 }
  0x40   :  { %1504 = vrot.lane.b32.xlu0 %v124_v18, %s3471_s23  ;;  %1578 = vrot.lane.b32.xlu1 %v124_v18, %s3476_s17 }
  0x44   :  { %1670 = vrot.lane.b32.xlu0 %v124_v18, %s3470_s20  ;;  %1672 = vrot.lane.b32.xlu1 %v125_v20, %s3470_s20 }
  0x48   :  { %1748 = vrot.lane.b32.xlu0 %v125_v20, %s3472_s24  ;;  %1823 = vrot.lane.b32.xlu1 %v125_v20, %s3465_s11 }
  0x4c   :  { %1920 = vrot.lane.b32.xlu0 %v3599_v21, %s3475_s2  ;;  %s3480_s2 = smov 123  }
  0x7a   :  { %v299_v23 = vpop.permute.xlu0 %298  ;;  %v814_v24 = vpop.permute.xlu1 %813 }
  0x7b   :  { %v304_v25 = vmul.f32 %v3605_v22, %v299_v23  ;;  %v303_v26 = vmul.f32 %v299_v23, %v3567_v17  ;;  %v302_v30 = vmul.f32 %v3612_v27, %v299_v23  ;;  %v301_v31 = vmul.f32 %v299_v23, %v3577_v19 }
  0x7c   :  { %v818_v46 = vmul.f32 %v814_v24, %v3567_v17  ;;  %v819_v47 = vmul.f32 %v3605_v22, %v814_v24  ;;  %v816_v52 = vmul.f32 %v814_v24, %v3577_v19  ;;  %v817_v53 = vmul.f32 %v3612_v27, %v814_v24 }
  0x7d   :  { %392 = vrot.lane.b32.xlu0 %v304_v25, %s3477_s29  ;;  %390 = vrot.lane.b32.xlu1 %v303_v26, %s3477_s29  ;;  %v128_v26 = vld [vmem:[%s4087_s0 + $0xf8] sm:$0xff]  ;;  %s3485_s0 = smov 56  }
  0x7e   :  { %v559_v28 = vpop.permute.xlu0 %558  ;;  %v821_v29 = vpop.permute.xlu1 %820 }
  0x7f   :  { %v564_v32 = vmul.f32 %v3605_v22, %v559_v28  ;;  %v563_v33 = vmul.f32 %v559_v28, %v3567_v17  ;;  %v561_v38 = vmul.f32 %v559_v28, %v3577_v19  ;;  %v562_v39 = vmul.f32 %v3612_v27, %v559_v28 }
  0x80   :  { %v825_v54 = vmul.f32 %v821_v29, %v818_v46  ;;  %v826_v55 = vmul.f32 %v821_v29, %v819_v47  ;;  %v823_v57 = vmul.f32 %v821_v29, %v816_v52  ;;  %v824_v58 = vmul.f32 %v821_v29, %v817_v53  ;;  %v132_v46 = vld [vmem:[%s4088_s1 + $0x18] sm:$0xff]  ;;  %v135_v47 = vld [vmem:[%s4088_s1 + $0x30] sm:$0xff] }
  0x81   :  { %388 = vrot.lane.b32.xlu1 %v302_v30, %s3477_s29  ;;  %386 = vrot.lane.b32.xlu0 %v301_v31, %s3477_s29  ;;  %v136_v52 = vld [vmem:[%s4088_s1 + $0x38] sm:$0xff] }
  0x82   :  { %v1235_v34 = vpop.permute.xlu0 %1234  ;;  %v3618_v35 = vpop.permute.xlu1 %1489 }
  0x83   :  { %v1239_v40 = vmul.f32 %v1235_v34, %v3567_v17  ;;  %v1240_v41 = vmul.f32 %v3605_v22, %v1235_v34  ;;  %v1238_v48 = vmul.f32 %v3612_v27, %v1235_v34  ;;  %v1237_v49 = vmul.f32 %v1235_v34, %v3577_v19 }
  0x84   :  { %v1494_v61 = vmul.f32 %v3618_v35, %v3567_v17  ;;  %v1495_v62 = vmul.f32 %v3605_v22, %v3618_v35  ;;  %v1492_v1 = vmul.f32 %v3618_v35, %v3577_v19  ;;  %v1493_v2 = vmul.f32 %v3612_v27, %v3618_v35 }
  0x85   :  { %652 = vrot.lane.b32.xlu1 %v564_v32, %s3478_s4  ;;  %650 = vrot.lane.b32.xlu0 %v563_v33, %s3478_s4 }
  0x86   :  { %v3620_v36 = vpop.permute.xlu0 %1496  ;;  %v3622_v37 = vpop.permute.xlu1 %1905 }
  0x87   :  { %v1502_v63 = vmul.f32 %v3620_v36, %v1495_v62  ;;  %v1501_v0 = vmul.f32 %v3620_v36, %v1494_v61  ;;  %v1910_v3 = vmul.f32 %v3622_v37, %v3567_v17  ;;  %v1499_v4 = vmul.f32 %v3620_v36, %v1492_v1 }
  0x88   :  { %v1500_v5 = vmul.f32 %v3620_v36, %v1493_v2  ;;  %v1909_v9 = vmul.f32 %v3612_v27, %v3622_v37  ;;  %v1911_v10 = vmul.f32 %v3605_v22, %v3622_v37  ;;  %v1908_v13 = vmul.f32 %v3622_v37, %v3577_v19 }
  0x89   :  { %646 = vrot.lane.b32.xlu1 %v561_v38, %s3478_s4  ;;  %648 = vrot.lane.b32.xlu0 %v562_v39, %s3478_s4 }
  0x8a   :  { %v3628_v42 = vpop.permute.xlu0 %1912  ;;  %v3630_v43 = vpop.permute.xlu1 %2317 }
  0x8b   :  { %v1917_v6 = vmul.f32 %v3628_v42, %v1910_v3  ;;  %v2323_v7 = vmul.f32 %v3605_v22, %v3630_v43  ;;  %v2322_v14 = vmul.f32 %v3630_v43, %v3567_v17  ;;  %v1918_v15 = vmul.f32 %v3628_v42, %v1911_v10  ;;  %v111_v3 = vld [vmem:[%s4092_s5 + $0x10] sm:$0xff] }
  0x8c   :  { %v1916_v18 = vmul.f32 %v3628_v42, %v1909_v9  ;;  %v2321_v22 = vmul.f32 %v3612_v27, %v3630_v43  ;;  %v1915_v24 = vmul.f32 %v3628_v42, %v1908_v13 }
  0x8d   :  { %1326 = vrot.lane.b32.xlu1 %v1239_v40, %s3463_s9  ;;  %1328 = vrot.lane.b32.xlu0 %v1240_v41, %s3463_s9  ;;  %v129_v40 = vld [vmem:[%s4088_s1] sm:$0xff]  ;;  %v130_v41 = vld [vmem:[%s4088_s1 + $0x8] sm:$0xff] }
  0x8e   :  { %v3634_v45 = vpop.permute.xlu0 %2324  ;;  %v3640_v50 = vpop.permute.xlu1 %2331 }
  0x8f   :  { %v2330_v11 = vmul.f32 %v3634_v45, %v2323_v7  ;;  %v2329_v23 = vmul.f32 %v3634_v45, %v2322_v14  ;;  %v2328_v29 = vmul.f32 %v3634_v45, %v2321_v22  ;;  %v112_v14 = vld [vmem:[%s4092_s5 + $0x18] sm:$0xff] }
  0x91   :  { %1324 = vrot.lane.b32.xlu1 %v1238_v48, %s3463_s9  ;;  %1322 = vrot.lane.b32.xlu0 %v1237_v49, %s3463_s9  ;;  %v2337_v20 = vmul.f32 %v3640_v50, %v2330_v11  ;;  %v2336_v30 = vmul.f32 %v3640_v50, %v2329_v23  ;;  %v2335_v32 = vmul.f32 %v3640_v50, %v2328_v29 }
  0x92   :  { %v139_v51 = vpop.permute.xlu0 %138  ;;  %v307_v56 = vpop.permute.xlu1 %306 }
  0x93   :  { %3198 = vmatmul.mubr.msk.f32.vlgmr.msra.gmra.mxu0 %vm140_vm2, %v139_v51 }
  0x94   :  { %3208 = vmatpush3.msra.mxu0 %v3567_v17  ;;  %3211 = vmatprep.mubr.msk.f32.mxu0 %vm3474_vm0, %v3473_v16 }
  0x95   :  { %916 = vrot.lane.b32.xlu1 %v825_v54, %s3480_s2  ;;  %918 = vrot.lane.b32.xlu0 %v826_v55, %s3480_s2 }
  0x96   :  { %3209 = vmatprep.subr.mxu0 %v3473_v16  ;;  %v472_v60 = vpop.permute.xlu1 %471  ;;  %v3696_v12 = vpop.permute.xlu0 %380 }
  0x97   :  { %3210 = vmatpush3.msra.mxu0 %v3577_v19 }
  0x98   :  { %3212 = vmatmul.mubr.msk.f32.vlgmr.msra.gmra.mxu0 %vm213_vm1, %v307_v56  ;;  %3221 = vmatprep.subr.mxu0 %v3473_v16 }
  0x99   :  { %912 = vrot.lane.b32.xlu1 %v823_v57, %s3480_s2  ;;  %914 = vrot.lane.b32.xlu0 %v824_v58, %s3480_s2 }
  0x9a   :  { %3222 = vmatpush3.msra.mxu0 %v110_v59  ;;  %3223 = vmatprep.mubr.msk.f32.mxu0 %vm3474_vm0, %v3473_v16  ;;  %v3711_v25 = vpop.permute.xlu0 %566  ;;  %v3724_v33 = vpop.permute.xlu1 %640 }
  0x9b   :  { %3233 = vmatprep.subr.mxu0 %v3473_v16 }
  0x9c   :  { %3224 = vmatmul.mubr.msk.f32.vlgmr.msra.gmra.mxu0 %vm140_vm2, %v472_v60 }
  0x9d   :  { %1994 = vrot.lane.b32.xlu1 %v3599_v21, %s3481_s7  ;;  %2085 = vrot.lane.b32.xlu0 %v3599_v21, %s3468_s16  ;;  %s3482_s16 = smov 111  }
  0x9e   :  { %3237 = vmatprep.mubr.msk.f32.mxu0 %vm3474_vm0, %v3473_v16  ;;  %v3720_v27 = vpop.permute.xlu0 %731  ;;  %v3730_v35 = vpop.permute.xlu1 %829 }
  0xa1   :  { %2160 = vrot.lane.b32.xlu1 %v3599_v21, %s3467_s15  ;;  %2235 = vrot.lane.b32.xlu0 %v3599_v21, %s3469_s19  ;;  %v2320_v21 = vmul.f32 %v3630_v43, %v3577_v19  ;;  %v131_v43 = vld [vmem:[%s4088_s1 + $0x10] sm:$0xff] }
  0xa2   :  { %v3726_v34 = vpop.permute.xlu0 %831  ;;  %v3736_v37 = vpop.permute.xlu1 %906 }
  0xa3   :  { %v2327_v28 = vmul.f32 %v3634_v45, %v2320_v21  ;;  %v833_v9 = vsel %vm140_vm2, %v3730_v35, %v3726_v34  ;;  %v114_v34 = vld [vmem:[%s4092_s5 + $0x28] sm:$0xff] }
  0xa5   :  { %1590 = vrot.lane.b32.xlu1 %v1502_v63, %s3482_s16  ;;  %1588 = vrot.lane.b32.xlu0 %v1501_v0, %s3482_s16  ;;  %v2334_v31 = vmul.f32 %v3640_v50, %v2327_v28  ;;  %v134_v50 = vld [vmem:[%s4088_s1 + $0x28] sm:$0xff] }
  0xa6   :  { %v3734_v36 = vpop.permute.xlu0 %997  ;;  %v3743_v39 = vpop.permute.xlu1 %1072 }
  0xa9   :  { %1584 = vrot.lane.b32.xlu1 %v1499_v4, %s3482_s16  ;;  %1586 = vrot.lane.b32.xlu0 %v1500_v5, %s3482_s16 }
  0xaa   :  { %v3739_v38 = vpop.permute.xlu0 %1147  ;;  %v3759_v45 = vpop.permute.xlu1 %1242 }
  0xad   :  { %2340 = vrot.lane.b32.xlu1 %v127_v8, %s3470_s20  ;;  %2004 = vrot.lane.b32.xlu0 %v1917_v6, %s3483_s8 }
  0xae   :  { %v3751_v42 = vpop.permute.xlu0 %1316  ;;  %v3769_v49 = vpop.permute.xlu1 %1407 }
  0xb1   :  { %2006 = vrot.lane.b32.xlu1 %v1918_v15, %s3483_s8  ;;  %2002 = vrot.lane.b32.xlu0 %v1916_v18, %s3483_s8 }
  0xb2   :  { %v3767_v48 = vpop.permute.xlu0 %1504  ;;  %v3779_v53 = vpop.permute.xlu1 %1578 }
  0xb5   :  { %2000 = vrot.lane.b32.xlu1 %v1915_v24, %s3483_s8  ;;  %2429 = vrot.lane.b32.xlu0 %v2337_v20, %s3484_s13 }
  0xb6   :  { %v3774_v51 = vpop.permute.xlu0 %1670  ;;  %v3783_v55 = vpop.permute.xlu1 %1672 }
  0xb9   :  { %2427 = vrot.lane.b32.xlu1 %v2336_v30, %s3484_s13  ;;  %2342 = vrot.lane.b32.xlu0 %v128_v26, %s3470_s20 }
  0xba   :  { %v3781_v54 = vpop.permute.xlu0 %1748  ;;  %v3785_v56 = vpop.permute.xlu1 %1823 }
  0xbd   :  { %2423 = vrot.lane.b32.xlu1 %v2334_v31, %s3484_s13  ;;  %2425 = vrot.lane.b32.xlu0 %v2335_v32, %s3484_s13  ;;  %v113_v32 = vld [vmem:[%s4092_s5 + $0x20] sm:$0xff] }
  0xbe   :  { %v3787_v57 = vpop.permute.xlu0 %1920 }
  0xc1   :  { %2417 = vrot.lane.b32.xlu1 %v127_v8, %s3471_s23  ;;  %2508 = vrot.lane.b32.xlu0 %v128_v26, %s3472_s24 }
  0xc5   :  { %2583 = vrot.lane.b32.xlu1 %v128_v26, %s3465_s11  ;;  %2658 = vrot.lane.b32.xlu0 %v128_v26, %s3464_s10 }
  0xc9   :  { %2733 = vrot.lane.b32.xlu1 %v128_v26, %s3466_s12  ;;  %2808 = vrot.lane.b32.xlu0 %v128_v26, %s3485_s0 }
  0xca   :  { %v3837_v10 = vpop.f32.mrf.mxu1 }
  0xcc   :  { %v3206_v13 = vpop.f32.mrf.mxu1 }
  0xcd   :  { %2883 = vrot.lane.b32.xlu1 %v128_v26, %s3476_s17  ;;  %2958 = vrot.lane.b32.xlu0 %v128_v26, %s3471_s23 }
  0xd1   :  { %288 = vperm.xlu1 %3454, %v129_v40   ;;  %548 = vperm.xlu0 %3455, %v130_v41  }
  0xd5   :  { %808 = vperm.xlu1 %3454, %v131_v43   ;;  %1484 = vperm.xlu0 %3455, %v133_v44  }
  0xd9   :  { %1224 = vperm.xlu1 %3454, %v132_v46   ;;  %2312 = vperm.xlu0 %3455, %v135_v47  }
  0xdd   :  { %1900 = vperm.xlu1 %3454, %v134_v50  }
  0xe1   :  { %3035 = vperm.xlu1 %3454, %v136_v52  }
  0xef   :  { %v393_v58 = vpop.permute.xlu0 %392  ;;  %v391_v59 = vpop.permute.xlu1 %390 }
  0xf0   :  { %v3789_v60 = vsel %vm394_vm3, %v391_v59, %v393_v58 }
  0xf1   :  { %3215 = vmatpush3.msra.mxu1 %v3789_v60 }
  0xf2   :  { %3216 = vmatprep.subr.mxu1 %v3473_v16 }
  0xf3   :  { %v389_v61 = vpop.permute.xlu1 %388  ;;  %v387_v62 = vpop.permute.xlu0 %386 }
  0xf4   :  { %v3793_v63 = vsel %vm394_vm3, %v387_v62, %v389_v61  ;;  %v116_v62 = vld [vmem:[%s4092_s5 + $0x38] sm:$0xff] }
  0xf5   :  { %3217 = vmatpush3.msra.mxu1 %v3793_v63 }
  0xf6   :  { %3219 = vmatmul.mubr.msk.f32.vlgmr.msra.gmra.mxu1 %vm213_vm1, %v3696_v12  ;;  %3226 = vmatprep.subr.mxu1 %v3473_v16 }
  0xf7   :  { %v653_v0 = vpop.permute.xlu1 %652  ;;  %v651_v1 = vpop.permute.xlu0 %650  ;;  %3227 = vmatpush3.msra.mxu1 %v3567_v17  ;;  %3230 = vmatprep.mubr.msk.f32.mxu1 %vm3474_vm0, %v3473_v16 }
  0xf8   :  { %v3803_v2 = vsel %vm654_vm4, %v651_v1, %v653_v0  ;;  %3228 = vmatprep.subr.mxu1 %v3473_v16 }
  0xf9   :  { %3229 = vmatpush3.msra.mxu1 %v3577_v19  ;;  %3234 = vmatpush3.msra.mxu0 %v3803_v2 }
  0xfa   :  { %3231 = vmatmul.mubr.msk.f32.vlgmr.msra.gmra.mxu1 %vm213_vm1, %v3711_v25  ;;  %3235 = vmatprep.subr.mxu0 %v3473_v16 }
  0xfb   :  { %v647_v4 = vpop.permute.xlu1 %646  ;;  %v649_v5 = vpop.permute.xlu0 %648  ;;  %3240 = vmatprep.subr.mxu1 %v3473_v16  ;;  %3242 = vmatprep.mubr.msk.f32.mxu1 %vm3474_vm0, %v3473_v16 }
  0xfc   :  { %v3818_v6 = vsel %vm654_vm4, %v647_v4, %v649_v5  ;;  %3241 = vmatpush3.msra.mxu1 %v111_v3 }
  0xfd   :  { %3236 = vmatpush3.msra.mxu0 %v3818_v6  ;;  %3252 = vmatprep.subr.mxu1 %v3473_v16 }
  0xfe   :  { %3238 = vmatmul.mubr.msk.f32.vlgmr.msra.gmra.mxu0 %vm213_vm1, %v3724_v33  ;;  %3243 = vmatmul.mubr.msk.f32.vlgmr.msra.gmra.mxu1 %vm140_vm2, %v3720_v27  ;;  %v1674_v33 = vsel %vm140_vm2, %v3774_v51, %v3783_v55 }
  0xff   :  { %3245 = vmatprep.subr.mxu0 %v3473_v16  ;;  %v1327_v7 = vpop.permute.xlu1 %1326  ;;  %v1329_v8 = vpop.permute.xlu0 %1328  ;;  %3249 = vmatprep.mubr.msk.f32.mxu0 %vm3474_vm0, %v3473_v16 }
 0x100   :  { %3246 = vmatpush3.msra.mxu0 %v3803_v2  ;;  %3256 = vmatprep.mubr.msk.f32.mxu1 %vm3474_vm0, %v3473_v16  ;;  %v3860_v21 = vsel %vm1330_vm6, %v1327_v7, %v1329_v8 }
 0x101   :  { %3247 = vmatprep.subr.mxu0 %v3473_v16 }
 0x102   :  { %3248 = vmatpush3.msra.mxu0 %v3818_v6 }
 0x103   :  { %3250 = vmatmul.mubr.msk.f32.vlgmr.msra.gmra.mxu0 %vm213_vm1, %v833_v9  ;;  %3259 = vmatprep.subr.mxu0 %v3473_v16  ;;  %v1325_v11 = vpop.permute.xlu1 %1324  ;;  %v1323_v12 = vpop.permute.xlu0 %1322 }
 0x104   :  { %3260 = vmatpush3.msra.mxu0 %v3789_v60  ;;  %3263 = vmatprep.mubr.msk.f32.mxu0 %vm3474_vm0, %v3473_v16  ;;  %v3870_v25 = vsel %vm1330_vm6, %v1323_v12, %v1325_v11 }
 0x105   :  { %3261 = vmatprep.subr.mxu0 %v3473_v16 }
 0x106   :  { %3262 = vmatpush3.msra.mxu0 %v3793_v63 }
 0x107   :  { %3264 = vmatmul.mubr.msk.f32.vlgmr.msra.gmra.mxu0 %vm213_vm1, %v3734_v36  ;;  %v917_v15 = vpop.permute.xlu1 %916  ;;  %3273 = vmatprep.subr.mxu0 %v3473_v16  ;;  %v919_v18 = vpop.permute.xlu0 %918 }
 0x108   :  { %v3853_v20 = vsel %vm920_vm5, %v917_v15, %v919_v18  ;;  %3274 = vmatpush3.msra.mxu0 %v112_v14  ;;  %3275 = vmatprep.mubr.msk.f32.mxu0 %vm3474_vm0, %v3473_v16 }
 0x109   :  { %3253 = vmatpush3.msra.mxu1 %v3853_v20  ;;  %3285 = vmatprep.subr.mxu0 %v3473_v16 }
 0x10a   :  { %3254 = vmatprep.subr.mxu1 %v3473_v16 }
 0x10b   :  { %3276 = vmatmul.mubr.msk.f32.vlgmr.msra.gmra.mxu0 %vm140_vm2, %v3739_v38  ;;  %v913_v22 = vpop.permute.xlu1 %912  ;;  %v915_v23 = vpop.permute.xlu0 %914 }
 0x10c   :  { %3286 = vmatpush3.msra.mxu0 %v3860_v21  ;;  %v3866_v24 = vsel %vm920_vm5, %v913_v22, %v915_v23  ;;  %3289 = vmatprep.mubr.msk.f32.mxu0 %vm3474_vm0, %v3473_v16 }
 0x10d   :  { %3287 = vmatprep.subr.mxu0 %v3473_v16  ;;  %3255 = vmatpush3.msra.mxu1 %v3866_v24 }
 0x10e   :  { %3288 = vmatpush3.msra.mxu0 %v3870_v25  ;;  %3257 = vmatmul.mubr.msk.f32.vlgmr.msra.gmra.mxu1 %vm213_vm1, %v3736_v37 }
 0x10f   :  { %3297 = vmatprep.subr.mxu0 %v3473_v16  ;;  %3266 = vmatprep.subr.mxu1 %v3473_v16  ;;  %v3879_v26 = vpop.permute.xlu1 %1994  ;;  %v3881_v28 = vpop.permute.xlu0 %2085 }
 0x110   :  { %3290 = vmatmul.mubr.msk.f32.vlgmr.msra.gmra.mxu0 %vm213_vm1, %v3751_v42  ;;  %3267 = vmatpush3.msra.mxu1 %v3567_v17 }
 0x111   :  { %3298 = vmatpush3.msra.mxu0 %v3860_v21  ;;  %3268 = vmatprep.subr.mxu1 %v3473_v16 }
 0x112   :  { %3299 = vmatprep.subr.mxu0 %v3473_v16  ;;  %3269 = vmatpush3.msra.mxu1 %v3577_v19 }
 0x113   :  { %3300 = vmatpush3.msra.mxu0 %v3870_v25  ;;  %3270 = vmatprep.mubr.msk.f32.mxu1 %vm3474_vm0, %v3473_v16  ;;  %v3893_v29 = vpop.permute.xlu1 %2160  ;;  %v3895_v30 = vpop.permute.xlu0 %2235 }
 0x114   :  { %3301 = vmatprep.mubr.msk.f32.mxu0 %vm3474_vm0, %v3473_v16  ;;  %3311 = vmatprep.subr.mxu0 %v3473_v16 }
 0x115   :  { %3271 = vmatmul.mubr.msk.f32.vlgmr.msra.gmra.mxu1 %vm213_vm1, %v3743_v39  ;;  %3278 = vmatprep.subr.mxu1 %v3473_v16 }
 0x116   :  { %3302 = vmatmul.mubr.msk.f32.vlgmr.msra.gmra.mxu0 %vm213_vm1, %v3767_v48  ;;  %3279 = vmatpush3.msra.mxu1 %v3567_v17 }
 0x117   :  { %3312 = vmatpush3.msra.mxu0 %v3789_v60  ;;  %3280 = vmatprep.subr.mxu1 %v3473_v16  ;;  %v1591_v27 = vpop.permute.xlu1 %1590  ;;  %v1589_v31 = vpop.permute.xlu0 %1588 }
 0x118   :  { %3313 = vmatprep.subr.mxu0 %v3473_v16  ;;  %3281 = vmatpush3.msra.mxu1 %v3577_v19  ;;  %v3929_v37 = vsel %vm1592_vm7, %v1589_v31, %v1591_v27 }
 0x119   :  { %3314 = vmatpush3.msra.mxu0 %v3793_v63  ;;  %3282 = vmatprep.mubr.msk.f32.mxu1 %vm3474_vm0, %v3473_v16 }
 0x11a   :  { %3315 = vmatprep.mubr.msk.f32.mxu0 %vm3474_vm0, %v3473_v16  ;;  %3283 = vmatmul.mubr.msk.f32.vlgmr.msra.gmra.mxu1 %vm213_vm1, %v3759_v45 }
 0x11b   :  { %3316 = vmatmul.mubr.msk.f32.vlgmr.msra.gmra.mxu0 %vm213_vm1, %v1674_v33  ;;  %3292 = vmatprep.subr.mxu1 %v3473_v16  ;;  %v1585_v35 = vpop.permute.xlu1 %1584  ;;  %v1587_v36 = vpop.permute.xlu0 %1586 }
 0x11c   :  { %3293 = vmatpush3.msra.mxu1 %v113_v32  ;;  %3325 = vmatprep.subr.mxu0 %v3473_v16  ;;  %v3940_v38 = vsel %vm1592_vm7, %v1585_v35, %v1587_v36 }
 0x11d   :  { %3294 = vmatprep.mubr.msk.f32.mxu1 %vm3474_vm0, %v3473_v16  ;;  %3304 = vmatprep.subr.mxu1 %v3473_v16 }
 0x11e   :  { %3326 = vmatpush3.msra.mxu0 %v114_v34  ;;  %3327 = vmatprep.mubr.msk.f32.mxu0 %vm3474_vm0, %v3473_v16 }
 0x11f   :  { %3295 = vmatmul.mubr.msk.f32.vlgmr.msra.gmra.mxu1 %vm140_vm2, %v3769_v49  ;;  %3328 = vmatmul.mubr.msk.f32.vlgmr.msra.gmra.mxu0 %vm140_vm2, %v3785_v56  ;;  %v3942_v39 = vpop.permute.xlu1 %2340  ;;  %v2005_v40 = vpop.permute.xlu0 %2004  ;;  %v115_v49 = vld [vmem:[%s4092_s5 + $0x30] sm:$0xff] }
 0x120   :  { %3305 = vmatpush3.msra.mxu1 %v3929_v37  ;;  %3308 = vmatprep.mubr.msk.f32.mxu1 %vm3474_vm0, %v3473_v16 }
 0x121   :  { %3306 = vmatprep.subr.mxu1 %v3473_v16  ;;  %3337 = vmatprep.subr.mxu0 %v3473_v16 }
 0x122   :  { %3307 = vmatpush3.msra.mxu1 %v3940_v38  ;;  %3341 = vmatprep.mubr.msk.f32.mxu0 %vm3474_vm0, %v3473_v16 }
 0x123   :  { %3309 = vmatmul.mubr.msk.f32.vlgmr.msra.gmra.mxu1 %vm213_vm1, %v3779_v53  ;;  %3318 = vmatprep.subr.mxu1 %v3473_v16  ;;  %v2007_v41 = vpop.permute.xlu1 %2006  ;;  %v2003_v42 = vpop.permute.xlu0 %2002 }
 0x124   :  { %3319 = vmatpush3.msra.mxu1 %v3567_v17  ;;  %3322 = vmatprep.mubr.msk.f32.mxu1 %vm3474_vm0, %v3473_v16  ;;  %v2010_v43 = vsel %vm2008_vm8, %v2005_v40, %v2007_v41 }
 0x125   :  { %3320 = vmatprep.subr.mxu1 %v3473_v16  ;;  %3338 = vmatpush3.msra.mxu0 %v2010_v43 }
 0x126   :  { %3321 = vmatpush3.msra.mxu1 %v3577_v19  ;;  %3339 = vmatprep.subr.mxu0 %v3473_v16 }
 0x127   :  { %3323 = vmatmul.mubr.msk.f32.vlgmr.msra.gmra.mxu1 %vm213_vm1, %v3781_v54  ;;  %3330 = vmatprep.subr.mxu1 %v3473_v16  ;;  %v2001_v44 = vpop.permute.xlu1 %2000  ;;  %v2430_v45 = vpop.permute.xlu0 %2429 }
 0x128   :  { %3331 = vmatpush3.msra.mxu1 %v3860_v21  ;;  %3334 = vmatprep.mubr.msk.f32.mxu1 %vm3474_vm0, %v3473_v16  ;;  %v2009_v46 = vsel %vm2008_vm8, %v2001_v44, %v2003_v42 }
 0x129   :  { %3332 = vmatprep.subr.mxu1 %v3473_v16  ;;  %3340 = vmatpush3.msra.mxu0 %v2009_v46 }
 0x12a   :  { %3333 = vmatpush3.msra.mxu1 %v3870_v25  ;;  %3342 = vmatmul.mubr.msk.f32.vlgmr.msra.gmra.mxu0 %vm213_vm1, %v3879_v26 }
 0x12b   :  { %3335 = vmatmul.mubr.msk.f32.vlgmr.msra.gmra.mxu1 %vm213_vm1, %v3787_v57  ;;  %3344 = vmatprep.subr.mxu1 %v3473_v16  ;;  %v2428_v47 = vpop.permute.xlu1 %2427  ;;  %v2343_v48 = vpop.permute.xlu0 %2342 }
 0x12c   :  { %3345 = vmatpush3.msra.mxu1 %v3803_v2  ;;  %3348 = vmatprep.mubr.msk.f32.mxu1 %vm3474_vm0, %v3473_v16  ;;  %v2433_v50 = vsel %vm2431_vm9, %v2428_v47, %v2430_v45  ;;  %v2344_v54 = vsel %vm140_vm2, %v3942_v39, %v2343_v48 }
 0x12d   :  { %3346 = vmatprep.subr.mxu1 %v3473_v16  ;;  %3351 = vmatprep.subr.mxu0 %v3473_v16 }
 0x12e   :  { %3347 = vmatpush3.msra.mxu1 %v3818_v6  ;;  %3352 = vmatpush3.msra.mxu0 %v3567_v17 }
 0x12f   :  { %3349 = vmatmul.mubr.msk.f32.vlgmr.msra.gmra.mxu1 %vm213_vm1, %v3881_v28  ;;  %3358 = vmatprep.subr.mxu1 %v3473_v16  ;;  %v2424_v51 = vpop.permute.xlu1 %2423  ;;  %v2426_v52 = vpop.permute.xlu0 %2425 }
 0x130   :  { %3353 = vmatprep.subr.mxu0 %v3473_v16  ;;  %3359 = vmatpush3.msra.mxu1 %v115_v49  ;;  %v2432_v53 = vsel %vm2431_vm9, %v2424_v51, %v2426_v52 }
 0x131   :  { %3354 = vmatpush3.msra.mxu0 %v3577_v19  ;;  %3355 = vmatprep.mubr.msk.f32.mxu0 %vm3474_vm0, %v3473_v16 }
 0x132   :  { %3360 = vmatprep.mubr.msk.f32.mxu1 %vm3474_vm0, %v3473_v16  ;;  %3370 = vmatprep.subr.mxu1 %v3473_v16 }
 0x133   :  { %3356 = vmatmul.mubr.msk.f32.vlgmr.msra.gmra.mxu0 %vm213_vm1, %v3893_v29  ;;  %3361 = vmatmul.mubr.msk.f32.vlgmr.msra.gmra.mxu1 %vm140_vm2, %v3895_v30  ;;  %v2418_v55 = vpop.permute.xlu1 %2417  ;;  %v2509_v56 = vpop.permute.xlu0 %2508 }
 0x134   :  { %3363 = vmatprep.subr.mxu0 %v3473_v16  ;;  %3371 = vmatpush3.msra.mxu1 %v2433_v50 }
 0x135   :  { %3364 = vmatpush3.msra.mxu0 %v2010_v43  ;;  %3372 = vmatprep.subr.mxu1 %v3473_v16 }
 0x136   :  { %3365 = vmatprep.subr.mxu0 %v3473_v16  ;;  %3367 = vmatprep.mubr.msk.f32.mxu0 %vm3474_vm0, %v3473_v16 }
 0x137   :  { %3366 = vmatpush3.msra.mxu0 %v2009_v46  ;;  %3373 = vmatpush3.msra.mxu1 %v2432_v53  ;;  %v2584_v57 = vpop.permute.xlu1 %2583  ;;  %v2659_v58 = vpop.permute.xlu0 %2658 }
 0x138   :  { %3368 = vmatmul.mubr.msk.f32.vlgmr.msra.gmra.mxu0 %vm213_vm1, %v2344_v54  ;;  %3377 = vmatprep.subr.mxu0 %v3473_v16 }
 0x139   :  { %3374 = vmatprep.mubr.msk.f32.mxu1 %vm3474_vm0, %v3473_v16  ;;  %3378 = vmatpush3.msra.mxu0 %v3929_v37 }
 0x13a   :  { %3384 = vmatprep.subr.mxu1 %v3473_v16  ;;  %3375 = vmatmul.mubr.msk.f32.vlgmr.msra.gmra.mxu1 %vm213_vm1, %v2418_v55 }
 0x13b   :  { %3379 = vmatprep.subr.mxu0 %v3473_v16  ;;  %3385 = vmatpush3.msra.mxu1 %v3860_v21  ;;  %v2734_v59 = vpop.permute.xlu1 %2733  ;;  %v2809_v61 = vpop.permute.xlu0 %2808 }
 0x13c   :  { %3380 = vmatpush3.msra.mxu0 %v3940_v38  ;;  %3381 = vmatprep.mubr.msk.f32.mxu0 %vm3474_vm0, %v3473_v16 }
 0x13d   :  { %3386 = vmatprep.subr.mxu1 %v3473_v16  ;;  %3382 = vmatmul.mubr.msk.f32.vlgmr.msra.gmra.mxu0 %vm213_vm1, %v2509_v56 }
 0x13e   :  { %3387 = vmatpush3.msra.mxu1 %v3870_v25  ;;  %3391 = vmatprep.subr.mxu0 %v3473_v16 }
 0x13f   :  { %3388 = vmatprep.mubr.msk.f32.mxu1 %vm3474_vm0, %v3473_v16  ;;  %3392 = vmatpush3.msra.mxu0 %v3853_v20  ;;  %v2959_v0 = vpop.permute.xlu0 %2958 }
 0x140   :  { %3398 = vmatprep.subr.mxu1 %v3473_v16  ;;  %3389 = vmatmul.mubr.msk.f32.vlgmr.msra.gmra.mxu1 %vm213_vm1, %v2584_v57 }
 0x141   :  { %3393 = vmatprep.subr.mxu0 %v3473_v16  ;;  %3399 = vmatpush3.msra.mxu1 %v3803_v2 }
 0x142   :  { %3394 = vmatpush3.msra.mxu0 %v3866_v24  ;;  %3395 = vmatprep.mubr.msk.f32.mxu0 %vm3474_vm0, %v3473_v16 }
 0x143   :  { %3400 = vmatprep.subr.mxu1 %v3473_v16  ;;  %3396 = vmatmul.mubr.msk.f32.vlgmr.msra.gmra.mxu0 %vm213_vm1, %v2659_v58 }
 0x144   :  { %3401 = vmatpush3.msra.mxu1 %v3818_v6  ;;  %3405 = vmatprep.subr.mxu0 %v3473_v16 }
 0x145   :  { %3402 = vmatprep.mubr.msk.f32.mxu1 %vm3474_vm0, %v3473_v16  ;;  %3406 = vmatpush3.msra.mxu0 %v3789_v60  ;;  %v2884_v60 = vpop.permute.xlu1 %2883 }
 0x146   :  { %3403 = vmatmul.mubr.msk.f32.vlgmr.msra.gmra.mxu1 %vm213_vm1, %v2734_v59  ;;  %3407 = vmatprep.subr.mxu0 %v3473_v16 }
 0x147   :  { %3412 = vmatprep.subr.mxu1 %v3473_v16  ;;  %3408 = vmatpush3.msra.mxu0 %v3793_v63 }
 0x148   :  { %3409 = vmatprep.mubr.msk.f32.mxu0 %vm3474_vm0, %v3473_v16  ;;  %3413 = vmatpush3.msra.mxu1 %v3567_v17 }
 0x149   :  { %3410 = vmatmul.mubr.msk.f32.vlgmr.msra.gmra.mxu0 %vm213_vm1, %v2809_v61  ;;  %3414 = vmatprep.subr.mxu1 %v3473_v16 }
 0x14a   :  { %3419 = vmatprep.subr.mxu0 %v3473_v16  ;;  %3415 = vmatpush3.msra.mxu1 %v3577_v19 }
 0x14b   :  { %3416 = vmatprep.mubr.msk.f32.mxu1 %vm3474_vm0, %v3473_v16  ;;  %3420 = vmatpush3.msra.mxu0 %v116_v62 }
 0x14c   :  { %3417 = vmatmul.mubr.msk.f32.vlgmr.msra.gmra.mxu1 %vm213_vm1, %v2884_v60  ;;  %3421 = vmatprep.mubr.msk.f32.mxu0 %vm3474_vm0, %v3473_v16  ;;  %v289_v63 = vpop.permute.xlu1 %288  ;;  %v549_v11 = vpop.permute.xlu0 %548 }
 0x14d   :  { %3422 = vmatmul.mubr.msk.f32.vlgmr.msra.gmra.mxu0 %vm140_vm2, %v2959_v0 }
 0x150   :  { %v809_v22 = vpop.permute.xlu1 %808  ;;  %v1485_v54 = vpop.permute.xlu0 %1484 }
 0x153   :  { %v209_v17 = vpop.f32.mrf.mxu0 }
 0x154   :  { %v283_v1 = vadd.f32 %v3837_v10, %v209_v17  ;;  %v1225_v44 = vpop.permute.xlu1 %1224 }
 0x155   :  { %v3199_v2 = vpop.f32.mrf.mxu0 }
 0x156   :  { %v291_v3 = vadd.f32 %v289_v63, %v283_v1 }
 0x158   :  { %v376_v4 = vpop.f32.mrf.mxu0  ;;  %v292_v19 = vmax.f32 %v291_v3, 0.0 }
 0x15a   :  { %3040 = vst [vmem:[%s4093_s6] sm:$0xff] %v292_v19  ;;  %v3213_v5 = vpop.f32.mrf.mxu0 }
 0x15c   :  { %v541_v6 = vpop.f32.mrf.mxu0 }
 0x15e   :  { %v3225_v7 = vpop.f32.mrf.mxu0 }
 0x1b6   :  { %v467_v8 = vpop.f32.mrf.mxu1 }
 0x1b7   :  { %v468_v9 = vadd.f32 %v467_v8, %v376_v4  ;;  %v1901_v4 = vpop.permute.xlu1 %1900 }
 0x1b8   :  { %v3220_v16 = vpop.f32.mrf.mxu1 }
 0x1b9   :  { %v545_v12 = vadd.f32 %v541_v6, %v468_v9 }
 0x1ba   :  { %v636_v13 = vpop.f32.mrf.mxu1 }
 0x1bb   :  { %v551_v14 = vadd.f32 %v549_v11, %v545_v12 }
 0x1bc   :  { %v3232_v15 = vpop.f32.mrf.mxu1 }
 0x1bd   :  { %v552_v10 = vmax.f32 %v551_v14, 0.0 }
 0x1be   :  { %v727_v18 = vpop.f32.mrf.mxu0  ;;  %v801_v20 = vpop.f32.mrf.mxu1 }
 0x1bf   :  { %3041 = vst [vmem:[%s4093_s6 + $0x8] sm:$0xff] %v552_v10  ;;  %v728_v21 = vadd.f32 %v727_v18, %v636_v13 }
 0x1c0   :  { %v3239_v23 = vpop.f32.mrf.mxu0  ;;  %v3244_v24 = vpop.f32.mrf.mxu1 }
 0x1c1   :  { %v805_v25 = vadd.f32 %v801_v20, %v728_v21  ;;  %v2313_v20 = vpop.permute.xlu0 %2312 }
 0x1c3   :  { %v811_v26 = vadd.f32 %v809_v22, %v805_v25  ;;  %v902_v28 = vpop.f32.mrf.mxu0 }
 0x1c5   :  { %v812_v29 = vmax.f32 %v811_v26, 0.0  ;;  %v3251_v30 = vpop.f32.mrf.mxu0 }
 0x1c7   :  { %3042 = vst [vmem:[%s4093_s6 + $0x10] sm:$0xff] %v812_v29  ;;  %v1067_v27 = vpop.f32.mrf.mxu0 }
 0x1c9   :  { %v3265_v31 = vpop.f32.mrf.mxu0 }
 0x1cb   :  { %v1217_v32 = vpop.f32.mrf.mxu0 }
 0x1cd   :  { %v3277_v33 = vpop.f32.mrf.mxu0 }
 0x1ce   :  { %v993_v34 = vpop.f32.mrf.mxu1 }
 0x1cf   :  { %v994_v35 = vadd.f32 %v993_v34, %v902_v28 }
 0x1d0   :  { %v1403_v36 = vpop.f32.mrf.mxu0  ;;  %v3258_v37 = vpop.f32.mrf.mxu1 }
 0x1d1   :  { %v1071_v39 = vadd.f32 %v1067_v27, %v994_v35 }
 0x1d2   :  { %v3291_v38 = vpop.f32.mrf.mxu0 }
 0x1d5   :  { %v1142_v40 = vpop.f32.mrf.mxu1 }
 0x1d6   :  { %v1146_v41 = vadd.f32 %v1142_v40, %v1071_v39  ;;  %v1574_v42 = vpop.f32.mrf.mxu0 }
 0x1d7   :  { %v3272_v43 = vpop.f32.mrf.mxu1 }
 0x1d8   :  { %v3303_v45 = vpop.f32.mrf.mxu0  ;;  %v1221_v46 = vadd.f32 %v1217_v32, %v1146_v41 }
 0x1da   :  { %v1227_v47 = vadd.f32 %v1225_v44, %v1221_v46  ;;  %v1312_v48 = vpop.f32.mrf.mxu1 }
 0x1db   :  { %v1743_v49 = vpop.f32.mrf.mxu0  ;;  %v1404_v53 = vadd.f32 %v1403_v36, %v1312_v48 }
 0x1dc   :  { %v1228_v50 = vmax.f32 %v1227_v47, 0.0  ;;  %v3284_v51 = vpop.f32.mrf.mxu1 }
 0x1dd   :  { %v3317_v52 = vpop.f32.mrf.mxu0 }
 0x1de   :  { %3043 = vst [vmem:[%s4093_s6 + $0x18] sm:$0xff] %v1228_v50  ;;  %v3036_v52 = vpop.permute.xlu1 %3035 }
 0x1df   :  { %v1477_v55 = vpop.f32.mrf.mxu1  ;;  %v1893_v56 = vpop.f32.mrf.mxu0 }
 0x1e0   :  { %v1481_v57 = vadd.f32 %v1477_v55, %v1404_v53 }
 0x1e1   :  { %v3329_v58 = vpop.f32.mrf.mxu0  ;;  %v3296_v59 = vpop.f32.mrf.mxu1 }
 0x1e2   :  { %v1487_v61 = vadd.f32 %v1485_v54, %v1481_v57 }
 0x1e3   :  { %v1665_v62 = vpop.f32.mrf.mxu1 }
 0x1e4   :  { %v1488_v60 = vmax.f32 %v1487_v61, 0.0  ;;  %v1666_v0 = vadd.f32 %v1665_v62, %v1574_v42 }
 0x1e5   :  { %v3310_v17 = vpop.f32.mrf.mxu1 }
 0x1e6   :  { %3044 = vst [vmem:[%s4093_s6 + $0x20] sm:$0xff] %v1488_v60  ;;  %v1747_v63 = vadd.f32 %v1743_v49, %v1666_v0 }
 0x1e7   :  { %v1818_v1 = vpop.f32.mrf.mxu1 }
 0x1e8   :  { %v1822_v2 = vadd.f32 %v1818_v1, %v1747_v63 }
 0x1e9   :  { %v3324_v3 = vpop.f32.mrf.mxu1 }
 0x1ea   :  { %v1897_v19 = vadd.f32 %v1893_v56, %v1822_v2  ;;  %v2081_v5 = vpop.f32.mrf.mxu0 }
 0x1eb   :  { %v1990_v6 = vpop.f32.mrf.mxu1 }
 0x1ec   :  { %v1903_v7 = vadd.f32 %v1901_v4, %v1897_v19  ;;  %v2082_v8 = vadd.f32 %v2081_v5, %v1990_v6  ;;  %v3343_v9 = vpop.f32.mrf.mxu0 }
 0x1ed   :  { %v3336_v16 = vpop.f32.mrf.mxu1 }
 0x1ee   :  { %v1904_v11 = vmax.f32 %v1903_v7, 0.0 }
 0x1ef   :  { %v2155_v12 = vpop.f32.mrf.mxu1 }
 0x1f0   :  { %3045 = vst [vmem:[%s4093_s6 + $0x28] sm:$0xff] %v1904_v11  ;;  %v2159_v13 = vadd.f32 %v2155_v12, %v2082_v8 }
 0x1f1   :  { %v3350_v14 = vpop.f32.mrf.mxu1 }
 0x1f3   :  { %v2230_v15 = vpop.f32.mrf.mxu0  ;;  %v2305_v10 = vpop.f32.mrf.mxu1 }
 0x1f4   :  { %v2234_v18 = vadd.f32 %v2230_v15, %v2159_v13 }
 0x1f5   :  { %v3357_v21 = vpop.f32.mrf.mxu0  ;;  %v3362_v22 = vpop.f32.mrf.mxu1 }
 0x1f6   :  { %v2309_v23 = vadd.f32 %v2305_v10, %v2234_v18 }
 0x1f8   :  { %v2413_v24 = vpop.f32.mrf.mxu0  ;;  %v2315_v25 = vadd.f32 %v2313_v20, %v2309_v23 }
 0x1fa   :  { %v2316_v26 = vmax.f32 %v2315_v25, 0.0  ;;  %v3369_v28 = vpop.f32.mrf.mxu0  ;;  %v2504_v29 = vpop.f32.mrf.mxu1 }
 0x1fb   :  { %v2505_v30 = vadd.f32 %v2504_v29, %v2413_v24 }
 0x1fc   :  { %3046 = vst [vmem:[%s4093_s6 + $0x30] sm:$0xff] %v2316_v26  ;;  %v3376_v27 = vpop.f32.mrf.mxu1 }
 0x1fd   :  { %v2578_v31 = vpop.f32.mrf.mxu0 }
 0x1fe   :  { %v2582_v32 = vadd.f32 %v2578_v31, %v2505_v30 }
 0x1ff   :  { %v3383_v33 = vpop.f32.mrf.mxu0 }
 0x200   :  { %v2653_v34 = vpop.f32.mrf.mxu1 }
 0x201   :  { %v2657_v35 = vadd.f32 %v2653_v34, %v2582_v32 }
 0x202   :  { %v3390_v36 = vpop.f32.mrf.mxu1 }
 0x203   :  { %v2728_v37 = vpop.f32.mrf.mxu0 }
 0x204   :  { %v2732_v38 = vadd.f32 %v2728_v37, %v2657_v35 }
 0x205   :  { %v3397_v39 = vpop.f32.mrf.mxu0 }
 0x206   :  { %v2803_v40 = vpop.f32.mrf.mxu1 }
 0x207   :  { %v2807_v41 = vadd.f32 %v2803_v40, %v2732_v38 }
 0x208   :  { %v3404_v42 = vpop.f32.mrf.mxu1 }
 0x209   :  { %v2878_v43 = vpop.f32.mrf.mxu0 }
 0x20a   :  { %v2882_v44 = vadd.f32 %v2878_v43, %v2807_v41 }
 0x20b   :  { %v3411_v45 = vpop.f32.mrf.mxu0 }
 0x20c   :  { %v2953_v46 = vpop.f32.mrf.mxu1 }
 0x20d   :  { %v2957_v47 = vadd.f32 %v2953_v46, %v2882_v44  ;;  %v3028_v48 = vpop.f32.mrf.mxu0 }
 0x20e   :  { %v3418_v49 = vpop.f32.mrf.mxu1 }
 0x20f   :  { %v3032_v50 = vadd.f32 %v3028_v48, %v2957_v47  ;;  %v3423_v51 = vpop.f32.mrf.mxu0 }
 0x211   :  { %v3038_v53 = vadd.f32 %v3036_v52, %v3032_v50 }
 0x213   :  { %v3039_v54 = vmax.f32 %v3038_v53, 0.0 }
 0x215   :  { %3047 = vst [vmem:[%s4093_s6 + $0x38] sm:$0xff] %v3039_v54 }

// kernel: _lambda_.11
= control target key start
LH: loop header
LB: loop body
LE: loop exit
PB: predicated region body
PF: predicated region fallthrough
CT: control target
= control target key end

     0   :  { %s3827_s21 = smov 0   ;;  %s3829_s22 = smov 0   ;;  %s4193_s0 = inlined_call_operand.vmem [shape: f32[32,248], index: 0, kind: input, shape index: {}]   ;;  %s4194_s1 = inlined_call_operand.vmem [shape: f32[32,1], index: 1, kind: input, shape index: {}]   ;;  %s4195_s2 = inlined_call_operand.vmem [shape: f32[3,512], index: 2, kind: input, shape index: {}]   ;;  %s4196_s3 = inlined_call_operand.vmem [shape: f32[8,640], index: 3, kind: input, shape index: {}, may-alias: {3,4}]   ;;  %s4197_s4 = inlined_call_operand.vmem [shape: f32[8,640], index: 4, kind: input, shape index: {}, may-alias: {3,4}]   ;;  %s4198_s5 = inlined_call_operand.vmem [shape: f32[32,512], index: 5, kind: input, shape index: {}]   ;;  %s4199_s6 = inlined_call_operand.vmem [shape: f32[32,512], index: 6, kind: output, shape index: {}]  }
   0x1   :  { %s3831_s23 = smov 0  }
   0x2 LB: > { %s3843_s24 = sadd.s32 4294967295, %s3752_s23   ;;  %s3846_s25 = sadd.s32 1, %s3752_s23   ;;  %s3752_s23 = sphi %s3831_s23, %s4211_s23   ;;  %s3748_s22 = sphi %s3829_s22, %s4210_s22   ;;  %s3744_s21 = sphi %s3827_s21, %s4209_s21  }
   0x3   : > { %s142_s26 = ssub.s32 %s3752_s23, %s3846_s25  ;;  %s145_s27 = sadd.s32 1, %s3748_s22 }
   0x4   : > { %p143_p0 = scmp.eq.s32.totalorder %s142_s26, 0  ;;  %p152_p1 = scmp.ne.s32.totalorder %s3748_s22, %s3744_s21 }
   0x5   : > { %p153_p2 = scmp.eq.s32.totalorder %s3752_s23, 0  ;;  %p182_p3 = scmp.eq.s32.totalorder %s3843_s24, 3 }
   0x6   : > { %s3856_s28 = scalar_select %p143_p0, %s3748_s22, %s145_s27  }
   0x7   : > { %p154_p4 = por %p153_p2, %p152_p1  ;;  %p3858_p5 = por %p182_p3, %p152_p1 }
   0x8   : > { %p3365_p6 = scmp.ge.s32.totalorder %s3752_s23, 4 }
   0xa   : > { %210 = sbr.rel (%p3365_p6) target bundleno = 23 (0x17), region = 24 }
   0xf   : > { %236 = sbr.rel (!%p154_p4) target bundleno = 23 (0x17), region = 40  ;;  %s238_s30 = sand.u32 (%p154_p4), 1, %s3748_s22  }
  0x10   : > { %s3367_s7 = sshll.u32 (%p154_p4), %s3752_s23, 3  ;;  %s3366_s8 = sshll.u32 (%p154_p4), %s238_s30, 5 }
  0x11   : > { %s242_s11 = scalar_lea.vmem (%p154_p4), %s4198_s5, %s3367_s7  ;;  %s240_s12 = scalar_lea.vmem (%p154_p4), [#allocation2], %s3366_s8 }
  0x12   : > { %v277_v0 = vld [vmem:[%s242_s11] sm:$0xff] (%p154_p4) }
  0x13   : > { %v279_v1 = vld [vmem:[%s242_s11 + $0x20] sm:$0xff] (%p154_p4)  ;;  %278 = vst [vmem:[%s240_s12] sm:$0xff] (%p154_p4), %v277_v0 }
  0x14   : > { %v281_v2 = vld [vmem:[%s242_s11 + $0x40] sm:$0xff]  ;;  %280 = vst [vmem:[%s240_s12 + $0x8] sm:$0xff] %v279_v1 }
  0x15   : > { %282 = vst [vmem:[%s240_s12 + $0x10] sm:$0xff] %v281_v2  ;;  %v283_v3 = vld [vmem:[%s242_s11 + $0x60] sm:$0xff] }
  0x16   : > { %284 = vst [vmem:[%s240_s12 + $0x18] sm:$0xff] %v283_v3 }
  0x17 PF: > { %p3368_p7 = scmp.ge.s32.totalorder %s3752_s23, 1  ;;  %p289_p8 = scmp.lt.s32.totalorder %s3752_s23, 5 }
  0x19   : > { %p290_p9 = pnand %p3368_p7, %p289_p8 }
  0x1a   : > { %p337_p10 = scmp.lt.s32.totalorder (!%p290_p9), %s3843_s24, 3  ;;  %s3754_s18 = smov (!%p290_p9), 1  }
  0x1b   : > { %293 = sbr.rel (%p290_p9) target bundleno = 549 (0x225), region = 78  ;;  %s3755_s19 = smov (!%p290_p9), 9  }
  0x1c   : > { %s3756_s20 = smov (!%p290_p9), 8   ;;  %s3757_s23 = smov (!%p290_p9), 64  }
  0x1d   : > { %s3758_s26 = smov (!%p290_p9), 65   ;;  %s3759_s27 = smov (!%p290_p9), 72  }
  0x1e   : > { %s3760_s30 = smov (!%p290_p9), 73   ;;  %s3761_s9 = smov (!%p290_p9), 120  }
  0x1f   : > { %s3762_s10 = smov (!%p290_p9), 108   ;;  %s3763_s11 = smov (!%p290_p9), 116  }
  0x20   : > { %v527_v4 = vlaneseq  ;;  %s338_s13 = scalar_select %p337_p10, %s3843_s24, 3  ;;  %v358_v13 = vld [vmem:[%s4193_s0] sm:$0xff]  ;;  %v359_v15 = vld [vmem:[%s4193_s0 + $0x10] sm:$0xff]  ;;  %v3776_v18 = vmov 0.0   ;;  %vm3777_vm0 = vmmov 0   ;;  %vm373_vm1 = vcmask 1043456  }
  0x21   : > { %v537_v14 = vrot.slane %v358_v13, 4  ;;  %s3764_s12 = smov 100   ;;  %v1040_v16 = vrot.slane %v359_v15, 4  ;;  %s3765_s15 = smov 88   ;;  %v360_v17 = vld [vmem:[%s4193_s0 + $0x20] sm:$0xff]  ;;  %3491 = vmatprep.subr.mxu0 %v3776_v18  ;;  %3493 = vmatprep.mubr.msk.f32.mxu0 %vm3777_vm0, %v3776_v18  ;;  %vm447_vm2 = vcmask 64512  }
  0x22   : > { %v528_v5 = vshrl.u32 %v527_v4, 7  ;;  %s3371_s14 = sshll.u32 %s338_s13, 2  ;;  %s3766_s16 = smov 96   ;;  %3496 = vmatprep.subr.mxu1 %v3776_v18  ;;  %3498 = vmatprep.mubr.msk.f32.mxu1 %vm3777_vm0, %v3776_v18  ;;  %v1693_v40 = vrot.slane %v360_v17, 4  ;;  %v361_v41 = vld [vmem:[%s4193_s0 + $0x28] sm:$0xff]  ;;  %vm370_vm3 = vcmask 31744  }
  0x23   : > { %s340_s17 = scalar_lea.vmem %s4195_s2, %s3371_s14  ;;  %p341_p11 = scmp.lt.s32.totalorder %s3843_s24, 4  ;;  %v1852_v44 = vrot.slane %v361_v41, 4  ;;  %v362_v56 = vld [vmem:[%s4193_s0 + $0x38] sm:$0xff]  ;;  %v3785_v57 = vmov 0   ;;  %v363_v4 = vld [vmem:[%s4194_s1] sm:$0xff]  ;;  %vm620_vm4 = vcmask 1039360  }
  0x24   : > { %v529_v6 = vsub.s32 0, %v528_v5  ;;  %v779_v7 = vsub.s32 1, %v528_v5  ;;  %v357_v8 = vld [vmem:[%s340_s17] sm:$0x7]  ;;  %v1432_v11 = vsub.s32 2, %v528_v5  ;;  %s3767_s17 = smov 80   ;;  %3728 = vset.pattern.permute.xlu1 %v3785_v57  ;;  %3729 = vset.pattern.permute.xlu0 %v3785_v57 }
  0x25   : > { %s342_s8 = scalar_select %p341_p11, %s3843_s24, 4  ;;  %v2506_v63 = vrot.slane %v362_v56, 4  ;;  %v364_v5 = vld [vmem:[%s4194_s1 + $0x8] sm:$0xff]  ;;  %vm870_vm5 = vcmask 982016   ;;  %vm1123_vm6 = vcmask 973824   ;;  %vm1523_vm7 = vcmask 523264  }
  0x26   : > { %v530_v9 = vrot.slane %v357_v8, %v529_v6  ;;  %v780_v10 = vrot.slane %v357_v8, %v779_v7  ;;  %v1433_v12 = vrot.slane %v357_v8, %v1432_v11  ;;  %s3775_s14 = smov 24   ;;  %v365_v6 = vld [vmem:[%s4194_s1 + $0x10] sm:$0xff]  ;;  %v366_v8 = vld [vmem:[%s4194_s1 + $0x18] sm:$0xff]  ;;  %vm1776_vm8 = vcmask 515072  }
  0x27   : > { %s3372_s13 = sshll.u32 %s342_s8, 3  ;;  %s3778_s8 = smov 127   ;;  %vm2181_vm9 = vcmask 457728   ;;  %vm2589_vm10 = vcmask 449536  }
  0x28   : > { %532 = vrot.lane.b32.xlu0 %v530_v9, %s3754_s18  ;;  %1030 = vrot.lane.b32.xlu1 %v780_v10, %s3755_s19  ;;  %s4202_s18 = smov 68  }
  0x2c   : > { %782 = vrot.lane.b32.xlu0 %v780_v10, %s3756_s20  ;;  %1035 = vrot.lane.b32.xlu1 %v530_v9, %s3755_s19  ;;  %s4201_s19 = smov 76   ;;  %s4200_s20 = smov 60  }
  0x30   : > { %1435 = vrot.lane.b32.xlu0 %v1433_v12, %s3757_s23  ;;  %1683 = vrot.lane.b32.xlu1 %v1433_v12, %s3758_s26 }
  0x34   : > { %1688 = vrot.lane.b32.xlu0 %v530_v9, %s3758_s26  ;;  %2088 = vrot.lane.b32.xlu1 %v1433_v12, %s3759_s27  ;;  %s4203_s26 = smov 52  }
  0x38   : > { %2093 = vrot.lane.b32.xlu0 %v780_v10, %s3759_s27  ;;  %2491 = vrot.lane.b32.xlu1 %v1433_v12, %s3760_s30  ;;  %s3772_s27 = smov 44  }
  0x3c   : > { %2496 = vrot.lane.b32.xlu0 %v780_v10, %s3760_s30  ;;  %2501 = vrot.lane.b32.xlu1 %v530_v9, %s3760_s30 }
  0x40   : > { %368 = vrot.lane.b32.xlu0 %v358_v13, %s3761_s9  ;;  %538 = vrot.lane.b32.xlu1 %v537_v14, %s3762_s10  ;;  %s3773_s10 = smov 32  }
  0x44   : > { %612 = vrot.lane.b32.xlu0 %v537_v14, %s3763_s11  ;;  %695 = vrot.lane.b32.xlu1 %v537_v14, %s3764_s12  ;;  %s3774_s12 = smov 40  }
  0x48   : > { %788 = vrot.lane.b32.xlu0 %v359_v15, %s3765_s15  ;;  %862 = vrot.lane.b32.xlu1 %v359_v15, %s3766_s16 }
  0x4c   : > { %945 = vrot.lane.b32.xlu0 %v359_v15, %s3767_s17  ;;  %1041 = vrot.lane.b32.xlu1 %v1040_v16, %s4202_s18  ;;  %s344_s18 = scalar_lea.vmem %s4196_s3, %s3372_s13  ;;  %s3780_s13 = smov 20  }
  0x4d   : > { %v3906_v19 = vld [vmem:[%s344_s18] sm:$0xff]  ;;  %s345_s18 = sadd.s32 1, %s3843_s24 }
  0x4e   : > { %3497 = vmatpush3.msra.mxu1 %v3906_v19  ;;  %p346_p12 = scmp.lt.s32.totalorder %s345_s18, 4 }
  0x4f   : > { %3499 = vmatmul.mubr.msk.f32.vlgmr.msra.gmra.mxu1 %vm447_vm2, %v358_v13  ;;  %3506 = vmatprep.subr.mxu1 %v3776_v18 }
  0x50   : > { %1115 = vrot.lane.b32.xlu0 %v1040_v16, %s4201_s19  ;;  %1198 = vrot.lane.b32.xlu1 %v1040_v16, %s4200_s20  ;;  %s4213_s18 = smov (!%p346_p12, %s345_s18), 4 }
  0x51   : > { %3508 = vmatprep.mubr.msk.f32.mxu1 %vm3777_vm0, %v3776_v18  ;;  %s3373_s19 = sshll.u32 %s4213_s18, 3  ;;  %s3783_s18 = smov 124  }
  0x52   : > { %s349_s7 = scalar_lea.vmem %s4197_s4, %s3373_s19  ;;  %s3784_s19 = smov 63  }
  0x53   : > { %v3929_v21 = vld [vmem:[%s349_s7] sm:$0xff]  ;;  %s3787_s7 = smov 112  }
  0x54   : > { %1273 = vrot.lane.b32.xlu0 %v1040_v16, %s4203_s26  ;;  %1348 = vrot.lane.b32.xlu1 %v1040_v16, %s3772_s27  ;;  %s296_s26 = sand.u32 1, %s3744_s21  }
  0x55   : > { %s3904_s30 = sshll.u32 %s296_s26, 5  ;;  %s3786_s26 = smov 104  }
  0x56   : > { %s3912_s21 = scalar_lea.vmem [#allocation2], %s3904_s30 }
  0x57   : > { %v3915_v20 = vld [vmem:[%s3912_s21] sm:$0xff]  ;;  %v356_v57 = vld [vmem:[%s3912_s21 + $0x18] sm:$0xff] }
  0x58   : > { %1441 = vrot.lane.b32.xlu0 %v360_v17, %s3773_s10  ;;  %1515 = vrot.lane.b32.xlu1 %v360_v17, %s3774_s12  ;;  %s3779_s10 = smov 119   ;;  %v697_v51 = vrot.slane %v3915_v20, 4  ;;  %s4207_s12 = smov 60  }
  0x59   : > { %3492 = vmatpush3.msk.msra.mxu0 %vm373_vm1, %v3915_v20 }
  0x5a   : > { %3501 = vmatprep.subr.mxu0 %v3776_v18 }
  0x5c   : > { %1598 = vrot.lane.b32.xlu0 %v360_v17, %s3775_s14  ;;  %s3781_s14 = smov 12  }
  0x9a   : > { %v533_v22 = vpop.permute.xlu0 %532  ;;  %v1031_v23 = vpop.permute.xlu1 %1030 }
  0x9b   : > { %v535_v24 = vmul.f32 %v533_v22, %v3906_v19  ;;  %v536_v25 = vmul.f32 %v533_v22, %v3929_v21  ;;  %v1033_v32 = vmul.f32 %v1031_v23, %v3906_v19  ;;  %v1034_v33 = vmul.f32 %v1031_v23, %v3929_v21 }
  0x9d   : > { %618 = vrot.lane.b32.xlu1 %v536_v25, %s3778_s8  ;;  %616 = vrot.lane.b32.xlu0 %v535_v24, %s3778_s8  ;;  %s3788_s8 = smov 56  }
  0x9e   : > { %v783_v26 = vpop.permute.xlu0 %782  ;;  %v1036_v27 = vpop.permute.xlu1 %1035 }
  0x9f   : > { %v785_v28 = vmul.f32 %v783_v26, %v3906_v19  ;;  %v786_v29 = vmul.f32 %v783_v26, %v3929_v21  ;;  %v1038_v38 = vmul.f32 %v1036_v27, %v1033_v32  ;;  %v1039_v39 = vmul.f32 %v1036_v27, %v1034_v33 }
  0xa1   : > { %868 = vrot.lane.b32.xlu0 %v786_v29, %s3761_s9  ;;  %866 = vrot.lane.b32.xlu1 %v785_v28, %s3761_s9  ;;  %s4206_s9 = smov 76   ;;  %v354_v28 = vld [vmem:[%s3912_s21 + $0x8] sm:$0xff] }
  0xa2   : > { %v1436_v30 = vpop.permute.xlu0 %1435  ;;  %v1684_v31 = vpop.permute.xlu1 %1683 }
  0xa3   : > { %v1438_v34 = vmul.f32 %v1436_v30, %v3906_v19  ;;  %v1439_v35 = vmul.f32 %v1436_v30, %v3929_v21  ;;  %v1686_v47 = vmul.f32 %v1684_v31, %v3906_v19  ;;  %v1687_v48 = vmul.f32 %v1684_v31, %v3929_v21 }
  0xa4   : > { %v1350_v31 = vrot.slane %v354_v28, 4 }
  0xa5   : > { %1521 = vrot.lane.b32.xlu0 %v1439_v35, %s3757_s23  ;;  %1519 = vrot.lane.b32.xlu1 %v1438_v34, %s3757_s23  ;;  %s3782_s23 = smov 4  }
  0xa6   : > { %v1689_v36 = vpop.permute.xlu0 %1688  ;;  %v2089_v37 = vpop.permute.xlu1 %2088 }
  0xa7   : > { %v1691_v52 = vmul.f32 %v1689_v36, %v1686_v47  ;;  %v1692_v53 = vmul.f32 %v1689_v36, %v1687_v48  ;;  %v2091_v55 = vmul.f32 %v2089_v37, %v3906_v19  ;;  %v2092_v59 = vmul.f32 %v2089_v37, %v3929_v21 }
  0xa9   : > { %1119 = vrot.lane.b32.xlu0 %v1038_v38, %s3779_s10  ;;  %1121 = vrot.lane.b32.xlu1 %v1039_v39, %s3779_s10  ;;  %s4205_s10 = smov 68  }
  0xaa   : > { %v2094_v42 = vpop.permute.xlu0 %2093  ;;  %v2492_v43 = vpop.permute.xlu1 %2491 }
  0xab   : > { %v2096_v58 = vmul.f32 %v2094_v42, %v2091_v55  ;;  %v2494_v60 = vmul.f32 %v2492_v43, %v3906_v19  ;;  %v2495_v61 = vmul.f32 %v2492_v43, %v3929_v21  ;;  %v2097_v62 = vmul.f32 %v2094_v42, %v2092_v59  ;;  %v355_v42 = vld [vmem:[%s3912_s21 + $0x10] sm:$0xff]  ;;  %s4164_s21 = scalar_lea.vmem [#allocation3], %s3904_s30  ;;  %s3418_s30 = sshll.u32 (%p3858_p5), %s3843_s24, 3 }
  0xac   : > { %v2008_v47 = vrot.slane %v355_v42, 4 }
  0xad   : > { %1768 = vrot.lane.b32.xlu0 %v1693_v40, %s3780_s13  ;;  %1694 = vrot.lane.b32.xlu1 %v1693_v40, %s3781_s14 }
  0xae   : > { %v2497_v45 = vpop.permute.xlu0 %2496  ;;  %v2502_v46 = vpop.permute.xlu1 %2501 }
  0xaf   : > { %v2499_v0 = vmul.f32 %v2497_v45, %v2494_v60  ;;  %v2500_v1 = vmul.f32 %v2497_v45, %v2495_v61 }
  0xb1   : > { %1855 = vrot.lane.b32.xlu0 %v1852_v44, %s3782_s23  ;;  %1853 = vrot.lane.b32.xlu1 %v1693_v40, %s3782_s23  ;;  %v2504_v2 = vmul.f32 %v2502_v46, %v2499_v0  ;;  %v2505_v3 = vmul.f32 %v2502_v46, %v2500_v1  ;;  %s4208_s23 = smov 52  }
  0xb2   : > { %v369_v49 = vpop.permute.xlu0 %368  ;;  %v539_v50 = vpop.permute.xlu1 %538 }
  0xb3   : > { %3494 = vmatmul.mubr.msk.f32.vlgmr.msra.gmra.mxu0 %vm370_vm3, %v369_v49 }
  0xb4   : > { %3502 = vmatpush3.msra.mxu0 %v3906_v19  ;;  %3503 = vmatprep.mubr.msk.f32.mxu0 %vm3777_vm0, %v3776_v18 }
  0xb5   : > { %2006 = vrot.lane.b32.xlu0 %v1852_v44, %s3763_s11  ;;  %1931 = vrot.lane.b32.xlu1 %v1852_v44, %s3783_s18  ;;  %s3791_s18 = smov 28  }
  0xb6   : > { %3511 = vmatprep.subr.mxu0 %v3776_v18  ;;  %v696_v54 = vpop.permute.xlu1 %695  ;;  %v613_v7 = vpop.permute.xlu0 %612 }
  0xb7   : > { %3504 = vmatmul.mubr.msk.f32.vlgmr.msra.gmra.mxu0 %vm447_vm2, %v539_v50 }
  0xb8   : > { %3512 = vmatpush3.msk.msra.mxu0 %vm373_vm1, %v697_v51  ;;  %3513 = vmatprep.mubr.msk.f32.mxu0 %vm3777_vm0, %v3776_v18 }
  0xb9   : > { %1774 = vrot.lane.b32.xlu1 %v1692_v53, %s3784_s19  ;;  %1772 = vrot.lane.b32.xlu0 %v1691_v52, %s3784_s19 }
  0xba   : > { %3521 = vmatprep.subr.mxu0 %v3776_v18  ;;  %v789_v9 = vpop.permute.xlu0 %788  ;;  %v863_v10 = vpop.permute.xlu1 %862 }
  0xbb   : > { %3514 = vmatmul.mubr.msk.f32.vlgmr.msra.gmra.mxu0 %vm370_vm3, %v696_v54 }
  0xbc   : > { %3523 = vmatprep.mubr.msk.f32.mxu0 %vm3777_vm0, %v3776_v18 }
  0xbd   : > { %2099 = vrot.lane.b32.xlu1 %v362_v56, %s3786_s26  ;;  %2173 = vrot.lane.b32.xlu0 %v362_v56, %s3787_s7 }
  0xbe   : > { %v946_v11 = vpop.permute.xlu0 %945  ;;  %v1042_v12 = vpop.permute.xlu1 %1041 }
  0xc1   : > { %2256 = vrot.lane.b32.xlu1 %v362_v56, %s3766_s16  ;;  %2177 = vrot.lane.b32.xlu0 %v2096_v58, %s3788_s8  ;;  %s3789_s16 = smov 55  }
  0xc2   : > { %v1116_v13 = vpop.permute.xlu0 %1115  ;;  %v1199_v14 = vpop.permute.xlu1 %1198 }
  0xc5   : > { %2179 = vrot.lane.b32.xlu1 %v2097_v62, %s3788_s8  ;;  %2331 = vrot.lane.b32.xlu0 %v362_v56, %s3765_s15  ;;  %s3790_s15 = smov 36  }
  0xc6   : > { %v1274_v15 = vpop.permute.xlu0 %1273  ;;  %v1349_v16 = vpop.permute.xlu1 %1348 }
  0xc9   : > { %2406 = vrot.lane.b32.xlu1 %v362_v56, %s3767_s17  ;;  %2507 = vrot.lane.b32.xlu0 %v2506_v63, %s4205_s10  ;;  %s3224_s10 = scalar_lea.vmem (%p3858_p5), %s4199_s6, %s3418_s30 }
  0xca   : > { %v3994_v17 = vpop.permute.xlu0 %1441  ;;  %v3996_v20 = vpop.permute.xlu1 %1515 }
  0xcd   : > { %2585 = vrot.lane.b32.xlu1 %v2504_v2, %s3789_s16  ;;  %2587 = vrot.lane.b32.xlu0 %v2505_v3, %s3789_s16  ;;  %v3116_v3 = vrot.slane %v356_v57, 4 }
  0xce   : > { %v3998_v21 = vpop.permute.xlu0 %1598 }
  0xd1   : > { %2581 = vrot.lane.b32.xlu1 %v2506_v63, %s4206_s9  ;;  %2664 = vrot.lane.b32.xlu0 %v2506_v63, %s4207_s12 }
  0xd5   : > { %2739 = vrot.lane.b32.xlu1 %v2506_v63, %s4208_s23  ;;  %2814 = vrot.lane.b32.xlu0 %v2506_v63, %s3772_s27 }
  0xd9   : > { %2889 = vrot.lane.b32.xlu1 %v2506_v63, %s3790_s15  ;;  %2964 = vrot.lane.b32.xlu0 %v2506_v63, %s3791_s18 }
  0xdd   : > { %3039 = vrot.lane.b32.xlu1 %v2506_v63, %s3780_s13  ;;  %3114 = vrot.lane.b32.xlu0 %v2506_v63, %s3781_s14 }
  0xe1   : > { %522 = vperm.xlu1 %3728, %v363_v4   ;;  %1025 = vperm.xlu0 %3729, %v364_v5  }
  0xe5   : > { %1678 = vperm.xlu1 %3728, %v365_v6  }
  0xe9   : > { %2486 = vperm.xlu1 %3728, %v366_v8  }
 0x10f   : > { %v619_v22 = vpop.permute.xlu1 %618  ;;  %v617_v23 = vpop.permute.xlu0 %616 }
 0x110   : > { %v4000_v24 = vsel %vm620_vm4, %v617_v23, %v619_v22  ;;  %v4049_v38 = vpop.f32.mrf.mxu1 }
 0x111   : > { %3507 = vmatpush3.msra.mxu1 %v4000_v24 }
 0x112   : > { %3509 = vmatmul.mubr.msk.f32.vlgmr.msra.gmra.mxu1 %vm447_vm2, %v613_v7  ;;  %3516 = vmatprep.subr.mxu1 %v3776_v18  ;;  %v3500_v41 = vpop.f32.mrf.mxu1 }
 0x113   : > { %v867_v25 = vpop.permute.xlu1 %866  ;;  %v869_v26 = vpop.permute.xlu0 %868  ;;  %3517 = vmatpush3.msra.mxu1 %v3906_v19  ;;  %3518 = vmatprep.mubr.msk.f32.mxu1 %vm3777_vm0, %v3776_v18 }
 0x114   : > { %v4008_v27 = vsel %vm870_vm5, %v867_v25, %v869_v26  ;;  %3526 = vmatprep.subr.mxu1 %v3776_v18 }
 0x115   : > { %3522 = vmatpush3.msra.mxu0 %v4008_v27 }
 0x116   : > { %3519 = vmatmul.mubr.msk.f32.vlgmr.msra.gmra.mxu1 %vm447_vm2, %v789_v9  ;;  %3524 = vmatmul.mubr.msk.f32.vlgmr.msra.gmra.mxu0 %vm447_vm2, %v863_v10 }
 0x117   : > { %3531 = vmatprep.subr.mxu0 %v3776_v18  ;;  %v1520_v29 = vpop.permute.xlu1 %1519  ;;  %v1522_v30 = vpop.permute.xlu0 %1521  ;;  %3527 = vmatpush3.msk.msra.mxu1 %vm373_vm1, %v354_v28 }
 0x118   : > { %3532 = vmatpush3.msra.mxu0 %v4008_v27  ;;  %3528 = vmatprep.mubr.msk.f32.mxu1 %vm3777_vm0, %v3776_v18  ;;  %v4045_v37 = vsel %vm1523_vm7, %v1520_v29, %v1522_v30 }
 0x119   : > { %3533 = vmatprep.mubr.msk.f32.mxu0 %vm3777_vm0, %v3776_v18  ;;  %3541 = vmatprep.subr.mxu0 %v3776_v18 }
 0x11a   : > { %3529 = vmatmul.mubr.msk.f32.vlgmr.msra.gmra.mxu1 %vm370_vm3, %v946_v11  ;;  %3534 = vmatmul.mubr.msk.f32.vlgmr.msra.gmra.mxu0 %vm447_vm2, %v1042_v12 }
 0x11b   : > { %3542 = vmatpush3.msra.mxu0 %v4000_v24  ;;  %v1122_v32 = vpop.permute.xlu1 %1121  ;;  %v1120_v33 = vpop.permute.xlu0 %1119  ;;  %3536 = vmatprep.subr.mxu1 %v3776_v18 }
 0x11c   : > { %v4027_v34 = vsel %vm1123_vm6, %v1120_v33, %v1122_v32  ;;  %3538 = vmatprep.mubr.msk.f32.mxu1 %vm3777_vm0, %v3776_v18  ;;  %3543 = vmatprep.mubr.msk.f32.mxu0 %vm3777_vm0, %v3776_v18 }
 0x11d   : > { %3537 = vmatpush3.msra.mxu1 %v4027_v34  ;;  %3551 = vmatprep.subr.mxu0 %v3776_v18 }
 0x11e   : > { %3539 = vmatmul.mubr.msk.f32.vlgmr.msra.gmra.mxu1 %vm447_vm2, %v1116_v13  ;;  %3544 = vmatmul.mubr.msk.f32.vlgmr.msra.gmra.mxu0 %vm447_vm2, %v1199_v14 }
 0x11f   : > { %v1695_v35 = vpop.permute.xlu1 %1694  ;;  %v1769_v36 = vpop.permute.xlu0 %1768  ;;  %3546 = vmatprep.subr.mxu1 %v3776_v18  ;;  %3552 = vmatpush3.msk.msra.mxu0 %vm373_vm1, %v1350_v31 }
 0x120   : > { %3547 = vmatpush3.msra.mxu1 %v3906_v19  ;;  %3548 = vmatprep.mubr.msk.f32.mxu1 %vm3777_vm0, %v3776_v18 }
 0x121   : > { %3553 = vmatprep.mubr.msk.f32.mxu0 %vm3777_vm0, %v3776_v18  ;;  %3561 = vmatprep.subr.mxu0 %v3776_v18 }
 0x122   : > { %3549 = vmatmul.mubr.msk.f32.vlgmr.msra.gmra.mxu1 %vm447_vm2, %v1274_v15  ;;  %3554 = vmatmul.mubr.msk.f32.vlgmr.msra.gmra.mxu0 %vm370_vm3, %v1349_v16 }
 0x123   : > { %3562 = vmatpush3.msra.mxu0 %v4045_v37  ;;  %v1854_v39 = vpop.permute.xlu1 %1853  ;;  %v1856_v40 = vpop.permute.xlu0 %1855  ;;  %3556 = vmatprep.subr.mxu1 %v3776_v18 }
 0x124   : > { %3557 = vmatpush3.msra.mxu1 %v3906_v19  ;;  %3558 = vmatprep.mubr.msk.f32.mxu1 %vm3777_vm0, %v3776_v18  ;;  %v1857_v49 = vsel %vm370_vm3, %v1854_v39, %v1856_v40 }
 0x125   : > { %3563 = vmatprep.mubr.msk.f32.mxu0 %vm3777_vm0, %v3776_v18  ;;  %3571 = vmatprep.subr.mxu0 %v3776_v18 }
 0x126   : > { %3559 = vmatmul.mubr.msk.f32.vlgmr.msra.gmra.mxu1 %vm447_vm2, %v3994_v17  ;;  %3564 = vmatmul.mubr.msk.f32.vlgmr.msra.gmra.mxu0 %vm447_vm2, %v3996_v20 }
 0x127   : > { %3572 = vmatpush3.msra.mxu0 %v4045_v37  ;;  %v1932_v43 = vpop.permute.xlu1 %1931  ;;  %v2007_v44 = vpop.permute.xlu0 %2006  ;;  %3566 = vmatprep.subr.mxu1 %v3776_v18 }
 0x128   : > { %3567 = vmatpush3.msk.msra.mxu1 %vm373_vm1, %v355_v42  ;;  %3568 = vmatprep.mubr.msk.f32.mxu1 %vm3777_vm0, %v3776_v18 }
 0x129   : > { %3573 = vmatprep.mubr.msk.f32.mxu0 %vm3777_vm0, %v3776_v18  ;;  %3581 = vmatprep.subr.mxu0 %v3776_v18 }
 0x12a   : > { %3569 = vmatmul.mubr.msk.f32.vlgmr.msra.gmra.mxu1 %vm370_vm3, %v3998_v21  ;;  %3574 = vmatmul.mubr.msk.f32.vlgmr.msra.gmra.mxu0 %vm447_vm2, %v1695_v35 }
 0x12b   : > { %3582 = vmatpush3.msra.mxu0 %v4000_v24  ;;  %v1775_v45 = vpop.permute.xlu1 %1774  ;;  %v1773_v46 = vpop.permute.xlu0 %1772  ;;  %3576 = vmatprep.subr.mxu1 %v3776_v18 }
 0x12c   : > { %v1777_v48 = vsel %vm1776_vm8, %v1773_v46, %v1775_v45  ;;  %3578 = vmatprep.mubr.msk.f32.mxu1 %vm3777_vm0, %v3776_v18  ;;  %3583 = vmatprep.mubr.msk.f32.mxu0 %vm3777_vm0, %v3776_v18 }
 0x12d   : > { %3577 = vmatpush3.msra.mxu1 %v1777_v48  ;;  %3591 = vmatprep.subr.mxu0 %v3776_v18 }
 0x12e   : > { %3579 = vmatmul.mubr.msk.f32.vlgmr.msra.gmra.mxu1 %vm447_vm2, %v1769_v36  ;;  %3584 = vmatmul.mubr.msk.f32.vlgmr.msra.gmra.mxu0 %vm447_vm2, %v1857_v49 }
 0x12f   : > { %v2100_v50 = vpop.permute.xlu1 %2099  ;;  %3586 = vmatprep.subr.mxu1 %v3776_v18  ;;  %v2174_v51 = vpop.permute.xlu0 %2173  ;;  %3588 = vmatprep.mubr.msk.f32.mxu1 %vm3777_vm0, %v3776_v18 }
 0x130   : > { %3587 = vmatpush3.msra.mxu1 %v3906_v19  ;;  %3592 = vmatpush3.msk.msra.mxu0 %vm373_vm1, %v2008_v47 }
 0x131   : > { %3593 = vmatprep.mubr.msk.f32.mxu0 %vm3777_vm0, %v3776_v18  ;;  %3596 = vmatprep.subr.mxu1 %v3776_v18 }
 0x132   : > { %3589 = vmatmul.mubr.msk.f32.vlgmr.msra.gmra.mxu1 %vm447_vm2, %v1932_v43  ;;  %3594 = vmatmul.mubr.msk.f32.vlgmr.msra.gmra.mxu0 %vm370_vm3, %v2007_v44 }
 0x133   : > { %3597 = vmatpush3.msra.mxu1 %v4045_v37  ;;  %v2257_v52 = vpop.permute.xlu1 %2256  ;;  %v2178_v53 = vpop.permute.xlu0 %2177  ;;  %3598 = vmatprep.mubr.msk.f32.mxu1 %vm3777_vm0, %v3776_v18 }
 0x134   : > { %3606 = vmatprep.subr.mxu1 %v3776_v18  ;;  %3601 = vmatprep.subr.mxu0 %v3776_v18 }
 0x135   : > { %3603 = vmatprep.mubr.msk.f32.mxu0 %vm3777_vm0, %v3776_v18 }
 0x136   : > { %3599 = vmatmul.mubr.msk.f32.vlgmr.msra.gmra.mxu1 %vm447_vm2, %v2100_v50 }
 0x137   : > { %3607 = vmatpush3.msra.mxu1 %v4008_v27  ;;  %v2180_v54 = vpop.permute.xlu1 %2179  ;;  %v2332_v55 = vpop.permute.xlu0 %2331  ;;  %3608 = vmatprep.mubr.msk.f32.mxu1 %vm3777_vm0, %v3776_v18 }
 0x138   : > { %v2182_v56 = vsel %vm2181_vm9, %v2178_v53, %v2180_v54  ;;  %3616 = vmatprep.subr.mxu1 %v3776_v18 }
 0x139   : > { %3602 = vmatpush3.msra.mxu0 %v2182_v56 }
 0x13a   : > { %3604 = vmatmul.mubr.msk.f32.vlgmr.msra.gmra.mxu0 %vm447_vm2, %v2174_v51  ;;  %3609 = vmatmul.mubr.msk.f32.vlgmr.msra.gmra.mxu1 %vm447_vm2, %v2257_v52 }
 0x13b   : > { %v2407_v58 = vpop.permute.xlu1 %2406  ;;  %3611 = vmatprep.subr.mxu0 %v3776_v18  ;;  %v2508_v59 = vpop.permute.xlu0 %2507  ;;  %3613 = vmatprep.mubr.msk.f32.mxu0 %vm3777_vm0, %v3776_v18 }
 0x13c   : > { %3612 = vmatpush3.msra.mxu0 %v3906_v19  ;;  %3617 = vmatpush3.msk.msra.mxu1 %vm373_vm1, %v356_v57 }
 0x13d   : > { %3618 = vmatprep.mubr.msk.f32.mxu1 %vm3777_vm0, %v3776_v18  ;;  %3621 = vmatprep.subr.mxu0 %v3776_v18 }
 0x13e   : > { %3614 = vmatmul.mubr.msk.f32.vlgmr.msra.gmra.mxu0 %vm447_vm2, %v2332_v55  ;;  %3619 = vmatmul.mubr.msk.f32.vlgmr.msra.gmra.mxu1 %vm370_vm3, %v2407_v58 }
 0x13f   : > { %3622 = vmatpush3.msra.mxu0 %v2182_v56  ;;  %v2586_v60 = vpop.permute.xlu1 %2585  ;;  %v2588_v61 = vpop.permute.xlu0 %2587  ;;  %3623 = vmatprep.mubr.msk.f32.mxu0 %vm3777_vm0, %v3776_v18 }
 0x140   : > { %v2590_v62 = vsel %vm2589_vm10, %v2586_v60, %v2588_v61  ;;  %3626 = vmatprep.subr.mxu1 %v3776_v18  ;;  %3631 = vmatprep.subr.mxu0 %v3776_v18 }
 0x141   : > { %3627 = vmatpush3.msra.mxu1 %v2590_v62  ;;  %3628 = vmatprep.mubr.msk.f32.mxu1 %vm3777_vm0, %v3776_v18 }
 0x142   : > { %3624 = vmatmul.mubr.msk.f32.vlgmr.msra.gmra.mxu0 %vm447_vm2, %v2508_v59  ;;  %3636 = vmatprep.subr.mxu1 %v3776_v18 }
 0x143   : > { %3632 = vmatpush3.msra.mxu0 %v1777_v48  ;;  %v2582_v63 = vpop.permute.xlu1 %2581  ;;  %v2665_v0 = vpop.permute.xlu0 %2664  ;;  %3633 = vmatprep.mubr.msk.f32.mxu0 %vm3777_vm0, %v3776_v18 }
 0x144   : > { %3629 = vmatmul.mubr.msk.f32.vlgmr.msra.gmra.mxu1 %vm447_vm2, %v2582_v63  ;;  %3641 = vmatprep.subr.mxu0 %v3776_v18 }
 0x145   : > { %3637 = vmatpush3.msra.mxu1 %v4045_v37  ;;  %3638 = vmatprep.mubr.msk.f32.mxu1 %vm3777_vm0, %v3776_v18 }
 0x146   : > { %3634 = vmatmul.mubr.msk.f32.vlgmr.msra.gmra.mxu0 %vm447_vm2, %v2665_v0  ;;  %3646 = vmatprep.subr.mxu1 %v3776_v18 }
 0x147   : > { %3642 = vmatpush3.msra.mxu0 %v4027_v34  ;;  %v2740_v1 = vpop.permute.xlu1 %2739  ;;  %v2815_v2 = vpop.permute.xlu0 %2814  ;;  %3643 = vmatprep.mubr.msk.f32.mxu0 %vm3777_vm0, %v3776_v18 }
 0x148   : > { %3639 = vmatmul.mubr.msk.f32.vlgmr.msra.gmra.mxu1 %vm447_vm2, %v2740_v1  ;;  %3651 = vmatprep.subr.mxu0 %v3776_v18 }
 0x149   : > { %3647 = vmatpush3.msra.mxu1 %v4008_v27  ;;  %3648 = vmatprep.mubr.msk.f32.mxu1 %vm3777_vm0, %v3776_v18 }
 0x14a   : > { %3644 = vmatmul.mubr.msk.f32.vlgmr.msra.gmra.mxu0 %vm447_vm2, %v2815_v2  ;;  %3656 = vmatprep.subr.mxu1 %v3776_v18 }
 0x14b   : > { %3652 = vmatpush3.msra.mxu0 %v4000_v24  ;;  %v2890_v4 = vpop.permute.xlu1 %2889  ;;  %v2965_v5 = vpop.permute.xlu0 %2964  ;;  %3653 = vmatprep.mubr.msk.f32.mxu0 %vm3777_vm0, %v3776_v18 }
 0x14c   : > { %3649 = vmatmul.mubr.msk.f32.vlgmr.msra.gmra.mxu1 %vm447_vm2, %v2890_v4  ;;  %3661 = vmatprep.subr.mxu0 %v3776_v18 }
 0x14d   : > { %3657 = vmatpush3.msra.mxu1 %v3906_v19  ;;  %3658 = vmatprep.mubr.msk.f32.mxu1 %vm3777_vm0, %v3776_v18 }
 0x14e   : > { %3654 = vmatmul.mubr.msk.f32.vlgmr.msra.gmra.mxu0 %vm447_vm2, %v2965_v5 }
 0x14f   : > { %v3040_v6 = vpop.permute.xlu1 %3039  ;;  %v3115_v7 = vpop.permute.xlu0 %3114  ;;  %3662 = vmatpush3.msk.msra.mxu0 %vm373_vm1, %v3116_v3  ;;  %3663 = vmatprep.mubr.msk.f32.mxu0 %vm3777_vm0, %v3776_v18 }
 0x150   : > { %3659 = vmatmul.mubr.msk.f32.vlgmr.msra.gmra.mxu1 %vm447_vm2, %v3040_v6 }
 0x152   : > { %3664 = vmatmul.mubr.msk.f32.vlgmr.msra.gmra.mxu0 %vm370_vm3, %v3115_v7 }
 0x15c   : > { %v523_v13 = vpop.permute.xlu1 %522  ;;  %v1026_v41 = vpop.permute.xlu0 %1025 }
 0x15d   : > { %v773_v16 = vrot.slane %v523_v13, 4  ;;  %v1426_v46 = vrot.slane %v1026_v41, 4 }
 0x160   : > { %v1679_v7 = vpop.permute.xlu1 %1678 }
 0x173   : > { %v443_v8 = vpop.f32.mrf.mxu0 }
 0x174   : > { %v517_v15 = vadd.f32 %v4049_v38, %v443_v8 }
 0x175   : > { %v3495_v9 = vpop.f32.mrf.mxu0 }
 0x176   : > { %v525_v23 = vadd.f32 %v523_v13, %v517_v15 }
 0x177   : > { %v608_v10 = vpop.f32.mrf.mxu0 }
 0x178   : > { %v526_v30 = vmax.f32 %v525_v23, 0.0 }
 0x179   : > { %v3505_v19 = vpop.f32.mrf.mxu0 }
 0x17b   : > { %v768_v11 = vpop.f32.mrf.mxu0 }
 0x17d   : > { %v3515_v12 = vpop.f32.mrf.mxu0 }
 0x1d2   : > { %v691_v14 = vpop.f32.mrf.mxu1 }
 0x1d3   : > { %v692_v17 = vadd.f32 %v691_v14, %v608_v10 }
 0x1d4   : > { %v3510_v20 = vpop.f32.mrf.mxu1 }
 0x1d5   : > { %v772_v21 = vadd.f32 %v768_v11, %v692_v17  ;;  %v2084_v11 = vrot.slane %v1679_v7, 4 }
 0x1d6   : > { %v858_v18 = vpop.f32.mrf.mxu1  ;;  %v941_v22 = vpop.f32.mrf.mxu0 }
 0x1d7   : > { %v775_v24 = vadd.f32 %v773_v16, %v772_v21  ;;  %v942_v40 = vadd.f32 %v941_v22, %v858_v18 }
 0x1d8   : > { %v3520_v25 = vpop.f32.mrf.mxu1  ;;  %v3525_v26 = vpop.f32.mrf.mxu0 }
 0x1d9   : > { %v776_v27 = vmax.f32 %v775_v24, 0.0 }
 0x1da   : > { %v1018_v28 = vpop.f32.mrf.mxu1  ;;  %v1111_v29 = vpop.f32.mrf.mxu0 }
 0x1db   : > { %v3197_v31 = vrot.slane %v776_v27, 4  ;;  %v1022_v45 = vadd.f32 %v1018_v28, %v942_v40 }
 0x1dc   : > { %v3530_v32 = vpop.f32.mrf.mxu1  ;;  %v3535_v33 = vpop.f32.mrf.mxu0 }
 0x1dd   : > { %v3208_v34 = vsel %vm373_vm1, %v526_v30, %v3197_v31  ;;  %v1028_v53 = vadd.f32 %v1026_v41, %v1022_v45 }
 0x1de   : > { %3212 = vst [vmem:[%s4164_s21] sm:$0xff] %v3208_v34  ;;  %v1194_v35 = vpop.f32.mrf.mxu1  ;;  %v1268_v36 = vpop.f32.mrf.mxu0 }
 0x1df   : > { %v1195_v37 = vadd.f32 %v1194_v35, %v1111_v29  ;;  %v1029_v60 = vmax.f32 %v1028_v53, 0.0 }
 0x1e0   : > { %v3540_v38 = vpop.f32.mrf.mxu1  ;;  %v3545_v39 = vpop.f32.mrf.mxu0 }
 0x1e1   : > { %v1272_v42 = vadd.f32 %v1268_v36, %v1195_v37 }
 0x1e2   : > { %v1343_v43 = vpop.f32.mrf.mxu1  ;;  %v1421_v44 = vpop.f32.mrf.mxu0 }
 0x1e3   : > { %v1347_v47 = vadd.f32 %v1343_v43, %v1272_v42 }
 0x1e4   : > { %v3550_v48 = vpop.f32.mrf.mxu1  ;;  %v3555_v49 = vpop.f32.mrf.mxu0 }
 0x1e5   : > { %v1425_v50 = vadd.f32 %v1421_v44, %v1347_v47 }
 0x1e6   : > { %v1511_v51 = vpop.f32.mrf.mxu1  ;;  %v1594_v52 = vpop.f32.mrf.mxu0 }
 0x1e7   : > { %v1428_v54 = vadd.f32 %v1426_v46, %v1425_v50  ;;  %v1595_v6 = vadd.f32 %v1594_v52, %v1511_v51 }
 0x1e8   : > { %v3560_v55 = vpop.f32.mrf.mxu1  ;;  %v3565_v56 = vpop.f32.mrf.mxu0 }
 0x1e9   : > { %v1429_v57 = vmax.f32 %v1428_v54, 0.0 }
 0x1ea   : > { %v1671_v58 = vpop.f32.mrf.mxu1  ;;  %v1764_v59 = vpop.f32.mrf.mxu0 }
 0x1eb   : > { %v3200_v61 = vrot.slane %v1429_v57, 4  ;;  %v1675_v19 = vadd.f32 %v1671_v58, %v1595_v6  ;;  %v2487_v58 = vpop.permute.xlu1 %2486 }
 0x1ec   : > { %v3570_v62 = vpop.f32.mrf.mxu1  ;;  %v3575_v63 = vpop.f32.mrf.mxu0 }
 0x1ed   : > { %v3209_v0 = vsel %vm373_vm1, %v1029_v60, %v3200_v61  ;;  %v1681_v17 = vadd.f32 %v1679_v7, %v1675_v19  ;;  %v3192_v62 = vrot.slane %v2487_v58, 4  ;;  %v3259_v7 = vld [vmem:[%s4164_s21] sm:$0xff] (%p3858_p5) }
 0x1ee   : > { %3213 = vst [vmem:[%s4164_s21 + $0x8] sm:$0xff] %v3209_v0  ;;  %v1847_v1 = vpop.f32.mrf.mxu1  ;;  %v1926_v2 = vpop.f32.mrf.mxu0  ;;  %3260 = vst [vmem:[%s3224_s10] sm:$0xff] (%p3858_p5), %v3259_v7 }
 0x1ef   : > { %v1848_v3 = vadd.f32 %v1847_v1, %v1764_v59  ;;  %v1682_v24 = vmax.f32 %v1681_v17, 0.0 }
 0x1f0   : > { %v3580_v4 = vpop.f32.mrf.mxu1  ;;  %v3585_v5 = vpop.f32.mrf.mxu0 }
 0x1f1   : > { %v1930_v8 = vadd.f32 %v1926_v2, %v1848_v3 }
 0x1f2   : > { %v2001_v9 = vpop.f32.mrf.mxu1  ;;  %v2079_v10 = vpop.f32.mrf.mxu0 }
 0x1f3   : > { %v2005_v12 = vadd.f32 %v2001_v9, %v1930_v8 }
 0x1f4   : > { %v3590_v13 = vpop.f32.mrf.mxu1  ;;  %v3595_v14 = vpop.f32.mrf.mxu0 }
 0x1f5   : > { %v2083_v15 = vadd.f32 %v2079_v10, %v2005_v12  ;;  %v3261_v8 = vld [vmem:[%s4164_s21 + $0x8] sm:$0xff] (%p3858_p5) }
 0x1f6   : > { %v2169_v16 = vpop.f32.mrf.mxu1  ;;  %3262 = vst [vmem:[%s3224_s10 + $0x20] sm:$0xff] (%p3858_p5), %v3261_v8 }
 0x1f7   : > { %v2086_v20 = vadd.f32 %v2084_v11, %v2083_v15 }
 0x1f8   : > { %v3600_v21 = vpop.f32.mrf.mxu1 }
 0x1f9   : > { %v2087_v18 = vmax.f32 %v2086_v20, 0.0 }
 0x1fa   : > { %v2252_v22 = vpop.f32.mrf.mxu0  ;;  %v2326_v23 = vpop.f32.mrf.mxu1 }
 0x1fb   : > { %v3203_v25 = vrot.slane %v2087_v18, 4  ;;  %v2253_v36 = vadd.f32 %v2252_v22, %v2169_v16 }
 0x1fc   : > { %v3605_v26 = vpop.f32.mrf.mxu0  ;;  %v3610_v27 = vpop.f32.mrf.mxu1 }
 0x1fd   : > { %v3210_v28 = vsel %vm373_vm1, %v1682_v24, %v3203_v25  ;;  %v2330_v43 = vadd.f32 %v2326_v23, %v2253_v36 }
 0x1fe   : > { %3214 = vst [vmem:[%s4164_s21 + $0x10] sm:$0xff] %v3210_v28  ;;  %v2401_v29 = vpop.f32.mrf.mxu0  ;;  %v2479_v30 = vpop.f32.mrf.mxu1 }
 0x1ff   : > { %v2405_v50 = vadd.f32 %v2401_v29, %v2330_v43 }
 0x200   : > { %v3615_v31 = vpop.f32.mrf.mxu0  ;;  %v3620_v32 = vpop.f32.mrf.mxu1 }
 0x201   : > { %v2483_v57 = vadd.f32 %v2479_v30, %v2405_v50 }
 0x202   : > { %v2577_v33 = vpop.f32.mrf.mxu0 }
 0x203   : > { %v2489_v1 = vadd.f32 %v2487_v58, %v2483_v57 }
 0x204   : > { %v3625_v34 = vpop.f32.mrf.mxu0  ;;  %v2660_v35 = vpop.f32.mrf.mxu1 }
 0x205   : > { %v2661_v37 = vadd.f32 %v2660_v35, %v2577_v33  ;;  %v2490_v4 = vmax.f32 %v2489_v1, 0.0  ;;  %v3263_v9 = vld [vmem:[%s4164_s21 + $0x10] sm:$0xff] (%p3858_p5) }
 0x206   : > { %v3630_v38 = vpop.f32.mrf.mxu1  ;;  %v2734_v39 = vpop.f32.mrf.mxu0  ;;  %3264 = vst [vmem:[%s3224_s10 + $0x40] sm:$0xff] (%p3858_p5), %v3263_v9 }
 0x207   : > { %v2738_v40 = vadd.f32 %v2734_v39, %v2661_v37 }
 0x208   : > { %v3635_v41 = vpop.f32.mrf.mxu0  ;;  %v2809_v42 = vpop.f32.mrf.mxu1 }
 0x209   : > { %v2813_v44 = vadd.f32 %v2809_v42, %v2738_v40 }
 0x20a   : > { %v3640_v45 = vpop.f32.mrf.mxu1  ;;  %v2884_v46 = vpop.f32.mrf.mxu0 }
 0x20b   : > { %v2888_v47 = vadd.f32 %v2884_v46, %v2813_v44 }
 0x20c   : > { %v3645_v48 = vpop.f32.mrf.mxu0  ;;  %v2959_v49 = vpop.f32.mrf.mxu1 }
 0x20d   : > { %v2963_v51 = vadd.f32 %v2959_v49, %v2888_v47 }
 0x20e   : > { %v3650_v52 = vpop.f32.mrf.mxu1  ;;  %v3034_v53 = vpop.f32.mrf.mxu0 }
 0x20f   : > { %v3038_v54 = vadd.f32 %v3034_v53, %v2963_v51 }
 0x210   : > { %v3655_v55 = vpop.f32.mrf.mxu0  ;;  %v3109_v56 = vpop.f32.mrf.mxu1 }
 0x211   : > { %v3113_v59 = vadd.f32 %v3109_v56, %v3038_v54 }
 0x212   : > { %v3187_v60 = vpop.f32.mrf.mxu0  ;;  %v3660_v61 = vpop.f32.mrf.mxu1 }
 0x213   : > { %v3191_v63 = vadd.f32 %v3187_v60, %v3113_v59 }
 0x214   : > { %v3665_v0 = vpop.f32.mrf.mxu0 }
 0x215   : > { %v3194_v2 = vadd.f32 %v3192_v62, %v3191_v63 }
 0x217   : > { %v3195_v3 = vmax.f32 %v3194_v2, 0.0 }
 0x218   : > { %3222 = sbr.rel (!%p3858_p5) target bundleno = 549 (0x225), region = 86 }
 0x219   : > { %v3206_v5 = vrot.slane %v3195_v3, 4 }
 0x21b   : > { %v3211_v6 = vsel %vm373_vm1, %v2490_v4, %v3206_v5 }
 0x21c   : > { %3215 = vst [vmem:[%s4164_s21 + $0x18] sm:$0xff] %v3211_v6 }
 0x223   : > { %v3265_v10 = vld [vmem:[%s4164_s21 + $0x18] sm:$0xff] }
 0x224   : > { %3266 = vst [vmem:[%s3224_s10 + $0x60] sm:$0xff] %v3265_v10 }
 0x225 PF: > { %p13_p13 = scmp.ge.s32.totalorder %s3846_s25, 6   ;;  %s4209_s21 = smov %s3748_s22 }
 0x226   : > { %s4210_s22 = smov %s3856_s28  ;;  %s4211_s23 = smov %s3846_s25 }
 0x227   :  { %15 = sbr.rel (!%p13_p13) target bundleno = 2 (0x2), region = 164 }

</bundles_post_ra>
